<compile_context>
chip_gen: v7x
topology: tpu7x:2x2x1
jax: 0.10.0
libtpu: 0.0.40
codegen_flags: <defaults>
</compile_context>

<pallas_src>
import math

import jax
import jax.numpy as jnp
import numpy as np
from jax.experimental import pallas as pl
from jax.experimental.pallas import tpu as pltpu

LN_EPS = 1e-5


# ---------------------------------------------------------------------------
# In-kernel helpers (operate on a (Bb, T, V, C) batch-chunk as jnp values;
# batch and time are always folded into the matmul M dimension).
# ---------------------------------------------------------------------------

def _bf16(w):
  return w if w.dtype == jnp.bfloat16 else w.astype(jnp.bfloat16)


def _dot(a, b):
  # Weights arrive pre-cast to bf16; only the activation is cast here.
  return jnp.dot(a.astype(jnp.bfloat16), _bf16(b),
                 preferred_element_type=jnp.float32)


def _sigmoid(x):
  return 1.0 / (1.0 + jnp.exp(-x))


def _k_temporal_glu(x, w_ref, b_ref):
  # x: (Bb, T, V, Cin).  w_ref: (Kt*Cin, 3*Cout) bf16 = [P | Q | align] with the
  # align block only at the last tap.  b_ref: (1, 3*Cout) f32.
  Bb, T, V, Cin = x.shape
  Kt = w_ref.shape[0] // Cin
  Cout = w_ref.shape[1] // 3
  T_out = T - Kt + 1
  # im2col over the Kt taps -> a single fused dot.
  taps = [x[:, k:k + T_out] for k in range(Kt)]
  xc = jnp.concatenate(taps, axis=-1).reshape(Bb * T_out * V, Kt * Cin)
  acc = _dot(xc, w_ref[...]) + b_ref[...]
  # GLU: (P + align) * sigmoid(Q); slices consumed immediately.
  out = (acc[:, :Cout] + acc[:, 2 * Cout:]) * _sigmoid(acc[:, Cout:2 * Cout])
  return out.reshape(Bb, T_out, V, Cout)


def _k_cheb_gconv_relu(x, wa_ref, ba_ref, gso_ref, wk_ref, bk_ref):
  # x: (Bb, T, V, Cin).  gso_ref: (V, V) bf16 -- no kron(I_T, gso): the shift is
  # a batched matmul over the folded Bb*T axis.  wk_ref: (Ks*Cout, Cout) bf16
  # (all Chebyshev output projections stacked -> one projection dot).
  Bb, T, V, Cin = x.shape
  Cout = wa_ref.shape[1]
  Ks = wk_ref.shape[0] // Cout
  BT = Bb * T
  x_in = _dot(x.reshape(BT * V, Cin), wa_ref[...]) + ba_ref[...]  # (BT*V, Cout)
  x0 = x_in.reshape(BT, V, Cout)
  basis = [x0]
  if Ks > 1:
    gso_b = jnp.broadcast_to(gso_ref[...], (BT, V, V))   # hoisted, reused
    x1 = jnp.einsum('tuv,tvc->tuc', gso_b, x0.astype(jnp.bfloat16),
                    preferred_element_type=jnp.float32)
    basis.append(x1)
    xm2, xm1 = x0, x1
    for _ in range(2, Ks):
      xk = 2.0 * jnp.einsum('tuv,tvc->tuc', gso_b, xm1.astype(jnp.bfloat16),
                            preferred_element_type=jnp.float32) - xm2
      basis.append(xk)
      xm2, xm1 = xm1, xk
    stk = jnp.concatenate(basis, axis=-1).reshape(BT * V, Ks * Cout)
  else:
    stk = x_in
  out = _dot(stk, wk_ref[...]) + bk_ref[...] + x_in      # bias + residual
  return jnp.maximum(out, 0.0).reshape(Bb, T, V, Cout)   # ReLU


def _k_layernorm(x, g_ref, b_ref):
  # LayerNorm over (V, C) per (batch, timestep); params shipped as (1,1,V,C).
  inv_n = 1.0 / (x.shape[2] * x.shape[3])
  mu = jnp.sum(jnp.sum(x, axis=3, keepdims=True), axis=2, keepdims=True) * inv_n
  xc = x - mu
  var = jnp.sum(jnp.sum(xc * xc, axis=3, keepdims=True), axis=2,
                keepdims=True) * inv_n
  return xc * jax.lax.rsqrt(var + LN_EPS) * g_ref[...] + b_ref[...]


def _k_head(x, w1_ref, b1_ref, w2_ref, b2_ref, we_ref, be_ref):
  # fc1 -> ReLU -> fc2 -> expression_fc, batch & time folded into M.
  Bb, T, V, C = x.shape
  h = x.reshape(Bb * T * V, C)
  h = jnp.maximum(_dot(h, w1_ref[...]) + b1_ref[...], 0.0)
  h = _dot(h, w2_ref[...]) + b2_ref[...]
  if we_ref.shape[0] == 1:                 # expression_fc is a 1x1 Linear
    return h * we_ref[...] + be_ref[...]
  return _dot(h, we_ref[...]) + be_ref[...]


# ---------------------------------------------------------------------------
# Fused whole-network kernel + pallas_call wrapper
# ---------------------------------------------------------------------------

def _make_stgcn_kernel(treedef, n_params):
  def kernel(*refs):
    x_ref = refs[0]
    o_ref = refs[1 + n_params]
    p = jax.tree_util.tree_unflatten(treedef, refs[1:1 + n_params])
    x = x_ref[...]                                       # (Bb, T, V, Cin)
    for blk in p["st_blocks"]:
      x = _k_temporal_glu(x, *blk["tconv1"])
      x = _k_cheb_gconv_relu(x, *blk["gconv"])
      x = _k_temporal_glu(x, *blk["tconv2"])
      x = _k_layernorm(x, *blk["ln"])
      # dropout: identity (inference)
    ob = p["output"]
    x = _k_temporal_glu(x, *ob["tconv"])
    x = _k_layernorm(x, *ob["ln"])
    o_ref[...] = _k_head(x, *ob["fc1"], *ob["fc2"], *p["expr"])  # (Bb*T_f*V, 1)
  return kernel


def _zero_index_map(nd):
  return lambda b: (0,) * nd


def _default_batch_block(B):
  # v7x has 2 TensorCores -> keep a parallel grid so each TC gets a batch
  # chunk; v5e/v6e have one TC -> fold the whole batch into matmul M.
  try:
    kind = jax.devices()[0].device_kind.lower()
  except Exception:
    kind = ""
  n_tc = 2 if "v7" in kind else 1
  if n_tc > 1 and B % n_tc == 0:
    return B // n_tc
  return B


def _final_time_len(kparams, T, c_in):
  c = c_in
  T_f = T
  for blk in kparams["st_blocks"]:
    w1 = blk["tconv1"][0]
    T_f -= w1.shape[0] // c - 1
    c_g = blk["gconv"][0].shape[1]
    w2 = blk["tconv2"][0]
    T_f -= w2.shape[0] // c_g - 1
    c = w2.shape[1] // 3
  wo = kparams["output"]["tconv"][0]
  T_f -= wo.shape[0] // c - 1
  return T_f


def stgcn_pallas_forward(x_nchw, kparams, batch_block=None):
  x = jnp.transpose(x_nchw, (0, 2, 3, 1)).astype(jnp.float32)   # (B, T, V, C)
  B, T, V, Cin = x.shape
  T_f = _final_time_len(kparams, T, Cin)
  if batch_block is None:
    batch_block = _default_batch_block(B)

  leaves, treedef = jax.tree_util.tree_flatten(kparams)
  kernel = _make_stgcn_kernel(treedef, len(leaves))

  in_specs = [pl.BlockSpec((batch_block, T, V, Cin), lambda b: (b, 0, 0, 0))]
  for leaf in leaves:
    in_specs.append(pl.BlockSpec(tuple(leaf.shape), _zero_index_map(leaf.ndim)))

  out = pl.pallas_call(
      kernel,
      grid=(B // batch_block,),
      in_specs=in_specs,
      out_specs=pl.BlockSpec((batch_block * T_f * V, 1), lambda b: (b, 0)),
      out_shape=jax.ShapeDtypeStruct((B * T_f * V, 1), jnp.float32),
      compiler_params=pltpu.CompilerParams(
          dimension_semantics=("parallel",)),
  )(x, *leaves)
  return out.reshape(B, 1, T_f, V)                        # NCHW (B, 1, T_f, V)


# ---------------------------------------------------------------------------
# Parameter prep (one-time, host side): fused / bf16 pre-cast kernel weights
# ---------------------------------------------------------------------------

def _fuse_tconv_params(tp):
  wp, bp, wq, bq, wa, ba = tp
  Kt, Cin, Cout = wp.shape
  wa_k = jnp.zeros((Kt, Cin, Cout), jnp.float32).at[Kt - 1].set(wa)
  w = jnp.concatenate([wp, wq, wa_k], axis=2)             # (Kt, Cin, 3*Cout)
  w = w.reshape(Kt * Cin, 3 * Cout).astype(jnp.bfloat16)  # im2col layout, bf16
  b = jnp.concatenate([bp, bq, ba], axis=1)               # (1, 3*Cout) f32
  return (w, b)


def prepare_kernel_params(params):
  """Fused [P|Q|align] im2col temporal-conv weights, stacked Chebyshev
  projection weights, bf16 pre-cast of every matmul weight (incl. gso),
  and (1,1,V,C) LayerNorm scale/shift."""
  st_blocks = []
  for blk in params["st_blocks"]:
    wa, ba, gso, wk, bk = blk["gconv"]
    Ks, Cg = wk.shape[0], wk.shape[1]
    g, b = blk["ln"]
    st_blocks.append(dict(
        tconv1=_fuse_tconv_params(blk["tconv1"]),
        gconv=(wa.astype(jnp.bfloat16), ba, gso.astype(jnp.bfloat16),
               wk.reshape(Ks * Cg, wk.shape[2]).astype(jnp.bfloat16), bk),
        tconv2=_fuse_tconv_params(blk["tconv2"]),
        ln=(g.reshape(1, 1, *g.shape), b.reshape(1, 1, *b.shape)),
    ))
  ob = params["output"]
  g, b = ob["ln"]
  we, be = params["expr"]
  output = dict(
      tconv=_fuse_tconv_params(ob["tconv"]),
      ln=(g.reshape(1, 1, *g.shape), b.reshape(1, 1, *b.shape)),
      fc1=(ob["fc1"][0].astype(jnp.bfloat16), ob["fc1"][1]),
      fc2=(ob["fc2"][0].astype(jnp.bfloat16), ob["fc2"][1]),
  )
  expr = (we if we.shape[0] == 1 else we.astype(jnp.bfloat16), be)
  return dict(st_blocks=st_blocks, output=output, expr=expr)


# ---------------------------------------------------------------------------
# Pure-JAX reference (independent, einsum-based, raw params)
# ---------------------------------------------------------------------------

def _ref_mm(x, w):
  return jnp.einsum('...c,cd->...d', x.astype(jnp.bfloat16),
                    w.astype(jnp.bfloat16), preferred_element_type=jnp.float32)


def _ref_temporal_glu(x, wp, bp, wq, bq, wa, ba):
  Kt = wp.shape[0]
  T_out = x.shape[1] - Kt + 1
  p = jnp.zeros(x.shape[:1] + (T_out, x.shape[2], wp.shape[2]), jnp.float32) + bp[0]
  q = jnp.zeros_like(p) + bq[0]
  for k in range(Kt):
    xk = x[:, k:k + T_out]
    p = p + _ref_mm(xk, wp[k])
    q = q + _ref_mm(xk, wq[k])
  x_in = _ref_mm(x[:, Kt - 1:], wa) + ba[0]
  return (p + x_in) * jax.nn.sigmoid(q)


def _ref_cheb_gc_relu(x, wa, ba, gso, wk, bk):
  x_in = _ref_mm(x, wa) + ba[0]
  Ks = wk.shape[0]
  gso_b = gso.astype(jnp.bfloat16)
  xs = [x_in]
  if Ks > 1:
    xs.append(jnp.einsum('hv,btvc->bthc', gso_b, x_in.astype(jnp.bfloat16),
                         preferred_element_type=jnp.float32))
    for k in range(2, Ks):
      xs.append(2.0 * jnp.einsum('hv,btvc->bthc', gso_b,
                                 xs[-1].astype(jnp.bfloat16),
                                 preferred_element_type=jnp.float32) - xs[-2])
  out = sum(_ref_mm(xs[k], wk[k]) for k in range(Ks)) + bk[0]
  return jnp.maximum(out + x_in, 0.0)


def _ref_layer_norm(x, g, b):
  mu = jnp.mean(x, axis=(2, 3), keepdims=True)
  var = jnp.mean(jnp.square(x - mu), axis=(2, 3), keepdims=True)
  return (x - mu) * jax.lax.rsqrt(var + LN_EPS) * g + b


def _ref_mlp_head(x, w1, b1, w2, b2, we, be):
  h = jnp.maximum(_ref_mm(x, w1) + b1[0], 0.0)
  h = _ref_mm(h, w2) + b2[0]
  if we.shape[0] == 1:
    return h * we[0, 0] + be[0, 0]
  return _ref_mm(h, we) + be[0]


def reference_forward(x_nchw, params):
  x = jnp.transpose(x_nchw, (0, 2, 3, 1)).astype(jnp.float32)
  for blk in params["st_blocks"]:
    x = _ref_temporal_glu(x, *blk["tconv1"])
    x = _ref_cheb_gc_relu(x, *blk["gconv"])
    x = _ref_temporal_glu(x, *blk["tconv2"])
    x = _ref_layer_norm(x, *blk["ln"])
  ob = params["output"]
  x = _ref_temporal_glu(x, *ob["tconv"])
  x = _ref_layer_norm(x, *ob["ln"])
  x = _ref_mlp_head(x, *ob["fc1"], *ob["fc2"], *params["expr"])
  return jnp.transpose(x, (0, 3, 1, 2))


# ---------------------------------------------------------------------------
# Parameter initialization (deterministic, synthetic)
# ---------------------------------------------------------------------------

def _dense_init(key, shape, fan_in):
  return (jax.random.normal(key, shape, jnp.float32) / math.sqrt(fan_in)
          ).astype(jnp.float32)


def _align_params(key, c_in, c_out):
  if c_in > c_out:
    kw, kb = jax.random.split(key)
    w = _dense_init(kw, (c_in, c_out), c_in)
    b = 0.1 * jax.random.normal(kb, (1, c_out), jnp.float32)
  elif c_in < c_out:
    w = jnp.concatenate([jnp.eye(c_in, dtype=jnp.float32),
                         jnp.zeros((c_in, c_out - c_in), jnp.float32)], axis=1)
    b = jnp.zeros((1, c_out), jnp.float32)
  else:
    w = jnp.eye(c_in, dtype=jnp.float32)
    b = jnp.zeros((1, c_out), jnp.float32)
  return w, b


def _tconv_params(key, Kt, c_in, c_out):
  k1, k2, k3, k4, k5 = jax.random.split(key, 5)
  wp = _dense_init(k1, (Kt, c_in, c_out), Kt * c_in)
  wq = _dense_init(k2, (Kt, c_in, c_out), Kt * c_in)
  bp = 0.1 * jax.random.normal(k3, (1, c_out), jnp.float32)
  bq = 0.1 * jax.random.normal(k4, (1, c_out), jnp.float32)
  wa, ba = _align_params(k5, c_in, c_out)
  return (wp, bp, wq, bq, wa, ba)


def _gconv_params(key, Ks, c_in, c_out, gso):
  k1, k2, k3 = jax.random.split(key, 3)
  wa, ba = _align_params(k1, c_in, c_out)
  wk = _dense_init(k2, (Ks, c_out, c_out), Ks * c_out)
  bk = 0.1 * jax.random.normal(k3, (1, c_out), jnp.float32)
  return (wa, ba, gso, wk, bk)


def _fc_params(key, c_in, c_out):
  k1, k2 = jax.random.split(key)
  return (_dense_init(k1, (c_in, c_out), c_in),
          0.1 * jax.random.normal(k2, (1, c_out), jnp.float32))


def make_gso(n_vertex):
  # Deterministic Chebyshev-rescaled normalized Laplacian of a ring graph.
  i = np.arange(n_vertex)
  d = np.abs(i[:, None] - i[None, :])
  a = ((d == 1) | (d == n_vertex - 1)).astype(np.float32)
  dinv = 1.0 / np.sqrt(a.sum(1))
  lap = np.eye(n_vertex, dtype=np.float32) - dinv[:, None] * a * dinv[None, :]
  return jnp.asarray(lap - np.eye(n_vertex, dtype=np.float32))


def init_params(key, blocks, Kt, Ks, n_vertex, Ko):
  gso = make_gso(n_vertex)
  keys = iter(jax.random.split(key, 32))
  st_blocks = []
  for l in range(len(blocks) - 3):
    c_prev = blocks[l][-1]
    ch = blocks[l + 1]
    st_blocks.append(dict(
        tconv1=_tconv_params(next(keys), Kt, c_prev, ch[0]),
        gconv=_gconv_params(next(keys), Ks, ch[0], ch[1], gso),
        tconv2=_tconv_params(next(keys), Kt, ch[1], ch[2]),
        ln=(jnp.ones((n_vertex, ch[2]), jnp.float32),
            jnp.zeros((n_vertex, ch[2]), jnp.float32)),
    ))
  last_block_channel = blocks[-2][-1]          # as written in the module code
  ch = blocks[-2]
  output = dict(
      tconv=_tconv_params(next(keys), Ko, last_block_channel, ch[0]),
      ln=(jnp.ones((n_vertex, ch[0]), jnp.float32),
          jnp.zeros((n_vertex, ch[0]), jnp.float32)),
      fc1=_fc_params(next(keys), ch[0], ch[1]),
      fc2=_fc_params(next(keys), ch[1], blocks[-1][0]),
  )
  expr = _fc_params(next(keys), blocks[-1][0], 1)   # expression_fc: Linear(C,1)
  return dict(st_blocks=st_blocks, output=output, expr=expr)


# ---------------------------------------------------------------------------
# Main
# ---------------------------------------------------------------------------

if __name__ == "__main__":
  B, V, T = 2, 16, 12
  Kt, Ks = 3, 3
  blocks = [[4], [8, 4, 8], [8, 4, 8], [16, 8], [1]]
  Ko = T - (len(blocks) - 3) * 2 * (Kt - 1)   # = 4 (> 1 -> OutputBlock path)

  key = jax.random.PRNGKey(0)
  k_x, k_p = jax.random.split(key)
  x = jax.random.normal(k_x, (B, blocks[0][0], T, V), jnp.float32)  # NCHW
  params = init_params(k_p, blocks, Kt, Ks, V, Ko)
  kparams = prepare_kernel_params(params)     # one-time kernel-friendly prep

  run = jax.jit(stgcn_pallas_forward)
  out = jax.block_until_ready(run(x, kparams))
  assert out.shape == (B, 1, 1, V), out.shape

  ref = jax.block_until_ready(jax.jit(reference_forward)(x, params))
  np.testing.assert_allclose(np.asarray(out), np.asarray(ref),
                             rtol=1e-2, atol=1e-2)
  print("KERNEL_OK")
</pallas_src>

<mosaic_0001>
module attributes {stable_mosaic.version = 11 : i64} {
  func.func @kernel(%arg0: i32, %arg1: memref<2x12x16x4xf32, #tpu.memory_space<vmem>>, %arg2: memref<1x1xf32, #tpu.memory_space<vmem>>, %arg3: memref<1x1xf32, #tpu.memory_space<vmem>>, %arg4: memref<16x8xbf16, #tpu.memory_space<vmem>>, %arg5: memref<1x8xf32, #tpu.memory_space<vmem>>, %arg6: memref<8x1xbf16, #tpu.memory_space<vmem>>, %arg7: memref<1x1xf32, #tpu.memory_space<vmem>>, %arg8: memref<1x1x16x16xf32, #tpu.memory_space<vmem>>, %arg9: memref<1x1x16x16xf32, #tpu.memory_space<vmem>>, %arg10: memref<32x48xbf16, #tpu.memory_space<vmem>>, %arg11: memref<1x48xf32, #tpu.memory_space<vmem>>, %arg12: memref<8x4xbf16, #tpu.memory_space<vmem>>, %arg13: memref<1x4xf32, #tpu.memory_space<vmem>>, %arg14: memref<16x16xbf16, #tpu.memory_space<vmem>>, %arg15: memref<12x4xbf16, #tpu.memory_space<vmem>>, %arg16: memref<1x4xf32, #tpu.memory_space<vmem>>, %arg17: memref<1x1x16x8xf32, #tpu.memory_space<vmem>>, %arg18: memref<1x1x16x8xf32, #tpu.memory_space<vmem>>, %arg19: memref<12x24xbf16, #tpu.memory_space<vmem>>, %arg20: memref<1x24xf32, #tpu.memory_space<vmem>>, %arg21: memref<12x24xbf16, #tpu.memory_space<vmem>>, %arg22: memref<1x24xf32, #tpu.memory_space<vmem>>, %arg23: memref<8x4xbf16, #tpu.memory_space<vmem>>, %arg24: memref<1x4xf32, #tpu.memory_space<vmem>>, %arg25: memref<16x16xbf16, #tpu.memory_space<vmem>>, %arg26: memref<12x4xbf16, #tpu.memory_space<vmem>>, %arg27: memref<1x4xf32, #tpu.memory_space<vmem>>, %arg28: memref<1x1x16x8xf32, #tpu.memory_space<vmem>>, %arg29: memref<1x1x16x8xf32, #tpu.memory_space<vmem>>, %arg30: memref<24x24xbf16, #tpu.memory_space<vmem>>, %arg31: memref<1x24xf32, #tpu.memory_space<vmem>>, %arg32: memref<12x24xbf16, #tpu.memory_space<vmem>>, %arg33: memref<1x24xf32, #tpu.memory_space<vmem>>, %arg34: memref<32x1xf32, #tpu.memory_space<vmem>>) attributes {dimension_semantics = [#tpu.dimension_semantics<parallel>], iteration_bounds = array<i64: 1>, scalar_prefetch = 0 : i64, scratch_operands = 0 : i64, tpu.core_type = #tpu.core_type<tc>, window_params = [{transform_indices = @transform_0, window_bounds = array<i64: 2, 12, 16, 4>}, {pipeline_mode = #tpu.pipeline_mode<synchronous>, transform_indices = @transform_1, window_bounds = array<i64: 1, 1>}, {pipeline_mode = #tpu.pipeline_mode<synchronous>, transform_indices = @transform_2, window_bounds = array<i64: 1, 1>}, {pipeline_mode = #tpu.pipeline_mode<synchronous>, transform_indices = @transform_3, window_bounds = array<i64: 16, 8>}, {pipeline_mode = #tpu.pipeline_mode<synchronous>, transform_indices = @transform_4, window_bounds = array<i64: 1, 8>}, {pipeline_mode = #tpu.pipeline_mode<synchronous>, transform_indices = @transform_5, window_bounds = array<i64: 8, 1>}, {pipeline_mode = #tpu.pipeline_mode<synchronous>, transform_indices = @transform_6, window_bounds = array<i64: 1, 1>}, {pipeline_mode = #tpu.pipeline_mode<synchronous>, transform_indices = @transform_7, window_bounds = array<i64: 1, 1, 16, 16>}, {pipeline_mode = #tpu.pipeline_mode<synchronous>, transform_indices = @transform_8, window_bounds = array<i64: 1, 1, 16, 16>}, {pipeline_mode = #tpu.pipeline_mode<synchronous>, transform_indices = @transform_9, window_bounds = array<i64: 32, 48>}, {pipeline_mode = #tpu.pipeline_mode<synchronous>, transform_indices = @transform_10, window_bounds = array<i64: 1, 48>}, {pipeline_mode = #tpu.pipeline_mode<synchronous>, transform_indices = @transform_11, window_bounds = array<i64: 8, 4>}, {pipeline_mode = #tpu.pipeline_mode<synchronous>, transform_indices = @transform_12, window_bounds = array<i64: 1, 4>}, {pipeline_mode = #tpu.pipeline_mode<synchronous>, transform_indices = @transform_13, window_bounds = array<i64: 16, 16>}, {pipeline_mode = #tpu.pipeline_mode<synchronous>, transform_indices = @transform_14, window_bounds = array<i64: 12, 4>}, {pipeline_mode = #tpu.pipeline_mode<synchronous>, transform_indices = @transform_15, window_bounds = array<i64: 1, 4>}, {pipeline_mode = #tpu.pipeline_mode<synchronous>, transform_indices = @transform_16, window_bounds = array<i64: 1, 1, 16, 8>}, {pipeline_mode = #tpu.pipeline_mode<synchronous>, transform_indices = @transform_17, window_bounds = array<i64: 1, 1, 16, 8>}, {pipeline_mode = #tpu.pipeline_mode<synchronous>, transform_indices = @transform_18, window_bounds = array<i64: 12, 24>}, {pipeline_mode = #tpu.pipeline_mode<synchronous>, transform_indices = @transform_19, window_bounds = array<i64: 1, 24>}, {pipeline_mode = #tpu.pipeline_mode<synchronous>, transform_indices = @transform_20, window_bounds = array<i64: 12, 24>}, {pipeline_mode = #tpu.pipeline_mode<synchronous>, transform_indices = @transform_21, window_bounds = array<i64: 1, 24>}, {pipeline_mode = #tpu.pipeline_mode<synchronous>, transform_indices = @transform_22, window_bounds = array<i64: 8, 4>}, {pipeline_mode = #tpu.pipeline_mode<synchronous>, transform_indices = @transform_23, window_bounds = array<i64: 1, 4>}, {pipeline_mode = #tpu.pipeline_mode<synchronous>, transform_indices = @transform_24, window_bounds = array<i64: 16, 16>}, {pipeline_mode = #tpu.pipeline_mode<synchronous>, transform_indices = @transform_25, window_bounds = array<i64: 12, 4>}, {pipeline_mode = #tpu.pipeline_mode<synchronous>, transform_indices = @transform_26, window_bounds = array<i64: 1, 4>}, {pipeline_mode = #tpu.pipeline_mode<synchronous>, transform_indices = @transform_27, window_bounds = array<i64: 1, 1, 16, 8>}, {pipeline_mode = #tpu.pipeline_mode<synchronous>, transform_indices = @transform_28, window_bounds = array<i64: 1, 1, 16, 8>}, {pipeline_mode = #tpu.pipeline_mode<synchronous>, transform_indices = @transform_29, window_bounds = array<i64: 24, 24>}, {pipeline_mode = #tpu.pipeline_mode<synchronous>, transform_indices = @transform_30, window_bounds = array<i64: 1, 24>}, {pipeline_mode = #tpu.pipeline_mode<synchronous>, transform_indices = @transform_31, window_bounds = array<i64: 12, 24>}, {pipeline_mode = #tpu.pipeline_mode<synchronous>, transform_indices = @transform_32, window_bounds = array<i64: 1, 24>}, {transform_indices = @transform_33, window_bounds = array<i64: 32, 1>}]} {
    %c0 = arith.constant 0 : index
    %c0_0 = arith.constant 0 : index
    %c0_1 = arith.constant 0 : index
    %c0_2 = arith.constant 0 : index
    %0 = vector.load %arg1[%c0, %c0_0, %c0_1, %c0_2] : memref<2x12x16x4xf32, #tpu.memory_space<vmem>>, vector<2x12x16x4xf32>
    %1 = vector.extract_strided_slice %0 {offsets = [0, 0, 0, 0], sizes = [2, 10, 16, 4], strides = [1, 1, 1, 1]} : vector<2x12x16x4xf32> to vector<2x10x16x4xf32>
    %2 = vector.extract_strided_slice %0 {offsets = [0, 1, 0, 0], sizes = [2, 10, 16, 4], strides = [1, 1, 1, 1]} : vector<2x12x16x4xf32> to vector<2x10x16x4xf32>
    %3 = vector.extract_strided_slice %0 {offsets = [0, 2, 0, 0], sizes = [2, 10, 16, 4], strides = [1, 1, 1, 1]} : vector<2x12x16x4xf32> to vector<2x10x16x4xf32>
    %4 = tpu.concatenate %1, %2, %3 in 3 : vector<2x10x16x4xf32>, vector<2x10x16x4xf32>, vector<2x10x16x4xf32> -> vector<2x10x16x12xf32>
    %5 = vector.shape_cast %4 : vector<2x10x16x12xf32> to vector<320x12xf32>
    %c0_3 = arith.constant 0 : index
    %c0_4 = arith.constant 0 : index
    %6 = vector.load %arg19[%c0_3, %c0_4] : memref<12x24xbf16, #tpu.memory_space<vmem>>, vector<12x24xbf16>
    %7 = arith.truncf %5 : vector<320x12xf32> to vector<320x12xbf16>
    %cst = arith.constant dense<0.000000e+00> : vector<320x24xf32>
    %8 = tpu.matmul %7, %6, %cst {dimension_numbers = #tpu.dot_dimension_numbers<[1], [0], [0], [1], [0, 0, 1, 1], [], []>} : vector<320x12xbf16>, vector<12x24xbf16>, vector<320x24xf32> -> vector<320x24xf32>
    %c0_5 = arith.constant 0 : index
    %c0_6 = arith.constant 0 : index
    %9 = vector.load %arg20[%c0_5, %c0_6] : memref<1x24xf32, #tpu.memory_space<vmem>>, vector<1x24xf32>
    %10 = vector.broadcast %9 : vector<1x24xf32> to vector<320x24xf32>
    %11 = arith.addf %8, %10 : vector<320x24xf32>
    %12 = vector.extract_strided_slice %11 {offsets = [0, 0], sizes = [320, 8], strides = [1, 1]} : vector<320x24xf32> to vector<320x8xf32>
    %13 = vector.extract_strided_slice %11 {offsets = [0, 16], sizes = [320, 8], strides = [1, 1]} : vector<320x24xf32> to vector<320x8xf32>
    %14 = arith.addf %12, %13 : vector<320x8xf32>
    %15 = vector.extract_strided_slice %11 {offsets = [0, 8], sizes = [320, 8], strides = [1, 1]} : vector<320x24xf32> to vector<320x8xf32>
    %cst_7 = arith.constant 0.000000e+00 : f32
    %16 = vector.broadcast %cst_7 : f32 to vector<320x8xf32>
    %17 = arith.subf %16, %15 : vector<320x8xf32>
    %18 = math.exp %17 : vector<320x8xf32>
    %cst_8 = arith.constant 1.000000e+00 : f32
    %19 = vector.broadcast %cst_8 : f32 to vector<320x8xf32>
    %20 = arith.addf %19, %18 : vector<320x8xf32>
    %cst_9 = arith.constant 1.000000e+00 : f32
    %21 = vector.broadcast %cst_9 : f32 to vector<320x8xf32>
    %22 = arith.divf %21, %20 : vector<320x8xf32>
    %23 = arith.mulf %14, %22 : vector<320x8xf32>
    %24 = vector.shape_cast %23 : vector<320x8xf32> to vector<2x10x16x8xf32>
    %25 = vector.shape_cast %24 : vector<2x10x16x8xf32> to vector<320x8xf32>
    %c0_10 = arith.constant 0 : index
    %c0_11 = arith.constant 0 : index
    %26 = vector.load %arg12[%c0_10, %c0_11] : memref<8x4xbf16, #tpu.memory_space<vmem>>, vector<8x4xbf16>
    %27 = arith.truncf %25 : vector<320x8xf32> to vector<320x8xbf16>
    %cst_12 = arith.constant dense<0.000000e+00> : vector<320x4xf32>
    %28 = tpu.matmul %27, %26, %cst_12 {dimension_numbers = #tpu.dot_dimension_numbers<[1], [0], [0], [1], [0, 0, 1, 1], [], []>} : vector<320x8xbf16>, vector<8x4xbf16>, vector<320x4xf32> -> vector<320x4xf32>
    %c0_13 = arith.constant 0 : index
    %c0_14 = arith.constant 0 : index
    %29 = vector.load %arg13[%c0_13, %c0_14] : memref<1x4xf32, #tpu.memory_space<vmem>>, vector<1x4xf32>
    %30 = vector.broadcast %29 : vector<1x4xf32> to vector<320x4xf32>
    %31 = arith.addf %28, %30 : vector<320x4xf32>
    %32 = vector.shape_cast %31 : vector<320x4xf32> to vector<20x16x4xf32>
    %c0_15 = arith.constant 0 : index
    %c0_16 = arith.constant 0 : index
    %33 = vector.load %arg14[%c0_15, %c0_16] : memref<16x16xbf16, #tpu.memory_space<vmem>>, vector<16x16xbf16>
    %34 = vector.shape_cast %33 : vector<16x16xbf16> to vector<1x16x16xbf16>
    %35 = vector.broadcast %34 : vector<1x16x16xbf16> to vector<20x16x16xbf16>
    %36 = arith.truncf %32 : vector<20x16x4xf32> to vector<20x16x4xbf16>
    "tpu.trace_start"() <{level = 10 : i32, message = "tuv,tvc->tuc"}> : () -> ()
    %cst_17 = arith.constant dense<0.000000e+00> : vector<20x16x4xf32>
    %37 = tpu.matmul %35, %36, %cst_17 {dimension_numbers = #tpu.dot_dimension_numbers<[2], [1], [1], [2], [0, 0, 0, 1, 1, 2], [0], [0]>} : vector<20x16x16xbf16>, vector<20x16x4xbf16>, vector<20x16x4xf32> -> vector<20x16x4xf32>
    "tpu.trace_stop"() : () -> ()
    %38 = arith.truncf %37 : vector<20x16x4xf32> to vector<20x16x4xbf16>
    "tpu.trace_start"() <{level = 10 : i32, message = "tuv,tvc->tuc"}> : () -> ()
    %cst_18 = arith.constant dense<0.000000e+00> : vector<20x16x4xf32>
    %39 = tpu.matmul %35, %38, %cst_18 {dimension_numbers = #tpu.dot_dimension_numbers<[2], [1], [1], [2], [0, 0, 0, 1, 1, 2], [0], [0]>} : vector<20x16x16xbf16>, vector<20x16x4xbf16>, vector<20x16x4xf32> -> vector<20x16x4xf32>
    "tpu.trace_stop"() : () -> ()
    %cst_19 = arith.constant 2.000000e+00 : f32
    %40 = vector.broadcast %cst_19 : f32 to vector<20x16x4xf32>
    %41 = arith.mulf %40, %39 : vector<20x16x4xf32>
    %42 = arith.subf %41, %32 : vector<20x16x4xf32>
    %43 = tpu.concatenate %32, %37, %42 in 2 : vector<20x16x4xf32>, vector<20x16x4xf32>, vector<20x16x4xf32> -> vector<20x16x12xf32>
    %44 = vector.shape_cast %43 : vector<20x16x12xf32> to vector<320x12xf32>
    %c0_20 = arith.constant 0 : index
    %c0_21 = arith.constant 0 : index
    %45 = vector.load %arg15[%c0_20, %c0_21] : memref<12x4xbf16, #tpu.memory_space<vmem>>, vector<12x4xbf16>
    %46 = arith.truncf %44 : vector<320x12xf32> to vector<320x12xbf16>
    %cst_22 = arith.constant dense<0.000000e+00> : vector<320x4xf32>
    %47 = tpu.matmul %46, %45, %cst_22 {dimension_numbers = #tpu.dot_dimension_numbers<[1], [0], [0], [1], [0, 0, 1, 1], [], []>} : vector<320x12xbf16>, vector<12x4xbf16>, vector<320x4xf32> -> vector<320x4xf32>
    %c0_23 = arith.constant 0 : index
    %c0_24 = arith.constant 0 : index
    %48 = vector.load %arg16[%c0_23, %c0_24] : memref<1x4xf32, #tpu.memory_space<vmem>>, vector<1x4xf32>
    %49 = vector.broadcast %48 : vector<1x4xf32> to vector<320x4xf32>
    %50 = arith.addf %47, %49 : vector<320x4xf32>
    %51 = arith.addf %50, %31 : vector<320x4xf32>
    %cst_25 = arith.constant 0.000000e+00 : f32
    %52 = vector.broadcast %cst_25 : f32 to vector<320x4xf32>
    %53 = arith.maximumf %51, %52 : vector<320x4xf32>
    %54 = vector.shape_cast %53 : vector<320x4xf32> to vector<2x10x16x4xf32>
    %55 = vector.extract_strided_slice %54 {offsets = [0, 0, 0, 0], sizes = [2, 8, 16, 4], strides = [1, 1, 1, 1]} : vector<2x10x16x4xf32> to vector<2x8x16x4xf32>
    %56 = vector.extract_strided_slice %54 {offsets = [0, 1, 0, 0], sizes = [2, 8, 16, 4], strides = [1, 1, 1, 1]} : vector<2x10x16x4xf32> to vector<2x8x16x4xf32>
    %57 = vector.extract_strided_slice %54 {offsets = [0, 2, 0, 0], sizes = [2, 8, 16, 4], strides = [1, 1, 1, 1]} : vector<2x10x16x4xf32> to vector<2x8x16x4xf32>
    %58 = tpu.concatenate %55, %56, %57 in 3 : vector<2x8x16x4xf32>, vector<2x8x16x4xf32>, vector<2x8x16x4xf32> -> vector<2x8x16x12xf32>
    %59 = vector.shape_cast %58 : vector<2x8x16x12xf32> to vector<256x12xf32>
    %c0_26 = arith.constant 0 : index
    %c0_27 = arith.constant 0 : index
    %60 = vector.load %arg21[%c0_26, %c0_27] : memref<12x24xbf16, #tpu.memory_space<vmem>>, vector<12x24xbf16>
    %61 = arith.truncf %59 : vector<256x12xf32> to vector<256x12xbf16>
    %cst_28 = arith.constant dense<0.000000e+00> : vector<256x24xf32>
    %62 = tpu.matmul %61, %60, %cst_28 {dimension_numbers = #tpu.dot_dimension_numbers<[1], [0], [0], [1], [0, 0, 1, 1], [], []>} : vector<256x12xbf16>, vector<12x24xbf16>, vector<256x24xf32> -> vector<256x24xf32>
    %c0_29 = arith.constant 0 : index
    %c0_30 = arith.constant 0 : index
    %63 = vector.load %arg22[%c0_29, %c0_30] : memref<1x24xf32, #tpu.memory_space<vmem>>, vector<1x24xf32>
    %64 = vector.broadcast %63 : vector<1x24xf32> to vector<256x24xf32>
    %65 = arith.addf %62, %64 : vector<256x24xf32>
    %66 = vector.extract_strided_slice %65 {offsets = [0, 0], sizes = [256, 8], strides = [1, 1]} : vector<256x24xf32> to vector<256x8xf32>
    %67 = vector.extract_strided_slice %65 {offsets = [0, 16], sizes = [256, 8], strides = [1, 1]} : vector<256x24xf32> to vector<256x8xf32>
    %68 = arith.addf %66, %67 : vector<256x8xf32>
    %69 = vector.extract_strided_slice %65 {offsets = [0, 8], sizes = [256, 8], strides = [1, 1]} : vector<256x24xf32> to vector<256x8xf32>
    %cst_31 = arith.constant 0.000000e+00 : f32
    %70 = vector.broadcast %cst_31 : f32 to vector<256x8xf32>
    %71 = arith.subf %70, %69 : vector<256x8xf32>
    %72 = math.exp %71 : vector<256x8xf32>
    %cst_32 = arith.constant 1.000000e+00 : f32
    %73 = vector.broadcast %cst_32 : f32 to vector<256x8xf32>
    %74 = arith.addf %73, %72 : vector<256x8xf32>
    %cst_33 = arith.constant 1.000000e+00 : f32
    %75 = vector.broadcast %cst_33 : f32 to vector<256x8xf32>
    %76 = arith.divf %75, %74 : vector<256x8xf32>
    %77 = arith.mulf %68, %76 : vector<256x8xf32>
    %78 = vector.shape_cast %77 : vector<256x8xf32> to vector<2x8x16x8xf32>
    %cst_34 = arith.constant dense<0.000000e+00> : vector<2x8x16xf32>
    %79 = vector.multi_reduction <add>, %78, %cst_34 [3] : vector<2x8x16x8xf32> to vector<2x8x16xf32>
    %80 = vector.shape_cast %79 : vector<2x8x16xf32> to vector<2x8x16x1xf32>
    %cst_35 = arith.constant dense<0.000000e+00> : vector<2x8x1xf32>
    %81 = vector.multi_reduction <add>, %80, %cst_35 [2] : vector<2x8x16x1xf32> to vector<2x8x1xf32>
    %82 = vector.shape_cast %81 : vector<2x8x1xf32> to vector<2x8x1x1xf32>
    %cst_36 = arith.constant 7.812500e-03 : f32
    %83 = vector.broadcast %cst_36 : f32 to vector<2x8x1x1xf32>
    %84 = arith.mulf %82, %83 : vector<2x8x1x1xf32>
    %85 = vector.broadcast %84 : vector<2x8x1x1xf32> to vector<2x8x16x8xf32>
    %86 = arith.subf %78, %85 : vector<2x8x16x8xf32>
    %87 = arith.mulf %86, %86 : vector<2x8x16x8xf32>
    %cst_37 = arith.constant dense<0.000000e+00> : vector<2x8x16xf32>
    %88 = vector.multi_reduction <add>, %87, %cst_37 [3] : vector<2x8x16x8xf32> to vector<2x8x16xf32>
    %89 = vector.shape_cast %88 : vector<2x8x16xf32> to vector<2x8x16x1xf32>
    %cst_38 = arith.constant dense<0.000000e+00> : vector<2x8x1xf32>
    %90 = vector.multi_reduction <add>, %89, %cst_38 [2] : vector<2x8x16x1xf32> to vector<2x8x1xf32>
    %91 = vector.shape_cast %90 : vector<2x8x1xf32> to vector<2x8x1x1xf32>
    %cst_39 = arith.constant 7.812500e-03 : f32
    %92 = vector.broadcast %cst_39 : f32 to vector<2x8x1x1xf32>
    %93 = arith.mulf %91, %92 : vector<2x8x1x1xf32>
    %cst_40 = arith.constant 9.99999974E-6 : f32
    %94 = vector.broadcast %cst_40 : f32 to vector<2x8x1x1xf32>
    %95 = arith.addf %93, %94 : vector<2x8x1x1xf32>
    %96 = math.rsqrt %95 : vector<2x8x1x1xf32>
    %97 = vector.broadcast %96 : vector<2x8x1x1xf32> to vector<2x8x16x8xf32>
    %98 = arith.mulf %86, %97 : vector<2x8x16x8xf32>
    %c0_41 = arith.constant 0 : index
    %c0_42 = arith.constant 0 : index
    %c0_43 = arith.constant 0 : index
    %c0_44 = arith.constant 0 : index
    %99 = vector.load %arg17[%c0_41, %c0_42, %c0_43, %c0_44] : memref<1x1x16x8xf32, #tpu.memory_space<vmem>>, vector<1x1x16x8xf32>
    %100 = vector.broadcast %99 : vector<1x1x16x8xf32> to vector<2x8x16x8xf32>
    %101 = arith.mulf %98, %100 : vector<2x8x16x8xf32>
    %c0_45 = arith.constant 0 : index
    %c0_46 = arith.constant 0 : index
    %c0_47 = arith.constant 0 : index
    %c0_48 = arith.constant 0 : index
    %102 = vector.load %arg18[%c0_45, %c0_46, %c0_47, %c0_48] : memref<1x1x16x8xf32, #tpu.memory_space<vmem>>, vector<1x1x16x8xf32>
    %103 = vector.broadcast %102 : vector<1x1x16x8xf32> to vector<2x8x16x8xf32>
    %104 = arith.addf %101, %103 : vector<2x8x16x8xf32>
    %105 = vector.extract_strided_slice %104 {offsets = [0, 0, 0, 0], sizes = [2, 6, 16, 8], strides = [1, 1, 1, 1]} : vector<2x8x16x8xf32> to vector<2x6x16x8xf32>
    %106 = vector.extract_strided_slice %104 {offsets = [0, 1, 0, 0], sizes = [2, 6, 16, 8], strides = [1, 1, 1, 1]} : vector<2x8x16x8xf32> to vector<2x6x16x8xf32>
    %107 = vector.extract_strided_slice %104 {offsets = [0, 2, 0, 0], sizes = [2, 6, 16, 8], strides = [1, 1, 1, 1]} : vector<2x8x16x8xf32> to vector<2x6x16x8xf32>
    %108 = tpu.concatenate %105, %106, %107 in 3 : vector<2x6x16x8xf32>, vector<2x6x16x8xf32>, vector<2x6x16x8xf32> -> vector<2x6x16x24xf32>
    %109 = vector.shape_cast %108 : vector<2x6x16x24xf32> to vector<192x24xf32>
    %c0_49 = arith.constant 0 : index
    %c0_50 = arith.constant 0 : index
    %110 = vector.load %arg30[%c0_49, %c0_50] : memref<24x24xbf16, #tpu.memory_space<vmem>>, vector<24x24xbf16>
    %111 = arith.truncf %109 : vector<192x24xf32> to vector<192x24xbf16>
    %cst_51 = arith.constant dense<0.000000e+00> : vector<192x24xf32>
    %112 = tpu.matmul %111, %110, %cst_51 {dimension_numbers = #tpu.dot_dimension_numbers<[1], [0], [0], [1], [0, 0, 1, 1], [], []>} : vector<192x24xbf16>, vector<24x24xbf16>, vector<192x24xf32> -> vector<192x24xf32>
    %c0_52 = arith.constant 0 : index
    %c0_53 = arith.constant 0 : index
    %113 = vector.load %arg31[%c0_52, %c0_53] : memref<1x24xf32, #tpu.memory_space<vmem>>, vector<1x24xf32>
    %114 = vector.broadcast %113 : vector<1x24xf32> to vector<192x24xf32>
    %115 = arith.addf %112, %114 : vector<192x24xf32>
    %116 = vector.extract_strided_slice %115 {offsets = [0, 0], sizes = [192, 8], strides = [1, 1]} : vector<192x24xf32> to vector<192x8xf32>
    %117 = vector.extract_strided_slice %115 {offsets = [0, 16], sizes = [192, 8], strides = [1, 1]} : vector<192x24xf32> to vector<192x8xf32>
    %118 = arith.addf %116, %117 : vector<192x8xf32>
    %119 = vector.extract_strided_slice %115 {offsets = [0, 8], sizes = [192, 8], strides = [1, 1]} : vector<192x24xf32> to vector<192x8xf32>
    %cst_54 = arith.constant 0.000000e+00 : f32
    %120 = vector.broadcast %cst_54 : f32 to vector<192x8xf32>
    %121 = arith.subf %120, %119 : vector<192x8xf32>
    %122 = math.exp %121 : vector<192x8xf32>
    %cst_55 = arith.constant 1.000000e+00 : f32
    %123 = vector.broadcast %cst_55 : f32 to vector<192x8xf32>
    %124 = arith.addf %123, %122 : vector<192x8xf32>
    %cst_56 = arith.constant 1.000000e+00 : f32
    %125 = vector.broadcast %cst_56 : f32 to vector<192x8xf32>
    %126 = arith.divf %125, %124 : vector<192x8xf32>
    %127 = arith.mulf %118, %126 : vector<192x8xf32>
    %128 = vector.shape_cast %127 : vector<192x8xf32> to vector<2x6x16x8xf32>
    %129 = vector.shape_cast %128 : vector<2x6x16x8xf32> to vector<192x8xf32>
    %c0_57 = arith.constant 0 : index
    %c0_58 = arith.constant 0 : index
    %130 = vector.load %arg23[%c0_57, %c0_58] : memref<8x4xbf16, #tpu.memory_space<vmem>>, vector<8x4xbf16>
    %131 = arith.truncf %129 : vector<192x8xf32> to vector<192x8xbf16>
    %cst_59 = arith.constant dense<0.000000e+00> : vector<192x4xf32>
    %132 = tpu.matmul %131, %130, %cst_59 {dimension_numbers = #tpu.dot_dimension_numbers<[1], [0], [0], [1], [0, 0, 1, 1], [], []>} : vector<192x8xbf16>, vector<8x4xbf16>, vector<192x4xf32> -> vector<192x4xf32>
    %c0_60 = arith.constant 0 : index
    %c0_61 = arith.constant 0 : index
    %133 = vector.load %arg24[%c0_60, %c0_61] : memref<1x4xf32, #tpu.memory_space<vmem>>, vector<1x4xf32>
    %134 = vector.broadcast %133 : vector<1x4xf32> to vector<192x4xf32>
    %135 = arith.addf %132, %134 : vector<192x4xf32>
    %136 = vector.shape_cast %135 : vector<192x4xf32> to vector<12x16x4xf32>
    %c0_62 = arith.constant 0 : index
    %c0_63 = arith.constant 0 : index
    %137 = vector.load %arg25[%c0_62, %c0_63] : memref<16x16xbf16, #tpu.memory_space<vmem>>, vector<16x16xbf16>
    %138 = vector.shape_cast %137 : vector<16x16xbf16> to vector<1x16x16xbf16>
    %139 = vector.broadcast %138 : vector<1x16x16xbf16> to vector<12x16x16xbf16>
    %140 = arith.truncf %136 : vector<12x16x4xf32> to vector<12x16x4xbf16>
    "tpu.trace_start"() <{level = 10 : i32, message = "tuv,tvc->tuc"}> : () -> ()
    %cst_64 = arith.constant dense<0.000000e+00> : vector<12x16x4xf32>
    %141 = tpu.matmul %139, %140, %cst_64 {dimension_numbers = #tpu.dot_dimension_numbers<[2], [1], [1], [2], [0, 0, 0, 1, 1, 2], [0], [0]>} : vector<12x16x16xbf16>, vector<12x16x4xbf16>, vector<12x16x4xf32> -> vector<12x16x4xf32>
    "tpu.trace_stop"() : () -> ()
    %142 = arith.truncf %141 : vector<12x16x4xf32> to vector<12x16x4xbf16>
    "tpu.trace_start"() <{level = 10 : i32, message = "tuv,tvc->tuc"}> : () -> ()
    %cst_65 = arith.constant dense<0.000000e+00> : vector<12x16x4xf32>
    %143 = tpu.matmul %139, %142, %cst_65 {dimension_numbers = #tpu.dot_dimension_numbers<[2], [1], [1], [2], [0, 0, 0, 1, 1, 2], [0], [0]>} : vector<12x16x16xbf16>, vector<12x16x4xbf16>, vector<12x16x4xf32> -> vector<12x16x4xf32>
    "tpu.trace_stop"() : () -> ()
    %cst_66 = arith.constant 2.000000e+00 : f32
    %144 = vector.broadcast %cst_66 : f32 to vector<12x16x4xf32>
    %145 = arith.mulf %144, %143 : vector<12x16x4xf32>
    %146 = arith.subf %145, %136 : vector<12x16x4xf32>
    %147 = tpu.concatenate %136, %141, %146 in 2 : vector<12x16x4xf32>, vector<12x16x4xf32>, vector<12x16x4xf32> -> vector<12x16x12xf32>
    %148 = vector.shape_cast %147 : vector<12x16x12xf32> to vector<192x12xf32>
    %c0_67 = arith.constant 0 : index
    %c0_68 = arith.constant 0 : index
    %149 = vector.load %arg26[%c0_67, %c0_68] : memref<12x4xbf16, #tpu.memory_space<vmem>>, vector<12x4xbf16>
    %150 = arith.truncf %148 : vector<192x12xf32> to vector<192x12xbf16>
    %cst_69 = arith.constant dense<0.000000e+00> : vector<192x4xf32>
    %151 = tpu.matmul %150, %149, %cst_69 {dimension_numbers = #tpu.dot_dimension_numbers<[1], [0], [0], [1], [0, 0, 1, 1], [], []>} : vector<192x12xbf16>, vector<12x4xbf16>, vector<192x4xf32> -> vector<192x4xf32>
    %c0_70 = arith.constant 0 : index
    %c0_71 = arith.constant 0 : index
    %152 = vector.load %arg27[%c0_70, %c0_71] : memref<1x4xf32, #tpu.memory_space<vmem>>, vector<1x4xf32>
    %153 = vector.broadcast %152 : vector<1x4xf32> to vector<192x4xf32>
    %154 = arith.addf %151, %153 : vector<192x4xf32>
    %155 = arith.addf %154, %135 : vector<192x4xf32>
    %cst_72 = arith.constant 0.000000e+00 : f32
    %156 = vector.broadcast %cst_72 : f32 to vector<192x4xf32>
    %157 = arith.maximumf %155, %156 : vector<192x4xf32>
    %158 = vector.shape_cast %157 : vector<192x4xf32> to vector<2x6x16x4xf32>
    %159 = vector.extract_strided_slice %158 {offsets = [0, 0, 0, 0], sizes = [2, 4, 16, 4], strides = [1, 1, 1, 1]} : vector<2x6x16x4xf32> to vector<2x4x16x4xf32>
    %160 = vector.extract_strided_slice %158 {offsets = [0, 1, 0, 0], sizes = [2, 4, 16, 4], strides = [1, 1, 1, 1]} : vector<2x6x16x4xf32> to vector<2x4x16x4xf32>
    %161 = vector.extract_strided_slice %158 {offsets = [0, 2, 0, 0], sizes = [2, 4, 16, 4], strides = [1, 1, 1, 1]} : vector<2x6x16x4xf32> to vector<2x4x16x4xf32>
    %162 = tpu.concatenate %159, %160, %161 in 3 : vector<2x4x16x4xf32>, vector<2x4x16x4xf32>, vector<2x4x16x4xf32> -> vector<2x4x16x12xf32>
    %163 = vector.shape_cast %162 : vector<2x4x16x12xf32> to vector<128x12xf32>
    %c0_73 = arith.constant 0 : index
    %c0_74 = arith.constant 0 : index
    %164 = vector.load %arg32[%c0_73, %c0_74] : memref<12x24xbf16, #tpu.memory_space<vmem>>, vector<12x24xbf16>
    %165 = arith.truncf %163 : vector<128x12xf32> to vector<128x12xbf16>
    %cst_75 = arith.constant dense<0.000000e+00> : vector<128x24xf32>
    %166 = tpu.matmul %165, %164, %cst_75 {dimension_numbers = #tpu.dot_dimension_numbers<[1], [0], [0], [1], [0, 0, 1, 1], [], []>} : vector<128x12xbf16>, vector<12x24xbf16>, vector<128x24xf32> -> vector<128x24xf32>
    %c0_76 = arith.constant 0 : index
    %c0_77 = arith.constant 0 : index
    %167 = vector.load %arg33[%c0_76, %c0_77] : memref<1x24xf32, #tpu.memory_space<vmem>>, vector<1x24xf32>
    %168 = vector.broadcast %167 : vector<1x24xf32> to vector<128x24xf32>
    %169 = arith.addf %166, %168 : vector<128x24xf32>
    %170 = vector.extract_strided_slice %169 {offsets = [0, 0], sizes = [128, 8], strides = [1, 1]} : vector<128x24xf32> to vector<128x8xf32>
    %171 = vector.extract_strided_slice %169 {offsets = [0, 16], sizes = [128, 8], strides = [1, 1]} : vector<128x24xf32> to vector<128x8xf32>
    %172 = arith.addf %170, %171 : vector<128x8xf32>
    %173 = vector.extract_strided_slice %169 {offsets = [0, 8], sizes = [128, 8], strides = [1, 1]} : vector<128x24xf32> to vector<128x8xf32>
    %cst_78 = arith.constant 0.000000e+00 : f32
    %174 = vector.broadcast %cst_78 : f32 to vector<128x8xf32>
    %175 = arith.subf %174, %173 : vector<128x8xf32>
    %176 = math.exp %175 : vector<128x8xf32>
    %cst_79 = arith.constant 1.000000e+00 : f32
    %177 = vector.broadcast %cst_79 : f32 to vector<128x8xf32>
    %178 = arith.addf %177, %176 : vector<128x8xf32>
    %cst_80 = arith.constant 1.000000e+00 : f32
    %179 = vector.broadcast %cst_80 : f32 to vector<128x8xf32>
    %180 = arith.divf %179, %178 : vector<128x8xf32>
    %181 = arith.mulf %172, %180 : vector<128x8xf32>
    %182 = vector.shape_cast %181 : vector<128x8xf32> to vector<2x4x16x8xf32>
    %cst_81 = arith.constant dense<0.000000e+00> : vector<2x4x16xf32>
    %183 = vector.multi_reduction <add>, %182, %cst_81 [3] : vector<2x4x16x8xf32> to vector<2x4x16xf32>
    %184 = vector.shape_cast %183 : vector<2x4x16xf32> to vector<2x4x16x1xf32>
    %cst_82 = arith.constant dense<0.000000e+00> : vector<2x4x1xf32>
    %185 = vector.multi_reduction <add>, %184, %cst_82 [2] : vector<2x4x16x1xf32> to vector<2x4x1xf32>
    %186 = vector.shape_cast %185 : vector<2x4x1xf32> to vector<2x4x1x1xf32>
    %cst_83 = arith.constant 7.812500e-03 : f32
    %187 = vector.broadcast %cst_83 : f32 to vector<2x4x1x1xf32>
    %188 = arith.mulf %186, %187 : vector<2x4x1x1xf32>
    %189 = vector.broadcast %188 : vector<2x4x1x1xf32> to vector<2x4x16x8xf32>
    %190 = arith.subf %182, %189 : vector<2x4x16x8xf32>
    %191 = arith.mulf %190, %190 : vector<2x4x16x8xf32>
    %cst_84 = arith.constant dense<0.000000e+00> : vector<2x4x16xf32>
    %192 = vector.multi_reduction <add>, %191, %cst_84 [3] : vector<2x4x16x8xf32> to vector<2x4x16xf32>
    %193 = vector.shape_cast %192 : vector<2x4x16xf32> to vector<2x4x16x1xf32>
    %cst_85 = arith.constant dense<0.000000e+00> : vector<2x4x1xf32>
    %194 = vector.multi_reduction <add>, %193, %cst_85 [2] : vector<2x4x16x1xf32> to vector<2x4x1xf32>
    %195 = vector.shape_cast %194 : vector<2x4x1xf32> to vector<2x4x1x1xf32>
    %cst_86 = arith.constant 7.812500e-03 : f32
    %196 = vector.broadcast %cst_86 : f32 to vector<2x4x1x1xf32>
    %197 = arith.mulf %195, %196 : vector<2x4x1x1xf32>
    %cst_87 = arith.constant 9.99999974E-6 : f32
    %198 = vector.broadcast %cst_87 : f32 to vector<2x4x1x1xf32>
    %199 = arith.addf %197, %198 : vector<2x4x1x1xf32>
    %200 = math.rsqrt %199 : vector<2x4x1x1xf32>
    %201 = vector.broadcast %200 : vector<2x4x1x1xf32> to vector<2x4x16x8xf32>
    %202 = arith.mulf %190, %201 : vector<2x4x16x8xf32>
    %c0_88 = arith.constant 0 : index
    %c0_89 = arith.constant 0 : index
    %c0_90 = arith.constant 0 : index
    %c0_91 = arith.constant 0 : index
    %203 = vector.load %arg28[%c0_88, %c0_89, %c0_90, %c0_91] : memref<1x1x16x8xf32, #tpu.memory_space<vmem>>, vector<1x1x16x8xf32>
    %204 = vector.broadcast %203 : vector<1x1x16x8xf32> to vector<2x4x16x8xf32>
    %205 = arith.mulf %202, %204 : vector<2x4x16x8xf32>
    %c0_92 = arith.constant 0 : index
    %c0_93 = arith.constant 0 : index
    %c0_94 = arith.constant 0 : index
    %c0_95 = arith.constant 0 : index
    %206 = vector.load %arg29[%c0_92, %c0_93, %c0_94, %c0_95] : memref<1x1x16x8xf32, #tpu.memory_space<vmem>>, vector<1x1x16x8xf32>
    %207 = vector.broadcast %206 : vector<1x1x16x8xf32> to vector<2x4x16x8xf32>
    %208 = arith.addf %205, %207 : vector<2x4x16x8xf32>
    %209 = vector.extract_strided_slice %208 {offsets = [0, 0, 0, 0], sizes = [2, 1, 16, 8], strides = [1, 1, 1, 1]} : vector<2x4x16x8xf32> to vector<2x1x16x8xf32>
    %210 = vector.extract_strided_slice %208 {offsets = [0, 1, 0, 0], sizes = [2, 1, 16, 8], strides = [1, 1, 1, 1]} : vector<2x4x16x8xf32> to vector<2x1x16x8xf32>
    %211 = vector.extract_strided_slice %208 {offsets = [0, 2, 0, 0], sizes = [2, 1, 16, 8], strides = [1, 1, 1, 1]} : vector<2x4x16x8xf32> to vector<2x1x16x8xf32>
    %212 = vector.extract_strided_slice %208 {offsets = [0, 3, 0, 0], sizes = [2, 1, 16, 8], strides = [1, 1, 1, 1]} : vector<2x4x16x8xf32> to vector<2x1x16x8xf32>
    %213 = tpu.concatenate %209, %210, %211, %212 in 3 : vector<2x1x16x8xf32>, vector<2x1x16x8xf32>, vector<2x1x16x8xf32>, vector<2x1x16x8xf32> -> vector<2x1x16x32xf32>
    %214 = vector.shape_cast %213 : vector<2x1x16x32xf32> to vector<32x32xf32>
    %c0_96 = arith.constant 0 : index
    %c0_97 = arith.constant 0 : index
    %215 = vector.load %arg10[%c0_96, %c0_97] : memref<32x48xbf16, #tpu.memory_space<vmem>>, vector<32x48xbf16>
    %216 = arith.truncf %214 : vector<32x32xf32> to vector<32x32xbf16>
    %cst_98 = arith.constant dense<0.000000e+00> : vector<32x48xf32>
    %217 = tpu.matmul %216, %215, %cst_98 {dimension_numbers = #tpu.dot_dimension_numbers<[1], [0], [0], [1], [0, 0, 1, 1], [], []>} : vector<32x32xbf16>, vector<32x48xbf16>, vector<32x48xf32> -> vector<32x48xf32>
    %c0_99 = arith.constant 0 : index
    %c0_100 = arith.constant 0 : index
    %218 = vector.load %arg11[%c0_99, %c0_100] : memref<1x48xf32, #tpu.memory_space<vmem>>, vector<1x48xf32>
    %219 = vector.broadcast %218 : vector<1x48xf32> to vector<32x48xf32>
    %220 = arith.addf %217, %219 : vector<32x48xf32>
    %221 = vector.extract_strided_slice %220 {offsets = [0, 0], sizes = [32, 16], strides = [1, 1]} : vector<32x48xf32> to vector<32x16xf32>
    %222 = vector.extract_strided_slice %220 {offsets = [0, 32], sizes = [32, 16], strides = [1, 1]} : vector<32x48xf32> to vector<32x16xf32>
    %223 = arith.addf %221, %222 : vector<32x16xf32>
    %224 = vector.extract_strided_slice %220 {offsets = [0, 16], sizes = [32, 16], strides = [1, 1]} : vector<32x48xf32> to vector<32x16xf32>
    %cst_101 = arith.constant 0.000000e+00 : f32
    %225 = vector.broadcast %cst_101 : f32 to vector<32x16xf32>
    %226 = arith.subf %225, %224 : vector<32x16xf32>
    %227 = math.exp %226 : vector<32x16xf32>
    %cst_102 = arith.constant 1.000000e+00 : f32
    %228 = vector.broadcast %cst_102 : f32 to vector<32x16xf32>
    %229 = arith.addf %228, %227 : vector<32x16xf32>
    %cst_103 = arith.constant 1.000000e+00 : f32
    %230 = vector.broadcast %cst_103 : f32 to vector<32x16xf32>
    %231 = arith.divf %230, %229 : vector<32x16xf32>
    %232 = arith.mulf %223, %231 : vector<32x16xf32>
    %233 = vector.shape_cast %232 : vector<32x16xf32> to vector<2x1x16x16xf32>
    %cst_104 = arith.constant dense<0.000000e+00> : vector<2x1x16xf32>
    %234 = vector.multi_reduction <add>, %233, %cst_104 [3] : vector<2x1x16x16xf32> to vector<2x1x16xf32>
    %235 = vector.shape_cast %234 : vector<2x1x16xf32> to vector<2x1x16x1xf32>
    %cst_105 = arith.constant dense<0.000000e+00> : vector<2x1x1xf32>
    %236 = vector.multi_reduction <add>, %235, %cst_105 [2] : vector<2x1x16x1xf32> to vector<2x1x1xf32>
    %237 = vector.shape_cast %236 : vector<2x1x1xf32> to vector<2x1x1x1xf32>
    %cst_106 = arith.constant 3.906250e-03 : f32
    %238 = vector.broadcast %cst_106 : f32 to vector<2x1x1x1xf32>
    %239 = arith.mulf %237, %238 : vector<2x1x1x1xf32>
    %240 = vector.broadcast %239 : vector<2x1x1x1xf32> to vector<2x1x16x16xf32>
    %241 = arith.subf %233, %240 : vector<2x1x16x16xf32>
    %242 = arith.mulf %241, %241 : vector<2x1x16x16xf32>
    %cst_107 = arith.constant dense<0.000000e+00> : vector<2x1x16xf32>
    %243 = vector.multi_reduction <add>, %242, %cst_107 [3] : vector<2x1x16x16xf32> to vector<2x1x16xf32>
    %244 = vector.shape_cast %243 : vector<2x1x16xf32> to vector<2x1x16x1xf32>
    %cst_108 = arith.constant dense<0.000000e+00> : vector<2x1x1xf32>
    %245 = vector.multi_reduction <add>, %244, %cst_108 [2] : vector<2x1x16x1xf32> to vector<2x1x1xf32>
    %246 = vector.shape_cast %245 : vector<2x1x1xf32> to vector<2x1x1x1xf32>
    %cst_109 = arith.constant 3.906250e-03 : f32
    %247 = vector.broadcast %cst_109 : f32 to vector<2x1x1x1xf32>
    %248 = arith.mulf %246, %247 : vector<2x1x1x1xf32>
    %cst_110 = arith.constant 9.99999974E-6 : f32
    %249 = vector.broadcast %cst_110 : f32 to vector<2x1x1x1xf32>
    %250 = arith.addf %248, %249 : vector<2x1x1x1xf32>
    %251 = math.rsqrt %250 : vector<2x1x1x1xf32>
    %252 = vector.broadcast %251 : vector<2x1x1x1xf32> to vector<2x1x16x16xf32>
    %253 = arith.mulf %241, %252 : vector<2x1x16x16xf32>
    %c0_111 = arith.constant 0 : index
    %c0_112 = arith.constant 0 : index
    %c0_113 = arith.constant 0 : index
    %c0_114 = arith.constant 0 : index
    %254 = vector.load %arg8[%c0_111, %c0_112, %c0_113, %c0_114] : memref<1x1x16x16xf32, #tpu.memory_space<vmem>>, vector<1x1x16x16xf32>
    %255 = vector.broadcast %254 : vector<1x1x16x16xf32> to vector<2x1x16x16xf32>
    %256 = arith.mulf %253, %255 : vector<2x1x16x16xf32>
    %c0_115 = arith.constant 0 : index
    %c0_116 = arith.constant 0 : index
    %c0_117 = arith.constant 0 : index
    %c0_118 = arith.constant 0 : index
    %257 = vector.load %arg9[%c0_115, %c0_116, %c0_117, %c0_118] : memref<1x1x16x16xf32, #tpu.memory_space<vmem>>, vector<1x1x16x16xf32>
    %258 = vector.broadcast %257 : vector<1x1x16x16xf32> to vector<2x1x16x16xf32>
    %259 = arith.addf %256, %258 : vector<2x1x16x16xf32>
    %260 = vector.shape_cast %259 : vector<2x1x16x16xf32> to vector<32x16xf32>
    %c0_119 = arith.constant 0 : index
    %c0_120 = arith.constant 0 : index
    %261 = vector.load %arg4[%c0_119, %c0_120] : memref<16x8xbf16, #tpu.memory_space<vmem>>, vector<16x8xbf16>
    %262 = arith.truncf %260 : vector<32x16xf32> to vector<32x16xbf16>
    %cst_121 = arith.constant dense<0.000000e+00> : vector<32x8xf32>
    %263 = tpu.matmul %262, %261, %cst_121 {dimension_numbers = #tpu.dot_dimension_numbers<[1], [0], [0], [1], [0, 0, 1, 1], [], []>} : vector<32x16xbf16>, vector<16x8xbf16>, vector<32x8xf32> -> vector<32x8xf32>
    %c0_122 = arith.constant 0 : index
    %c0_123 = arith.constant 0 : index
    %264 = vector.load %arg5[%c0_122, %c0_123] : memref<1x8xf32, #tpu.memory_space<vmem>>, vector<1x8xf32>
    %265 = vector.broadcast %264 : vector<1x8xf32> to vector<32x8xf32>
    %266 = arith.addf %263, %265 : vector<32x8xf32>
    %cst_124 = arith.constant 0.000000e+00 : f32
    %267 = vector.broadcast %cst_124 : f32 to vector<32x8xf32>
    %268 = arith.maximumf %266, %267 : vector<32x8xf32>
    %c0_125 = arith.constant 0 : index
    %c0_126 = arith.constant 0 : index
    %269 = vector.load %arg6[%c0_125, %c0_126] : memref<8x1xbf16, #tpu.memory_space<vmem>>, vector<8x1xbf16>
    %270 = arith.truncf %268 : vector<32x8xf32> to vector<32x8xbf16>
    %cst_127 = arith.constant dense<0.000000e+00> : vector<32x1xf32>
    %271 = tpu.matmul %270, %269, %cst_127 {dimension_numbers = #tpu.dot_dimension_numbers<[1], [0], [0], [1], [0, 0, 1, 1], [], []>} : vector<32x8xbf16>, vector<8x1xbf16>, vector<32x1xf32> -> vector<32x1xf32>
    %c0_128 = arith.constant 0 : index
    %c0_129 = arith.constant 0 : index
    %272 = vector.load %arg7[%c0_128, %c0_129] : memref<1x1xf32, #tpu.memory_space<vmem>>, vector<1x1xf32>
    %273 = vector.broadcast %272 : vector<1x1xf32> to vector<32x1xf32>
    %274 = arith.addf %271, %273 : vector<32x1xf32>
    %c0_130 = arith.constant 0 : index
    %c0_131 = arith.constant 0 : index
    %275 = vector.load %arg2[%c0_130, %c0_131] : memref<1x1xf32, #tpu.memory_space<vmem>>, vector<1x1xf32>
    %276 = vector.broadcast %275 : vector<1x1xf32> to vector<32x1xf32>
    %277 = arith.mulf %274, %276 : vector<32x1xf32>
    %c0_132 = arith.constant 0 : index
    %c0_133 = arith.constant 0 : index
    %278 = vector.load %arg3[%c0_132, %c0_133] : memref<1x1xf32, #tpu.memory_space<vmem>>, vector<1x1xf32>
    %279 = vector.broadcast %278 : vector<1x1xf32> to vector<32x1xf32>
    %280 = arith.addf %277, %279 : vector<32x1xf32>
    %c0_134 = arith.constant 0 : index
    %c0_135 = arith.constant 0 : index
    %281 = vector.load %arg34[%c0_134, %c0_135] : memref<32x1xf32, #tpu.memory_space<vmem>>, vector<32x1xf32>
    tpu.vector_store %arg34[%c0_134, %c0_135], %280 {strides = array<i32>} : memref<32x1xf32, #tpu.memory_space<vmem>>, vector<32x1xf32>,
    return
  }
  func.func @transform_0(%arg0: i32) -> (i32, i32, i32, i32) {
    %c0_i32 = arith.constant 0 : i32
    %c0_i32_0 = arith.constant 0 : i32
    %c0_i32_1 = arith.constant 0 : i32
    %c0_i32_2 = arith.constant 0 : i32
    return %arg0, %c0_i32, %c0_i32_0, %c0_i32_1 : i32, i32, i32, i32
  }
  func.func @transform_1(%arg0: i32) -> (i32, i32) {
    %c0_i32 = arith.constant 0 : i32
    %c0_i32_0 = arith.constant 0 : i32
    %c0_i32_1 = arith.constant 0 : i32
    return %c0_i32, %c0_i32_0 : i32, i32
  }
  func.func @transform_2(%arg0: i32) -> (i32, i32) {
    %c0_i32 = arith.constant 0 : i32
    %c0_i32_0 = arith.constant 0 : i32
    %c0_i32_1 = arith.constant 0 : i32
    return %c0_i32, %c0_i32_0 : i32, i32
  }
  func.func @transform_3(%arg0: i32) -> (i32, i32) {
    %c0_i32 = arith.constant 0 : i32
    %c0_i32_0 = arith.constant 0 : i32
    %c0_i32_1 = arith.constant 0 : i32
    return %c0_i32, %c0_i32_0 : i32, i32
  }
  func.func @transform_4(%arg0: i32) -> (i32, i32) {
    %c0_i32 = arith.constant 0 : i32
    %c0_i32_0 = arith.constant 0 : i32
    %c0_i32_1 = arith.constant 0 : i32
    return %c0_i32, %c0_i32_0 : i32, i32
  }
  func.func @transform_5(%arg0: i32) -> (i32, i32) {
    %c0_i32 = arith.constant 0 : i32
    %c0_i32_0 = arith.constant 0 : i32
    %c0_i32_1 = arith.constant 0 : i32
    return %c0_i32, %c0_i32_0 : i32, i32
  }
  func.func @transform_6(%arg0: i32) -> (i32, i32) {
    %c0_i32 = arith.constant 0 : i32
    %c0_i32_0 = arith.constant 0 : i32
    %c0_i32_1 = arith.constant 0 : i32
    return %c0_i32, %c0_i32_0 : i32, i32
  }
  func.func @transform_7(%arg0: i32) -> (i32, i32, i32, i32) {
    %c0_i32 = arith.constant 0 : i32
    %c0_i32_0 = arith.constant 0 : i32
    %c0_i32_1 = arith.constant 0 : i32
    %c0_i32_2 = arith.constant 0 : i32
    %c0_i32_3 = arith.constant 0 : i32
    return %c0_i32, %c0_i32_0, %c0_i32_1, %c0_i32_2 : i32, i32, i32, i32
  }
  func.func @transform_8(%arg0: i32) -> (i32, i32, i32, i32) {
    %c0_i32 = arith.constant 0 : i32
    %c0_i32_0 = arith.constant 0 : i32
    %c0_i32_1 = arith.constant 0 : i32
    %c0_i32_2 = arith.constant 0 : i32
    %c0_i32_3 = arith.constant 0 : i32
    return %c0_i32, %c0_i32_0, %c0_i32_1, %c0_i32_2 : i32, i32, i32, i32
  }
  func.func @transform_9(%arg0: i32) -> (i32, i32) {
    %c0_i32 = arith.constant 0 : i32
    %c0_i32_0 = arith.constant 0 : i32
    %c0_i32_1 = arith.constant 0 : i32
    return %c0_i32, %c0_i32_0 : i32, i32
  }
  func.func @transform_10(%arg0: i32) -> (i32, i32) {
    %c0_i32 = arith.constant 0 : i32
    %c0_i32_0 = arith.constant 0 : i32
    %c0_i32_1 = arith.constant 0 : i32
    return %c0_i32, %c0_i32_0 : i32, i32
  }
  func.func @transform_11(%arg0: i32) -> (i32, i32) {
    %c0_i32 = arith.constant 0 : i32
    %c0_i32_0 = arith.constant 0 : i32
    %c0_i32_1 = arith.constant 0 : i32
    return %c0_i32, %c0_i32_0 : i32, i32
  }
  func.func @transform_12(%arg0: i32) -> (i32, i32) {
    %c0_i32 = arith.constant 0 : i32
    %c0_i32_0 = arith.constant 0 : i32
    %c0_i32_1 = arith.constant 0 : i32
    return %c0_i32, %c0_i32_0 : i32, i32
  }
  func.func @transform_13(%arg0: i32) -> (i32, i32) {
    %c0_i32 = arith.constant 0 : i32
    %c0_i32_0 = arith.constant 0 : i32
    %c0_i32_1 = arith.constant 0 : i32
    return %c0_i32, %c0_i32_0 : i32, i32
  }
  func.func @transform_14(%arg0: i32) -> (i32, i32) {
    %c0_i32 = arith.constant 0 : i32
    %c0_i32_0 = arith.constant 0 : i32
    %c0_i32_1 = arith.constant 0 : i32
    return %c0_i32, %c0_i32_0 : i32, i32
  }
  func.func @transform_15(%arg0: i32) -> (i32, i32) {
    %c0_i32 = arith.constant 0 : i32
    %c0_i32_0 = arith.constant 0 : i32
    %c0_i32_1 = arith.constant 0 : i32
    return %c0_i32, %c0_i32_0 : i32, i32
  }
  func.func @transform_16(%arg0: i32) -> (i32, i32, i32, i32) {
    %c0_i32 = arith.constant 0 : i32
    %c0_i32_0 = arith.constant 0 : i32
    %c0_i32_1 = arith.constant 0 : i32
    %c0_i32_2 = arith.constant 0 : i32
    %c0_i32_3 = arith.constant 0 : i32
    return %c0_i32, %c0_i32_0, %c0_i32_1, %c0_i32_2 : i32, i32, i32, i32
  }
  func.func @transform_17(%arg0: i32) -> (i32, i32, i32, i32) {
    %c0_i32 = arith.constant 0 : i32
    %c0_i32_0 = arith.constant 0 : i32
    %c0_i32_1 = arith.constant 0 : i32
    %c0_i32_2 = arith.constant 0 : i32
    %c0_i32_3 = arith.constant 0 : i32
    return %c0_i32, %c0_i32_0, %c0_i32_1, %c0_i32_2 : i32, i32, i32, i32
  }
  func.func @transform_18(%arg0: i32) -> (i32, i32) {
    %c0_i32 = arith.constant 0 : i32
    %c0_i32_0 = arith.constant 0 : i32
    %c0_i32_1 = arith.constant 0 : i32
    return %c0_i32, %c0_i32_0 : i32, i32
  }
  func.func @transform_19(%arg0: i32) -> (i32, i32) {
    %c0_i32 = arith.constant 0 : i32
    %c0_i32_0 = arith.constant 0 : i32
    %c0_i32_1 = arith.constant 0 : i32
    return %c0_i32, %c0_i32_0 : i32, i32
  }
  func.func @transform_20(%arg0: i32) -> (i32, i32) {
    %c0_i32 = arith.constant 0 : i32
    %c0_i32_0 = arith.constant 0 : i32
    %c0_i32_1 = arith.constant 0 : i32
    return %c0_i32, %c0_i32_0 : i32, i32
  }
  func.func @transform_21(%arg0: i32) -> (i32, i32) {
    %c0_i32 = arith.constant 0 : i32
    %c0_i32_0 = arith.constant 0 : i32
    %c0_i32_1 = arith.constant 0 : i32
    return %c0_i32, %c0_i32_0 : i32, i32
  }
  func.func @transform_22(%arg0: i32) -> (i32, i32) {
    %c0_i32 = arith.constant 0 : i32
    %c0_i32_0 = arith.constant 0 : i32
    %c0_i32_1 = arith.constant 0 : i32
    return %c0_i32, %c0_i32_0 : i32, i32
  }
  func.func @transform_23(%arg0: i32) -> (i32, i32) {
    %c0_i32 = arith.constant 0 : i32
    %c0_i32_0 = arith.constant 0 : i32
    %c0_i32_1 = arith.constant 0 : i32
    return %c0_i32, %c0_i32_0 : i32, i32
  }
  func.func @transform_24(%arg0: i32) -> (i32, i32) {
    %c0_i32 = arith.constant 0 : i32
    %c0_i32_0 = arith.constant 0 : i32
    %c0_i32_1 = arith.constant 0 : i32
    return %c0_i32, %c0_i32_0 : i32, i32
  }
  func.func @transform_25(%arg0: i32) -> (i32, i32) {
    %c0_i32 = arith.constant 0 : i32
    %c0_i32_0 = arith.constant 0 : i32
    %c0_i32_1 = arith.constant 0 : i32
    return %c0_i32, %c0_i32_0 : i32, i32
  }
  func.func @transform_26(%arg0: i32) -> (i32, i32) {
    %c0_i32 = arith.constant 0 : i32
    %c0_i32_0 = arith.constant 0 : i32
    %c0_i32_1 = arith.constant 0 : i32
    return %c0_i32, %c0_i32_0 : i32, i32
  }
  func.func @transform_27(%arg0: i32) -> (i32, i32, i32, i32) {
    %c0_i32 = arith.constant 0 : i32
    %c0_i32_0 = arith.constant 0 : i32
    %c0_i32_1 = arith.constant 0 : i32
    %c0_i32_2 = arith.constant 0 : i32
    %c0_i32_3 = arith.constant 0 : i32
    return %c0_i32, %c0_i32_0, %c0_i32_1, %c0_i32_2 : i32, i32, i32, i32
  }
  func.func @transform_28(%arg0: i32) -> (i32, i32, i32, i32) {
    %c0_i32 = arith.constant 0 : i32
    %c0_i32_0 = arith.constant 0 : i32
    %c0_i32_1 = arith.constant 0 : i32
    %c0_i32_2 = arith.constant 0 : i32
    %c0_i32_3 = arith.constant 0 : i32
    return %c0_i32, %c0_i32_0, %c0_i32_1, %c0_i32_2 : i32, i32, i32, i32
  }
  func.func @transform_29(%arg0: i32) -> (i32, i32) {
    %c0_i32 = arith.constant 0 : i32
    %c0_i32_0 = arith.constant 0 : i32
    %c0_i32_1 = arith.constant 0 : i32
    return %c0_i32, %c0_i32_0 : i32, i32
  }
  func.func @transform_30(%arg0: i32) -> (i32, i32) {
    %c0_i32 = arith.constant 0 : i32
    %c0_i32_0 = arith.constant 0 : i32
    %c0_i32_1 = arith.constant 0 : i32
    return %c0_i32, %c0_i32_0 : i32, i32
  }
  func.func @transform_31(%arg0: i32) -> (i32, i32) {
    %c0_i32 = arith.constant 0 : i32
    %c0_i32_0 = arith.constant 0 : i32
    %c0_i32_1 = arith.constant 0 : i32
    return %c0_i32, %c0_i32_0 : i32, i32
  }
  func.func @transform_32(%arg0: i32) -> (i32, i32) {
    %c0_i32 = arith.constant 0 : i32
    %c0_i32_0 = arith.constant 0 : i32
    %c0_i32_1 = arith.constant 0 : i32
    return %c0_i32, %c0_i32_0 : i32, i32
  }
  func.func @transform_33(%arg0: i32) -> (i32, i32) {
    %c0_i32 = arith.constant 0 : i32
    %c0_i32_0 = arith.constant 0 : i32
    return %arg0, %c0_i32 : i32, i32
  }
}

</mosaic_0001>

<bundles_post_ra>
// kernel: stgcn_pallas_forward.1
= control target key start
LH: loop header
LB: loop body
LE: loop exit
PB: predicated region body
PF: predicated region fallthrough
CT: control target
= control target key end

     0   :  { %s12547_s6 = smov 8   ;;  %s12548_s7 = smov 4   ;;  %vm654_vm0 = vcmask 1045504   ;;  %vm477_vm1 = vcmask 31744   ;;  %vm518_vm2 = vcmask 64512   ;;  %vm593_vm3 = vcmask 97280   ;;  %s16885_s0 = inlined_call_operand.smem [shape: u32[34], index: -1, kind: input, shape index: {}] }
   0x1   :  { %s12593_s5 = sld [smem:[%s16885_s0]]   ;;  %s12549_s8 = smov 18   ;;  %vm1579_vm4 = vcmask 1043456   ;;  %vm12556_vm5 = vmmov 0   ;;  %vm1803_vm6 = vcmask 130048   ;;  %vm6258_vm7 = vcmask 195584  }
   0x2   :  { %s9902_s11 = sld [smem:[%s16885_s0 + %s12549_s8]]   ;;  %s12550_s12 = smov 19   ;;  %vm9506_vm8 = vcmask 261120   ;;  %vm9876_vm9 = vcmask 7168  }
   0x3   :  { %s9903_s15 = sld [smem:[%s16885_s0 + %s12550_s12]]   ;;  %s12551_s16 = smov 112  }
   0x4   :  { %s12552_s17 = smov 11   ;;  %s12553_s21 = smov 120  }
   0x5   :  { %s9895_s20 = sld [smem:[%s16885_s0 + %s12552_s17]]   ;;  %s12554_s22 = smov 13  }
   0x6   :  { %s13415_s25 = sld [smem:[%s16885_s0 + %s12554_s22]]   ;;  %s12557_s26 = smov 12  }
   0x7   :  { %v12596_v0 = vld [vmem:[%s12593_s5 + $0x20] sm:$0xff]  ;;  %v12599_v1 = vld [vmem:[%s12593_s5 + $0x28] sm:$0xff]  ;;  %v12602_v2 = vld [vmem:[%s12593_s5 + $0x10] sm:$0xff]  ;;  %s9896_s29 = sld [smem:[%s16885_s0 + %s12557_s26]]   ;;  %s12558_s30 = smov 14  }
   0x8   :  { %v11119_v3 = vpack.i.bf16 %v12599_v1, %v12596_v0  ;;  %v12607_v4 = vld [vmem:[%s12593_s5 + $0x18] sm:$0xff]  ;;  %v12610_v5 = vld [vmem:[%s12593_s5 + $0x30] sm:$0xff]  ;;  %v12622_v9 = vld [vmem:[%s12593_s5 + $0x40] sm:$0xff]  ;;  %s9898_s3 = sld [smem:[%s16885_s0 + %s12558_s30]]   ;;  %s12559_s4 = smov 15  }
   0x9   :  { %v12613_v6 = vld [vmem:[%s12593_s5 + $0x38] sm:$0xff]  ;;  %v11109_v7 = vpack.i.bf16 %v12607_v4, %v12602_v2  ;;  %v12625_v10 = vld [vmem:[%s12593_s5 + $0x48] sm:$0xff]  ;;  %v12635_v12 = vld [vmem:[%s12593_s5 + $0x50] sm:$0xff]  ;;  %s9899_s9 = sld [smem:[%s16885_s0 + %s12559_s4]]   ;;  %s12560_s10 = smov 20  }
   0xa   :  { %11120 = vrot.lane.b32.xlu1 %v11119_v3, %s12547_s6  ;;  %v11124_v8 = vpack.i.bf16 %v12613_v6, %v12610_v5  ;;  %v11134_v11 = vpack.i.bf16 %v12625_v10, %v12622_v9  ;;  %v12638_v13 = vld [vmem:[%s12593_s5 + $0x58] sm:$0xff]  ;;  %v12645_v15 = vld [vmem:[%s12593_s5 + $0x60] sm:$0xff]  ;;  %v12648_v16 = vld [vmem:[%s12593_s5 + $0x68] sm:$0xff]  ;;  %s9904_s13 = sld [smem:[%s16885_s0 + %s12560_s10]]   ;;  %s12561_s14 = smov 21  }
   0xb   :  { %11110 = vrot.lane.b32.xlu0 %v11109_v7, %s12548_s7  ;;  %v11144_v14 = vpack.i.bf16 %v12638_v13, %v12635_v12  ;;  %v12019_v17 = vld [vmem:[%s9902_s11] sm:$0x3f]   ;;  %v11154_v18 = vpack.i.bf16 %v12648_v16, %v12645_v15  ;;  %v12655_v19 = vld [vmem:[%s12593_s5 + $0x70] sm:$0xff]  ;;  %v12658_v20 = vld [vmem:[%s12593_s5 + $0x78] sm:$0xff]  ;;  %s9905_s18 = sld [smem:[%s16885_s0 + %s12561_s14]]   ;;  %s12562_s19 = smov 16  }
   0xc   :  { %11062 = vmatprep.subr.msk.bf16.mxu0 %vm654_vm0, %v12019_v17  ;;  %v656_v21 = vsel %vm654_vm0, %v12019_v17, 0  ;;  %v11164_v22 = vpack.i.bf16 %v12658_v20, %v12655_v19  ;;  %v12667_v23 = vld [vmem:[%s12593_s5 + $0x80] sm:$0xff]  ;;  %v12670_v24 = vld [vmem:[%s12593_s5 + $0x88] sm:$0xff]  ;;  %v12677_v26 = vld [vmem:[%s12593_s5 + $0x90] sm:$0xff]  ;;  %s9900_s23 = sld [smem:[%s16885_s0 + %s12562_s19]]   ;;  %s12563_s24 = smov 17  }
   0xd   :  { %10401 = vmatpush3.bf16.msra.mxu0 %v656_v21  ;;  %v11174_v25 = vpack.i.bf16 %v12670_v24, %v12667_v23  ;;  %v12680_v27 = vld [vmem:[%s12593_s5 + $0x98] sm:$0xff]  ;;  %v165_v29 = vld [vmem:[%s12593_s5 + $0xa0] sm:$0xff]  ;;  %v166_v30 = vld [vmem:[%s12593_s5 + $0xa8] sm:$0xff]  ;;  %s9901_s27 = sld [smem:[%s16885_s0 + %s12563_s24]]   ;;  %s12564_s28 = smov 29  }
   0xe   :  { %11125 = vrot.lane.b32.xlu1 %v11124_v8, %s12547_s6  ;;  %v11184_v28 = vpack.i.bf16 %v12680_v27, %v12677_v26  ;;  %v11194_v31 = vpack.i.bf16 %v166_v30, %v165_v29  ;;  %v167_v32 = vld [vmem:[%s12593_s5 + $0xb0] sm:$0xff]  ;;  %v168_v33 = vld [vmem:[%s12593_s5 + $0xb8] sm:$0xff]  ;;  %v12695_v35 = vld [vmem:[%s12593_s5 + $0xe0] sm:$0xff]  ;;  %s9913_s1 = sld [smem:[%s16885_s0 + %s12564_s28]]   ;;  %s12565_s2 = smov 30  }
   0xf   :  { %11115 = vrot.lane.b32.xlu0 %v11119_v3, %s12548_s7  ;;  %v11204_v34 = vpack.i.bf16 %v168_v33, %v167_v32  ;;  %v12698_v36 = vld [vmem:[%s12593_s5 + $0xe8] sm:$0xff]  ;;  %v12701_v37 = vld [vmem:[%s12593_s5 + $0xd0] sm:$0xff]  ;;  %v12704_v38 = vld [vmem:[%s12593_s5 + $0xd8] sm:$0xff]  ;;  %s12566_s8 = smov 22   ;;  %s12567_s12 = smov 24  }
  0x10   :  { %v11214_v39 = vpack.i.bf16 %v12698_v36, %v12695_v35  ;;  %v11209_v40 = vpack.i.bf16 %v12704_v38, %v12701_v37  ;;  %v12713_v41 = vld [vmem:[%s12593_s5 + $0xf0] sm:$0xff]  ;;  %v12716_v42 = vld [vmem:[%s12593_s5 + $0xf8] sm:$0xff]  ;;  %v12723_v44 = vld [vmem:[%s12593_s5 + $0x100] sm:$0xff]  ;;  %s9906_s11 = sld [smem:[%s16885_s0 + %s12566_s8]]   ;;  %s12568_s17 = smov 23  }
  0x11   :  { %v11224_v43 = vpack.i.bf16 %v12716_v42, %v12713_v41  ;;  %v12726_v45 = vld [vmem:[%s12593_s5 + $0x108] sm:$0xff]  ;;  %v12733_v47 = vld [vmem:[%s12593_s5 + $0x110] sm:$0xff]  ;;  %v12736_v48 = vld [vmem:[%s12593_s5 + $0x118] sm:$0xff]  ;;  %s9907_s22 = sld [smem:[%s16885_s0 + %s12568_s17]]   ;;  %s12577_s28 = smov 96  }
  0x12   :  { %11135 = vrot.lane.b32.xlu1 %v11134_v11, %s12548_s7  ;;  %v11234_v46 = vpack.i.bf16 %v12726_v45, %v12723_v44  ;;  %v11244_v49 = vpack.i.bf16 %v12736_v48, %v12733_v47  ;;  %v12743_v50 = vld [vmem:[%s12593_s5 + $0x120] sm:$0xff]  ;;  %v12746_v51 = vld [vmem:[%s12593_s5 + $0x128] sm:$0xff]  ;;  %v12753_v53 = vld [vmem:[%s12593_s5 + $0x130] sm:$0xff] }
  0x13   :  { %11130 = vrot.lane.b32.xlu0 %v11124_v8, %s12548_s7  ;;  %v11254_v52 = vpack.i.bf16 %v12746_v51, %v12743_v50  ;;  %v12756_v54 = vld [vmem:[%s12593_s5 + $0x138] sm:$0xff]  ;;  %v12763_v56 = vld [vmem:[%s12593_s5 + $0x140] sm:$0xff]  ;;  %v12766_v57 = vld [vmem:[%s12593_s5 + $0x148] sm:$0xff] }
  0x14   :  { %v11264_v55 = vpack.i.bf16 %v12756_v54, %v12753_v53  ;;  %v11274_v58 = vpack.i.bf16 %v12766_v57, %v12763_v56  ;;  %v12773_v59 = vld [vmem:[%s12593_s5 + $0x150] sm:$0xff]  ;;  %v12776_v60 = vld [vmem:[%s12593_s5 + $0x158] sm:$0xff]  ;;  %v189_v62 = vld [vmem:[%s12593_s5 + $0x160] sm:$0xff] }
  0x15   :  { %v11284_v61 = vpack.i.bf16 %v12776_v60, %v12773_v59  ;;  %v190_v63 = vld [vmem:[%s12593_s5 + $0x168] sm:$0xff]  ;;  %v191_v7 = vld [vmem:[%s12593_s5 + $0x170] sm:$0xff]  ;;  %v192_v8 = vld [vmem:[%s12593_s5 + $0x178] sm:$0xff] }
  0x16   :  { %11145 = vrot.lane.b32.xlu1 %v11144_v14, %s12547_s6  ;;  %v11294_v3 = vpack.i.bf16 %v190_v63, %v189_v62 }
  0x17   :  { %11140 = vrot.lane.b32.xlu0 %v11134_v11, %s12547_s6  ;;  %v11304_v11 = vpack.i.bf16 %v192_v8, %v191_v7 }
  0x1a   :  { %11155 = vrot.lane.b32.xlu1 %v11154_v18, %s12548_s7 }
  0x1b   :  { %11150 = vrot.lane.b32.xlu0 %v11144_v14, %s12548_s7 }
  0x1e   :  { %11165 = vrot.lane.b32.xlu1 %v11164_v22, %s12547_s6 }
  0x1f   :  { %11160 = vrot.lane.b32.xlu0 %v11154_v18, %s12547_s6 }
  0x22   :  { %11175 = vrot.lane.b32.xlu1 %v11174_v25, %s12548_s7 }
  0x23   :  { %11170 = vrot.lane.b32.xlu0 %v11164_v22, %s12548_s7  ;;  %v145_v22 = vld [vmem:[%s12593_s5] sm:$0xff] }
  0x26   :  { %11185 = vrot.lane.b32.xlu1 %v11184_v28, %s12547_s6 }
  0x27   :  { %11180 = vrot.lane.b32.xlu0 %v11174_v25, %s12547_s6  ;;  %v146_v25 = vld [vmem:[%s12593_s5 + $0x8] sm:$0xff] }
  0x2a   :  { %11195 = vrot.lane.b32.xlu1 %v11194_v31, %s12548_s7 }
  0x2b   :  { %11190 = vrot.lane.b32.xlu0 %v11184_v28, %s12548_s7 }
  0x2e   :  { %11205 = vrot.lane.b32.xlu1 %v11204_v34, %s12547_s6 }
  0x2f   :  { %11200 = vrot.lane.b32.xlu0 %v11194_v31, %s12547_s6 }
  0x32   :  { %11215 = vrot.lane.b32.xlu1 %v11214_v39, %s12548_s7 }
  0x33   :  { %11210 = vrot.lane.b32.xlu0 %v11209_v40, %s12548_s7 }
  0x36   :  { %11225 = vrot.lane.b32.xlu1 %v11224_v43, %s12547_s6 }
  0x37   :  { %11220 = vrot.lane.b32.xlu0 %v11214_v39, %s12547_s6 }
  0x3a   :  { %11235 = vrot.lane.b32.xlu1 %v11234_v46, %s12548_s7 }
  0x3b   :  { %11230 = vrot.lane.b32.xlu0 %v11224_v43, %s12548_s7 }
  0x3e   :  { %11245 = vrot.lane.b32.xlu1 %v11244_v49, %s12547_s6 }
  0x3f   :  { %11240 = vrot.lane.b32.xlu0 %v11234_v46, %s12547_s6 }
  0x42   :  { %11255 = vrot.lane.b32.xlu1 %v11254_v52, %s12548_s7 }
  0x43   :  { %11250 = vrot.lane.b32.xlu0 %v11244_v49, %s12548_s7 }
  0x46   :  { %11265 = vrot.lane.b32.xlu1 %v11264_v55, %s12547_s6 }
  0x47   :  { %11260 = vrot.lane.b32.xlu0 %v11254_v52, %s12547_s6 }
  0x4a   :  { %11275 = vrot.lane.b32.xlu1 %v11274_v58, %s12548_s7 }
  0x4b   :  { %11270 = vrot.lane.b32.xlu0 %v11264_v55, %s12548_s7 }
  0x4e   :  { %11285 = vrot.lane.b32.xlu1 %v11284_v61, %s12547_s6 }
  0x4f   :  { %11280 = vrot.lane.b32.xlu0 %v11274_v58, %s12547_s6 }
  0x52   :  { %11295 = vrot.lane.b32.xlu1 %v11294_v3, %s12548_s7 }
  0x53   :  { %11290 = vrot.lane.b32.xlu0 %v11284_v61, %s12548_s7 }
  0x56   :  { %11305 = vrot.lane.b32.xlu1 %v11304_v11, %s12547_s6 }
  0x57   :  { %11300 = vrot.lane.b32.xlu0 %v11294_v3, %s12547_s6 }
  0x7c   :  { %v11121_v14 = vpop.permute.xlu1 %11120 }
  0x7d   :  { %v11123_v17 = vunpack.i.h.bf16 %v11121_v14  ;;  %v11122_v18 = vunpack.i.l.bf16 %v11121_v14  ;;  %v11111_v21 = vpop.permute.xlu0 %11110 }
  0x7e   :  { %v11113_v28 = vunpack.i.h.bf16 %v11111_v21  ;;  %v11112_v29 = vunpack.i.l.bf16 %v11111_v21 }
  0x80   :  { %v11126_v30 = vpop.permute.xlu1 %11125  ;;  %v478_v31 = vsel %vm477_vm1, %v145_v22, %v11112_v29  ;;  %v479_v32 = vsel %vm477_vm1, %v146_v25, %v11113_v28 }
  0x81   :  { %v11128_v33 = vunpack.i.h.bf16 %v11126_v30  ;;  %v11127_v34 = vunpack.i.l.bf16 %v11126_v30  ;;  %v11116_v39 = vpop.permute.xlu0 %11115  ;;  %v519_v40 = vsel %vm518_vm2, %v478_v31, %v11122_v18  ;;  %v520_v43 = vsel %vm518_vm2, %v479_v32, %v11123_v17 }
  0x82   :  { %v11118_v46 = vunpack.i.h.bf16 %v11116_v39  ;;  %v11117_v49 = vunpack.i.l.bf16 %v11116_v39  ;;  %v561_v52 = vpack.c.bf16 %v520_v43, %v519_v40 }
  0x84   :  { %v481_v55 = vsel %vm477_vm1, %v12607_v4, %v11118_v46  ;;  %v480_v58 = vsel %vm477_vm1, %v12602_v2, %v11117_v49  ;;  %10402 = vmatprep.mubr.msk.bf16.mxu0 %vm593_vm3, %v561_v52  ;;  %v11136_v61 = vpop.permute.xlu1 %11135 }
  0x85   :  { %v11131_v62 = vpop.permute.xlu0 %11130  ;;  %v521_v63 = vsel %vm518_vm2, %v480_v58, %v11127_v34  ;;  %v522_v3 = vsel %vm518_vm2, %v481_v55, %v11128_v33  ;;  %v11138_v7 = vunpack.i.h.bf16 %v11136_v61  ;;  %v11137_v8 = vunpack.i.l.bf16 %v11136_v61 }
  0x86   :  { %v562_v11 = vpack.c.bf16 %v522_v3, %v521_v63  ;;  %v11133_v14 = vunpack.i.h.bf16 %v11131_v62  ;;  %v11132_v17 = vunpack.i.l.bf16 %v11131_v62 }
  0x87   :  { %v485_v2 = vsel %vm477_vm1, %v12613_v6, %v11138_v7  ;;  %v484_v25 = vsel %vm477_vm1, %v12610_v5, %v11137_v8 }
  0x88   :  { %10403 = vmatmul.mubr.msk.bf16.vlgmr.msra.gmra.mrb[0].mxu0 %vm593_vm3, %v562_v11  ;;  %v11146_v18 = vpop.permute.xlu1 %11145  ;;  %v483_v30 = vsel %vm477_vm1, %v12599_v1, %v11133_v14  ;;  %v482_v31 = vsel %vm477_vm1, %v12596_v0, %v11132_v17 }
  0x89   :  { %v11148_v4 = vunpack.i.h.bf16 %v11146_v18  ;;  %v11147_v21 = vunpack.i.l.bf16 %v11146_v18  ;;  %v11141_v22 = vpop.permute.xlu0 %11140 }
  0x8a   :  { %v11143_v28 = vunpack.i.h.bf16 %v11141_v22  ;;  %v11142_v29 = vunpack.i.l.bf16 %v11141_v22 }
  0x8b   :  { %v525_v32 = vsel %vm518_vm2, %v484_v25, %v11147_v21  ;;  %v526_v33 = vsel %vm518_vm2, %v485_v2, %v11148_v4 }
  0x8c   :  { %v523_v34 = vsel %vm518_vm2, %v482_v31, %v11142_v29  ;;  %v524_v39 = vsel %vm518_vm2, %v483_v30, %v11143_v28  ;;  %v11156_v6 = vpop.permute.xlu1 %11155  ;;  %v564_v40 = vpack.c.bf16 %v526_v33, %v525_v32 }
  0x8d   :  { %v11151_v43 = vpop.permute.xlu0 %11150  ;;  %v563_v5 = vpack.c.bf16 %v524_v39, %v523_v34  ;;  %v11158_v46 = vunpack.i.h.bf16 %v11156_v6  ;;  %v11157_v49 = vunpack.i.l.bf16 %v11156_v6 }
  0x8e   :  { %v11153_v52 = vunpack.i.h.bf16 %v11151_v43  ;;  %v11152_v55 = vunpack.i.l.bf16 %v11151_v43 }
  0x8f   :  { %10406 = vmatprep.mubr.msk.bf16.mxu0 %vm593_vm3, %v563_v5  ;;  %v489_v62 = vsel %vm477_vm1, %v12638_v13, %v11158_v46  ;;  %v488_v63 = vsel %vm477_vm1, %v12635_v12, %v11157_v49 }
  0x90   :  { %10407 = vmatmul.mubr.msk.bf16.gmra.mrb[4].mxu0 %vm593_vm3, %v564_v40  ;;  %v11166_v0 = vpop.permute.xlu1 %11165  ;;  %v487_v8 = vsel %vm477_vm1, %v12625_v10, %v11153_v52  ;;  %v486_v11 = vsel %vm477_vm1, %v12622_v9, %v11152_v55 }
  0x91   :  { %v11168_v1 = vunpack.i.h.bf16 %v11166_v0  ;;  %v11167_v58 = vunpack.i.l.bf16 %v11166_v0  ;;  %v11161_v61 = vpop.permute.xlu0 %11160 }
  0x92   :  { %v11163_v3 = vunpack.i.h.bf16 %v11161_v61  ;;  %v11162_v7 = vunpack.i.l.bf16 %v11161_v61 }
  0x93   :  { %v529_v14 = vsel %vm518_vm2, %v488_v63, %v11167_v58  ;;  %v530_v17 = vsel %vm518_vm2, %v489_v62, %v11168_v1 }
  0x94   :  { %v527_v18 = vsel %vm518_vm2, %v486_v11, %v11162_v7  ;;  %v528_v4 = vsel %vm518_vm2, %v487_v8, %v11163_v3  ;;  %v11176_v13 = vpop.permute.xlu1 %11175  ;;  %v566_v21 = vpack.c.bf16 %v530_v17, %v529_v14 }
  0x95   :  { %v11171_v22 = vpop.permute.xlu0 %11170  ;;  %v565_v12 = vpack.c.bf16 %v528_v4, %v527_v18  ;;  %v11178_v2 = vunpack.i.h.bf16 %v11176_v13  ;;  %v11177_v25 = vunpack.i.l.bf16 %v11176_v13 }
  0x96   :  { %v11173_v28 = vunpack.i.h.bf16 %v11171_v22  ;;  %v11172_v29 = vunpack.i.l.bf16 %v11171_v22 }
  0x97   :  { %10410 = vmatprep.mubr.msk.bf16.mxu0 %vm593_vm3, %v565_v12  ;;  %v493_v32 = vsel %vm477_vm1, %v12658_v20, %v11178_v2  ;;  %v492_v33 = vsel %vm477_vm1, %v12655_v19, %v11177_v25  ;;  %v169_v2 = vld [vmem:[%s12593_s5 + $0xc0] sm:$0xff]  ;;  %v170_v25 = vld [vmem:[%s12593_s5 + $0xc8] sm:$0xff]  ;;  %s9914_s5 = sld [smem:[%s16885_s0 + %s12565_s2]]   ;;  %s12579_s2 = smov 7  }
  0x98   :  { %10411 = vmatmul.mubr.msk.bf16.gmra.mrb[8].mxu0 %vm593_vm3, %v566_v21  ;;  %v11186_v9 = vpop.permute.xlu1 %11185  ;;  %v491_v6 = vsel %vm477_vm1, %v12648_v16, %v11173_v28  ;;  %v490_v40 = vsel %vm477_vm1, %v12645_v15, %v11172_v29 }
  0x99   :  { %v11188_v10 = vunpack.i.h.bf16 %v11186_v9  ;;  %v11187_v30 = vunpack.i.l.bf16 %v11186_v9  ;;  %v11181_v31 = vpop.permute.xlu0 %11180 }
  0x9a   :  { %v11183_v34 = vunpack.i.h.bf16 %v11181_v31  ;;  %v11182_v39 = vunpack.i.l.bf16 %v11181_v31 }
  0x9b   :  { %v533_v43 = vsel %vm518_vm2, %v492_v33, %v11187_v30  ;;  %v534_v5 = vsel %vm518_vm2, %v493_v32, %v11188_v10 }
  0x9c   :  { %v531_v46 = vsel %vm518_vm2, %v490_v40, %v11182_v39  ;;  %v532_v49 = vsel %vm518_vm2, %v491_v6, %v11183_v34  ;;  %v568_v20 = vpack.c.bf16 %v534_v5, %v533_v43  ;;  %v11196_v52 = vpop.permute.xlu1 %11195 }
  0x9d   :  { %v567_v55 = vpack.c.bf16 %v532_v49, %v531_v46  ;;  %v11191_v19 = vpop.permute.xlu0 %11190  ;;  %v11198_v0 = vunpack.i.h.bf16 %v11196_v52  ;;  %v11197_v1 = vunpack.i.l.bf16 %v11196_v52 }
  0x9e   :  { %v11193_v58 = vunpack.i.h.bf16 %v11191_v19  ;;  %v11192_v61 = vunpack.i.l.bf16 %v11191_v19 }
  0x9f   :  { %10414 = vmatprep.mubr.msk.bf16.mxu0 %vm593_vm3, %v567_v55  ;;  %v497_v15 = vsel %vm477_vm1, %v12680_v27, %v11198_v0  ;;  %v496_v16 = vsel %vm477_vm1, %v12677_v26, %v11197_v1 }
  0xa0   :  { %10415 = vmatmul.mubr.msk.bf16.gmra.mrb[12].mxu0 %vm593_vm3, %v568_v20  ;;  %v11206_v62 = vpop.permute.xlu1 %11205  ;;  %v495_v63 = vsel %vm477_vm1, %v12670_v24, %v11193_v58  ;;  %v494_v3 = vsel %vm477_vm1, %v12667_v23, %v11192_v61 }
  0xa1   :  { %v11201_v7 = vpop.permute.xlu0 %11200  ;;  %v11208_v8 = vunpack.i.h.bf16 %v11206_v62  ;;  %v11207_v11 = vunpack.i.l.bf16 %v11206_v62 }
  0xa2   :  { %v11203_v14 = vunpack.i.h.bf16 %v11201_v7  ;;  %v11202_v17 = vunpack.i.l.bf16 %v11201_v7 }
  0xa3   :  { %v537_v18 = vsel %vm518_vm2, %v496_v16, %v11207_v11  ;;  %v538_v27 = vsel %vm518_vm2, %v497_v15, %v11208_v8 }
  0xa4   :  { %v535_v26 = vsel %vm518_vm2, %v494_v3, %v11202_v17  ;;  %v536_v4 = vsel %vm518_vm2, %v495_v63, %v11203_v14  ;;  %v570_v13 = vpack.c.bf16 %v538_v27, %v537_v18  ;;  %v11216_v24 = vpop.permute.xlu1 %11215 }
  0xa5   :  { %v569_v21 = vpack.c.bf16 %v536_v4, %v535_v26  ;;  %v11211_v22 = vpop.permute.xlu0 %11210  ;;  %v11218_v23 = vunpack.i.h.bf16 %v11216_v24  ;;  %v11217_v12 = vunpack.i.l.bf16 %v11216_v24 }
  0xa6   :  { %v11213_v28 = vunpack.i.h.bf16 %v11211_v22  ;;  %v11212_v29 = vunpack.i.l.bf16 %v11211_v22 }
  0xa7   :  { %10418 = vmatprep.mubr.msk.bf16.mxu0 %vm593_vm3, %v569_v21  ;;  %v501_v9 = vsel %vm477_vm1, %v12704_v38, %v11218_v23  ;;  %v500_v10 = vsel %vm477_vm1, %v12701_v37, %v11217_v12 }
  0xa8   :  { %10419 = vmatmul.mubr.msk.bf16.gmra.mrb[16].mxu0 %vm593_vm3, %v570_v13  ;;  %v11226_v30 = vpop.permute.xlu1 %11225  ;;  %v499_v31 = vsel %vm477_vm1, %v170_v25, %v11213_v28  ;;  %v498_v32 = vsel %vm477_vm1, %v169_v2, %v11212_v29 }
  0xa9   :  { %v11221_v33 = vpop.permute.xlu0 %11220  ;;  %v11228_v34 = vunpack.i.h.bf16 %v11226_v30  ;;  %v11227_v39 = vunpack.i.l.bf16 %v11226_v30 }
  0xaa   :  { %v11223_v6 = vunpack.i.h.bf16 %v11221_v33  ;;  %v11222_v40 = vunpack.i.l.bf16 %v11221_v33 }
  0xab   :  { %v541_v43 = vsel %vm518_vm2, %v500_v10, %v11227_v39  ;;  %v542_v5 = vsel %vm518_vm2, %v501_v9, %v11228_v34 }
  0xac   :  { %v539_v46 = vsel %vm518_vm2, %v498_v32, %v11222_v40  ;;  %v540_v38 = vsel %vm518_vm2, %v499_v31, %v11223_v6  ;;  %v572_v49 = vpack.c.bf16 %v542_v5, %v541_v43  ;;  %v11236_v37 = vpop.permute.xlu1 %11235 }
  0xad   :  { %v571_v20 = vpack.c.bf16 %v540_v38, %v539_v46  ;;  %v11231_v52 = vpop.permute.xlu0 %11230  ;;  %v11238_v55 = vunpack.i.h.bf16 %v11236_v37  ;;  %v11237_v19 = vunpack.i.l.bf16 %v11236_v37 }
  0xae   :  { %v11233_v0 = vunpack.i.h.bf16 %v11231_v52  ;;  %v11232_v1 = vunpack.i.l.bf16 %v11231_v52 }
  0xaf   :  { %10422 = vmatprep.mubr.msk.bf16.mxu0 %vm593_vm3, %v571_v20  ;;  %v505_v58 = vsel %vm477_vm1, %v12716_v42, %v11238_v55  ;;  %v504_v61 = vsel %vm477_vm1, %v12713_v41, %v11237_v19 }
  0xb0   :  { %10423 = vmatmul.mubr.msk.bf16.gmra.mrb[20].mxu0 %vm593_vm3, %v572_v49  ;;  %v11246_v15 = vpop.permute.xlu1 %11245  ;;  %v503_v16 = vsel %vm477_vm1, %v12698_v36, %v11233_v0  ;;  %v502_v62 = vsel %vm477_vm1, %v12695_v35, %v11232_v1 }
  0xb1   :  { %v11241_v63 = vpop.permute.xlu0 %11240  ;;  %v11248_v3 = vunpack.i.h.bf16 %v11246_v15  ;;  %v11247_v7 = vunpack.i.l.bf16 %v11246_v15 }
  0xb2   :  { %v11243_v8 = vunpack.i.h.bf16 %v11241_v63  ;;  %v11242_v11 = vunpack.i.l.bf16 %v11241_v63 }
  0xb3   :  { %v545_v14 = vsel %vm518_vm2, %v504_v61, %v11247_v7  ;;  %v546_v17 = vsel %vm518_vm2, %v505_v58, %v11248_v3 }
  0xb4   :  { %v543_v42 = vsel %vm518_vm2, %v502_v62, %v11242_v11  ;;  %v544_v41 = vsel %vm518_vm2, %v503_v16, %v11243_v8  ;;  %v574_v18 = vpack.c.bf16 %v546_v17, %v545_v14  ;;  %v11256_v27 = vpop.permute.xlu1 %11255 }
  0xb5   :  { %v573_v26 = vpack.c.bf16 %v544_v41, %v543_v42  ;;  %v11251_v36 = vpop.permute.xlu0 %11250  ;;  %v11258_v4 = vunpack.i.h.bf16 %v11256_v27  ;;  %v11257_v13 = vunpack.i.l.bf16 %v11256_v27 }
  0xb6   :  { %v11253_v35 = vunpack.i.h.bf16 %v11251_v36  ;;  %v11252_v24 = vunpack.i.l.bf16 %v11251_v36 }
  0xb7   :  { %10426 = vmatprep.mubr.msk.bf16.mxu0 %vm593_vm3, %v573_v26  ;;  %v509_v21 = vsel %vm477_vm1, %v12736_v48, %v11258_v4  ;;  %v508_v22 = vsel %vm477_vm1, %v12733_v47, %v11257_v13 }
  0xb8   :  { %10427 = vmatmul.mubr.msk.bf16.gmra.mrb[24].mxu0 %vm593_vm3, %v574_v18  ;;  %v11266_v23 = vpop.permute.xlu1 %11265  ;;  %v507_v12 = vsel %vm477_vm1, %v12726_v45, %v11253_v35  ;;  %v506_v2 = vsel %vm477_vm1, %v12723_v44, %v11252_v24 }
  0xb9   :  { %v11261_v25 = vpop.permute.xlu0 %11260  ;;  %v11268_v28 = vunpack.i.h.bf16 %v11266_v23  ;;  %v11267_v29 = vunpack.i.l.bf16 %v11266_v23 }
  0xba   :  { %v11263_v9 = vunpack.i.h.bf16 %v11261_v25  ;;  %v11262_v10 = vunpack.i.l.bf16 %v11261_v25 }
  0xbb   :  { %v549_v30 = vsel %vm518_vm2, %v508_v22, %v11267_v29  ;;  %v550_v31 = vsel %vm518_vm2, %v509_v21, %v11268_v28 }
  0xbc   :  { %v547_v48 = vsel %vm518_vm2, %v506_v2, %v11262_v10  ;;  %v548_v47 = vsel %vm518_vm2, %v507_v12, %v11263_v9  ;;  %v576_v32 = vpack.c.bf16 %v550_v31, %v549_v30  ;;  %v11276_v33 = vpop.permute.xlu1 %11275 }
  0xbd   :  { %v575_v34 = vpack.c.bf16 %v548_v47, %v547_v48  ;;  %v11271_v45 = vpop.permute.xlu0 %11270  ;;  %v11278_v39 = vunpack.i.h.bf16 %v11276_v33  ;;  %v11277_v6 = vunpack.i.l.bf16 %v11276_v33 }
  0xbe   :  { %v11273_v44 = vunpack.i.h.bf16 %v11271_v45  ;;  %v11272_v40 = vunpack.i.l.bf16 %v11271_v45 }
  0xbf   :  { %10430 = vmatprep.mubr.msk.bf16.mxu0 %vm593_vm3, %v575_v34  ;;  %v513_v43 = vsel %vm477_vm1, %v12756_v54, %v11278_v39  ;;  %v512_v5 = vsel %vm477_vm1, %v12753_v53, %v11277_v6 }
  0xc0   :  { %10431 = vmatmul.mubr.msk.bf16.gmra.mrb[28].mxu0 %vm593_vm3, %v576_v32  ;;  %v11286_v46 = vpop.permute.xlu1 %11285  ;;  %v511_v38 = vsel %vm477_vm1, %v12746_v51, %v11273_v44  ;;  %v510_v49 = vsel %vm477_vm1, %v12743_v50, %v11272_v40 }
  0xc1   :  { %v11281_v37 = vpop.permute.xlu0 %11280  ;;  %v11288_v20 = vunpack.i.h.bf16 %v11286_v46  ;;  %v11287_v52 = vunpack.i.l.bf16 %v11286_v46 }
  0xc2   :  { %v11283_v55 = vunpack.i.h.bf16 %v11281_v37  ;;  %v11282_v19 = vunpack.i.l.bf16 %v11281_v37 }
  0xc3   :  { %v553_v0 = vsel %vm518_vm2, %v512_v5, %v11287_v52  ;;  %v554_v1 = vsel %vm518_vm2, %v513_v43, %v11288_v20 }
  0xc4   :  { %v551_v54 = vsel %vm518_vm2, %v510_v49, %v11282_v19  ;;  %v552_v53 = vsel %vm518_vm2, %v511_v38, %v11283_v55  ;;  %v578_v58 = vpack.c.bf16 %v554_v1, %v553_v0  ;;  %v11296_v61 = vpop.permute.xlu1 %11295 }
  0xc5   :  { %v577_v15 = vpack.c.bf16 %v552_v53, %v551_v54  ;;  %v11291_v51 = vpop.permute.xlu0 %11290  ;;  %v11298_v16 = vunpack.i.h.bf16 %v11296_v61  ;;  %v11297_v62 = vunpack.i.l.bf16 %v11296_v61 }
  0xc6   :  { %v11293_v50 = vunpack.i.h.bf16 %v11291_v51  ;;  %v11292_v63 = vunpack.i.l.bf16 %v11291_v51 }
  0xc7   :  { %10434 = vmatprep.mubr.msk.bf16.mxu0 %vm593_vm3, %v577_v15  ;;  %v517_v3 = vsel %vm477_vm1, %v12776_v60, %v11298_v16  ;;  %v516_v7 = vsel %vm477_vm1, %v12773_v59, %v11297_v62 }
  0xc8   :  { %10435 = vmatmul.mubr.msk.bf16.gmra.mrb[32].mxu0 %vm593_vm3, %v578_v58  ;;  %v11306_v8 = vpop.permute.xlu1 %11305  ;;  %v515_v11 = vsel %vm477_vm1, %v12766_v57, %v11293_v50  ;;  %v514_v14 = vsel %vm477_vm1, %v12763_v56, %v11292_v63  ;;  %v12935_v56 = vld [vmem:[%s9903_s15] ss:$0 sm:$0xff]  ;;  %s9908_s15 = sld [smem:[%s16885_s0 + %s12567_s12]]  }
  0xc9   :  { %v11301_v17 = vpop.permute.xlu0 %11300  ;;  %v11308_v42 = vunpack.i.h.bf16 %v11306_v8  ;;  %v11307_v41 = vunpack.i.l.bf16 %v11306_v8 }
  0xca   :  { %v11303_v18 = vunpack.i.h.bf16 %v11301_v17  ;;  %v11302_v27 = vunpack.i.l.bf16 %v11301_v17 }
  0xcb   :  { %v557_v26 = vsel %vm518_vm2, %v516_v7, %v11307_v41  ;;  %v558_v36 = vsel %vm518_vm2, %v517_v3, %v11308_v42 }
  0xcc   :  { %v555_v60 = vsel %vm518_vm2, %v514_v14, %v11302_v27  ;;  %v556_v59 = vsel %vm518_vm2, %v515_v11, %v11303_v18  ;;  %v580_v4 = vpack.c.bf16 %v558_v36, %v557_v26  ;;  %v1491_v18 = vld [vmem:[%s9895_s20] sm:$0xf] }
  0xcd   :  { %v579_v13 = vpack.c.bf16 %v556_v59, %v555_v60  ;;  %11063 = vmatprep.subr.msk.bf16.mxu1 %vm1579_vm4, %v1491_v18  ;;  %v1581_v36 = vsel %vm1579_vm4, %v1491_v18, 0 }
  0xce   :  { %10443 = vmatpush3.bf16.msra.mxu1 %v1581_v36 }
  0xcf   :  { %10438 = vmatprep.mubr.msk.bf16.mxu0 %vm593_vm3, %v579_v13 }
  0xd0   :  { %10439 = vmatmul.mubr.msk.bf16.gmra.mrb[36].mxu0 %vm593_vm3, %v580_v4 }
 0x15b   :  { %v10404_v57 = vpop.f32.mrb[0].mxu0 }
 0x15c   :  { %v12938_v35 = vadd.f32 %v10404_v57, %v12935_v56  ;;  %v692_v24 = vpop.f32.mrb[1].mxu0 }
 0x15d   :  { %v12941_v21 = vadd.f32 %v12935_v56, %v692_v24  ;;  %v10405_v22 = vpop.f32.mrb[2].mxu0 }
 0x15e   :  { %v1053_v23 = vsub.f32 0.0, %v12938_v35  ;;  %v12945_v12 = vadd.f32 %v10405_v22, %v12935_v56  ;;  %895 = vrot.lane.b32.xlu0 %v12938_v35, %s12551_s16  ;;  %v695_v2 = vpop.f32.mrb[3].mxu0 }
 0x15f   :  { %v1051_v25 = vsub.f32 0.0, %v12941_v21  ;;  %v12951_v28 = vadd.f32 %v12935_v56, %v695_v2 }
 0x160   :  { %v1095_v29 = vmul.f32 1.442695, %v1053_v23  ;;  %v1054_v9 = vsub.f32 0.0, %v12945_v12  ;;  %897 = vrot.lane.b32.xlu1 %v12945_v12, %s12551_s16 }
 0x161   :  { %v1052_v10 = vsub.f32 0.0, %v12951_v28  ;;  %v1091_v30 = vmul.f32 1.442695, %v1051_v25 }
 0x162   :  { %12031 = vpow2.f32 %v1095_v29  ;;  %v1097_v31 = vmul.f32 1.442695, %v1054_v9  ;;  %891 = vrot.lane.b32.xlu0 %v12941_v21, %s12551_s16 }
 0x163   :  { %v10408_v48 = vpop.f32.mrb[4].mxu0  ;;  %v1093_v47 = vmul.f32 1.442695, %v1052_v10 }
 0x164   :  { %12033 = vpow2.f32 %v1097_v31  ;;  %v12960_v32 = vadd.f32 %v10408_v48, %v12935_v56  ;;  %v708_v33 = vpop.f32.mrb[5].mxu0  ;;  %893 = vrot.lane.b32.xlu1 %v12951_v28, %s12551_s16 }
 0x165   :  { %v10409_v34 = vpop.f32.mrb[6].mxu0  ;;  %12035 = vpow2.f32 %v1091_v30  ;;  %v12970_v6 = vadd.f32 %v12935_v56, %v708_v33 }
 0x166   :  { %v12965_v45 = vadd.f32 %v10409_v34, %v12935_v56  ;;  %v711_v39 = vpop.f32.mrb[7].mxu0  ;;  %903 = vrot.lane.b32.xlu0 %v12960_v32, %s12551_s16  ;;  %12037 = vpow2.f32 %v1093_v47  ;;  %v1057_v44 = vsub.f32 0.0, %v12960_v32 }
 0x167   :  { %v12976_v40 = vadd.f32 %v12935_v56, %v711_v39  ;;  %v1055_v55 = vsub.f32 0.0, %v12970_v6 }
 0x168   :  { %905 = vrot.lane.b32.xlu1 %v12965_v45, %s12551_s16  ;;  %v1058_v46 = vsub.f32 0.0, %v12965_v45  ;;  %v1103_v52 = vmul.f32 1.442695, %v1057_v44 }
 0x169   :  { %v1056_v58 = vsub.f32 0.0, %v12976_v40  ;;  %v1099_v16 = vmul.f32 1.442695, %v1055_v55 }
 0x16a   :  { %899 = vrot.lane.b32.xlu0 %v12970_v6, %s12551_s16  ;;  %v1105_v53 = vmul.f32 1.442695, %v1058_v46  ;;  %12039 = vpow2.f32 %v1103_v52 }
 0x16b   :  { %v10412_v43 = vpop.f32.mrb[8].mxu0  ;;  %v1101_v3 = vmul.f32 1.442695, %v1056_v58 }
 0x16c   :  { %v12032_v5 = vpop.eup %12031  ;;  %v12982_v38 = vadd.f32 %v10412_v43, %v12935_v56  ;;  %v724_v49 = vpop.f32.mrb[9].mxu0  ;;  %901 = vrot.lane.b32.xlu1 %v12976_v40, %s12551_s16 }
 0x16d   :  { %v10413_v37 = vpop.f32.mrb[10].mxu0  ;;  %v1173_v1 = vadd.f32 1.0, %v12032_v5  ;;  %v12994_v61 = vadd.f32 %v12935_v56, %v724_v49 }
 0x16e   :  { %v12034_v20 = vpop.eup %12033  ;;  %v12988_v19 = vadd.f32 %v10413_v37, %v12935_v56  ;;  %v727_v0 = vpop.f32.mrb[11].mxu0  ;;  %911 = vrot.lane.b32.xlu0 %v12982_v38, %s12551_s16  ;;  %v1061_v27 = vsub.f32 0.0, %v12982_v38 }
 0x16f   :  { %v12036_v54 = vpop.eup %12035  ;;  %v1174_v15 = vadd.f32 1.0, %v12034_v20  ;;  %v12999_v62 = vadd.f32 %v12935_v56, %v727_v0  ;;  %12041 = vrcp.f32 %v1173_v1  ;;  %v1059_v2 = vsub.f32 0.0, %v12994_v61 }
 0x170   :  { %913 = vrot.lane.b32.xlu1 %v12988_v19, %s12551_s16  ;;  %v12038_v51 = vpop.eup %12037  ;;  %v1171_v50 = vadd.f32 1.0, %v12036_v54  ;;  %12043 = vpow2.f32 %v1105_v53  ;;  %v1062_v4 = vsub.f32 0.0, %v12988_v19  ;;  %v1111_v23 = vmul.f32 1.442695, %v1061_v27 }
 0x171   :  { %12045 = vrcp.f32 %v1174_v15  ;;  %v1172_v11 = vadd.f32 1.0, %v12038_v51  ;;  %v1060_v31 = vsub.f32 0.0, %v12999_v62  ;;  %v1107_v34 = vmul.f32 1.442695, %v1059_v2 }
 0x172   :  { %907 = vrot.lane.b32.xlu0 %v12994_v61, %s12551_s16  ;;  %12047 = vpow2.f32 %v1099_v16  ;;  %v1113_v30 = vmul.f32 1.442695, %v1062_v4 }
 0x173   :  { %v10416_v63 = vpop.f32.mrb[12].mxu0  ;;  %12049 = vrcp.f32 %v1171_v50  ;;  %v1109_v5 = vmul.f32 1.442695, %v1060_v31 }
 0x174   :  { %v13007_v7 = vadd.f32 %v10416_v63, %v12935_v56  ;;  %v740_v8 = vpop.f32.mrb[13].mxu0  ;;  %909 = vrot.lane.b32.xlu1 %v12999_v62, %s12551_s16  ;;  %12051 = vpow2.f32 %v1101_v3  ;;  %v12040_v59 = vpop.eup %12039 }
 0x175   :  { %v10417_v14 = vpop.f32.mrb[14].mxu0  ;;  %v13017_v41 = vadd.f32 %v12935_v56, %v740_v8  ;;  %12053 = vrcp.f32 %v1172_v11  ;;  %v1177_v9 = vadd.f32 1.0, %v12040_v59 }
 0x176   :  { %v13012_v17 = vadd.f32 %v10417_v14, %v12935_v56  ;;  %v743_v42 = vpop.f32.mrb[15].mxu0  ;;  %919 = vrot.lane.b32.xlu0 %v13007_v7, %s12551_s16  ;;  %12055 = vpow2.f32 %v1111_v23  ;;  %v1065_v1 = vsub.f32 0.0, %v13007_v7 }
 0x177   :  { %v13023_v26 = vadd.f32 %v12935_v56, %v743_v42  ;;  %12057 = vrcp.f32 %v1177_v9  ;;  %v1063_v8 = vsub.f32 0.0, %v13017_v41 }
 0x178   :  { %921 = vrot.lane.b32.xlu1 %v13012_v17, %s12551_s16  ;;  %12059 = vpow2.f32 %v1113_v30  ;;  %v1066_v15 = vsub.f32 0.0, %v13012_v17  ;;  %v1119_v3 = vmul.f32 1.442695, %v1065_v1 }
 0x179   :  { %v12042_v57 = vpop.eup %12041  ;;  %v1064_v36 = vsub.f32 0.0, %v13023_v26 }
 0x17a   :  { %915 = vrot.lane.b32.xlu0 %v13017_v41, %s12551_s16  ;;  %v12044_v22 = vpop.eup %12043  ;;  %v1121_v27 = vmul.f32 1.442695, %v1066_v15 }
 0x17b   :  { %v10420_v60 = vpop.f32.mrb[16].mxu0  ;;  %v12046_v29 = vpop.eup %12045  ;;  %v1178_v47 = vadd.f32 1.0, %v12044_v22  ;;  %v1117_v23 = vmul.f32 1.442695, %v1064_v36 }
 0x17c   :  { %917 = vrot.lane.b32.xlu1 %v13023_v26, %s12551_s16  ;;  %v756_v13 = vpop.f32.mrb[17].mxu0  ;;  %v12048_v10 = vpop.eup %12047  ;;  %v13038_v46 = vadd.f32 %v10420_v60, %v12935_v56 }
 0x17d   :  { %v10421_v24 = vpop.f32.mrb[18].mxu0  ;;  %v12050_v48 = vpop.eup %12049  ;;  %v1175_v44 = vadd.f32 1.0, %v12048_v10  ;;  %12061 = vrcp.f32 %v1178_v47  ;;  %v13047_v0 = vadd.f32 %v12935_v56, %v756_v13  ;;  %v1115_v13 = vmul.f32 1.442695, %v1063_v8 }
 0x17e   :  { %1335 = vrot.lane.b32.xlu0 %v12042_v57, %s12553_s21  ;;  %v759_v25 = vpop.f32.mrb[19].mxu0  ;;  %v12052_v33 = vpop.eup %12051  ;;  %12063 = vpow2.f32 %v1107_v34  ;;  %v13042_v52 = vadd.f32 %v10421_v24, %v12935_v56 }
 0x17f   :  { %v12054_v39 = vpop.eup %12053  ;;  %v1176_v37 = vadd.f32 1.0, %v12052_v33  ;;  %12065 = vrcp.f32 %v1175_v44  ;;  %v13053_v54 = vadd.f32 %v12935_v56, %v759_v25 }
 0x180   :  { %1337 = vrot.lane.b32.xlu1 %v12046_v29, %s12553_s21  ;;  %12067 = vpow2.f32 %v1109_v5  ;;  %v12056_v58 = vpop.eup %12055 }
 0x181   :  { %12069 = vrcp.f32 %v1176_v37  ;;  %v12058_v16 = vpop.eup %12057  ;;  %v1181_v42 = vadd.f32 1.0, %v12056_v58 }
 0x182   :  { %1331 = vrot.lane.b32.xlu0 %v12050_v48, %s12553_s21  ;;  %v12060_v63 = vpop.eup %12059  ;;  %12071 = vpow2.f32 %v1119_v3  ;;  %v1069_v48 = vsub.f32 0.0, %v13038_v46 }
 0x183   :  { %v10424_v43 = vpop.f32.mrb[20].mxu0  ;;  %v1182_v59 = vadd.f32 1.0, %v12060_v63  ;;  %12073 = vrcp.f32 %v1181_v42  ;;  %v1068_v63 = vsub.f32 0.0, %v13053_v54 }
 0x184   :  { %1333 = vrot.lane.b32.xlu1 %v12054_v39, %s12553_s21  ;;  %v772_v49 = vpop.f32.mrb[21].mxu0  ;;  %12075 = vpow2.f32 %v1121_v27  ;;  %v13076_v2 = vadd.f32 %v10424_v43, %v12935_v56  ;;  %v1070_v39 = vsub.f32 0.0, %v13042_v52  ;;  %v1127_v37 = vmul.f32 1.442695, %v1069_v48 }
 0x185   :  { %v10425_v20 = vpop.f32.mrb[22].mxu0  ;;  %12077 = vrcp.f32 %v1182_v59  ;;  %v13091_v31 = vadd.f32 %v12935_v56, %v772_v49 }
 0x186   :  { %927 = vrot.lane.b32.xlu0 %v13038_v46, %s12551_s16  ;;  %v775_v55 = vpop.f32.mrb[23].mxu0  ;;  %12079 = vpow2.f32 %v1115_v13  ;;  %v13084_v10 = vadd.f32 %v10425_v20, %v12935_v56  ;;  %v1067_v20 = vsub.f32 0.0, %v13047_v0 }
 0x187   :  { %v12062_v14 = vpop.eup %12061  ;;  %v13097_v47 = vadd.f32 %v12935_v56, %v775_v55 }
 0x188   :  { %929 = vrot.lane.b32.xlu1 %v13042_v52, %s12551_s16  ;;  %v12064_v18 = vpop.eup %12063  ;;  %v1123_v42 = vmul.f32 1.442695, %v1067_v20 }
 0x189   :  { %v12066_v60 = vpop.eup %12065  ;;  %v1179_v24 = vadd.f32 1.0, %v12064_v18 }
 0x18a   :  { %923 = vrot.lane.b32.xlu0 %v13047_v0, %s12551_s16  ;;  %v12068_v4 = vpop.eup %12067 }
 0x18b   :  { %v13057_v53 = vpop.f32.mrb[24].mxu0  ;;  %v12070_v57 = vpop.eup %12069  ;;  %v1180_v29 = vadd.f32 1.0, %v12068_v4  ;;  %12081 = vrcp.f32 %v1179_v24 }
 0x18c   :  { %925 = vrot.lane.b32.xlu1 %v13053_v54, %s12551_s16  ;;  %v13062_v51 = vpop.f32.mrb[25].mxu0  ;;  %12083 = vpow2.f32 %v1117_v23  ;;  %v12072_v34 = vpop.eup %12071  ;;  %v13121_v59 = vadd.f32 %v13057_v53, %v12935_v56 }
 0x18d   :  { %v13064_v50 = vpop.f32.mrb[26].mxu0  ;;  %12085 = vrcp.f32 %v1180_v29  ;;  %v12074_v43 = vpop.eup %12073  ;;  %v1185_v58 = vadd.f32 1.0, %v12072_v34  ;;  %v13138_v53 = vadd.f32 %v12935_v56, %v13062_v51  ;;  %v1073_v29 = vsub.f32 0.0, %v13076_v2 }
 0x18e   :  { %1343 = vrot.lane.b32.xlu0 %v12058_v16, %s12553_s21  ;;  %v13068_v11 = vpop.f32.mrb[27].mxu0  ;;  %v12076_v49 = vpop.eup %12075  ;;  %v1129_v16 = vmul.f32 1.442695, %v1070_v39  ;;  %12087 = vpow2.f32 %v1127_v37  ;;  %v13130_v24 = vadd.f32 %v13064_v50, %v12935_v56  ;;  %v1074_v34 = vsub.f32 0.0, %v13084_v10 }
 0x18f   :  { %v12078_v1 = vpop.eup %12077  ;;  %v1186_v8 = vadd.f32 1.0, %v12076_v49  ;;  %12089 = vrcp.f32 %v1185_v58  ;;  %v13145_v50 = vadd.f32 %v12935_v56, %v13068_v11  ;;  %v1071_v49 = vsub.f32 0.0, %v13091_v31 }
 0x190   :  { %1345 = vrot.lane.b32.xlu1 %v12062_v14, %s12553_s21  ;;  %v12080_v15 = vpop.eup %12079  ;;  %12091 = vpow2.f32 %v1129_v16  ;;  %v1072_v58 = vsub.f32 0.0, %v13097_v47 }
 0x191   :  { %v1183_v27 = vadd.f32 1.0, %v12080_v15  ;;  %12093 = vrcp.f32 %v1186_v8 }
 0x192   :  { %1339 = vrot.lane.b32.xlu0 %v12066_v60, %s12553_s21  ;;  %v1125_v60 = vmul.f32 1.442695, %v1068_v63  ;;  %12095 = vpow2.f32 %v1123_v42  ;;  %v1133_v42 = vmul.f32 1.442695, %v1072_v58 }
 0x193   :  { %v13073_v22 = vpop.f32.mrb[28].mxu0  ;;  %12097 = vrcp.f32 %v1183_v27 }
 0x194   :  { %1341 = vrot.lane.b32.xlu1 %v12070_v57, %s12553_s21  ;;  %v13079_v25 = vpop.f32.mrb[29].mxu0  ;;  %12099 = vpow2.f32 %v1125_v60  ;;  %v1077_v60 = vsub.f32 0.0, %v13121_v59 }
 0x195   :  { %v13081_v9 = vpop.f32.mrb[30].mxu0  ;;  %v12082_v3 = vpop.eup %12081 }
 0x196   :  { %935 = vrot.lane.b32.xlu0 %v13076_v2, %s12551_s16  ;;  %v13088_v30 = vpop.f32.mrb[31].mxu0  ;;  %v12084_v14 = vpop.eup %12083 }
 0x197   :  { %v12086_v18 = vpop.eup %12085  ;;  %v1184_v13 = vadd.f32 1.0, %v12084_v14 }
 0x198   :  { %937 = vrot.lane.b32.xlu1 %v13084_v10, %s12551_s16  ;;  %v12088_v48 = vpop.eup %12087 }
 0x199   :  { %12101 = vrcp.f32 %v1184_v13  ;;  %v12090_v51 = vpop.eup %12089  ;;  %v1189_v20 = vadd.f32 1.0, %v12088_v48  ;;  %v13165_v13 = vadd.f32 %v13081_v9, %v12935_v56  ;;  %v1143_v48 = vmul.f32 1.442695, %v1077_v60 }
 0x19a   :  { %931 = vrot.lane.b32.xlu0 %v13091_v31, %s12551_s16  ;;  %v12092_v39 = vpop.eup %12091  ;;  %v13179_v9 = vadd.f32 %v12935_v56, %v13088_v30 }
 0x19b   :  { %v13101_v33 = vpop.f32.mrb[32].mxu0  ;;  %v12094_v37 = vpop.eup %12093  ;;  %v1190_v16 = vadd.f32 1.0, %v12092_v39 }
 0x19c   :  { %933 = vrot.lane.b32.xlu1 %v13097_v47, %s12551_s16  ;;  %v13106_v44 = vpop.f32.mrb[33].mxu0  ;;  %v12096_v11 = vpop.eup %12095 }
 0x19d   :  { %v13108_v5 = vpop.f32.mrb[34].mxu0  ;;  %v12098_v15 = vpop.eup %12097  ;;  %v1187_v14 = vadd.f32 1.0, %v12096_v11 }
 0x19e   :  { %1351 = vrot.lane.b32.xlu0 %v12074_v43, %s12553_s21  ;;  %v13112_v55 = vpop.f32.mrb[35].mxu0  ;;  %v1135_v43 = vmul.f32 1.442695, %v1073_v29  ;;  %v12100_v63 = vpop.eup %12099  ;;  %v1078_v29 = vsub.f32 0.0, %v13130_v24 }
 0x19f   :  { %v1188_v27 = vadd.f32 1.0, %v12100_v63 }
 0x1a0   :  { %1353 = vrot.lane.b32.xlu1 %v12078_v1, %s12553_s21  ;;  %v1137_v1 = vmul.f32 1.442695, %v1074_v34  ;;  %12103 = vpow2.f32 %v1135_v43  ;;  %v1075_v34 = vsub.f32 0.0, %v13138_v53  ;;  %v1145_v39 = vmul.f32 1.442695, %v1078_v29 }
 0x1a1   :  { %12105 = vrcp.f32 %v1189_v20  ;;  %v1076_v43 = vsub.f32 0.0, %v13145_v50 }
 0x1a2   :  { %1347 = vrot.lane.b32.xlu0 %v12082_v3, %s12553_s21  ;;  %v1131_v3 = vmul.f32 1.442695, %v1071_v49  ;;  %12107 = vpow2.f32 %v1137_v1 }
 0x1a3   :  { %v13117_v36 = vpop.f32.mrb[36].mxu0  ;;  %v12102_v8 = vpop.eup %12101  ;;  %12109 = vrcp.f32 %v1190_v16  ;;  %v1141_v58 = vmul.f32 1.442695, %v1076_v43  ;;  %v13205_v43 = vadd.f32 %v12935_v56, %v13106_v44 }
 0x1a4   :  { %1349 = vrot.lane.b32.xlu1 %v12086_v18, %s12553_s21  ;;  %v13124_v4 = vpop.f32.mrb[37].mxu0  ;;  %v13159_v18 = vadd.f32 %v13073_v22, %v12935_v56  ;;  %12111 = vpow2.f32 %v1131_v3  ;;  %v13172_v22 = vadd.f32 %v12935_v56, %v13079_v25 }
 0x1a5   :  { %v13126_v57 = vpop.f32.mrb[38].mxu0  ;;  %12113 = vrcp.f32 %v1187_v14  ;;  %16963 = vst [vmem:[#allocation6_spill] sm:$0xff] %v13205_v43 }
 0x1a6   :  { %943 = vrot.lane.b32.xlu0 %v13121_v59, %s12551_s16  ;;  %v13134_v23 = vpop.f32.mrb[39].mxu0  ;;  %12115 = vpow2.f32 %v1133_v42  ;;  %v1081_v20 = vsub.f32 0.0, %v13159_v18  ;;  %v1079_v14 = vsub.f32 0.0, %v13172_v22  ;;  %v13194_v42 = vadd.f32 %v13101_v33, %v12935_v56 }
 0x1a7   :  { %12117 = vrcp.f32 %v1188_v27 }
 0x1a8   :  { %945 = vrot.lane.b32.xlu1 %v13130_v24, %s12551_s16  ;;  %12119 = vpow2.f32 %v1143_v48  ;;  %16962 = vst [vmem:[#allocation5_spill] sm:$0xff] %v13194_v42  ;;  %v1080_v48 = vsub.f32 0.0, %v13179_v9  ;;  %v1085_v33 = vsub.f32 0.0, %v13194_v42 }
 0x1a9   :  { %12121 = vpow2.f32 %v1145_v39  ;;  %v1147_v39 = vmul.f32 1.442695, %v1079_v14 }
 0x1aa   :  { %939 = vrot.lane.b32.xlu0 %v13138_v53, %s12551_s16  ;;  %v1159_v44 = vmul.f32 1.442695, %v1085_v33 }
 0x1ac   :  { %941 = vrot.lane.b32.xlu1 %v13145_v50, %s12551_s16 }
 0x1ae   :  { %1359 = vrot.lane.b32.xlu0 %v12090_v51, %s12553_s21  ;;  %v12104_v51 = vpop.eup %12103 }
 0x1af   :  { %v12106_v25 = vpop.eup %12105  ;;  %v1193_v11 = vadd.f32 1.0, %v12104_v51 }
 0x1b0   :  { %1361 = vrot.lane.b32.xlu1 %v12094_v37, %s12553_s21  ;;  %v12108_v49 = vpop.eup %12107  ;;  %v1139_v37 = vmul.f32 1.442695, %v1075_v34  ;;  %v13200_v34 = vadd.f32 %v13108_v5, %v12935_v56 }
 0x1b1   :  { %v12110_v30 = vpop.eup %12109  ;;  %v1194_v63 = vadd.f32 1.0, %v12108_v49  ;;  %v1149_v49 = vmul.f32 1.442695, %v1080_v48 }
 0x1b2   :  { %1355 = vrot.lane.b32.xlu0 %v12098_v15, %s12553_s21  ;;  %v12112_v1 = vpop.eup %12111  ;;  %v1082_v15 = vsub.f32 0.0, %v13165_v13  ;;  %12123 = vpow2.f32 %v1139_v37  ;;  %v1086_v5 = vsub.f32 0.0, %v13200_v34  ;;  %v13214_v37 = vadd.f32 %v12935_v56, %v13112_v55 }
 0x1b3   :  { %v12114_v16 = vpop.eup %12113  ;;  %12125 = vrcp.f32 %v1193_v11  ;;  %v1191_v60 = vadd.f32 1.0, %v12112_v1 }
 0x1b4   :  { %1357 = vrot.lane.b32.xlu1 %v12102_v8, %s12553_s21  ;;  %v12116_v3 = vpop.eup %12115  ;;  %v1151_v8 = vmul.f32 1.442695, %v1081_v20  ;;  %12127 = vpow2.f32 %v1141_v58  ;;  %v1153_v29 = vmul.f32 1.442695, %v1082_v15  ;;  %16964 = vst [vmem:[#allocation7_spill] sm:$0xff] %v13214_v37  ;;  %v1084_v15 = vsub.f32 0.0, %v13214_v37 }
 0x1b5   :  { %v12118_v27 = vpop.eup %12117  ;;  %12129 = vrcp.f32 %v1194_v63  ;;  %v1192_v51 = vadd.f32 1.0, %v12116_v3  ;;  %v1161_v58 = vmul.f32 1.442695, %v1086_v5 }
 0x1b6   :  { %951 = vrot.lane.b32.xlu0 %v13159_v18, %s12551_s16  ;;  %12131 = vpow2.f32 %v1151_v8  ;;  %v13225_v8 = vadd.f32 %v12935_v56, %v13124_v4 }
 0x1b7   :  { %12133 = vrcp.f32 %v1191_v60 }
 0x1b8   :  { %953 = vrot.lane.b32.xlu1 %v13165_v13, %s12551_s16  ;;  %12135 = vpow2.f32 %v1153_v29  ;;  %16965 = vst [vmem:[#allocation8_spill] sm:$0xff] %v13225_v8  ;;  %v1157_v29 = vmul.f32 1.442695, %v1084_v15  ;;  %v1087_v5 = vsub.f32 0.0, %v13225_v8 }
 0x1b9   :  { %12137 = vrcp.f32 %v1192_v51  ;;  %v13232_v51 = vadd.f32 %v12935_v56, %v13134_v23 }
 0x1ba   :  { %947 = vrot.lane.b32.xlu0 %v13172_v22, %s12551_s16  ;;  %12139 = vpow2.f32 %v1147_v39 }
 0x1bb   :  { %12141 = vpow2.f32 %v1149_v49  ;;  %16966 = vst [vmem:[#allocation9_spill] sm:$0xff] %v13232_v51  ;;  %v13238_v49 = vadd.f32 %v13117_v36, %v12935_v56  ;;  %v1088_v36 = vsub.f32 0.0, %v13232_v51 }
 0x1bc   :  { %949 = vrot.lane.b32.xlu1 %v13179_v9, %s12551_s16  ;;  %12143 = vpow2.f32 %v1159_v44 }
 0x1bd   :  { %16967 = vst [vmem:[#allocation10_spill] sm:$0xff] %v13238_v49  ;;  %v1089_v15 = vsub.f32 0.0, %v13238_v49 }
 0x1be   :  { %1367 = vrot.lane.b32.xlu0 %v12106_v25, %s12553_s21  ;;  %v12120_v25 = vpop.eup %12119 }
 0x1bf   :  { %v12122_v20 = vpop.eup %12121  ;;  %v1197_v11 = vadd.f32 1.0, %v12120_v25 }
 0x1c0   :  { %1369 = vrot.lane.b32.xlu1 %v12110_v30, %s12553_s21  ;;  %v1083_v30 = vsub.f32 0.0, %v13205_v43  ;;  %v12124_v1 = vpop.eup %12123 }
 0x1c1   :  { %v12126_v55 = vpop.eup %12125  ;;  %12145 = vrcp.f32 %v1197_v11 }
 0x1c2   :  { %1363 = vrot.lane.b32.xlu0 %v12114_v16, %s12553_s21  ;;  %v1198_v16 = vadd.f32 1.0, %v12122_v20  ;;  %v12128_v63 = vpop.eup %12127  ;;  %v1155_v3 = vmul.f32 1.442695, %v1083_v30  ;;  %12147 = vpow2.f32 %v1161_v58  ;;  %v13244_v30 = vadd.f32 %v13126_v57, %v12935_v56 }
 0x1c3   :  { %v12130_v14 = vpop.eup %12129  ;;  %v1196_v33 = vadd.f32 1.0, %v12128_v63 }
 0x1c4   :  { %1365 = vrot.lane.b32.xlu1 %v12118_v27, %s12553_s21  ;;  %v1195_v27 = vadd.f32 1.0, %v12124_v1  ;;  %v12132_v60 = vpop.eup %12131  ;;  %12149 = vrcp.f32 %v1198_v16  ;;  %16968 = vst [vmem:[#allocation11_spill] sm:$0xff] %v13244_v30  ;;  %v1090_v63 = vsub.f32 0.0, %v13244_v30 }
 0x1c5   :  { %v12134_v39 = vpop.eup %12133  ;;  %12151 = vpow2.f32 %v1155_v3  ;;  %v1201_v44 = vadd.f32 1.0, %v12132_v60  ;;  %v1165_v3 = vmul.f32 1.442695, %v1088_v36 }
 0x1c6   :  { %959 = vrot.lane.b32.xlu0 %v13194_v42, %s12551_s16  ;;  %v12136_v25 = vpop.eup %12135  ;;  %12153 = vrcp.f32 %v1195_v27 }
 0x1c7   :  { %v12138_v20 = vpop.eup %12137  ;;  %12155 = vpow2.f32 %v1157_v29  ;;  %v1202_v1 = vadd.f32 1.0, %v12136_v25 }
 0x1c8   :  { %961 = vrot.lane.b32.xlu1 %v13200_v34, %s12551_s16  ;;  %v12140_v23 = vpop.eup %12139  ;;  %12157 = vrcp.f32 %v1196_v33 }
 0x1c9   :  { %v12142_v58 = vpop.eup %12141  ;;  %12159 = vrcp.f32 %v1201_v44  ;;  %v1199_v56 = vadd.f32 1.0, %v12140_v23  ;;  %v1169_v44 = vmul.f32 1.442695, %v1090_v63 }
 0x1ca   :  { %955 = vrot.lane.b32.xlu0 %v13205_v43, %s12551_s16  ;;  %v12144_v57 = vpop.eup %12143  ;;  %12161 = vrcp.f32 %v1202_v1  ;;  %v1200_v60 = vadd.f32 1.0, %v12142_v58 }
 0x1cb   :  { %v12146_v27 = vpop.eup %12145 }
 0x1cc   :  { %957 = vrot.lane.b32.xlu1 %v13214_v37, %s12551_s16  ;;  %v12148_v29 = vpop.eup %12147 }
 0x1cd   :  { %v1206_v1 = vadd.f32 1.0, %v12148_v29 }
 0x1ce   :  { %1375 = vrot.lane.b32.xlu0 %v12126_v55, %s12553_s21  ;;  %v1163_v55 = vmul.f32 1.442695, %v1087_v5  ;;  %v12150_v25 = vpop.eup %12149  ;;  %v1205_v5 = vadd.f32 1.0, %v12144_v57 }
 0x1d0   :  { %v13227_v48 = vpop.permute.xlu0 %895  ;;  %1377 = vrot.lane.b32.xlu1 %v12130_v14, %s12553_s21  ;;  %12163 = vpow2.f32 %v1163_v55 }
 0x1d1   :  { %12165 = vrcp.f32 %v1199_v56 }
 0x1d2   :  { %v13234_v4 = vpop.permute.xlu1 %897  ;;  %1371 = vrot.lane.b32.xlu0 %v12134_v39, %s12553_s21  ;;  %v1167_v39 = vmul.f32 1.442695, %v1089_v15  ;;  %12167 = vpow2.f32 %v1165_v3 }
 0x1d3   :  { %12169 = vrcp.f32 %v1200_v60 }
 0x1d4   :  { %1373 = vrot.lane.b32.xlu1 %v12138_v20, %s12553_s21  ;;  %v13247_v11 = vpop.permute.xlu0 %891  ;;  %v12152_v20 = vpop.eup %12151  ;;  %12171 = vpow2.f32 %v1167_v39 }
 0x1d5   :  { %v12154_v36 = vpop.eup %12153  ;;  %12173 = vrcp.f32 %v1205_v5  ;;  %v1203_v56 = vadd.f32 1.0, %v12152_v20 }
 0x1d6   :  { %v13251_v16 = vpop.permute.xlu1 %893  ;;  %963 = vrot.lane.b32.xlu0 %v13225_v8, %s12551_s16  ;;  %v12156_v58 = vpop.eup %12155  ;;  %12175 = vpow2.f32 %v1169_v44 }
 0x1d7   :  { %v12158_v55 = vpop.eup %12157  ;;  %12177 = vrcp.f32 %v1206_v1  ;;  %v1204_v3 = vadd.f32 1.0, %v12156_v58 }
 0x1d8   :  { %965 = vrot.lane.b32.xlu1 %v13232_v51, %s12551_s16  ;;  %v13258_v14 = vpop.permute.xlu0 %903  ;;  %v12160_v63 = vpop.eup %12159  ;;  %12179 = vrcp.f32 %v1203_v56 }
 0x1d9   :  { %v12162_v60 = vpop.eup %12161  ;;  %12181 = vrcp.f32 %v1204_v3 }
 0x1da   :  { %v13260_v33 = vpop.permute.xlu1 %905  ;;  %1383 = vrot.lane.b32.xlu0 %v12146_v27, %s12553_s21  ;;  %v12164_v29 = vpop.eup %12163 }
 0x1dc   :  { %1385 = vrot.lane.b32.xlu1 %v12150_v25, %s12553_s21  ;;  %v13264_v23 = vpop.permute.xlu0 %899  ;;  %v12166_v25 = vpop.eup %12165 }
 0x1dd   :  { %v12168_v5 = vpop.eup %12167 }
 0x1de   :  { %v13266_v15 = vpop.permute.xlu1 %901  ;;  %1379 = vrot.lane.b32.xlu0 %v12154_v36, %s12553_s21  ;;  %v12170_v44 = vpop.eup %12169  ;;  %v1207_v36 = vadd.f32 1.0, %v12164_v29  ;;  %v1208_v56 = vadd.f32 1.0, %v12168_v5 }
 0x1df   :  { %v12172_v1 = vpop.eup %12171 }
 0x1e0   :  { %1381 = vrot.lane.b32.xlu1 %v12158_v55, %s12553_s21  ;;  %v13270_v57 = vpop.permute.xlu0 %911  ;;  %v12174_v55 = vpop.eup %12173  ;;  %v1209_v51 = vadd.f32 1.0, %v12172_v1  ;;  %12183 = vrcp.f32 %v1207_v36  ;;  %v1014_v36 = vadd.f32 %v13234_v4, %v12945_v12 }
 0x1e1   :  { %12185 = vrcp.f32 %v1208_v56 }
 0x1e2   :  { %v13272_v27 = vpop.permute.xlu1 %913  ;;  %1391 = vrot.lane.b32.xlu0 %v12160_v63, %s12553_s21  ;;  %v12176_v63 = vpop.eup %12175  ;;  %12187 = vrcp.f32 %v1209_v51  ;;  %v1012_v51 = vadd.f32 %v13251_v16, %v12951_v28 }
 0x1e3   :  { %v12178_v3 = vpop.eup %12177  ;;  %v1210_v8 = vadd.f32 1.0, %v12176_v63  ;;  %v1011_v63 = vadd.f32 %v13247_v11, %v12941_v21 }
 0x1e4   :  { %1393 = vrot.lane.b32.xlu1 %v12162_v60, %s12553_s21  ;;  %v13276_v39 = vpop.permute.xlu0 %907  ;;  %v12180_v29 = vpop.eup %12179 }
 0x1e5   :  { %v12182_v5 = vpop.eup %12181  ;;  %12189 = vrcp.f32 %v1210_v8  ;;  %v1013_v8 = vadd.f32 %v13227_v48, %v12938_v35 }
 0x1e6   :  { %v13278_v20 = vpop.permute.xlu1 %909  ;;  %1387 = vrot.lane.b32.xlu0 %v12166_v25, %s12553_s21 }
 0x1e8   :  { %1389 = vrot.lane.b32.xlu1 %v12170_v44, %s12553_s21  ;;  %v13282_v58 = vpop.permute.xlu0 %919 }
 0x1ea   :  { %v13284_v60 = vpop.permute.xlu1 %921  ;;  %1399 = vrot.lane.b32.xlu0 %v12174_v55, %s12553_s21  ;;  %v12184_v56 = vpop.eup %12183 }
 0x1ec   :  { %1401 = vrot.lane.b32.xlu1 %v12178_v3, %s12553_s21  ;;  %v13288_v25 = vpop.permute.xlu0 %915 }
 0x1ee   :  { %v13290_v44 = vpop.permute.xlu1 %917  ;;  %1395 = vrot.lane.b32.xlu0 %v12180_v29, %s12553_s21 }
 0x1f0   :  { %1397 = vrot.lane.b32.xlu1 %v12182_v5, %s12553_s21  ;;  %v1336_v42 = vpop.permute.xlu0 %1335  ;;  %v12186_v5 = vpop.eup %12185 }
 0x1f1   :  { %v12188_v37 = vpop.eup %12187 }
 0x1f2   :  { %v1338_v55 = vpop.permute.xlu1 %1337  ;;  %967 = vrot.lane.b32.xlu0 %v13238_v49, %s12551_s16  ;;  %v1453_v49 = vmul.f32 %v1336_v42, %v1013_v8  ;;  %v12190_v35 = vpop.eup %12189 }
 0x1f3   :  { %v1454_v3 = vmul.f32 %v1338_v55, %v1014_v36  ;;  %v1016_v36 = vadd.f32 %v13266_v15, %v12976_v40  ;;  %v1019_v15 = vadd.f32 %v13276_v39, %v12994_v61 }
 0x1f4   :  { %969 = vrot.lane.b32.xlu1 %v13244_v30, %s12551_s16  ;;  %v1332_v1 = vpop.permute.xlu0 %1331 }
 0x1f5   :  { %v1451_v12 = vmul.f32 %v1332_v1, %v1011_v63  ;;  %v1493_v11 = vpack.c.bf16 %v1454_v3, %v1453_v49  ;;  %v1018_v49 = vadd.f32 %v13260_v33, %v12965_v45  ;;  %v1017_v1 = vadd.f32 %v13258_v14, %v12960_v32 }
 0x1f6   :  { %v1334_v29 = vpop.permute.xlu1 %1333  ;;  %1403 = vrot.lane.b32.xlu0 %v12184_v56, %s12553_s21  ;;  %v1022_v33 = vadd.f32 %v13272_v27, %v12988_v19  ;;  %v1026_v27 = vadd.f32 %v13284_v60, %v13012_v17 }
 0x1f7   :  { %v1452_v4 = vmul.f32 %v1334_v29, %v1012_v51 }
 0x1f8   :  { %1405 = vrot.lane.b32.xlu1 %v12186_v5, %s12553_s21  ;;  %v13308_v30 = vpop.permute.xlu0 %927 }
 0x1f9   :  { %v1492_v21 = vpack.c.bf16 %v1452_v4, %v1451_v12  ;;  %v1020_v4 = vadd.f32 %v13278_v20, %v12999_v62  ;;  %v1023_v20 = vadd.f32 %v13288_v25, %v13017_v41 }
 0x1fa   :  { %v13310_v43 = vpop.permute.xlu1 %929  ;;  %1407 = vrot.lane.b32.xlu0 %v12188_v37, %s12553_s21  ;;  %v1015_v37 = vadd.f32 %v13264_v23, %v12970_v6 }
 0x1fb   :  { %10444 = vmatprep.mubr.msk.bf16.mxu1 %vm518_vm2, %v1492_v21  ;;  %v1021_v21 = vadd.f32 %v13270_v57, %v12982_v38  ;;  %v1030_v60 = vadd.f32 %v13310_v43, %v13042_v52 }
 0x1fc   :  { %1409 = vrot.lane.b32.xlu1 %v12190_v35, %s12553_s21  ;;  %10445 = vmatmul.mubr.msk.bf16.vlgmr.msra.gmra.mrb[0].mxu1 %vm518_vm2, %v1493_v11  ;;  %v13316_v28 = vpop.permute.xlu0 %923 }
 0x1fe   :  { %v13318_v42 = vpop.permute.xlu1 %925 }
 0x200   :  { %v1344_v48 = vpop.permute.xlu0 %1343 }
 0x201   :  { %v1457_v3 = vmul.f32 %v1344_v48, %v1017_v1  ;;  %v1024_v1 = vadd.f32 %v13290_v44, %v13023_v26  ;;  %v1027_v44 = vadd.f32 %v13316_v28, %v13047_v0 }
 0x202   :  { %v1346_v16 = vpop.permute.xlu1 %1345 }
 0x203   :  { %v1458_v56 = vmul.f32 %v1346_v16, %v1018_v49 }
 0x204   :  { %v1340_v55 = vpop.permute.xlu0 %1339 }
 0x205   :  { %v1455_v51 = vmul.f32 %v1340_v55, %v1015_v37  ;;  %v1495_v12 = vpack.c.bf16 %v1458_v56, %v1457_v3  ;;  %v1025_v56 = vadd.f32 %v13282_v58, %v13007_v7 }
 0x206   :  { %v1342_v63 = vpop.permute.xlu1 %1341 }
 0x207   :  { %v1456_v8 = vmul.f32 %v1342_v63, %v1016_v36 }
 0x208   :  { %v13328_v29 = vpop.permute.xlu0 %935 }
 0x209   :  { %v1494_v5 = vpack.c.bf16 %v1456_v8, %v1455_v51 }
 0x20a   :  { %v13330_v45 = vpop.permute.xlu1 %937 }
 0x20b   :  { %10448 = vmatprep.mubr.msk.bf16.mxu1 %vm518_vm2, %v1494_v5 }
 0x20c   :  { %10449 = vmatmul.mubr.msk.bf16.gmra.mrb[4].mxu1 %vm518_vm2, %v1495_v12  ;;  %v13334_v6 = vpop.permute.xlu0 %931 }
 0x20e   :  { %v13336_v40 = vpop.permute.xlu1 %933 }
 0x210   :  { %v1352_v32 = vpop.permute.xlu0 %1351 }
 0x211   :  { %v1461_v49 = vmul.f32 %v1352_v32, %v1021_v21 }
 0x212   :  { %v1354_v14 = vpop.permute.xlu1 %1353 }
 0x213   :  { %v1462_v11 = vmul.f32 %v1354_v14, %v1022_v33  ;;  %v1028_v33 = vadd.f32 %v13318_v42, %v13053_v54  ;;  %v1031_v42 = vadd.f32 %v13334_v6, %v13091_v31 }
 0x214   :  { %v1348_v23 = vpop.permute.xlu0 %1347 }
 0x215   :  { %v1459_v48 = vmul.f32 %v1348_v23, %v1019_v15  ;;  %v1497_v36 = vpack.c.bf16 %v1462_v11, %v1461_v49  ;;  %v1029_v23 = vadd.f32 %v13308_v30, %v13038_v46  ;;  %v1034_v30 = vadd.f32 %v13330_v45, %v13084_v10 }
 0x216   :  { %v1350_v35 = vpop.permute.xlu1 %1349 }
 0x217   :  { %v1460_v16 = vmul.f32 %v1350_v35, %v1020_v4 }
 0x218   :  { %v13346_v55 = vpop.permute.xlu0 %943 }
 0x219   :  { %v1496_v37 = vpack.c.bf16 %v1460_v16, %v1459_v48 }
 0x21a   :  { %v13348_v19 = vpop.permute.xlu1 %945 }
 0x21b   :  { %10452 = vmatprep.mubr.msk.bf16.mxu1 %vm518_vm2, %v1496_v37  ;;  %v1032_v37 = vadd.f32 %v13336_v40, %v13097_v47  ;;  %v1038_v47 = vadd.f32 %v13348_v19, %v13130_v24  ;;  %v1037_v40 = vadd.f32 %v13346_v55, %v13121_v59 }
 0x21c   :  { %10453 = vmatmul.mubr.msk.bf16.gmra.mrb[8].mxu1 %vm518_vm2, %v1497_v36  ;;  %v13352_v61 = vpop.permute.xlu0 %939  ;;  %v1033_v36 = vadd.f32 %v13328_v29, %v13076_v2 }
 0x21d   :  { %v1035_v29 = vadd.f32 %v13352_v61, %v13138_v53 }
 0x21e   :  { %v13354_v62 = vpop.permute.xlu1 %941 }
 0x21f   :  { %v1036_v6 = vadd.f32 %v13354_v62, %v13145_v50 }
 0x220   :  { %v1360_v38 = vpop.permute.xlu0 %1359 }
 0x221   :  { %v1465_v5 = vmul.f32 %v1360_v38, %v1025_v56 }
 0x222   :  { %v1362_v57 = vpop.permute.xlu1 %1361 }
 0x223   :  { %v1466_v63 = vmul.f32 %v1362_v57, %v1026_v27 }
 0x224   :  { %v1356_v39 = vpop.permute.xlu0 %1355 }
 0x225   :  { %v1463_v8 = vmul.f32 %v1356_v39, %v1023_v20  ;;  %v1499_v14 = vpack.c.bf16 %v1466_v63, %v1465_v5 }
 0x226   :  { %v1358_v51 = vpop.permute.xlu1 %1357 }
 0x227   :  { %v1464_v3 = vmul.f32 %v1358_v51, %v1024_v1 }
 0x228   :  { %v13364_v12 = vpop.permute.xlu0 %951 }
 0x229   :  { %v1498_v32 = vpack.c.bf16 %v1464_v3, %v1463_v8 }
 0x22a   :  { %v13366_v17 = vpop.permute.xlu1 %953 }
 0x22b   :  { %10456 = vmatprep.mubr.msk.bf16.mxu1 %vm518_vm2, %v1498_v32  ;;  %v16893_v32 = vmov 0.0   ;;  %v1042_v55 = vadd.f32 %v13366_v17, %v13165_v13 }
 0x22c   :  { %10457 = vmatmul.mubr.msk.bf16.gmra.mrb[12].mxu1 %vm518_vm2, %v1499_v14  ;;  %v13370_v41 = vpop.permute.xlu0 %947  ;;  %10490 = vmatprep.subr.bf16.mxu1 %v16893_v32 }
 0x22d   :  { %10484 = vmatprep.subr.bf16.mxu0 %v16893_v32  ;;  %10486 = vmatprep.mubr.msk.bf16.mxu0 %vm12556_vm5, %v16893_v32  ;;  %v1039_v62 = vadd.f32 %v13370_v41, %v13172_v22  ;;  %v16969_v41 = vld [vmem:[#allocation6_spill] sm:$0xff] }
 0x22e   :  { %v13372_v26 = vpop.permute.xlu1 %949 }
 0x22f   :  { %v1040_v14 = vadd.f32 %v13372_v26, %v13179_v9 }
 0x230   :  { %v1368_v7 = vpop.permute.xlu0 %1367 }
 0x231   :  { %v1469_v35 = vmul.f32 %v1368_v7, %v1029_v23  ;;  %v1041_v7 = vadd.f32 %v13364_v12, %v13159_v18  ;;  %v16970_v12 = vld [vmem:[#allocation7_spill] sm:$0xff] }
 0x232   :  { %v1370_v58 = vpop.permute.xlu1 %1369 }
 0x233   :  { %v1470_v15 = vmul.f32 %v1370_v58, %v1030_v60 }
 0x234   :  { %v1364_v25 = vpop.permute.xlu0 %1363 }
 0x235   :  { %v1467_v21 = vmul.f32 %v1364_v25, %v1027_v44  ;;  %v1501_v49 = vpack.c.bf16 %v1470_v15, %v1469_v35 }
 0x236   :  { %v1366_v4 = vpop.permute.xlu1 %1365 }
 0x237   :  { %v1468_v11 = vmul.f32 %v1366_v4, %v1028_v33  ;;  %v16971_v4 = vld [vmem:[#allocation5_spill] sm:$0xff] }
 0x238   :  { %v13382_v48 = vpop.permute.xlu0 %959 }
 0x239   :  { %v1500_v16 = vpack.c.bf16 %v1468_v11, %v1467_v21  ;;  %v1045_v21 = vadd.f32 %v13382_v48, %v16971_v4 }
 0x23a   :  { %v13384_v52 = vpop.permute.xlu1 %961 }
 0x23b   :  { %10460 = vmatprep.mubr.msk.bf16.mxu1 %vm518_vm2, %v1500_v16  ;;  %v1046_v22 = vadd.f32 %v13384_v52, %v13200_v34 }
 0x23c   :  { %10461 = vmatmul.mubr.msk.bf16.gmra.mrb[16].mxu1 %vm518_vm2, %v1501_v49  ;;  %v13388_v0 = vpop.permute.xlu0 %955 }
 0x23d   :  { %v1043_v18 = vadd.f32 %v13388_v0, %v16969_v41 }
 0x23e   :  { %v13390_v54 = vpop.permute.xlu1 %957 }
 0x23f   :  { %v1044_v26 = vadd.f32 %v13390_v54, %v16970_v12 }
 0x240   :  { %v1376_v46 = vpop.permute.xlu0 %1375 }
 0x241   :  { %v1473_v20 = vmul.f32 %v1376_v46, %v1033_v36 }
 0x242   :  { %v1378_v43 = vpop.permute.xlu1 %1377 }
 0x243   :  { %v1474_v38 = vmul.f32 %v1378_v43, %v1034_v30 }
 0x244   :  { %v1372_v28 = vpop.permute.xlu0 %1371 }
 0x245   :  { %v1471_v27 = vmul.f32 %v1372_v28, %v1031_v42  ;;  %v1503_v63 = vpack.c.bf16 %v1474_v38, %v1473_v20  ;;  %v16972_v28 = vld [vmem:[#allocation8_spill] sm:$0xff]  ;;  %v16973_v42 = vld [vmem:[#allocation9_spill] sm:$0xff]  ;;  %v16975_v20 = vld [vmem:[#allocation11_spill] sm:$0xff] }
 0x246   :  { %v1374_v57 = vpop.permute.xlu1 %1373 }
 0x247   :  { %v1472_v39 = vmul.f32 %v1374_v57, %v1032_v37 }
 0x248   :  { %v13400_v1 = vpop.permute.xlu0 %963 }
 0x249   :  { %v1502_v56 = vpack.c.bf16 %v1472_v39, %v1471_v27  ;;  %v1047_v54 = vadd.f32 %v13400_v1, %v16972_v28  ;;  %v16974_v27 = vld [vmem:[#allocation10_spill] sm:$0xff] }
 0x24a   :  { %v966_v10 = vpop.permute.xlu1 %965 }
 0x24b   :  { %10464 = vmatprep.mubr.msk.bf16.mxu1 %vm518_vm2, %v1502_v56  ;;  %v1048_v37 = vadd.f32 %v966_v10, %v16973_v42  ;;  %v13455_v10 = vld [vmem:[%s9896_s29] ss:$0 sm:$0xff] }
 0x24c   :  { %10465 = vmatmul.mubr.msk.bf16.gmra.mrb[20].mxu1 %vm518_vm2, %v1503_v63  ;;  %v1384_v31 = vpop.permute.xlu0 %1383 }
 0x24d   :  { %v1477_v19 = vmul.f32 %v1384_v31, %v1037_v40 }
 0x24e   :  { %v1386_v45 = vpop.permute.xlu1 %1385 }
 0x24f   :  { %v1478_v51 = vmul.f32 %v1386_v45, %v1038_v47 }
 0x250   :  { %v1380_v2 = vpop.permute.xlu0 %1379 }
 0x251   :  { %v1475_v3 = vmul.f32 %v1380_v2, %v1035_v29  ;;  %v1505_v50 = vpack.c.bf16 %v1478_v51, %v1477_v19 }
 0x252   :  { %v1382_v8 = vpop.permute.xlu1 %1381 }
 0x253   :  { %v1476_v24 = vmul.f32 %v1382_v8, %v1036_v6 }
 0x254   :  { %v1392_v5 = vpop.permute.xlu0 %1391 }
 0x255   :  { %v1504_v53 = vpack.c.bf16 %v1476_v24, %v1475_v3  ;;  %v1481_v17 = vmul.f32 %v1392_v5, %v1041_v7 }
 0x256   :  { %v1394_v59 = vpop.permute.xlu1 %1393 }
 0x257   :  { %10468 = vmatprep.mubr.msk.bf16.mxu1 %vm518_vm2, %v1504_v53  ;;  %v1482_v58 = vmul.f32 %v1394_v59, %v1042_v55  ;;  %v13474_v53 = vld [vmem:[%s13415_s25] sm:$0xff]  }
 0x258   :  { %10469 = vmatmul.mubr.msk.bf16.gmra.mrb[24].mxu1 %vm518_vm2, %v1505_v50  ;;  %v1388_v61 = vpop.permute.xlu0 %1387 }
 0x259   :  { %v1479_v25 = vmul.f32 %v1388_v61, %v1039_v62  ;;  %v1507_v23 = vpack.c.bf16 %v1482_v58, %v1481_v17 }
 0x25a   :  { %v1390_v60 = vpop.permute.xlu1 %1389 }
 0x25b   :  { %v1480_v13 = vmul.f32 %v1390_v60, %v1040_v14 }
 0x25c   :  { %v1400_v44 = vpop.permute.xlu0 %1399 }
 0x25d   :  { %v1506_v33 = vpack.c.bf16 %v1480_v13, %v1479_v25  ;;  %v1485_v46 = vmul.f32 %v1400_v44, %v1045_v21 }
 0x25e   :  { %v1402_v15 = vpop.permute.xlu1 %1401 }
 0x25f   :  { %10472 = vmatprep.mubr.msk.bf16.mxu1 %vm518_vm2, %v1506_v33  ;;  %v1486_v11 = vmul.f32 %v1402_v15, %v1046_v22 }
 0x260   :  { %10473 = vmatmul.mubr.msk.bf16.gmra.mrb[28].mxu1 %vm518_vm2, %v1507_v23  ;;  %v1396_v9 = vpop.permute.xlu0 %1395 }
 0x261   :  { %v1483_v16 = vmul.f32 %v1396_v9, %v1043_v18  ;;  %v1509_v34 = vpack.c.bf16 %v1486_v11, %v1485_v46 }
 0x262   :  { %v1398_v35 = vpop.permute.xlu1 %1397 }
 0x263   :  { %v1484_v49 = vmul.f32 %v1398_v35, %v1044_v26 }
 0x264   :  { %v968_v43 = vpop.permute.xlu0 %967 }
 0x265   :  { %v1508_v30 = vpack.c.bf16 %v1484_v49, %v1483_v16  ;;  %v1049_v39 = vadd.f32 %v968_v43, %v16974_v27 }
 0x266   :  { %v970_v52 = vpop.permute.xlu1 %969 }
 0x267   :  { %10476 = vmatprep.mubr.msk.bf16.mxu1 %vm518_vm2, %v1508_v30  ;;  %v1050_v56 = vadd.f32 %v970_v52, %v16975_v20 }
 0x268   :  { %10477 = vmatmul.mubr.msk.bf16.gmra.mrb[32].mxu1 %vm518_vm2, %v1509_v34  ;;  %v1404_v0 = vpop.permute.xlu0 %1403 }
 0x269   :  { %v1487_v36 = vmul.f32 %v1404_v0, %v1047_v54 }
 0x26a   :  { %v1406_v48 = vpop.permute.xlu1 %1405 }
 0x26b   :  { %v1488_v38 = vmul.f32 %v1406_v48, %v1048_v37 }
 0x26c   :  { %v1408_v57 = vpop.permute.xlu0 %1407 }
 0x26d   :  { %v1510_v63 = vpack.c.bf16 %v1488_v38, %v1487_v36  ;;  %v1489_v45 = vmul.f32 %v1408_v57, %v1049_v39 }
 0x26e   :  { %v1410_v31 = vpop.permute.xlu1 %1409 }
 0x26f   :  { %v1490_v47 = vmul.f32 %v1410_v31, %v1050_v56  ;;  %10480 = vmatprep.mubr.msk.bf16.mxu1 %vm518_vm2, %v1510_v63 }
 0x271   :  { %v1511_v2 = vpack.c.bf16 %v1490_v47, %v1489_v45 }
 0x273   :  { %10481 = vmatmul.mubr.msk.bf16.gmra.mrb[36].mxu1 %vm518_vm2, %v1511_v2 }
 0x274   :  { %10492 = vmatprep.mubr.msk.bf16.mxu1 %vm12556_vm5, %v16893_v32 }
 0x2cf   :  { %v10446_v1 = vpop.f32.mrb[0].mxu1 }
 0x2d0   :  { %v1617_v29 = vpop.f32.mrb[1].mxu1  ;;  %v13458_v40 = vadd.f32 %v10446_v1, %v13455_v10 }
 0x2d1   :  { %v10447_v6 = vpop.f32.mrb[2].mxu1  ;;  %v13464_v3 = vadd.f32 %v13455_v10, %v1617_v29 }
 0x2d2   :  { %v13461_v51 = vadd.f32 %v10447_v6, %v13455_v10  ;;  %v1620_v8 = vpop.f32.mrb[3].mxu1 }
 0x2d3   :  { %v13467_v24 = vadd.f32 %v13455_v10, %v1620_v8 }
 0x2d4   :  { %v1779_v19 = vpack.c.bf16 %v13461_v51, %v13458_v40 }
 0x2d5   :  { %v1778_v5 = vpack.c.bf16 %v13467_v24, %v13464_v3 }
 0x2d6   :  { %10491 = vmatpush3.bf16.msra.mxu1 %v1779_v19 }
 0x2d7   :  { %10485 = vmatpush3.bf16.msra.mxu0 %v1778_v5  ;;  %10502 = vmatprep.subr.bf16.mxu1 %v16893_v32 }
 0x2d8   :  { %10496 = vmatprep.subr.bf16.mxu0 %v16893_v32 }
 0x2d9   :  { %10493 = vmatmul.mubr.msk.bf16.vlgmr.msra.gmra.mrb[40].mxu1 %vm1803_vm6, %v13474_v53 }
 0x2da   :  { %10487 = vmatmul.mubr.msk.bf16.vlgmr.msra.gmra.mrb[40].mxu0 %vm1803_vm6, %v13474_v53  ;;  %10504 = vmatprep.mubr.msk.bf16.mxu1 %vm12556_vm5, %v16893_v32 }
 0x2db   :  { %10498 = vmatprep.mubr.msk.bf16.mxu0 %vm12556_vm5, %v16893_v32 }
 0x2df   :  { %v10450_v50 = vpop.f32.mrb[4].mxu1 }
 0x2e0   :  { %v1633_v59 = vpop.f32.mrb[5].mxu1  ;;  %v13487_v61 = vadd.f32 %v10450_v50, %v13455_v10 }
 0x2e1   :  { %v10451_v55 = vpop.f32.mrb[6].mxu1  ;;  %v13493_v7 = vadd.f32 %v13455_v10, %v1633_v59 }
 0x2e2   :  { %v13490_v62 = vadd.f32 %v10451_v55, %v13455_v10  ;;  %v1636_v14 = vpop.f32.mrb[7].mxu1 }
 0x2e3   :  { %v13496_v58 = vadd.f32 %v13455_v10, %v1636_v14 }
 0x2e4   :  { %v1781_v60 = vpack.c.bf16 %v13490_v62, %v13487_v61 }
 0x2e5   :  { %v1780_v25 = vpack.c.bf16 %v13496_v58, %v13493_v7 }
 0x2e6   :  { %10503 = vmatpush3.bf16.msra.mxu1 %v1781_v60 }
 0x2e7   :  { %10497 = vmatpush3.bf16.msra.mxu0 %v1780_v25  ;;  %10514 = vmatprep.subr.bf16.mxu1 %v16893_v32 }
 0x2e8   :  { %10508 = vmatprep.subr.bf16.mxu0 %v16893_v32 }
 0x2e9   :  { %10505 = vmatmul.mubr.msk.bf16.vlgmr.msra.gmra.mrb[44].mxu1 %vm1803_vm6, %v13474_v53 }
 0x2ea   :  { %10499 = vmatmul.mubr.msk.bf16.vlgmr.msra.gmra.mrb[44].mxu0 %vm1803_vm6, %v13474_v53  ;;  %10516 = vmatprep.mubr.msk.bf16.mxu1 %vm12556_vm5, %v16893_v32 }
 0x2eb   :  { %10510 = vmatprep.mubr.msk.bf16.mxu0 %vm12556_vm5, %v16893_v32 }
 0x2ef   :  { %v10454_v13 = vpop.f32.mrb[8].mxu1 }
 0x2f0   :  { %v1649_v17 = vpop.f32.mrb[9].mxu1  ;;  %v13513_v33 = vadd.f32 %v10454_v13, %v13455_v10 }
 0x2f1   :  { %v10455_v44 = vpop.f32.mrb[10].mxu1  ;;  %v13519_v22 = vadd.f32 %v13455_v10, %v1649_v17 }
 0x2f2   :  { %v13516_v23 = vadd.f32 %v10455_v44, %v13455_v10  ;;  %v1652_v15 = vpop.f32.mrb[11].mxu1 }
 0x2f3   :  { %v13522_v9 = vadd.f32 %v13455_v10, %v1652_v15 }
 0x2f4   :  { %v1783_v41 = vpack.c.bf16 %v13516_v23, %v13513_v33 }
 0x2f5   :  { %v1782_v18 = vpack.c.bf16 %v13522_v9, %v13519_v22 }
 0x2f6   :  { %10515 = vmatpush3.bf16.msra.mxu1 %v1783_v41 }
 0x2f7   :  { %10509 = vmatpush3.bf16.msra.mxu0 %v1782_v18  ;;  %10526 = vmatprep.subr.bf16.mxu1 %v16893_v32 }
 0x2f8   :  { %10520 = vmatprep.subr.bf16.mxu0 %v16893_v32 }
 0x2f9   :  { %10517 = vmatmul.mubr.msk.bf16.vlgmr.msra.gmra.mrb[48].mxu1 %vm1803_vm6, %v13474_v53 }
 0x2fa   :  { %10511 = vmatmul.mubr.msk.bf16.vlgmr.msra.gmra.mrb[48].mxu0 %vm1803_vm6, %v13474_v53  ;;  %10528 = vmatprep.mubr.msk.bf16.mxu1 %vm12556_vm5, %v16893_v32 }
 0x2fb   :  { %10522 = vmatprep.mubr.msk.bf16.mxu0 %vm12556_vm5, %v16893_v32 }
 0x2ff   :  { %v10458_v12 = vpop.f32.mrb[12].mxu1 }
 0x300   :  { %v1665_v26 = vpop.f32.mrb[13].mxu1  ;;  %v13539_v21 = vadd.f32 %v10458_v12, %v13455_v10 }
 0x301   :  { %v10459_v4 = vpop.f32.mrb[14].mxu1  ;;  %v13545_v16 = vadd.f32 %v13455_v10, %v1665_v26 }
 0x302   :  { %v13542_v11 = vadd.f32 %v10459_v4, %v13455_v10  ;;  %v1668_v35 = vpop.f32.mrb[15].mxu1 }
 0x303   :  { %v13548_v49 = vadd.f32 %v13455_v10, %v1668_v35 }
 0x304   :  { %v1785_v46 = vpack.c.bf16 %v13542_v11, %v13539_v21 }
 0x305   :  { %v1784_v43 = vpack.c.bf16 %v13548_v49, %v13545_v16 }
 0x306   :  { %10527 = vmatpush3.bf16.msra.mxu1 %v1785_v46 }
 0x307   :  { %10521 = vmatpush3.bf16.msra.mxu0 %v1784_v43  ;;  %10538 = vmatprep.subr.bf16.mxu1 %v16893_v32 }
 0x308   :  { %10532 = vmatprep.subr.bf16.mxu0 %v16893_v32 }
 0x309   :  { %10529 = vmatmul.mubr.msk.bf16.vlgmr.msra.gmra.mrb[52].mxu1 %vm1803_vm6, %v13474_v53 }
 0x30a   :  { %10523 = vmatmul.mubr.msk.bf16.vlgmr.msra.gmra.mrb[52].mxu0 %vm1803_vm6, %v13474_v53  ;;  %10540 = vmatprep.mubr.msk.bf16.mxu1 %vm12556_vm5, %v16893_v32 }
 0x30b   :  { %10534 = vmatprep.mubr.msk.bf16.mxu0 %vm12556_vm5, %v16893_v32 }
 0x30f   :  { %v10462_v30 = vpop.f32.mrb[16].mxu1 }
 0x310   :  { %v1681_v34 = vpop.f32.mrb[17].mxu1  ;;  %v13565_v0 = vadd.f32 %v10462_v30, %v13455_v10 }
 0x311   :  { %v10463_v52 = vpop.f32.mrb[18].mxu1  ;;  %v13571_v42 = vadd.f32 %v13455_v10, %v1681_v34 }
 0x312   :  { %v13568_v28 = vadd.f32 %v10463_v52, %v13455_v10  ;;  %v1684_v54 = vpop.f32.mrb[19].mxu1 }
 0x313   :  { %v13574_v37 = vadd.f32 %v13455_v10, %v1684_v54 }
 0x314   :  { %v1787_v48 = vpack.c.bf16 %v13568_v28, %v13565_v0 }
 0x315   :  { %v1786_v36 = vpack.c.bf16 %v13574_v37, %v13571_v42 }
 0x316   :  { %10539 = vmatpush3.bf16.msra.mxu1 %v1787_v48 }
 0x317   :  { %10533 = vmatpush3.bf16.msra.mxu0 %v1786_v36  ;;  %10550 = vmatprep.subr.bf16.mxu1 %v16893_v32 }
 0x318   :  { %10544 = vmatprep.subr.bf16.mxu0 %v16893_v32 }
 0x319   :  { %10541 = vmatmul.mubr.msk.bf16.vlgmr.msra.gmra.mrb[56].mxu1 %vm1803_vm6, %v13474_v53 }
 0x31a   :  { %10535 = vmatmul.mubr.msk.bf16.vlgmr.msra.gmra.mrb[56].mxu0 %vm1803_vm6, %v13474_v53  ;;  %10552 = vmatprep.mubr.msk.bf16.mxu1 %vm12556_vm5, %v16893_v32 }
 0x31b   :  { %10546 = vmatprep.mubr.msk.bf16.mxu0 %vm12556_vm5, %v16893_v32 }
 0x31f   :  { %v10466_v38 = vpop.f32.mrb[20].mxu1 }
 0x320   :  { %v1697_v57 = vpop.f32.mrb[21].mxu1  ;;  %v13591_v39 = vadd.f32 %v10466_v38, %v13455_v10 }
 0x321   :  { %v10467_v27 = vpop.f32.mrb[22].mxu1  ;;  %v13597_v63 = vadd.f32 %v13455_v10, %v1697_v57 }
 0x322   :  { %v13594_v20 = vadd.f32 %v10467_v27, %v13455_v10  ;;  %v1700_v56 = vpop.f32.mrb[23].mxu1 }
 0x323   :  { %v13600_v31 = vadd.f32 %v13455_v10, %v1700_v56 }
 0x324   :  { %v1789_v45 = vpack.c.bf16 %v13594_v20, %v13591_v39 }
 0x325   :  { %v1788_v47 = vpack.c.bf16 %v13600_v31, %v13597_v63 }
 0x326   :  { %10551 = vmatpush3.bf16.msra.mxu1 %v1789_v45 }
 0x327   :  { %10545 = vmatpush3.bf16.msra.mxu0 %v1788_v47  ;;  %10562 = vmatprep.subr.bf16.mxu1 %v16893_v32 }
 0x328   :  { %10556 = vmatprep.subr.bf16.mxu0 %v16893_v32 }
 0x329   :  { %10553 = vmatmul.mubr.msk.bf16.vlgmr.msra.gmra.mrb[60].mxu1 %vm1803_vm6, %v13474_v53 }
 0x32a   :  { %10547 = vmatmul.mubr.msk.bf16.vlgmr.msra.gmra.mrb[60].mxu0 %vm1803_vm6, %v13474_v53  ;;  %10564 = vmatprep.mubr.msk.bf16.mxu1 %vm12556_vm5, %v16893_v32 }
 0x32b   :  { %v10470_v2 = vpop.f32.mrb[24].mxu1  ;;  %10558 = vmatprep.mubr.msk.bf16.mxu0 %vm12556_vm5, %v16893_v32 }
 0x32c   :  { %v1713_v1 = vpop.f32.mrb[25].mxu1  ;;  %v13617_v6 = vadd.f32 %v10470_v2, %v13455_v10 }
 0x32d   :  { %v10471_v29 = vpop.f32.mrb[26].mxu1  ;;  %v13623_v5 = vadd.f32 %v13455_v10, %v1713_v1 }
 0x32e   :  { %16976 = vst [vmem:[#allocation6_spill] sm:$0xff] %v13617_v6  ;;  %v13620_v8 = vadd.f32 %v10471_v29, %v13455_v10  ;;  %v1716_v19 = vpop.f32.mrb[27].mxu1 }
 0x32f   :  { %16978 = vst [vmem:[#allocation5_spill] sm:$0xff] %v13623_v5  ;;  %v13626_v50 = vadd.f32 %v13455_v10, %v1716_v19 }
 0x330   :  { %16977 = vst [vmem:[#allocation7_spill] sm:$0xff] %v13620_v8  ;;  %v1791_v59 = vpack.c.bf16 %v13620_v8, %v13617_v6 }
 0x331   :  { %16979 = vst [vmem:[#allocation8_spill] sm:$0xff] %v13626_v50  ;;  %v1790_v55 = vpack.c.bf16 %v13626_v50, %v13623_v5 }
 0x332   :  { %10563 = vmatpush3.bf16.msra.mxu1 %v1791_v59 }
 0x333   :  { %v10474_v14 = vpop.f32.mrb[28].mxu1  ;;  %10557 = vmatpush3.bf16.msra.mxu0 %v1790_v55  ;;  %10574 = vmatprep.subr.bf16.mxu1 %v16893_v32 }
 0x334   :  { %v1729_v60 = vpop.f32.mrb[29].mxu1  ;;  %10568 = vmatprep.subr.bf16.mxu0 %v16893_v32  ;;  %v13637_v13 = vadd.f32 %v10474_v14, %v13455_v10 }
 0x335   :  { %v10475_v25 = vpop.f32.mrb[30].mxu1  ;;  %10565 = vmatmul.mubr.msk.bf16.vlgmr.msra.gmra.mrb[64].mxu1 %vm1803_vm6, %v13474_v53  ;;  %v13647_v15 = vadd.f32 %v13455_v10, %v1729_v60 }
 0x336   :  { %16980 = vst [vmem:[#allocation9_spill] sm:$0xff] %v13637_v13  ;;  %v13640_v17 = vadd.f32 %v10475_v25, %v13455_v10  ;;  %v1732_v44 = vpop.f32.mrb[31].mxu1  ;;  %10559 = vmatmul.mubr.msk.bf16.vlgmr.msra.gmra.mrb[64].mxu0 %vm1803_vm6, %v13474_v53  ;;  %10576 = vmatprep.mubr.msk.bf16.mxu1 %vm12556_vm5, %v16893_v32 }
 0x337   :  { %16982 = vst [vmem:[#allocation11_spill] sm:$0xff] %v13647_v15  ;;  %v13650_v41 = vadd.f32 %v13455_v10, %v1732_v44  ;;  %10570 = vmatprep.mubr.msk.bf16.mxu0 %vm12556_vm5, %v16893_v32 }
 0x338   :  { %16981 = vst [vmem:[#allocation10_spill] sm:$0xff] %v13640_v17  ;;  %v1793_v18 = vpack.c.bf16 %v13640_v17, %v13637_v13 }
 0x339   :  { %16983 = vst [vmem:[#allocation12_spill] sm:$0xff] %v13650_v41  ;;  %v1792_v12 = vpack.c.bf16 %v13650_v41, %v13647_v15 }
 0x33a   :  { %10575 = vmatpush3.bf16.msra.mxu1 %v1793_v18 }
 0x33b   :  { %v10478_v26 = vpop.f32.mrb[32].mxu1  ;;  %10569 = vmatpush3.bf16.msra.mxu0 %v1792_v12  ;;  %10586 = vmatprep.subr.bf16.mxu1 %v16893_v32 }
 0x33c   :  { %v1745_v4 = vpop.f32.mrb[33].mxu1  ;;  %10580 = vmatprep.subr.bf16.mxu0 %v16893_v32  ;;  %v13663_v46 = vadd.f32 %v10478_v26, %v13455_v10 }
 0x33d   :  { %v10479_v35 = vpop.f32.mrb[34].mxu1  ;;  %10577 = vmatmul.mubr.msk.bf16.vlgmr.msra.gmra.mrb[68].mxu1 %vm1803_vm6, %v13474_v53  ;;  %v13673_v34 = vadd.f32 %v13455_v10, %v1745_v4 }
 0x33e   :  { %16984 = vst [vmem:[#allocation13_spill] sm:$0xff] %v13663_v46  ;;  %v13666_v43 = vadd.f32 %v10479_v35, %v13455_v10  ;;  %v1748_v30 = vpop.f32.mrb[35].mxu1  ;;  %10571 = vmatmul.mubr.msk.bf16.vlgmr.msra.gmra.mrb[68].mxu0 %vm1803_vm6, %v13474_v53  ;;  %10588 = vmatprep.mubr.msk.bf16.mxu1 %vm12556_vm5, %v16893_v32 }
 0x33f   :  { %16986 = vst [vmem:[#allocation15_spill] sm:$0xff] %v13673_v34  ;;  %v13676_v52 = vadd.f32 %v13455_v10, %v1748_v30  ;;  %10582 = vmatprep.mubr.msk.bf16.mxu0 %vm12556_vm5, %v16893_v32 }
 0x340   :  { %16985 = vst [vmem:[#allocation14_spill] sm:$0xff] %v13666_v43  ;;  %v1795_v54 = vpack.c.bf16 %v13666_v43, %v13663_v46 }
 0x341   :  { %16987 = vst [vmem:[#allocation16_spill] sm:$0xff] %v13676_v52  ;;  %v1794_v48 = vpack.c.bf16 %v13676_v52, %v13673_v34 }
 0x342   :  { %10587 = vmatpush3.bf16.msra.mxu1 %v1795_v54 }
 0x343   :  { %10581 = vmatpush3.bf16.msra.mxu0 %v1794_v48  ;;  %10598 = vmatprep.subr.bf16.mxu1 %v16893_v32 }
 0x344   :  { %10592 = vmatprep.subr.bf16.mxu0 %v16893_v32 }
 0x345   :  { %10589 = vmatmul.mubr.msk.bf16.vlgmr.msra.gmra.mrb[72].mxu1 %vm1803_vm6, %v13474_v53 }
 0x346   :  { %v10482_v36 = vpop.f32.mrb[36].mxu1  ;;  %10583 = vmatmul.mubr.msk.bf16.vlgmr.msra.gmra.mrb[72].mxu0 %vm1803_vm6, %v13474_v53  ;;  %10600 = vmatprep.mubr.msk.bf16.mxu1 %vm12556_vm5, %v16893_v32 }
 0x347   :  { %v1761_v38 = vpop.f32.mrb[37].mxu1  ;;  %10594 = vmatprep.mubr.msk.bf16.mxu0 %vm12556_vm5, %v16893_v32  ;;  %v13695_v27 = vadd.f32 %v10482_v36, %v13455_v10 }
 0x348   :  { %v10483_v57 = vpop.f32.mrb[38].mxu1  ;;  %v13701_v47 = vadd.f32 %v13455_v10, %v1761_v38 }
 0x349   :  { %16988 = vst [vmem:[#allocation17_spill] sm:$0xff] %v13695_v27  ;;  %v13698_v56 = vadd.f32 %v10483_v57, %v13455_v10  ;;  %v1764_v45 = vpop.f32.mrb[39].mxu1 }
 0x34a   :  { %16990 = vst [vmem:[#allocation19_spill] sm:$0xff] %v13701_v47  ;;  %v13704_v2 = vadd.f32 %v13455_v10, %v1764_v45 }
 0x34b   :  { %16989 = vst [vmem:[#allocation18_spill] sm:$0xff] %v13698_v56  ;;  %v1797_v1 = vpack.c.bf16 %v13698_v56, %v13695_v27 }
 0x34c   :  { %16991 = vst [vmem:[#allocation20_spill] sm:$0xff] %v13704_v2  ;;  %v1796_v29 = vpack.c.bf16 %v13704_v2, %v13701_v47 }
 0x34d   :  { %10599 = vmatpush3.bf16.msra.mxu1 %v1797_v1 }
 0x34e   :  { %10593 = vmatpush3.bf16.msra.mxu0 %v1796_v29  ;;  %10610 = vmatprep.subr.bf16.mxu1 %v16893_v32 }
 0x34f   :  { %10604 = vmatprep.subr.bf16.mxu0 %v16893_v32 }
 0x350   :  { %10601 = vmatmul.mubr.msk.bf16.vlgmr.msra.gmra.mrb[76].mxu1 %vm1803_vm6, %v13474_v53 }
 0x351   :  { %10595 = vmatmul.mubr.msk.bf16.vlgmr.msra.gmra.mrb[76].mxu0 %vm1803_vm6, %v13474_v53  ;;  %10612 = vmatprep.mubr.msk.bf16.mxu1 %vm12556_vm5, %v16893_v32 }
 0x352   :  { %10606 = vmatprep.mubr.msk.bf16.mxu0 %vm12556_vm5, %v16893_v32 }
 0x3ac   :  { %v1882_v10 = vpop.f32.mrb[40].mxu1 }
 0x3ad   :  { %v1841_v19 = vpop.f32.mrb[40].mxu0  ;;  %v10494_v59 = vpop.f32.mrb[41].mxu1 }
 0x3ae   :  { %v10488_v55 = vpop.f32.mrb[41].mxu0  ;;  %v1885_v14 = vpop.f32.mrb[42].mxu1 }
 0x3af   :  { %v11309_v60 = vpack.i.bf16 %v1885_v14, %v1882_v10  ;;  %v2628_v25 = vpack.c.bf16 %v1885_v14, %v1882_v10  ;;  %v1844_v44 = vpop.f32.mrb[42].mxu0  ;;  %v10495_v18 = vpop.f32.mrb[43].mxu1 }
 0x3b0   :  { %v11314_v12 = vpack.i.bf16 %v1844_v44, %v1841_v19  ;;  %v2627_v26 = vpack.c.bf16 %v1844_v44, %v1841_v19  ;;  %v10489_v4 = vpop.f32.mrb[43].mxu0 }
 0x3b1   :  { %11310 = vrot.lane.b32.xlu1 %v11309_v60, %s12548_s7  ;;  %10611 = vmatpush3.bf16.msra.mxu1 %v2628_v25 }
 0x3b2   :  { %11315 = vrot.lane.b32.xlu0 %v11314_v12, %s12548_s7  ;;  %10605 = vmatpush3.bf16.msra.mxu0 %v2627_v26 }
 0x3b3   :  { %10622 = vmatprep.subr.bf16.mxu1 %v16893_v32  ;;  %10616 = vmatprep.subr.bf16.mxu0 %v16893_v32 }
 0x3b4   :  { %10613 = vmatmul.mubr.msk.bf16.vlgmr.msra.gmra.mrb[80].mxu1 %vm1803_vm6, %v13474_v53 }
 0x3b5   :  { %10607 = vmatmul.mubr.msk.bf16.vlgmr.msra.gmra.mrb[80].mxu0 %vm1803_vm6, %v13474_v53  ;;  %10624 = vmatprep.mubr.msk.bf16.mxu1 %vm12556_vm5, %v16893_v32 }
 0x3b6   :  { %10618 = vmatprep.mubr.msk.bf16.mxu0 %vm12556_vm5, %v16893_v32 }
 0x3bc   :  { %v13732_v35 = vpop.f32.mrb[44].mxu1 }
 0x3bd   :  { %v13734_v30 = vpop.f32.mrb[44].mxu0  ;;  %v10506_v54 = vpop.f32.mrb[45].mxu1 }
 0x3be   :  { %v10500_v48 = vpop.f32.mrb[45].mxu0  ;;  %v13736_v36 = vpop.f32.mrb[46].mxu1 }
 0x3bf   :  { %v2630_v57 = vpack.c.bf16 %v13736_v36, %v13732_v35  ;;  %v13742_v45 = vpop.f32.mrb[46].mxu0  ;;  %v10507_v1 = vpop.f32.mrb[47].mxu1 }
 0x3c0   :  { %v2629_v10 = vpack.c.bf16 %v13742_v45, %v13734_v30  ;;  %v10501_v19 = vpop.f32.mrb[47].mxu0 }
 0x3c1   :  { %10623 = vmatpush3.bf16.msra.mxu1 %v2630_v57 }
 0x3c2   :  { %10617 = vmatpush3.bf16.msra.mxu0 %v2629_v10  ;;  %10634 = vmatprep.subr.bf16.mxu1 %v16893_v32 }
 0x3c3   :  { %10628 = vmatprep.subr.bf16.mxu0 %v16893_v32 }
 0x3c4   :  { %10625 = vmatmul.mubr.msk.bf16.vlgmr.msra.gmra.mrb[84].mxu1 %vm1803_vm6, %v13474_v53 }
 0x3c5   :  { %10619 = vmatmul.mubr.msk.bf16.vlgmr.msra.gmra.mrb[84].mxu0 %vm1803_vm6, %v13474_v53  ;;  %10636 = vmatprep.mubr.msk.bf16.mxu1 %vm12556_vm5, %v16893_v32 }
 0x3c6   :  { %10630 = vmatprep.mubr.msk.bf16.mxu0 %vm12556_vm5, %v16893_v32 }
 0x3cc   :  { %v13758_v59 = vpop.f32.mrb[48].mxu1 }
 0x3cd   :  { %v13760_v55 = vpop.f32.mrb[48].mxu0  ;;  %v10518_v14 = vpop.f32.mrb[49].mxu1 }
 0x3ce   :  { %v10512_v60 = vpop.f32.mrb[49].mxu0  ;;  %v13762_v25 = vpop.f32.mrb[50].mxu1 }
 0x3cf   :  { %v2632_v18 = vpack.c.bf16 %v13762_v25, %v13758_v59  ;;  %v13768_v12 = vpop.f32.mrb[50].mxu0  ;;  %v10519_v26 = vpop.f32.mrb[51].mxu1 }
 0x3d0   :  { %v2631_v54 = vpack.c.bf16 %v13768_v12, %v13760_v55  ;;  %v10513_v48 = vpop.f32.mrb[51].mxu0 }
 0x3d1   :  { %10635 = vmatpush3.bf16.msra.mxu1 %v2632_v18 }
 0x3d2   :  { %10629 = vmatpush3.bf16.msra.mxu0 %v2631_v54  ;;  %10646 = vmatprep.subr.bf16.mxu1 %v16893_v32 }
 0x3d3   :  { %10640 = vmatprep.subr.bf16.mxu0 %v16893_v32 }
 0x3d4   :  { %10637 = vmatmul.mubr.msk.bf16.vlgmr.msra.gmra.mrb[88].mxu1 %vm1803_vm6, %v13474_v53 }
 0x3d5   :  { %10631 = vmatmul.mubr.msk.bf16.vlgmr.msra.gmra.mrb[88].mxu0 %vm1803_vm6, %v13474_v53  ;;  %10648 = vmatprep.mubr.msk.bf16.mxu1 %vm12556_vm5, %v16893_v32 }
 0x3d6   :  { %10642 = vmatprep.mubr.msk.bf16.mxu0 %vm12556_vm5, %v16893_v32 }
 0x3dc   :  { %v13784_v57 = vpop.f32.mrb[52].mxu1 }
 0x3dd   :  { %v13786_v1 = vpop.f32.mrb[52].mxu0  ;;  %v10530_v10 = vpop.f32.mrb[53].mxu1 }
 0x3de   :  { %v10524_v19 = vpop.f32.mrb[53].mxu0  ;;  %v13788_v14 = vpop.f32.mrb[54].mxu1 }
 0x3df   :  { %v2634_v18 = vpack.c.bf16 %v13788_v14, %v13784_v57  ;;  %v13794_v26 = vpop.f32.mrb[54].mxu0  ;;  %v10531_v54 = vpop.f32.mrb[55].mxu1 }
 0x3e0   :  { %v2633_v4 = vpack.c.bf16 %v13794_v26, %v13786_v1  ;;  %v10525_v44 = vpop.f32.mrb[55].mxu0 }
 0x3e1   :  { %10647 = vmatpush3.bf16.msra.mxu1 %v2634_v18 }
 0x3e2   :  { %10641 = vmatpush3.bf16.msra.mxu0 %v2633_v4  ;;  %10658 = vmatprep.subr.bf16.mxu1 %v16893_v32 }
 0x3e3   :  { %10652 = vmatprep.subr.bf16.mxu0 %v16893_v32 }
 0x3e4   :  { %10649 = vmatmul.mubr.msk.bf16.vlgmr.msra.gmra.mrb[92].mxu1 %vm1803_vm6, %v13474_v53 }
 0x3e5   :  { %10643 = vmatmul.mubr.msk.bf16.vlgmr.msra.gmra.mrb[92].mxu0 %vm1803_vm6, %v13474_v53  ;;  %10660 = vmatprep.mubr.msk.bf16.mxu1 %vm12556_vm5, %v16893_v32 }
 0x3e6   :  { %10654 = vmatprep.mubr.msk.bf16.mxu0 %vm12556_vm5, %v16893_v32 }
 0x3ec   :  { %v13810_v10 = vpop.f32.mrb[56].mxu1 }
 0x3ed   :  { %v13812_v44 = vpop.f32.mrb[56].mxu0  ;;  %v10542_v4 = vpop.f32.mrb[57].mxu1 }
 0x3ee   :  { %v10536_v19 = vpop.f32.mrb[57].mxu0  ;;  %v13814_v18 = vpop.f32.mrb[58].mxu1  ;;  %v16992_v4 = vmov 0.0  }
 0x3ef   :  { %v2636_v48 = vpack.c.bf16 %v13814_v18, %v13810_v10  ;;  %v13820_v60 = vpop.f32.mrb[58].mxu0  ;;  %v10543_v29 = vpop.f32.mrb[59].mxu1 }
 0x3f0   :  { %v2635_v32 = vpack.c.bf16 %v13820_v60, %v13812_v44  ;;  %v10537_v2 = vpop.f32.mrb[59].mxu0 }
 0x3f1   :  { %10659 = vmatpush3.bf16.msra.mxu1 %v2636_v48 }
 0x3f2   :  { %10653 = vmatpush3.bf16.msra.mxu0 %v2635_v32  ;;  %10670 = vmatprep.subr.bf16.mxu1 %v16992_v4 }
 0x3f3   :  { %10664 = vmatprep.subr.bf16.mxu0 %v16992_v4 }
 0x3f4   :  { %10661 = vmatmul.mubr.msk.bf16.vlgmr.msra.gmra.mrb[96].mxu1 %vm1803_vm6, %v13474_v53 }
 0x3f5   :  { %10655 = vmatmul.mubr.msk.bf16.vlgmr.msra.gmra.mrb[96].mxu0 %vm1803_vm6, %v13474_v53  ;;  %10672 = vmatprep.mubr.msk.bf16.mxu1 %vm12556_vm5, %v16992_v4 }
 0x3f6   :  { %10666 = vmatprep.mubr.msk.bf16.mxu0 %vm12556_vm5, %v16992_v4 }
 0x3fc   :  { %v13836_v29 = vpop.f32.mrb[60].mxu1 }
 0x3fd   :  { %v13838_v2 = vpop.f32.mrb[60].mxu0  ;;  %v10554_v32 = vpop.f32.mrb[61].mxu1 }
 0x3fe   :  { %v10548_v48 = vpop.f32.mrb[61].mxu0  ;;  %v13840_v19 = vpop.f32.mrb[62].mxu1 }
 0x3ff   :  { %v2638_v54 = vpack.c.bf16 %v13840_v19, %v13836_v29  ;;  %v13846_v56 = vpop.f32.mrb[62].mxu0  ;;  %v10555_v47 = vpop.f32.mrb[63].mxu1 }
 0x400   :  { %v2637_v52 = vpack.c.bf16 %v13846_v56, %v13838_v2  ;;  %v10549_v34 = vpop.f32.mrb[63].mxu0 }
 0x401   :  { %10671 = vmatpush3.bf16.msra.mxu1 %v2638_v54 }
 0x402   :  { %10665 = vmatpush3.bf16.msra.mxu0 %v2637_v52  ;;  %10682 = vmatprep.subr.bf16.mxu1 %v16992_v4 }
 0x403   :  { %10676 = vmatprep.subr.bf16.mxu0 %v16992_v4 }
 0x404   :  { %10673 = vmatmul.mubr.msk.bf16.vlgmr.msra.gmra.mrb[100].mxu1 %vm1803_vm6, %v13474_v53 }
 0x405   :  { %10667 = vmatmul.mubr.msk.bf16.vlgmr.msra.gmra.mrb[100].mxu0 %vm1803_vm6, %v13474_v53  ;;  %10684 = vmatprep.mubr.msk.bf16.mxu1 %vm12556_vm5, %v16992_v4 }
 0x406   :  { %10678 = vmatprep.mubr.msk.bf16.mxu0 %vm12556_vm5, %v16992_v4 }
 0x408   :  { %v13862_v47 = vpop.f32.mrb[64].mxu1 }
 0x409   :  { %v13864_v34 = vpop.f32.mrb[64].mxu0  ;;  %v10566_v52 = vpop.f32.mrb[65].mxu1 }
 0x40a   :  { %16993 = vst [vmem:[#allocation21_spill] sm:$0xff] %v13864_v34  ;;  %v10560_v54 = vpop.f32.mrb[65].mxu0  ;;  %v13866_v32 = vpop.f32.mrb[66].mxu1 }
 0x40b   :  { %v2640_v27 = vpack.c.bf16 %v13866_v32, %v13862_v47  ;;  %v13872_v38 = vpop.f32.mrb[66].mxu0  ;;  %v10567_v43 = vpop.f32.mrb[67].mxu1 }
 0x40c   :  { %16994 = vst [vmem:[#allocation22_spill] sm:$0xff] %v13872_v38  ;;  %v2639_v41 = vpack.c.bf16 %v13872_v38, %v13864_v34  ;;  %v10561_v15 = vpop.f32.mrb[67].mxu0 }
 0x40d   :  { %10683 = vmatpush3.bf16.msra.mxu1 %v2640_v27 }
 0x40e   :  { %10677 = vmatpush3.bf16.msra.mxu0 %v2639_v41  ;;  %10694 = vmatprep.subr.bf16.mxu1 %v16992_v4 }
 0x40f   :  { %10688 = vmatprep.subr.bf16.mxu0 %v16992_v4 }
 0x410   :  { %v13880_v52 = vpop.f32.mrb[68].mxu1  ;;  %10685 = vmatmul.mubr.msk.bf16.vlgmr.msra.gmra.mrb[104].mxu1 %vm1803_vm6, %v13474_v53 }
 0x411   :  { %16995 = vst [vmem:[#allocation23_spill] sm:$0xff] %v13880_v52  ;;  %v13884_v54 = vpop.f32.mrb[68].mxu0  ;;  %v10578_v43 = vpop.f32.mrb[69].mxu1  ;;  %10679 = vmatmul.mubr.msk.bf16.vlgmr.msra.gmra.mrb[104].mxu0 %vm1803_vm6, %v13474_v53  ;;  %10696 = vmatprep.mubr.msk.bf16.mxu1 %vm12556_vm5, %v16992_v4 }
 0x412   :  { %16996 = vst [vmem:[#allocation24_spill] sm:$0xff] %v13884_v54  ;;  %v10572_v15 = vpop.f32.mrb[69].mxu0  ;;  %v13890_v41 = vpop.f32.mrb[70].mxu1  ;;  %10690 = vmatprep.mubr.msk.bf16.mxu0 %vm12556_vm5, %v16992_v4 }
 0x413   :  { %16997 = vst [vmem:[#allocation25_spill] sm:$0xff] %v13890_v41  ;;  %v2642_v46 = vpack.c.bf16 %v13890_v41, %v13880_v52  ;;  %v13898_v48 = vpop.f32.mrb[70].mxu0  ;;  %v10579_v43 = vpop.f32.mrb[71].mxu1 }
 0x414   :  { %16998 = vst [vmem:[#allocation26_spill] sm:$0xff] %v13898_v48  ;;  %v2641_v15 = vpack.c.bf16 %v13898_v48, %v13884_v54  ;;  %v10573_v13 = vpop.f32.mrb[71].mxu0 }
 0x415   :  { %10695 = vmatpush3.bf16.msra.mxu1 %v2642_v46 }
 0x416   :  { %10689 = vmatpush3.bf16.msra.mxu0 %v2641_v15  ;;  %10706 = vmatprep.subr.bf16.mxu1 %v16992_v4 }
 0x417   :  { %10700 = vmatprep.subr.bf16.mxu0 %v16992_v4 }
 0x418   :  { %v13906_v27 = vpop.f32.mrb[72].mxu1  ;;  %10697 = vmatmul.mubr.msk.bf16.vlgmr.msra.gmra.mrb[108].mxu1 %vm1803_vm6, %v13474_v53 }
 0x419   :  { %16999 = vst [vmem:[#allocation27_spill] sm:$0xff] %v13906_v27  ;;  %v13910_v52 = vpop.f32.mrb[72].mxu0  ;;  %v10590_v43 = vpop.f32.mrb[73].mxu1  ;;  %10691 = vmatmul.mubr.msk.bf16.vlgmr.msra.gmra.mrb[108].mxu0 %vm1803_vm6, %v13474_v53  ;;  %10708 = vmatprep.mubr.msk.bf16.mxu1 %vm12556_vm5, %v16992_v4 }
 0x41a   :  { %17000 = vst [vmem:[#allocation28_spill] sm:$0xff] %v13910_v52  ;;  %v10584_v13 = vpop.f32.mrb[73].mxu0  ;;  %v13916_v46 = vpop.f32.mrb[74].mxu1  ;;  %10702 = vmatprep.mubr.msk.bf16.mxu0 %vm12556_vm5, %v16992_v4 }
 0x41b   :  { %17001 = vst [vmem:[#allocation29_spill] sm:$0xff] %v13916_v46  ;;  %v2644_v17 = vpack.c.bf16 %v13916_v46, %v13906_v27  ;;  %v13924_v54 = vpop.f32.mrb[74].mxu0  ;;  %v10591_v43 = vpop.f32.mrb[75].mxu1 }
 0x41c   :  { %17002 = vst [vmem:[#allocation30_spill] sm:$0xff] %v13924_v54  ;;  %v2643_v13 = vpack.c.bf16 %v13924_v54, %v13910_v52  ;;  %v10585_v41 = vpop.f32.mrb[75].mxu0 }
 0x41d   :  { %10707 = vmatpush3.bf16.msra.mxu1 %v2644_v17 }
 0x41e   :  { %10701 = vmatpush3.bf16.msra.mxu0 %v2643_v13  ;;  %10718 = vmatprep.subr.bf16.mxu1 %v16992_v4 }
 0x41f   :  { %10712 = vmatprep.subr.bf16.mxu0 %v16992_v4 }
 0x420   :  { %10709 = vmatmul.mubr.msk.bf16.vlgmr.msra.gmra.mrb[112].mxu1 %vm1803_vm6, %v13474_v53 }
 0x421   :  { %10703 = vmatmul.mubr.msk.bf16.vlgmr.msra.gmra.mrb[112].mxu0 %vm1803_vm6, %v13474_v53  ;;  %10720 = vmatprep.mubr.msk.bf16.mxu1 %vm12556_vm5, %v16992_v4 }
 0x422   :  { %10714 = vmatprep.mubr.msk.bf16.mxu0 %vm12556_vm5, %v16992_v4 }
 0x423   :  { %v13940_v43 = vpop.f32.mrb[76].mxu1 }
 0x424   :  { %17003 = vst [vmem:[#allocation31_spill] sm:$0xff] %v13940_v43  ;;  %v13942_v17 = vpop.f32.mrb[76].mxu0  ;;  %v10602_v41 = vpop.f32.mrb[77].mxu1 }
 0x425   :  { %17004 = vst [vmem:[#allocation32_spill] sm:$0xff] %v13942_v17  ;;  %v10596_v13 = vpop.f32.mrb[77].mxu0  ;;  %v13944_v48 = vpop.f32.mrb[78].mxu1  ;;  %v12021_v41 = vld [vmem:[%s9898_s3] sm:$0x3f]  }
 0x426   :  { %17005 = vst [vmem:[#allocation33_spill] sm:$0xff] %v13944_v48  ;;  %v13946_v15 = vpop.f32.mrb[78].mxu0  ;;  %v2646_v54 = vpack.c.bf16 %v13944_v48, %v13940_v43  ;;  %v10603_v50 = vpop.f32.mrb[79].mxu1 }
 0x427   :  { %17006 = vst [vmem:[#allocation34_spill] sm:$0xff] %v13946_v15  ;;  %v2645_v4 = vpack.c.bf16 %v13946_v15, %v13942_v17  ;;  %v10597_v46 = vpop.f32.mrb[79].mxu0 }
 0x428   :  { %10719 = vmatpush3.bf16.msra.mxu1 %v2646_v54  ;;  %v4042_v46 = vsel %vm654_vm0, %v12021_v41, 0 }
 0x429   :  { %10713 = vmatpush3.bf16.msra.mxu0 %v2645_v4 }
 0x42a   :  { %11064 = vmatprep.subr.msk.bf16.mxu0 %vm654_vm0, %v12021_v41 }
 0x42b   :  { %10721 = vmatmul.mubr.msk.bf16.vlgmr.msra.gmra.mrb[116].mxu1 %vm1803_vm6, %v13474_v53 }
 0x42c   :  { %10715 = vmatmul.mubr.msk.bf16.vlgmr.msra.gmra.mrb[116].mxu0 %vm1803_vm6, %v13474_v53 }
 0x42d   :  { %10725 = vmatpush3.bf16.msra.mxu0 %v4042_v46 }
 0x487   :  { %v2722_v13 = vpop.f32.mrb[80].mxu1 }
 0x488   :  { %v3469_v50 = vmul.f32 2.0, %v2722_v13  ;;  %v2681_v54 = vpop.f32.mrb[80].mxu0  ;;  %v10614_v4 = vpop.f32.mrb[81].mxu1 }
 0x489   :  { %v3467_v27 = vmul.f32 2.0, %v2681_v54  ;;  %v10608_v52 = vpop.f32.mrb[81].mxu0  ;;  %v2725_v17 = vpop.f32.mrb[82].mxu1 }
 0x48a   :  { %v3470_v15 = vmul.f32 2.0, %v2725_v17  ;;  %v2684_v53 = vpop.f32.mrb[82].mxu0  ;;  %v10615_v43 = vpop.f32.mrb[83].mxu1  ;;  %v3509_v8 = vsub.f32 %v3469_v50, %v13458_v40  ;;  %v17007_v52 = vpack.i.bf16 %v13736_v36, %v13732_v35 }
 0x48b   :  { %v3468_v48 = vmul.f32 2.0, %v2684_v53  ;;  %v10609_v5 = vpop.f32.mrb[83].mxu0  ;;  %v3507_v34 = vsub.f32 %v3467_v27, %v13464_v3 }
 0x48c   :  { %v3510_v6 = vsub.f32 %v3470_v15, %v13461_v51  ;;  %v17008_v5 = vpack.i.bf16 %v13742_v45, %v13734_v30 }
 0x48d   :  { %v3508_v41 = vsub.f32 %v3468_v48, %v13467_v24 }
 0x48e   :  { %v11319_v13 = vpack.i.bf16 %v3510_v6, %v3509_v8 }
 0x48f   :  { %v11324_v38 = vpack.i.bf16 %v3508_v41, %v3507_v34  ;;  %v17009_v41 = vpack.i.bf16 %v13762_v25, %v13758_v59 }
 0x490   :  { %11320 = vrot.lane.b32.xlu1 %v11319_v13, %s12547_s6  ;;  %v17010_v13 = vpack.i.bf16 %v13768_v12, %v13760_v55 }
 0x491   :  { %11325 = vrot.lane.b32.xlu0 %v11324_v38, %s12547_s6 }
 0x494   :  { %11335 = vrot.lane.b32.xlu1 %v17007_v52, %s12548_s7 }
 0x495   :  { %11330 = vrot.lane.b32.xlu0 %v17008_v5, %s12548_s7 }
 0x497   :  { %v2804_v15 = vpop.f32.mrb[84].mxu1 }
 0x498   :  { %v3473_v27 = vmul.f32 2.0, %v2804_v15  ;;  %v2763_v43 = vpop.f32.mrb[84].mxu0  ;;  %v10626_v48 = vpop.f32.mrb[85].mxu1 }
 0x499   :  { %v3471_v6 = vmul.f32 2.0, %v2763_v43  ;;  %v10620_v8 = vpop.f32.mrb[85].mxu0  ;;  %v2807_v34 = vpop.f32.mrb[86].mxu1 }
 0x49a   :  { %v3474_v17 = vmul.f32 2.0, %v2807_v34  ;;  %v2766_v46 = vpop.f32.mrb[86].mxu0  ;;  %v10627_v38 = vpop.f32.mrb[87].mxu1  ;;  %v3513_v35 = vsub.f32 %v3473_v27, %v13487_v61 }
 0x49b   :  { %v3472_v50 = vmul.f32 2.0, %v2766_v46  ;;  %v10621_v54 = vpop.f32.mrb[87].mxu0  ;;  %v3511_v4 = vsub.f32 %v3471_v6, %v13493_v7 }
 0x49c   :  { %v3514_v36 = vsub.f32 %v3474_v17, %v13490_v62 }
 0x49d   :  { %v3512_v30 = vsub.f32 %v3472_v50, %v13496_v58 }
 0x49e   :  { %v11339_v45 = vpack.i.bf16 %v3514_v36, %v3513_v35  ;;  %v17011_v35 = vpack.i.bf16 %v13788_v14, %v13784_v57  ;;  %v17012_v36 = vpack.i.bf16 %v13794_v26, %v13786_v1 }
 0x49f   :  { %v11344_v53 = vpack.i.bf16 %v3512_v30, %v3511_v4 }
 0x4a0   :  { %11340 = vrot.lane.b32.xlu1 %v11339_v45, %s12547_s6 }
 0x4a1   :  { %11345 = vrot.lane.b32.xlu0 %v11344_v53, %s12547_s6 }
 0x4a4   :  { %11355 = vrot.lane.b32.xlu1 %v17009_v41, %s12548_s7 }
 0x4a5   :  { %11350 = vrot.lane.b32.xlu0 %v17010_v13, %s12548_s7 }
 0x4a7   :  { %v2886_v52 = vpop.f32.mrb[88].mxu1 }
 0x4a8   :  { %v3477_v5 = vmul.f32 2.0, %v2886_v52  ;;  %v2845_v15 = vpop.f32.mrb[88].mxu0  ;;  %v10638_v27 = vpop.f32.mrb[89].mxu1 }
 0x4a9   :  { %v3475_v43 = vmul.f32 2.0, %v2845_v15  ;;  %v10632_v48 = vpop.f32.mrb[89].mxu0  ;;  %v2889_v6 = vpop.f32.mrb[90].mxu1 }
 0x4aa   :  { %v3478_v8 = vmul.f32 2.0, %v2889_v6  ;;  %v2848_v34 = vpop.f32.mrb[90].mxu0  ;;  %v10639_v17 = vpop.f32.mrb[91].mxu1  ;;  %v3517_v59 = vsub.f32 %v3477_v5, %v13513_v33 }
 0x4ab   :  { %v3476_v46 = vmul.f32 2.0, %v2848_v34  ;;  %v10633_v38 = vpop.f32.mrb[91].mxu0  ;;  %v3515_v50 = vsub.f32 %v3475_v43, %v13519_v22  ;;  %v17013_v34 = vpack.i.bf16 %v13814_v18, %v13810_v10  ;;  %v17014_v17 = vpack.i.bf16 %v13820_v60, %v13812_v44 }
 0x4ac   :  { %v3518_v25 = vsub.f32 %v3478_v8, %v13516_v23 }
 0x4ad   :  { %v3516_v55 = vsub.f32 %v3476_v46, %v13522_v9 }
 0x4ae   :  { %v11359_v12 = vpack.i.bf16 %v3518_v25, %v3517_v59 }
 0x4af   :  { %v11364_v54 = vpack.i.bf16 %v3516_v55, %v3515_v50 }
 0x4b0   :  { %11360 = vrot.lane.b32.xlu1 %v11359_v12, %s12547_s6 }
 0x4b1   :  { %11365 = vrot.lane.b32.xlu0 %v11364_v54, %s12547_s6 }
 0x4b4   :  { %11375 = vrot.lane.b32.xlu1 %v17011_v35, %s12548_s7 }
 0x4b5   :  { %11370 = vrot.lane.b32.xlu0 %v17012_v36, %s12548_s7 }
 0x4b7   :  { %v2968_v4 = vpop.f32.mrb[92].mxu1 }
 0x4b8   :  { %v3481_v30 = vmul.f32 2.0, %v2968_v4  ;;  %v2927_v45 = vpop.f32.mrb[92].mxu0  ;;  %v10650_v53 = vpop.f32.mrb[93].mxu1 }
 0x4b9   :  { %v3479_v41 = vmul.f32 2.0, %v2927_v45  ;;  %v10644_v13 = vpop.f32.mrb[93].mxu0  ;;  %v2971_v52 = vpop.f32.mrb[94].mxu1 }
 0x4ba   :  { %v3482_v5 = vmul.f32 2.0, %v2971_v52  ;;  %v2930_v15 = vpop.f32.mrb[94].mxu0  ;;  %v10651_v27 = vpop.f32.mrb[95].mxu1  ;;  %v3521_v57 = vsub.f32 %v3481_v30, %v13539_v21  ;;  %v17016_v13 = vpack.i.bf16 %v13846_v56, %v13838_v2 }
 0x4bb   :  { %v3480_v43 = vmul.f32 2.0, %v2930_v15  ;;  %v10645_v48 = vpop.f32.mrb[95].mxu0  ;;  %v3519_v6 = vsub.f32 %v3479_v41, %v13545_v16  ;;  %v17015_v41 = vpack.i.bf16 %v13840_v19, %v13836_v29 }
 0x4bc   :  { %v3522_v14 = vsub.f32 %v3482_v5, %v13542_v11 }
 0x4bd   :  { %v3520_v1 = vsub.f32 %v3480_v43, %v13548_v49 }
 0x4be   :  { %v11379_v26 = vpack.i.bf16 %v3522_v14, %v3521_v57 }
 0x4bf   :  { %v11384_v8 = vpack.i.bf16 %v3520_v1, %v3519_v6 }
 0x4c0   :  { %11380 = vrot.lane.b32.xlu1 %v11379_v26, %s12547_s6 }
 0x4c1   :  { %11385 = vrot.lane.b32.xlu0 %v11384_v8, %s12547_s6 }
 0x4c4   :  { %11395 = vrot.lane.b32.xlu1 %v17013_v34, %s12548_s7 }
 0x4c5   :  { %11390 = vrot.lane.b32.xlu0 %v17014_v17, %s12548_s7 }
 0x4c7   :  { %v3050_v46 = vpop.f32.mrb[96].mxu1 }
 0x4c8   :  { %v3485_v38 = vmul.f32 2.0, %v3050_v46  ;;  %v3009_v59 = vpop.f32.mrb[96].mxu0  ;;  %v10662_v25 = vpop.f32.mrb[97].mxu1 }
 0x4c9   :  { %v3483_v50 = vmul.f32 2.0, %v3009_v59  ;;  %v10656_v55 = vpop.f32.mrb[97].mxu0  ;;  %v3053_v12 = vpop.f32.mrb[98].mxu1  ;;  %v17017_v59 = vpack.i.bf16 %v13866_v32, %v13862_v47  ;;  %v17023_v32 = vld [vmem:[#allocation5_spill] sm:$0xff] }
 0x4ca   :  { %v3486_v54 = vmul.f32 2.0, %v3053_v12  ;;  %v3012_v35 = vpop.f32.mrb[98].mxu0  ;;  %v10663_v36 = vpop.f32.mrb[99].mxu1  ;;  %v3525_v10 = vsub.f32 %v3485_v38, %v13565_v0 }
 0x4cb   :  { %v3484_v4 = vmul.f32 2.0, %v3012_v35  ;;  %v10657_v30 = vpop.f32.mrb[99].mxu0  ;;  %v3523_v45 = vsub.f32 %v3483_v50, %v13571_v42  ;;  %v17019_v35 = vld [vmem:[#allocation21_spill] sm:$0xff] }
 0x4cc   :  { %v3526_v18 = vsub.f32 %v3486_v54, %v13568_v28  ;;  %v17018_v54 = vld [vmem:[#allocation22_spill] sm:$0xff] }
 0x4cd   :  { %v3524_v60 = vsub.f32 %v3484_v4, %v13574_v37  ;;  %v17020_v36 = vpack.i.bf16 %v17018_v54, %v17019_v35  ;;  %v17031_v54 = vld [vmem:[#allocation12_spill] sm:$0xff] }
 0x4ce   :  { %v11399_v44 = vpack.i.bf16 %v3526_v18, %v3525_v10 }
 0x4cf   :  { %v11404_v53 = vpack.i.bf16 %v3524_v60, %v3523_v45 }
 0x4d0   :  { %11400 = vrot.lane.b32.xlu1 %v11399_v44, %s12547_s6  ;;  %v17021_v44 = vld [vmem:[#allocation6_spill] sm:$0xff] }
 0x4d1   :  { %11405 = vrot.lane.b32.xlu0 %v11404_v53, %s12547_s6 }
 0x4d4   :  { %11415 = vrot.lane.b32.xlu1 %v17015_v41, %s12548_s7  ;;  %v17022_v41 = vld [vmem:[#allocation7_spill] sm:$0xff] }
 0x4d5   :  { %11410 = vrot.lane.b32.xlu0 %v17016_v13, %s12548_s7 }
 0x4d7   :  { %v3132_v52 = vpop.f32.mrb[100].mxu1 }
 0x4d8   :  { %v3489_v5 = vmul.f32 2.0, %v3132_v52  ;;  %v3091_v15 = vpop.f32.mrb[100].mxu0  ;;  %v10674_v27 = vpop.f32.mrb[101].mxu1  ;;  %v17024_v52 = vld [vmem:[#allocation8_spill] sm:$0xff] }
 0x4d9   :  { %v3487_v43 = vmul.f32 2.0, %v3091_v15  ;;  %v10668_v48 = vpop.f32.mrb[101].mxu0  ;;  %v3135_v57 = vpop.f32.mrb[102].mxu1 }
 0x4da   :  { %v3490_v14 = vmul.f32 2.0, %v3135_v57  ;;  %v3094_v6 = vpop.f32.mrb[102].mxu0  ;;  %v10675_v1 = vpop.f32.mrb[103].mxu1  ;;  %v3529_v29 = vsub.f32 %v3489_v5, %v13591_v39 }
 0x4db   :  { %v3488_v26 = vmul.f32 2.0, %v3094_v6  ;;  %v10669_v8 = vpop.f32.mrb[103].mxu0  ;;  %v3527_v34 = vsub.f32 %v3487_v43, %v13597_v63 }
 0x4dc   :  { %v3530_v19 = vsub.f32 %v3490_v14, %v13594_v20 }
 0x4dd   :  { %v3528_v56 = vsub.f32 %v3488_v26, %v13600_v31 }
 0x4de   :  { %v11419_v2 = vpack.i.bf16 %v3530_v19, %v3529_v29 }
 0x4df   :  { %v11424_v17 = vpack.i.bf16 %v3528_v56, %v3527_v34 }
 0x4e0   :  { %11420 = vrot.lane.b32.xlu1 %v11419_v2, %s12547_s6  ;;  %v17025_v2 = vld [vmem:[#allocation9_spill] sm:$0xff] }
 0x4e1   :  { %11425 = vrot.lane.b32.xlu0 %v11424_v17, %s12547_s6 }
 0x4e3   :  { %v3214_v46 = vpop.f32.mrb[104].mxu1 }
 0x4e4   :  { %v3493_v38 = vmul.f32 2.0, %v3214_v46  ;;  %11435 = vrot.lane.b32.xlu1 %v17017_v59, %s12548_s7  ;;  %v3173_v25 = vpop.f32.mrb[104].mxu0  ;;  %v10686_v50 = vpop.f32.mrb[105].mxu1  ;;  %v17026_v46 = vld [vmem:[#allocation10_spill] sm:$0xff]  ;;  %v17027_v59 = vld [vmem:[#allocation25_spill] sm:$0xff] }
 0x4e5   :  { %v3491_v55 = vmul.f32 2.0, %v3173_v25  ;;  %v3217_v12 = vpop.f32.mrb[106].mxu1  ;;  %11430 = vrot.lane.b32.xlu0 %v17020_v36, %s12548_s7  ;;  %v10680_v4 = vpop.f32.mrb[105].mxu0  ;;  %v17028_v25 = vld [vmem:[#allocation23_spill] sm:$0xff]  ;;  %v17032_v36 = vld [vmem:[#allocation26_spill] sm:$0xff] }
 0x4e6   :  { %v3494_v30 = vmul.f32 2.0, %v3217_v12  ;;  %v3176_v10 = vpop.f32.mrb[106].mxu0  ;;  %v10687_v18 = vpop.f32.mrb[107].mxu1  ;;  %v3533_v53 = vsub.f32 %v3493_v38, %v17021_v44  ;;  %v17029_v50 = vpack.i.bf16 %v17027_v59, %v17028_v25  ;;  %v17033_v4 = vld [vmem:[#allocation24_spill] sm:$0xff]  ;;  %v17042_v25 = vld [vmem:[#allocation30_spill] sm:$0xff] }
 0x4e7   :  { %v3492_v45 = vmul.f32 2.0, %v3176_v10  ;;  %v10681_v60 = vpop.f32.mrb[107].mxu0  ;;  %v3531_v13 = vsub.f32 %v3491_v55, %v17023_v32  ;;  %v17030_v55 = vld [vmem:[#allocation11_spill] sm:$0xff] }
 0x4e8   :  { %v3534_v47 = vsub.f32 %v3494_v30, %v17022_v41  ;;  %v17034_v30 = vpack.i.bf16 %v17032_v36, %v17033_v4  ;;  %v11311_v36 = vpop.permute.xlu1 %11310 }
 0x4e9   :  { %v3532_v5 = vsub.f32 %v3492_v45, %v17024_v52 }
 0x4ea   :  { %v11439_v15 = vpack.i.bf16 %v3534_v47, %v3533_v53 }
 0x4eb   :  { %v11444_v27 = vpack.i.bf16 %v3532_v5, %v3531_v13  ;;  %v3296_v43 = vpop.f32.mrb[108].mxu1 }
 0x4ec   :  { %v3497_v48 = vmul.f32 2.0, %v3296_v43  ;;  %11440 = vrot.lane.b32.xlu1 %v11439_v15, %s12547_s6  ;;  %v3255_v57 = vpop.f32.mrb[108].mxu0  ;;  %v10698_v14 = vpop.f32.mrb[109].mxu1 }
 0x4ed   :  { %v3495_v6 = vmul.f32 2.0, %v3255_v57  ;;  %v3299_v1 = vpop.f32.mrb[110].mxu1  ;;  %11445 = vrot.lane.b32.xlu0 %v11444_v27, %s12547_s6  ;;  %v10692_v26 = vpop.f32.mrb[109].mxu0 }
 0x4ee   :  { %v3498_v8 = vmul.f32 2.0, %v3299_v1  ;;  %v3258_v29 = vpop.f32.mrb[110].mxu0  ;;  %v10699_v19 = vpop.f32.mrb[111].mxu1  ;;  %v3537_v17 = vsub.f32 %v3497_v48, %v17025_v2  ;;  %v17036_v26 = vld [vmem:[#allocation14_spill] sm:$0xff] }
 0x4ef   :  { %v3496_v34 = vmul.f32 2.0, %v3258_v29  ;;  %v10693_v56 = vpop.f32.mrb[111].mxu0  ;;  %v3535_v12 = vsub.f32 %v3495_v6, %v17030_v55  ;;  %v17035_v6 = vld [vmem:[#allocation13_spill] sm:$0xff]  ;;  %v17038_v19 = vld [vmem:[#allocation27_spill] sm:$0xff] }
 0x4f0   :  { %v3538_v38 = vsub.f32 %v3498_v8, %v17026_v46  ;;  %11455 = vrot.lane.b32.xlu1 %v17029_v50, %s12548_s7  ;;  %v17037_v29 = vld [vmem:[#allocation29_spill] sm:$0xff]  ;;  %v17040_v56 = vld [vmem:[#allocation15_spill] sm:$0xff]  ;;  %v17043_v50 = vld [vmem:[#allocation28_spill] sm:$0xff] }
 0x4f1   :  { %v3536_v35 = vsub.f32 %v3496_v34, %v17031_v54  ;;  %11450 = vrot.lane.b32.xlu0 %v17034_v30, %s12548_s7  ;;  %v17039_v34 = vpack.i.bf16 %v17037_v29, %v17038_v19  ;;  %v11313_v30 = vunpack.i.h.bf16 %v11311_v36 }
 0x4f2   :  { %v11459_v10 = vpack.i.bf16 %v3538_v38, %v3537_v17  ;;  %v17041_v38 = vld [vmem:[#allocation16_spill] sm:$0xff] }
 0x4f3   :  { %v11464_v18 = vpack.i.bf16 %v3536_v35, %v3535_v12  ;;  %v3378_v45 = vpop.f32.mrb[112].mxu1  ;;  %v17044_v12 = vpack.i.bf16 %v17042_v25, %v17043_v50 }
 0x4f4   :  { %v3501_v60 = vmul.f32 2.0, %v3378_v45  ;;  %11460 = vrot.lane.b32.xlu1 %v11459_v10, %s12547_s6  ;;  %v3337_v53 = vpop.f32.mrb[112].mxu0  ;;  %v10710_v47 = vpop.f32.mrb[113].mxu1 }
 0x4f5   :  { %v3499_v13 = vmul.f32 2.0, %v3337_v53  ;;  %v3381_v5 = vpop.f32.mrb[114].mxu1  ;;  %11465 = vrot.lane.b32.xlu0 %v11464_v18, %s12547_s6  ;;  %v10704_v15 = vpop.f32.mrb[113].mxu0 }
 0x4f6   :  { %v3502_v27 = vmul.f32 2.0, %v3381_v5  ;;  %v3340_v43 = vpop.f32.mrb[114].mxu0  ;;  %v10711_v48 = vpop.f32.mrb[115].mxu1  ;;  %v3541_v1 = vsub.f32 %v3501_v60, %v17035_v6  ;;  %v17046_v5 = vld [vmem:[#allocation31_spill] sm:$0xff] }
 0x4f7   :  { %v3500_v57 = vmul.f32 2.0, %v3340_v43  ;;  %v10705_v14 = vpop.f32.mrb[115].mxu0  ;;  %v3539_v17 = vsub.f32 %v3499_v13, %v17040_v56  ;;  %v11316_v10 = vpop.permute.xlu0 %11315  ;;  %v17045_v13 = vld [vmem:[#allocation33_spill] sm:$0xff]  ;;  %v11312_v43 = vunpack.i.l.bf16 %v11311_v36 }
 0x4f8   :  { %v3542_v8 = vsub.f32 %v3502_v27, %v17036_v26  ;;  %11475 = vrot.lane.b32.xlu1 %v17039_v34, %s12548_s7  ;;  %v17047_v15 = vpack.i.bf16 %v17045_v13, %v17046_v5  ;;  %v11318_v48 = vunpack.i.h.bf16 %v11316_v10  ;;  %v3870_v34 = vsel %vm477_vm1, %v13461_v51, %v11313_v30  ;;  %v17053_v13 = vld [vmem:[#allocation18_spill] sm:$0xff] }
 0x4f9   :  { %v3540_v59 = vsub.f32 %v3500_v57, %v17041_v38  ;;  %11470 = vrot.lane.b32.xlu0 %v17044_v12, %s12548_s7  ;;  %v11317_v57 = vunpack.i.l.bf16 %v11316_v10  ;;  %v17051_v12 = vld [vmem:[#allocation17_spill] sm:$0xff]  ;;  %v3869_v30 = vsel %vm477_vm1, %v13458_v40, %v11312_v43 }
 0x4fa   :  { %v11479_v35 = vpack.i.bf16 %v3542_v8, %v3541_v1  ;;  %v17048_v1 = vld [vmem:[#allocation34_spill] sm:$0xff]  ;;  %v17049_v8 = vld [vmem:[#allocation32_spill] sm:$0xff] }
 0x4fb   :  { %v11484_v4 = vpack.i.bf16 %v3540_v59, %v3539_v17  ;;  %v17050_v29 = vpack.i.bf16 %v17048_v1, %v17049_v8 }
 0x4fc   :  { %11480 = vrot.lane.b32.xlu1 %v11479_v35, %s12547_s6 }
 0x4fd   :  { %11485 = vrot.lane.b32.xlu0 %v11484_v4, %s12547_s6  ;;  %v17052_v4 = vld [vmem:[#allocation19_spill] sm:$0xff] }
 0x4fe   :  { %v3460_v18 = vpop.f32.mrb[116].mxu1 }
 0x4ff   :  { %v3419_v45 = vpop.f32.mrb[116].mxu0  ;;  %v3505_v60 = vmul.f32 2.0, %v3460_v18  ;;  %v10722_v47 = vpop.f32.mrb[117].mxu1 }
 0x500   :  { %v3503_v53 = vmul.f32 2.0, %v3419_v45  ;;  %11495 = vrot.lane.b32.xlu1 %v17047_v15, %s12548_s7  ;;  %v10716_v27 = vpop.f32.mrb[117].mxu0  ;;  %v3463_v14 = vpop.f32.mrb[118].mxu1  ;;  %v17054_v15 = vld [vmem:[#allocation20_spill] sm:$0xff] }
 0x501   :  { %11490 = vrot.lane.b32.xlu0 %v17050_v29, %s12548_s7  ;;  %v3422_v19 = vpop.f32.mrb[118].mxu0  ;;  %v3506_v17 = vmul.f32 2.0, %v3463_v14  ;;  %v3545_v35 = vsub.f32 %v3505_v60, %v17051_v12  ;;  %v10723_v47 = vpop.f32.mrb[119].mxu1  ;;  %v3868_v14 = vsel %vm477_vm1, %v13467_v24, %v11318_v48  ;;  %v3867_v60 = vsel %vm477_vm1, %v13464_v3, %v11317_v57 }
 0x502   :  { %v3504_v59 = vmul.f32 2.0, %v3422_v19  ;;  %v11321_v25 = vpop.permute.xlu1 %11320  ;;  %v10717_v50 = vpop.f32.mrb[119].mxu0  ;;  %v3543_v36 = vsub.f32 %v3503_v53, %v17052_v4 }
 0x503   :  { %v11323_v18 = vunpack.i.h.bf16 %v11321_v25  ;;  %v11322_v10 = vunpack.i.l.bf16 %v11321_v25  ;;  %v11326_v45 = vpop.permute.xlu0 %11325  ;;  %v3546_v5 = vsub.f32 %v3506_v17, %v17053_v13 }
 0x504   :  { %v3544_v27 = vsub.f32 %v3504_v59, %v17054_v15  ;;  %v11328_v1 = vunpack.i.h.bf16 %v11326_v45  ;;  %v11327_v8 = vunpack.i.l.bf16 %v11326_v45 }
 0x505   :  { %v3910_v53 = vsel %vm518_vm2, %v3870_v34, %v11323_v18  ;;  %v11504_v29 = vpack.i.bf16 %v3546_v5, %v3545_v35  ;;  %v3909_v25 = vsel %vm518_vm2, %v3869_v30, %v11322_v10 }
 0x506   :  { %v11499_v19 = vpack.i.bf16 %v3544_v27, %v3543_v36  ;;  %v3907_v17 = vsel %vm518_vm2, %v3867_v60, %v11327_v8  ;;  %v3908_v59 = vsel %vm518_vm2, %v3868_v14, %v11328_v1  ;;  %v3950_v50 = vpack.c.bf16 %v3910_v53, %v3909_v25  ;;  %v11336_v48 = vpop.permute.xlu1 %11335 }
 0x507   :  { %11505 = vrot.lane.b32.xlu1 %v11504_v29, %s12547_s6  ;;  %v3949_v43 = vpack.c.bf16 %v3908_v59, %v3907_v17  ;;  %v11331_v57 = vpop.permute.xlu0 %11330  ;;  %v11338_v34 = vunpack.i.h.bf16 %v11336_v48  ;;  %v11337_v35 = vunpack.i.l.bf16 %v11336_v48 }
 0x508   :  { %11500 = vrot.lane.b32.xlu0 %v11499_v19, %s12547_s6  ;;  %v11333_v36 = vunpack.i.h.bf16 %v11331_v57  ;;  %v11332_v18 = vunpack.i.l.bf16 %v11331_v57 }
 0x509   :  { %10726 = vmatprep.mubr.msk.bf16.mxu0 %vm593_vm3, %v3949_v43  ;;  %v3874_v27 = vsel %vm477_vm1, %v13490_v62, %v11338_v34  ;;  %v3873_v1 = vsel %vm477_vm1, %v13487_v61, %v11337_v35 }
 0x50a   :  { %10727 = vmatmul.mubr.msk.bf16.vlgmr.msra.gmra.mrb[120].mxu0 %vm593_vm3, %v3950_v50  ;;  %v3872_v14 = vsel %vm477_vm1, %v13496_v58, %v11333_v36  ;;  %v3871_v60 = vsel %vm477_vm1, %v13493_v7, %v11332_v18 }
 0x512   :  { %v11341_v10 = vpop.permute.xlu1 %11340 }
 0x513   :  { %v11343_v45 = vunpack.i.h.bf16 %v11341_v10  ;;  %v11342_v47 = vunpack.i.l.bf16 %v11341_v10  ;;  %v11346_v5 = vpop.permute.xlu0 %11345 }
 0x514   :  { %v11348_v8 = vunpack.i.h.bf16 %v11346_v5  ;;  %v11347_v30 = vunpack.i.l.bf16 %v11346_v5 }
 0x515   :  { %v3914_v53 = vsel %vm518_vm2, %v3874_v27, %v11343_v45  ;;  %v3913_v29 = vsel %vm518_vm2, %v3873_v1, %v11342_v47 }
 0x516   :  { %v3911_v19 = vsel %vm518_vm2, %v3871_v60, %v11347_v30  ;;  %v3912_v25 = vsel %vm518_vm2, %v3872_v14, %v11348_v8  ;;  %v3952_v59 = vpack.c.bf16 %v3914_v53, %v3913_v29  ;;  %v11356_v43 = vpop.permute.xlu1 %11355 }
 0x517   :  { %v3951_v17 = vpack.c.bf16 %v3912_v25, %v3911_v19  ;;  %v11351_v50 = vpop.permute.xlu0 %11350  ;;  %v11358_v48 = vunpack.i.h.bf16 %v11356_v43  ;;  %v11357_v57 = vunpack.i.l.bf16 %v11356_v43 }
 0x518   :  { %v11353_v34 = vunpack.i.h.bf16 %v11351_v50  ;;  %v11352_v35 = vunpack.i.l.bf16 %v11351_v50 }
 0x519   :  { %10730 = vmatprep.mubr.msk.bf16.mxu0 %vm593_vm3, %v3951_v17  ;;  %v3878_v47 = vsel %vm477_vm1, %v13516_v23, %v11358_v48  ;;  %v3877_v5 = vsel %vm477_vm1, %v13513_v33, %v11357_v57 }
 0x51a   :  { %10731 = vmatmul.mubr.msk.bf16.gmra.mrb[124].mxu0 %vm593_vm3, %v3952_v59  ;;  %v3876_v8 = vsel %vm477_vm1, %v13522_v9, %v11353_v34  ;;  %v3875_v30 = vsel %vm477_vm1, %v13519_v22, %v11352_v35 }
 0x522   :  { %v11361_v36 = vpop.permute.xlu1 %11360 }
 0x523   :  { %v11363_v18 = vunpack.i.h.bf16 %v11361_v36  ;;  %v11362_v10 = vunpack.i.l.bf16 %v11361_v36  ;;  %v11366_v45 = vpop.permute.xlu0 %11365 }
 0x524   :  { %v11368_v27 = vunpack.i.h.bf16 %v11366_v45  ;;  %v11367_v1 = vunpack.i.l.bf16 %v11366_v45 }
 0x525   :  { %v3918_v14 = vsel %vm518_vm2, %v3878_v47, %v11363_v18  ;;  %v3917_v60 = vsel %vm518_vm2, %v3877_v5, %v11362_v10 }
 0x526   :  { %v3915_v53 = vsel %vm518_vm2, %v3875_v30, %v11367_v1  ;;  %v3916_v29 = vsel %vm518_vm2, %v3876_v8, %v11368_v27  ;;  %v3954_v25 = vpack.c.bf16 %v3918_v14, %v3917_v60  ;;  %v11376_v17 = vpop.permute.xlu1 %11375 }
 0x527   :  { %v3953_v19 = vpack.c.bf16 %v3916_v29, %v3915_v53  ;;  %v11371_v59 = vpop.permute.xlu0 %11370  ;;  %v11378_v43 = vunpack.i.h.bf16 %v11376_v17  ;;  %v11377_v50 = vunpack.i.l.bf16 %v11376_v17 }
 0x528   :  { %v11373_v48 = vunpack.i.h.bf16 %v11371_v59  ;;  %v11372_v57 = vunpack.i.l.bf16 %v11371_v59 }
 0x529   :  { %10734 = vmatprep.mubr.msk.bf16.mxu0 %vm593_vm3, %v3953_v19  ;;  %v3882_v10 = vsel %vm477_vm1, %v13542_v11, %v11378_v43  ;;  %v3881_v45 = vsel %vm477_vm1, %v13539_v21, %v11377_v50 }
 0x52a   :  { %10735 = vmatmul.mubr.msk.bf16.gmra.mrb[128].mxu0 %vm593_vm3, %v3954_v25  ;;  %v3880_v27 = vsel %vm477_vm1, %v13548_v49, %v11373_v48  ;;  %v3879_v1 = vsel %vm477_vm1, %v13545_v16, %v11372_v57 }
 0x532   :  { %v11381_v34 = vpop.permute.xlu1 %11380 }
 0x533   :  { %v11383_v35 = vunpack.i.h.bf16 %v11381_v34  ;;  %v11382_v36 = vunpack.i.l.bf16 %v11381_v34  ;;  %v11386_v18 = vpop.permute.xlu0 %11385 }
 0x534   :  { %v11388_v47 = vunpack.i.h.bf16 %v11386_v18  ;;  %v11387_v5 = vunpack.i.l.bf16 %v11386_v18 }
 0x535   :  { %v3922_v8 = vsel %vm518_vm2, %v3882_v10, %v11383_v35  ;;  %v3921_v30 = vsel %vm518_vm2, %v3881_v45, %v11382_v36 }
 0x536   :  { %v3919_v14 = vsel %vm518_vm2, %v3879_v1, %v11387_v5  ;;  %v3920_v60 = vsel %vm518_vm2, %v3880_v27, %v11388_v47  ;;  %v3956_v29 = vpack.c.bf16 %v3922_v8, %v3921_v30  ;;  %v11396_v19 = vpop.permute.xlu1 %11395 }
 0x537   :  { %v3955_v53 = vpack.c.bf16 %v3920_v60, %v3919_v14  ;;  %v11391_v25 = vpop.permute.xlu0 %11390  ;;  %v11398_v17 = vunpack.i.h.bf16 %v11396_v19  ;;  %v11397_v59 = vunpack.i.l.bf16 %v11396_v19 }
 0x538   :  { %v11393_v43 = vunpack.i.h.bf16 %v11391_v25  ;;  %v11392_v50 = vunpack.i.l.bf16 %v11391_v25 }
 0x539   :  { %10738 = vmatprep.mubr.msk.bf16.mxu0 %vm593_vm3, %v3955_v53  ;;  %v3886_v36 = vsel %vm477_vm1, %v13568_v28, %v11398_v17  ;;  %v3885_v18 = vsel %vm477_vm1, %v13565_v0, %v11397_v59 }
 0x53a   :  { %10739 = vmatmul.mubr.msk.bf16.gmra.mrb[132].mxu0 %vm593_vm3, %v3956_v29  ;;  %v3884_v47 = vsel %vm477_vm1, %v13574_v37, %v11393_v43  ;;  %v3883_v5 = vsel %vm477_vm1, %v13571_v42, %v11392_v50 }
 0x542   :  { %v11401_v48 = vpop.permute.xlu1 %11400 }
 0x543   :  { %v11403_v57 = vunpack.i.h.bf16 %v11401_v48  ;;  %v11402_v34 = vunpack.i.l.bf16 %v11401_v48  ;;  %v11406_v35 = vpop.permute.xlu0 %11405 }
 0x544   :  { %v11408_v10 = vunpack.i.h.bf16 %v11406_v35  ;;  %v11407_v45 = vunpack.i.l.bf16 %v11406_v35 }
 0x545   :  { %v3926_v27 = vsel %vm518_vm2, %v3886_v36, %v11403_v57  ;;  %v3925_v1 = vsel %vm518_vm2, %v3885_v18, %v11402_v34 }
 0x546   :  { %v3923_v8 = vsel %vm518_vm2, %v3883_v5, %v11407_v45  ;;  %v3924_v30 = vsel %vm518_vm2, %v3884_v47, %v11408_v10  ;;  %v3958_v60 = vpack.c.bf16 %v3926_v27, %v3925_v1  ;;  %v11416_v53 = vpop.permute.xlu1 %11415 }
 0x547   :  { %v3957_v14 = vpack.c.bf16 %v3924_v30, %v3923_v8  ;;  %v11411_v29 = vpop.permute.xlu0 %11410  ;;  %v11418_v19 = vunpack.i.h.bf16 %v11416_v53  ;;  %v11417_v25 = vunpack.i.l.bf16 %v11416_v53 }
 0x548   :  { %v11413_v17 = vunpack.i.h.bf16 %v11411_v29  ;;  %v11412_v59 = vunpack.i.l.bf16 %v11411_v29 }
 0x549   :  { %10742 = vmatprep.mubr.msk.bf16.mxu0 %vm593_vm3, %v3957_v14  ;;  %v3890_v34 = vsel %vm477_vm1, %v13594_v20, %v11418_v19  ;;  %v3889_v35 = vsel %vm477_vm1, %v13591_v39, %v11417_v25 }
 0x54a   :  { %10743 = vmatmul.mubr.msk.bf16.gmra.mrb[136].mxu0 %vm593_vm3, %v3958_v60  ;;  %v3888_v10 = vsel %vm477_vm1, %v13600_v31, %v11413_v17  ;;  %v3887_v45 = vsel %vm477_vm1, %v13597_v63, %v11412_v59 }
 0x552   :  { %v11421_v43 = vpop.permute.xlu1 %11420 }
 0x553   :  { %v11423_v50 = vunpack.i.h.bf16 %v11421_v43  ;;  %v11422_v48 = vunpack.i.l.bf16 %v11421_v43  ;;  %v11426_v57 = vpop.permute.xlu0 %11425 }
 0x554   :  { %v11428_v36 = vunpack.i.h.bf16 %v11426_v57  ;;  %v11427_v18 = vunpack.i.l.bf16 %v11426_v57 }
 0x555   :  { %v3930_v47 = vsel %vm518_vm2, %v3890_v34, %v11423_v50  ;;  %v3929_v5 = vsel %vm518_vm2, %v3889_v35, %v11422_v48 }
 0x556   :  { %v3927_v27 = vsel %vm518_vm2, %v3887_v45, %v11427_v18  ;;  %v3928_v1 = vsel %vm518_vm2, %v3888_v10, %v11428_v36  ;;  %v3960_v30 = vpack.c.bf16 %v3930_v47, %v3929_v5  ;;  %v11436_v14 = vpop.permute.xlu1 %11435 }
 0x557   :  { %v3959_v8 = vpack.c.bf16 %v3928_v1, %v3927_v27  ;;  %v11431_v60 = vpop.permute.xlu0 %11430  ;;  %v11438_v53 = vunpack.i.h.bf16 %v11436_v14  ;;  %v11437_v29 = vunpack.i.l.bf16 %v11436_v14 }
 0x558   :  { %v11433_v19 = vunpack.i.h.bf16 %v11431_v60  ;;  %v11432_v25 = vunpack.i.l.bf16 %v11431_v60 }
 0x559   :  { %10746 = vmatprep.mubr.msk.bf16.mxu0 %vm593_vm3, %v3959_v8  ;;  %v3894_v48 = vsel %vm477_vm1, %v17022_v41, %v11438_v53  ;;  %v3893_v57 = vsel %vm477_vm1, %v17021_v44, %v11437_v29 }
 0x55a   :  { %10747 = vmatmul.mubr.msk.bf16.gmra.mrb[140].mxu0 %vm593_vm3, %v3960_v30  ;;  %v3892_v36 = vsel %vm477_vm1, %v17024_v52, %v11433_v19  ;;  %v3891_v18 = vsel %vm477_vm1, %v17023_v32, %v11432_v25 }
 0x55e   :  { %v11441_v17 = vpop.permute.xlu1 %11440 }
 0x55f   :  { %v11443_v59 = vunpack.i.h.bf16 %v11441_v17  ;;  %v11442_v43 = vunpack.i.l.bf16 %v11441_v17  ;;  %v11446_v50 = vpop.permute.xlu0 %11445 }
 0x560   :  { %v11448_v34 = vunpack.i.h.bf16 %v11446_v50  ;;  %v11447_v35 = vunpack.i.l.bf16 %v11446_v50 }
 0x561   :  { %v3934_v10 = vsel %vm518_vm2, %v3894_v48, %v11443_v59  ;;  %v3933_v45 = vsel %vm518_vm2, %v3893_v57, %v11442_v43 }
 0x562   :  { %v3931_v47 = vsel %vm518_vm2, %v3891_v18, %v11447_v35  ;;  %v3932_v5 = vsel %vm518_vm2, %v3892_v36, %v11448_v34  ;;  %v11456_v27 = vpop.permute.xlu1 %11455  ;;  %v3962_v60 = vpack.c.bf16 %v3934_v10, %v3933_v45 }
 0x563   :  { %v11451_v1 = vpop.permute.xlu0 %11450  ;;  %v3961_v8 = vpack.c.bf16 %v3932_v5, %v3931_v47  ;;  %v11458_v30 = vunpack.i.h.bf16 %v11456_v27  ;;  %v11457_v14 = vunpack.i.l.bf16 %v11456_v27 }
 0x564   :  { %v11453_v53 = vunpack.i.h.bf16 %v11451_v1  ;;  %v11452_v29 = vunpack.i.l.bf16 %v11451_v1 }
 0x565   :  { %10750 = vmatprep.mubr.msk.bf16.mxu0 %vm593_vm3, %v3961_v8  ;;  %v3898_v43 = vsel %vm477_vm1, %v17026_v46, %v11458_v30  ;;  %v3897_v50 = vsel %vm477_vm1, %v17025_v2, %v11457_v14 }
 0x566   :  { %v11461_v19 = vpop.permute.xlu1 %11460  ;;  %10751 = vmatmul.mubr.msk.bf16.gmra.mrb[144].mxu0 %vm593_vm3, %v3962_v60  ;;  %v3896_v34 = vsel %vm477_vm1, %v17031_v54, %v11453_v53  ;;  %v3895_v35 = vsel %vm477_vm1, %v17030_v55, %v11452_v29 }
 0x567   :  { %v11463_v25 = vunpack.i.h.bf16 %v11461_v19  ;;  %v11462_v17 = vunpack.i.l.bf16 %v11461_v19  ;;  %v11466_v59 = vpop.permute.xlu0 %11465 }
 0x568   :  { %v11468_v48 = vunpack.i.h.bf16 %v11466_v59  ;;  %v11467_v57 = vunpack.i.l.bf16 %v11466_v59 }
 0x569   :  { %v3938_v36 = vsel %vm518_vm2, %v3898_v43, %v11463_v25  ;;  %v3937_v18 = vsel %vm518_vm2, %v3897_v50, %v11462_v17 }
 0x56a   :  { %v3935_v10 = vsel %vm518_vm2, %v3895_v35, %v11467_v57  ;;  %v3936_v45 = vsel %vm518_vm2, %v3896_v34, %v11468_v48  ;;  %v11476_v47 = vpop.permute.xlu1 %11475  ;;  %v3964_v30 = vpack.c.bf16 %v3938_v36, %v3937_v18 }
 0x56b   :  { %v11471_v5 = vpop.permute.xlu0 %11470  ;;  %v3963_v27 = vpack.c.bf16 %v3936_v45, %v3935_v10  ;;  %v11478_v1 = vunpack.i.h.bf16 %v11476_v47  ;;  %v11477_v8 = vunpack.i.l.bf16 %v11476_v47 }
 0x56c   :  { %v11473_v14 = vunpack.i.h.bf16 %v11471_v5  ;;  %v11472_v60 = vunpack.i.l.bf16 %v11471_v5 }
 0x56d   :  { %10754 = vmatprep.mubr.msk.bf16.mxu0 %vm593_vm3, %v3963_v27  ;;  %v3902_v17 = vsel %vm477_vm1, %v17036_v26, %v11478_v1  ;;  %v3901_v59 = vsel %vm477_vm1, %v17035_v6, %v11477_v8 }
 0x56e   :  { %v11481_v53 = vpop.permute.xlu1 %11480  ;;  %10755 = vmatmul.mubr.msk.bf16.gmra.mrb[148].mxu0 %vm593_vm3, %v3964_v30  ;;  %v3900_v48 = vsel %vm477_vm1, %v17041_v38, %v11473_v14  ;;  %v3899_v57 = vsel %vm477_vm1, %v17040_v56, %v11472_v60 }
 0x56f   :  { %v11483_v29 = vunpack.i.h.bf16 %v11481_v53  ;;  %v11482_v19 = vunpack.i.l.bf16 %v11481_v53  ;;  %v11486_v25 = vpop.permute.xlu0 %11485 }
 0x570   :  { %v11488_v43 = vunpack.i.h.bf16 %v11486_v25  ;;  %v11487_v50 = vunpack.i.l.bf16 %v11486_v25 }
 0x571   :  { %v3942_v34 = vsel %vm518_vm2, %v3902_v17, %v11483_v29  ;;  %v3941_v35 = vsel %vm518_vm2, %v3901_v59, %v11482_v19 }
 0x572   :  { %v3939_v36 = vsel %vm518_vm2, %v3899_v57, %v11487_v50  ;;  %v3940_v18 = vsel %vm518_vm2, %v3900_v48, %v11488_v43  ;;  %v3966_v45 = vpack.c.bf16 %v3942_v34, %v3941_v35  ;;  %v11496_v47 = vpop.permute.xlu1 %11495 }
 0x573   :  { %v3965_v10 = vpack.c.bf16 %v3940_v18, %v3939_v36  ;;  %v11491_v5 = vpop.permute.xlu0 %11490  ;;  %v11498_v27 = vunpack.i.h.bf16 %v11496_v47  ;;  %v11497_v1 = vunpack.i.l.bf16 %v11496_v47 }
 0x574   :  { %v11493_v8 = vunpack.i.h.bf16 %v11491_v5  ;;  %v11492_v30 = vunpack.i.l.bf16 %v11491_v5 }
 0x575   :  { %10758 = vmatprep.mubr.msk.bf16.mxu0 %vm593_vm3, %v3965_v10  ;;  %v3906_v17 = vsel %vm477_vm1, %v17053_v13, %v11498_v27  ;;  %v3905_v59 = vsel %vm477_vm1, %v17051_v12, %v11497_v1  ;;  %v14240_v10 = vld [vmem:[%s9899_s9] ss:$0 sm:$0xff] }
 0x576   :  { %10759 = vmatmul.mubr.msk.bf16.gmra.mrb[152].mxu0 %vm593_vm3, %v3966_v45  ;;  %v3904_v43 = vsel %vm477_vm1, %v17054_v15, %v11493_v8  ;;  %v3903_v50 = vsel %vm477_vm1, %v17052_v4, %v11492_v30 }
 0x579   :  { %v11506_v14 = vpop.permute.xlu1 %11505 }
 0x57a   :  { %v11501_v60 = vpop.permute.xlu0 %11500  ;;  %v11508_v53 = vunpack.i.h.bf16 %v11506_v14  ;;  %v11507_v29 = vunpack.i.l.bf16 %v11506_v14 }
 0x57b   :  { %v11503_v19 = vunpack.i.h.bf16 %v11501_v60  ;;  %v11502_v25 = vunpack.i.l.bf16 %v11501_v60 }
 0x57c   :  { %v3946_v48 = vsel %vm518_vm2, %v3906_v17, %v11508_v53  ;;  %v3945_v57 = vsel %vm518_vm2, %v3905_v59, %v11507_v29 }
 0x57d   :  { %v3943_v34 = vsel %vm518_vm2, %v3903_v50, %v11502_v25  ;;  %v3944_v35 = vsel %vm518_vm2, %v3904_v43, %v11503_v19  ;;  %v3968_v18 = vpack.c.bf16 %v3946_v48, %v3945_v57  ;;  %v12022_v57 = vld [vmem:[%s9904_s13] sm:$0x3f]  }
 0x57e   :  { %v3967_v36 = vpack.c.bf16 %v3944_v35, %v3943_v34  ;;  %11065 = vmatprep.subr.msk.bf16.mxu1 %vm654_vm0, %v12022_v57 }
 0x580   :  { %10762 = vmatprep.mubr.msk.bf16.mxu0 %vm593_vm3, %v3967_v36  ;;  %v4688_v36 = vsel %vm654_vm0, %v12022_v57, 0 }
 0x581   :  { %10763 = vmatmul.mubr.msk.bf16.gmra.mrb[156].mxu0 %vm593_vm3, %v3968_v18  ;;  %10767 = vmatpush3.bf16.msra.mxu1 %v4688_v36 }
 0x5dd   :  { %v10728_v45 = vpop.f32.mrb[120].mxu0 }
 0x5de   :  { %v4087_v47 = vadd.f32 %v10728_v45, %v14240_v10  ;;  %v14243_v5 = vpop.f32.mrb[121].mxu0 }
 0x5df   :  { %v10729_v27 = vpop.f32.mrb[122].mxu0 }
 0x5e0   :  { %v14246_v1 = vadd.f32 %v4087_v47, %v13458_v40  ;;  %v4090_v8 = vadd.f32 %v10729_v27, %v14240_v10  ;;  %v14249_v30 = vpop.f32.mrb[123].mxu0 }
 0x5e2   :  { %v14252_v14 = vadd.f32 %v4090_v8, %v13461_v51  ;;  %v4279_v60 = vmax.f32 %v14246_v1, 0.0 }
 0x5e4   :  { %v4280_v53 = vmax.f32 %v14252_v14, 0.0 }
 0x5e6   :  { %v11509_v29 = vpack.i.bf16 %v4280_v53, %v4279_v60 }
 0x5e8   :  { %11510 = vrot.lane.b32.xlu0 %v11509_v29, %s12548_s7 }
 0x5ed   :  { %v10732_v40 = vpop.f32.mrb[124].mxu0 }
 0x5ee   :  { %v4094_v19 = vpop.f32.mrb[125].mxu0  ;;  %v4103_v43 = vadd.f32 %v10732_v40, %v14240_v10 }
 0x5ef   :  { %v4095_v51 = vadd.f32 %v14240_v10, %v4094_v19  ;;  %v10733_v25 = vpop.f32.mrb[126].mxu0 }
 0x5f0   :  { %v4106_v17 = vadd.f32 %v10733_v25, %v14240_v10  ;;  %v4097_v59 = vpop.f32.mrb[127].mxu0  ;;  %v14280_v18 = vadd.f32 %v4103_v43, %v13487_v61 }
 0x5f1   :  { %v14268_v50 = vadd.f32 %v4095_v51, %v13493_v7  ;;  %v4098_v48 = vadd.f32 %v14240_v10, %v4097_v59 }
 0x5f2   :  { %v14272_v34 = vadd.f32 %v4106_v17, %v13490_v62 }
 0x5f3   :  { %v14275_v35 = vadd.f32 %v4098_v48, %v13496_v58  ;;  %v4281_v7 = vmax.f32 %v14268_v50, 0.0  ;;  %v16950_v58 = vmax.f32 %v14280_v18, 0.0 }
 0x5f4   :  { %v4284_v47 = vmax.f32 %v14272_v34, 0.0 }
 0x5f5   :  { %v4282_v45 = vmax.f32 %v14275_v35, 0.0 }
 0x5f6   :  { %v11529_v61 = vpack.i.bf16 %v4284_v47, %v16950_v58 }
 0x5f7   :  { %v11524_v62 = vpack.i.bf16 %v4282_v45, %v4281_v7 }
 0x5f9   :  { %11525 = vrot.lane.b32.xlu0 %v11524_v62, %s12547_s6  ;;  %11515 = vrot.lane.b32.xlu1 %v11524_v62, %s12548_s7 }
 0x5fd   :  { %v10736_v27 = vpop.f32.mrb[128].mxu0  ;;  %11530 = vrot.lane.b32.xlu0 %v11529_v61, %s12548_s7  ;;  %11520 = vrot.lane.b32.xlu1 %v11529_v61, %s12547_s6 }
 0x5fe   :  { %v4110_v8 = vpop.f32.mrb[129].mxu0  ;;  %v4119_v25 = vadd.f32 %v10736_v27, %v14240_v10 }
 0x5ff   :  { %v4111_v29 = vadd.f32 %v14240_v10, %v4110_v8  ;;  %v10737_v40 = vpop.f32.mrb[130].mxu0 }
 0x600   :  { %v4122_v19 = vadd.f32 %v10737_v40, %v14240_v10  ;;  %v4113_v51 = vpop.f32.mrb[131].mxu0  ;;  %v14312_v57 = vadd.f32 %v4119_v25, %v13513_v33 }
 0x601   :  { %v14302_v17 = vadd.f32 %v4111_v29, %v13519_v22  ;;  %v4114_v59 = vadd.f32 %v14240_v10, %v4113_v51 }
 0x602   :  { %v14306_v43 = vadd.f32 %v4122_v19, %v13516_v23  ;;  %v16942_v23 = vmax.f32 %v14312_v57, 0.0 }
 0x603   :  { %v14309_v48 = vadd.f32 %v4114_v59, %v13522_v9  ;;  %v16948_v36 = vmax.f32 %v14302_v17, 0.0 }
 0x604   :  { %v16947_v61 = vmax.f32 %v14306_v43, 0.0 }
 0x605   :  { %v16949_v62 = vmax.f32 %v14309_v48, 0.0 }
 0x606   :  { %v11549_v33 = vpack.i.bf16 %v16947_v61, %v16942_v23 }
 0x607   :  { %v11544_v22 = vpack.i.bf16 %v16949_v62, %v16948_v36 }
 0x609   :  { %11545 = vrot.lane.b32.xlu0 %v11544_v22, %s12547_s6  ;;  %11535 = vrot.lane.b32.xlu1 %v11544_v22, %s12548_s7 }
 0x60d   :  { %v10740_v9 = vpop.f32.mrb[132].mxu0  ;;  %11550 = vrot.lane.b32.xlu0 %v11549_v33, %s12548_s7  ;;  %11540 = vrot.lane.b32.xlu1 %v11549_v33, %s12547_s6 }
 0x60e   :  { %v4126_v27 = vpop.f32.mrb[133].mxu0  ;;  %v4135_v51 = vadd.f32 %v10740_v9, %v14240_v10 }
 0x60f   :  { %v4127_v8 = vadd.f32 %v14240_v10, %v4126_v27  ;;  %v10741_v29 = vpop.f32.mrb[134].mxu0 }
 0x610   :  { %v4138_v40 = vadd.f32 %v10741_v29, %v14240_v10  ;;  %v4129_v19 = vpop.f32.mrb[135].mxu0  ;;  %v14344_v33 = vadd.f32 %v4135_v51, %v13539_v21 }
 0x611   :  { %v14334_v25 = vadd.f32 %v4127_v8, %v13545_v16  ;;  %v4130_v59 = vadd.f32 %v14240_v10, %v4129_v19 }
 0x612   :  { %v14338_v22 = vadd.f32 %v4138_v40, %v13542_v11  ;;  %v16945_v11 = vmax.f32 %v14344_v33, 0.0 }
 0x613   :  { %v14341_v23 = vadd.f32 %v4130_v59, %v13548_v49  ;;  %v16943_v27 = vmax.f32 %v14334_v25, 0.0 }
 0x614   :  { %v16946_v9 = vmax.f32 %v14338_v22, 0.0 }
 0x615   :  { %v16944_v29 = vmax.f32 %v14341_v23, 0.0 }
 0x616   :  { %v11569_v21 = vpack.i.bf16 %v16946_v9, %v16945_v11 }
 0x617   :  { %v11564_v16 = vpack.i.bf16 %v16944_v29, %v16943_v27 }
 0x619   :  { %11565 = vrot.lane.b32.xlu0 %v11564_v16, %s12547_s6  ;;  %11555 = vrot.lane.b32.xlu1 %v11564_v16, %s12548_s7 }
 0x61d   :  { %v10744_v49 = vpop.f32.mrb[136].mxu0  ;;  %11570 = vrot.lane.b32.xlu0 %v11569_v21, %s12548_s7  ;;  %11560 = vrot.lane.b32.xlu1 %v11569_v21, %s12547_s6 }
 0x61e   :  { %v4151_v8 = vadd.f32 %v10744_v49, %v14240_v10  ;;  %v4142_v40 = vpop.f32.mrb[137].mxu0 }
 0x61f   :  { %v4143_v19 = vadd.f32 %v14240_v10, %v4142_v40  ;;  %v10745_v51 = vpop.f32.mrb[138].mxu0 }
 0x620   :  { %v4255_v59 = vadd.f32 %v4151_v8, %v13565_v0  ;;  %v4154_v16 = vadd.f32 %v10745_v51, %v14240_v10  ;;  %v4145_v27 = vpop.f32.mrb[139].mxu0 }
 0x621   :  { %v4253_v29 = vadd.f32 %v4143_v19, %v13571_v42  ;;  %v4146_v11 = vadd.f32 %v14240_v10, %v4145_v27 }
 0x622   :  { %v4256_v9 = vadd.f32 %v4154_v16, %v13568_v28  ;;  %v4295_v21 = vmax.f32 %v4255_v59, 0.0 }
 0x623   :  { %v4254_v61 = vadd.f32 %v4146_v11, %v13574_v37  ;;  %v4293_v49 = vmax.f32 %v4253_v29, 0.0 }
 0x624   :  { %v4296_v36 = vmax.f32 %v4256_v9, 0.0 }
 0x625   :  { %v4294_v62 = vmax.f32 %v4254_v61, 0.0 }
 0x626   :  { %v11579_v58 = vpack.i.bf16 %v4296_v36, %v4295_v21 }
 0x627   :  { %v11584_v40 = vpack.i.bf16 %v4294_v62, %v4293_v49 }
 0x629   :  { %11585 = vrot.lane.b32.xlu0 %v11584_v40, %s12547_s6  ;;  %11575 = vrot.lane.b32.xlu1 %v11584_v40, %s12548_s7 }
 0x62d   :  { %v10748_v0 = vpop.f32.mrb[140].mxu0  ;;  %11580 = vrot.lane.b32.xlu1 %v11579_v58, %s12547_s6 }
 0x62e   :  { %v4167_v42 = vadd.f32 %v10748_v0, %v14240_v10  ;;  %v14374_v27 = vpop.f32.mrb[141].mxu0 }
 0x62f   :  { %v10749_v28 = vpop.f32.mrb[142].mxu0 }
 0x630   :  { %v14377_v37 = vadd.f32 %v4167_v42, %v13591_v39  ;;  %v4170_v29 = vadd.f32 %v10749_v28, %v14240_v10  ;;  %v14380_v61 = vpop.f32.mrb[143].mxu0 }
 0x632   :  { %v14383_v36 = vadd.f32 %v4170_v29, %v13594_v20  ;;  %v4299_v62 = vmax.f32 %v14377_v37, 0.0 }
 0x634   :  { %v4300_v9 = vmax.f32 %v14383_v36, 0.0 }
 0x636   :  { %v11589_v58 = vpack.i.bf16 %v4300_v9, %v4299_v62 }
 0x638   :  { %11590 = vrot.lane.b32.xlu0 %v11589_v58, %s12548_s7 }
 0x639   :  { %v10752_v39 = vpop.f32.mrb[144].mxu0 }
 0x63a   :  { %v4174_v11 = vpop.f32.mrb[145].mxu0  ;;  %v4183_v59 = vadd.f32 %v10752_v39, %v14240_v10 }
 0x63b   :  { %v4175_v8 = vadd.f32 %v14240_v10, %v4174_v11  ;;  %v10753_v19 = vpop.f32.mrb[146].mxu0 }
 0x63c   :  { %v4186_v51 = vadd.f32 %v10753_v19, %v14240_v10  ;;  %v4177_v20 = vpop.f32.mrb[147].mxu0  ;;  %v14406_v0 = vadd.f32 %v4183_v59, %v17021_v44 }
 0x63d   :  { %v14396_v16 = vadd.f32 %v4175_v8, %v17023_v32  ;;  %v4178_v21 = vadd.f32 %v14240_v10, %v4177_v20 }
 0x63e   :  { %v14400_v49 = vadd.f32 %v4186_v51, %v17022_v41  ;;  %v16951_v8 = vmax.f32 %v14406_v0, 0.0 }
 0x63f   :  { %v14403_v40 = vadd.f32 %v4178_v21, %v17024_v52  ;;  %v16959_v42 = vmax.f32 %v14396_v16, 0.0  ;;  %v17065_v37 = vmax.f32 %v14396_v16, 0.0  ;;  %v17067_v16 = vmax.f32 %v14406_v0, 0.0 }
 0x640   :  { %v16952_v32 = vmax.f32 %v14400_v49, 0.0 }
 0x641   :  { %v16960_v28 = vmax.f32 %v14403_v40, 0.0  ;;  %v10756_v29 = vpop.f32.mrb[148].mxu0  ;;  %v17064_v36 = vmax.f32 %v14403_v40, 0.0  ;;  %v17066_v40 = vmax.f32 %v14400_v49, 0.0 }
 0x642   :  { %v4190_v58 = vpop.f32.mrb[149].mxu0  ;;  %v4199_v19 = vadd.f32 %v10756_v29, %v14240_v10  ;;  %v11609_v29 = vpack.i.bf16 %v16952_v32, %v16951_v8 }
 0x643   :  { %v4191_v39 = vadd.f32 %v14240_v10, %v4190_v58  ;;  %v10757_v11 = vpop.f32.mrb[150].mxu0  ;;  %v11604_v41 = vpack.i.bf16 %v16960_v28, %v16959_v42 }
 0x644   :  { %v4202_v52 = vadd.f32 %v10757_v11, %v14240_v10  ;;  %v4193_v44 = vpop.f32.mrb[151].mxu0 }
 0x645   :  { %v14420_v51 = vadd.f32 %v4191_v39, %v17030_v55  ;;  %v4194_v20 = vadd.f32 %v14240_v10, %v4193_v44  ;;  %11605 = vrot.lane.b32.xlu0 %v11604_v41, %s12547_s6  ;;  %11595 = vrot.lane.b32.xlu1 %v11604_v41, %s12548_s7  ;;  %v14436_v55 = vadd.f32 %v4199_v19, %v17025_v2 }
 0x646   :  { %v14426_v59 = vadd.f32 %v4202_v52, %v17026_v46 }
 0x647   :  { %v14429_v21 = vadd.f32 %v4194_v20, %v17031_v54  ;;  %v16953_v58 = vmax.f32 %v14420_v51, 0.0  ;;  %v16954_v20 = vmax.f32 %v14436_v55, 0.0  ;;  %v17069_v0 = vmax.f32 %v14420_v51, 0.0 }
 0x648   :  { %v16955_v54 = vmax.f32 %v14426_v59, 0.0  ;;  %v17071_v51 = vmax.f32 %v14436_v55, 0.0 }
 0x649   :  { %v16958_v39 = vmax.f32 %v14429_v21, 0.0  ;;  %v10760_v11 = vpop.f32.mrb[152].mxu0  ;;  %11610 = vrot.lane.b32.xlu0 %v11609_v29, %s12548_s7  ;;  %11600 = vrot.lane.b32.xlu1 %v11609_v29, %s12547_s6  ;;  %v17068_v49 = vmax.f32 %v14429_v21, 0.0  ;;  %v17070_v21 = vmax.f32 %v14426_v59, 0.0 }
 0x64a   :  { %v4206_v46 = vpop.f32.mrb[153].mxu0  ;;  %v4215_v8 = vadd.f32 %v10760_v11, %v14240_v10  ;;  %v11629_v11 = vpack.i.bf16 %v16955_v54, %v16954_v20 }
 0x64b   :  { %v4207_v41 = vadd.f32 %v14240_v10, %v4206_v46  ;;  %v10761_v52 = vpop.f32.mrb[154].mxu0  ;;  %v11624_v2 = vpack.i.bf16 %v16958_v39, %v16953_v58 }
 0x64c   :  { %v4218_v44 = vadd.f32 %v10761_v52, %v14240_v10  ;;  %v4209_v19 = vpop.f32.mrb[155].mxu0 }
 0x64d   :  { %v14452_v29 = vadd.f32 %v4207_v41, %v17040_v56  ;;  %v4210_v32 = vadd.f32 %v14240_v10, %v4209_v19  ;;  %11625 = vrot.lane.b32.xlu0 %v11624_v2, %s12547_s6  ;;  %11615 = vrot.lane.b32.xlu1 %v11624_v2, %s12548_s7  ;;  %v14468_v56 = vadd.f32 %v4215_v8, %v17035_v6 }
 0x64e   :  { %v14458_v46 = vadd.f32 %v4218_v44, %v17036_v26 }
 0x64f   :  { %v14461_v58 = vadd.f32 %v4210_v32, %v17041_v38  ;;  %v16956_v41 = vmax.f32 %v14452_v29, 0.0  ;;  %v4311_v2 = vmax.f32 %v14468_v56, 0.0 }
 0x650   :  { %v4312_v26 = vmax.f32 %v14458_v46, 0.0  ;;  %v14650_v46 = vld [vmem:[%s9905_s18] ss:$0 sm:$0xff] }
 0x651   :  { %v16957_v52 = vmax.f32 %v14461_v58, 0.0  ;;  %11630 = vrot.lane.b32.xlu0 %v11629_v11, %s12548_s7  ;;  %11620 = vrot.lane.b32.xlu1 %v11629_v11, %s12547_s6  ;;  %v17072_v55 = vmax.f32 %v14461_v58, 0.0 }
 0x653   :  { %v11644_v38 = vpack.i.bf16 %v16957_v52, %v16956_v41  ;;  %v11649_v41 = vpack.i.bf16 %v4312_v26, %v4311_v2 }
 0x654   :  { %v10764_v32 = vpop.f32.mrb[156].mxu0 }
 0x655   :  { %v4231_v6 = vadd.f32 %v10764_v32, %v14240_v10  ;;  %v4222_v8 = vpop.f32.mrb[157].mxu0  ;;  %11645 = vrot.lane.b32.xlu0 %v11644_v38, %s12547_s6  ;;  %11635 = vrot.lane.b32.xlu1 %v11644_v38, %s12548_s7 }
 0x656   :  { %v4223_v44 = vadd.f32 %v14240_v10, %v4222_v8  ;;  %v10765_v19 = vpop.f32.mrb[158].mxu0 }
 0x657   :  { %v4275_v11 = vadd.f32 %v4231_v6, %v17051_v12  ;;  %v4234_v20 = vadd.f32 %v10765_v19, %v14240_v10  ;;  %v4225_v54 = vpop.f32.mrb[159].mxu0 }
 0x658   :  { %v4273_v32 = vadd.f32 %v4223_v44, %v17052_v4  ;;  %v4226_v52 = vadd.f32 %v14240_v10, %v4225_v54  ;;  %v4079_v4 = vadd.f32 %v14240_v10, %v14243_v5 }
 0x659   :  { %v4276_v39 = vadd.f32 %v4234_v20, %v17053_v13  ;;  %11650 = vrot.lane.b32.xlu0 %v11649_v41, %s12548_s7  ;;  %11640 = vrot.lane.b32.xlu1 %v11649_v41, %s12547_s6  ;;  %v4315_v38 = vmax.f32 %v4275_v11, 0.0  ;;  %v4082_v13 = vadd.f32 %v14240_v10, %v14249_v30 }
 0x65a   :  { %v4274_v12 = vadd.f32 %v4226_v52, %v17054_v15  ;;  %v4313_v8 = vmax.f32 %v4273_v32, 0.0  ;;  %v11511_v54 = vpop.permute.xlu0 %11510  ;;  %v4237_v15 = vadd.f32 %v4079_v4, %v13464_v3 }
 0x65b   :  { %v4316_v6 = vmax.f32 %v4276_v39, 0.0  ;;  %v4238_v39 = vadd.f32 %v4082_v13, %v13467_v24  ;;  %v11513_v20 = vunpack.i.h.bf16 %v11511_v54  ;;  %v11512_v41 = vunpack.i.l.bf16 %v11511_v54 }
 0x65c   :  { %v4314_v19 = vmax.f32 %v4274_v12, 0.0  ;;  %v4277_v52 = vmax.f32 %v4237_v15, 0.0 }
 0x65d   :  { %v11664_v42 = vpack.i.bf16 %v4316_v6, %v4315_v38  ;;  %v4278_v44 = vmax.f32 %v4238_v39, 0.0 }
 0x65e   :  { %v11659_v28 = vpack.i.bf16 %v4314_v19, %v4313_v8  ;;  %v4545_v5 = vsel %vm477_vm1, %v4277_v52, %v11512_v41 }
 0x65f   :  { %v4546_v38 = vsel %vm477_vm1, %v4278_v44, %v11513_v20 }
 0x660   :  { %11660 = vrot.lane.b32.xlu0 %v11659_v28, %s12547_s6  ;;  %11655 = vrot.lane.b32.xlu1 %v11659_v28, %s12548_s7 }
 0x664   :  { %11665 = vrot.lane.b32.xlu1 %v11664_v42, %s12547_s6 }
 0x66b   :  { %v11526_v11 = vpop.permute.xlu0 %11525  ;;  %v11516_v32 = vpop.permute.xlu1 %11515 }
 0x66c   :  { %v11528_v28 = vunpack.i.h.bf16 %v11526_v11  ;;  %v11527_v12 = vunpack.i.l.bf16 %v11526_v11  ;;  %v11518_v30 = vunpack.i.h.bf16 %v11516_v32  ;;  %v11517_v6 = vunpack.i.l.bf16 %v11516_v32 }
 0x66e   :  { %v4577_v42 = vsel %vm518_vm2, %v4545_v5, %v11527_v12  ;;  %v4578_v3 = vsel %vm518_vm2, %v4546_v38, %v11528_v28  ;;  %v4548_v13 = vsel %vm477_vm1, %v4280_v53, %v11518_v30  ;;  %v4547_v54 = vsel %vm477_vm1, %v4279_v60, %v11517_v6 }
 0x66f   :  { %v11521_v8 = vpop.permute.xlu1 %11520  ;;  %v4611_v24 = vpack.c.bf16 %v4578_v3, %v4577_v42  ;;  %v11531_v41 = vpop.permute.xlu0 %11530 }
 0x670   :  { %v11523_v19 = vunpack.i.h.bf16 %v11521_v8  ;;  %v11522_v4 = vunpack.i.l.bf16 %v11521_v8  ;;  %v11533_v52 = vunpack.i.h.bf16 %v11531_v41  ;;  %v11532_v44 = vunpack.i.l.bf16 %v11531_v41 }
 0x671   :  { %10768 = vmatprep.mubr.msk.bf16.mxu1 %vm593_vm3, %v4611_v24 }
 0x672   :  { %v4579_v15 = vsel %vm518_vm2, %v4547_v54, %v11522_v4  ;;  %v4580_v39 = vsel %vm518_vm2, %v4548_v13, %v11523_v19  ;;  %v4550_v1 = vsel %vm477_vm1, %v4282_v45, %v11533_v52  ;;  %v4549_v60 = vsel %vm477_vm1, %v4281_v7, %v11532_v44 }
 0x673   :  { %v4612_v20 = vpack.c.bf16 %v4580_v39, %v4579_v15  ;;  %v17055_v45 = vmax.f32 %v14280_v18, 0.0  ;;  %v17056_v18 = vmax.f32 %v14309_v48, 0.0 }
 0x675   :  { %10769 = vmatmul.mubr.msk.bf16.vlgmr.msra.gmra.mrb[120].mxu1 %vm593_vm3, %v4612_v20  ;;  %v17057_v20 = vmax.f32 %v14302_v17, 0.0 }
 0x67b   :  { %v11546_v11 = vpop.permute.xlu0 %11545  ;;  %v11536_v14 = vpop.permute.xlu1 %11535 }
 0x67c   :  { %v11548_v32 = vunpack.i.h.bf16 %v11546_v11  ;;  %v11547_v53 = vunpack.i.l.bf16 %v11546_v11  ;;  %v11538_v28 = vunpack.i.h.bf16 %v11536_v14  ;;  %v11537_v12 = vunpack.i.l.bf16 %v11536_v14 }
 0x67e   :  { %v4581_v5 = vsel %vm518_vm2, %v4549_v60, %v11547_v53  ;;  %v4582_v38 = vsel %vm518_vm2, %v4550_v1, %v11548_v32  ;;  %v4552_v35 = vsel %vm477_vm1, %v4284_v47, %v11538_v28  ;;  %v4551_v50 = vsel %vm477_vm1, %v17055_v45, %v11537_v12 }
 0x67f   :  { %v11541_v30 = vpop.permute.xlu1 %11540  ;;  %v4613_v6 = vpack.c.bf16 %v4582_v38, %v4581_v5  ;;  %v11551_v19 = vpop.permute.xlu0 %11550  ;;  %v17058_v28 = vmax.f32 %v14306_v43, 0.0  ;;  %v17059_v12 = vmax.f32 %v14312_v57, 0.0  ;;  %v17060_v57 = vmax.f32 %v14341_v23, 0.0 }
 0x680   :  { %v11543_v42 = vunpack.i.h.bf16 %v11541_v30  ;;  %v11542_v3 = vunpack.i.l.bf16 %v11541_v30  ;;  %v11553_v4 = vunpack.i.h.bf16 %v11551_v19  ;;  %v11552_v13 = vunpack.i.l.bf16 %v11551_v19 }
 0x681   :  { %10772 = vmatprep.mubr.msk.bf16.mxu1 %vm593_vm3, %v4613_v6 }
 0x682   :  { %v4583_v7 = vsel %vm518_vm2, %v4551_v50, %v11542_v3  ;;  %v4584_v8 = vsel %vm518_vm2, %v4552_v35, %v11543_v42  ;;  %v4554_v39 = vsel %vm477_vm1, %v17056_v18, %v11553_v4  ;;  %v4553_v41 = vsel %vm477_vm1, %v17057_v20, %v11552_v13 }
 0x683   :  { %v4614_v24 = vpack.c.bf16 %v4584_v8, %v4583_v7  ;;  %v17061_v8 = vmax.f32 %v14334_v25, 0.0  ;;  %v17063_v20 = vmax.f32 %v14344_v33, 0.0 }
 0x685   :  { %10773 = vmatmul.mubr.msk.bf16.gmra.mrb[124].mxu1 %vm593_vm3, %v4614_v24 }
 0x68b   :  { %v11566_v54 = vpop.permute.xlu0 %11565  ;;  %v11556_v34 = vpop.permute.xlu1 %11555 }
 0x68c   :  { %v11568_v15 = vunpack.i.h.bf16 %v11566_v54  ;;  %v11567_v47 = vunpack.i.l.bf16 %v11566_v54  ;;  %v11558_v52 = vunpack.i.h.bf16 %v11556_v34  ;;  %v11557_v44 = vunpack.i.l.bf16 %v11556_v34 }
 0x68e   :  { %v4585_v11 = vsel %vm518_vm2, %v4553_v41, %v11567_v47  ;;  %v4586_v14 = vsel %vm518_vm2, %v4554_v39, %v11568_v15  ;;  %v4556_v48 = vsel %vm477_vm1, %v17058_v28, %v11558_v52  ;;  %v4555_v17 = vsel %vm477_vm1, %v17059_v12, %v11557_v44 }
 0x68f   :  { %v11561_v32 = vpop.permute.xlu1 %11560  ;;  %v4615_v53 = vpack.c.bf16 %v4586_v14, %v4585_v11  ;;  %v11571_v6 = vpop.permute.xlu0 %11570  ;;  %v17062_v39 = vmax.f32 %v14338_v22, 0.0  ;;  %v4159_v11 = vadd.f32 %v14240_v10, %v14374_v27  ;;  %v4162_v22 = vadd.f32 %v14240_v10, %v14380_v61 }
 0x690   :  { %v11563_v1 = vunpack.i.h.bf16 %v11561_v32  ;;  %v11562_v60 = vunpack.i.l.bf16 %v11561_v32  ;;  %v11573_v42 = vunpack.i.h.bf16 %v11571_v6  ;;  %v11572_v3 = vunpack.i.l.bf16 %v11571_v6 }
 0x691   :  { %10776 = vmatprep.mubr.msk.bf16.mxu1 %vm593_vm3, %v4615_v53  ;;  %v4257_v33 = vadd.f32 %v4159_v11, %v13597_v63  ;;  %v4258_v32 = vadd.f32 %v4162_v22, %v13600_v31 }
 0x692   :  { %v4587_v5 = vsel %vm518_vm2, %v4555_v17, %v11562_v60  ;;  %v4588_v38 = vsel %vm518_vm2, %v4556_v48, %v11563_v1  ;;  %v4558_v7 = vsel %vm477_vm1, %v17060_v57, %v11573_v42  ;;  %v4557_v24 = vsel %vm477_vm1, %v17061_v8, %v11572_v3 }
 0x693   :  { %v4616_v30 = vpack.c.bf16 %v4588_v38, %v4587_v5  ;;  %v4297_v60 = vmax.f32 %v4257_v33, 0.0  ;;  %v4298_v28 = vmax.f32 %v4258_v32, 0.0 }
 0x695   :  { %10777 = vmatmul.mubr.msk.bf16.gmra.mrb[128].mxu1 %vm593_vm3, %v4616_v30 }
 0x69b   :  { %v11586_v35 = vpop.permute.xlu0 %11585  ;;  %v11576_v43 = vpop.permute.xlu1 %11575 }
 0x69c   :  { %v11588_v45 = vunpack.i.h.bf16 %v11586_v35  ;;  %v11587_v50 = vunpack.i.l.bf16 %v11586_v35  ;;  %v11578_v19 = vunpack.i.h.bf16 %v11576_v43  ;;  %v11577_v4 = vunpack.i.l.bf16 %v11576_v43 }
 0x69e   :  { %v4589_v13 = vsel %vm518_vm2, %v4557_v24, %v11587_v50  ;;  %v4590_v54 = vsel %vm518_vm2, %v4558_v7, %v11588_v45  ;;  %v4560_v23 = vsel %vm477_vm1, %v17062_v39, %v11578_v19  ;;  %v4559_v25 = vsel %vm477_vm1, %v17063_v20, %v11577_v4 }
 0x69f   :  { %v11581_v34 = vpop.permute.xlu1 %11580  ;;  %v4617_v15 = vpack.c.bf16 %v4590_v54, %v4589_v13 }
 0x6a0   :  { %v11583_v47 = vunpack.i.h.bf16 %v11581_v34  ;;  %v11582_v18 = vunpack.i.l.bf16 %v11581_v34 }
 0x6a1   :  { %10780 = vmatprep.mubr.msk.bf16.mxu1 %vm593_vm3, %v4617_v15 }
 0x6a2   :  { %v4591_v41 = vsel %vm518_vm2, %v4559_v25, %v11582_v18  ;;  %v4592_v52 = vsel %vm518_vm2, %v4560_v23, %v11583_v47 }
 0x6a3   :  { %v4618_v44 = vpack.c.bf16 %v4592_v52, %v4591_v41 }
 0x6a5   :  { %10781 = vmatmul.mubr.msk.bf16.gmra.mrb[132].mxu1 %vm593_vm3, %v4618_v44 }
 0x6aa   :  { %v11591_v14 = vpop.permute.xlu0 %11590 }
 0x6ab   :  { %v11593_v53 = vunpack.i.h.bf16 %v11591_v14  ;;  %v11592_v1 = vunpack.i.l.bf16 %v11591_v14 }
 0x6ad   :  { %v4562_v38 = vsel %vm477_vm1, %v4298_v28, %v11593_v53  ;;  %v4561_v27 = vsel %vm477_vm1, %v4297_v60, %v11592_v1 }
 0x6b7   :  { %v11606_v48 = vpop.permute.xlu0 %11605  ;;  %v11596_v12 = vpop.permute.xlu1 %11595 }
 0x6b8   :  { %v11608_v17 = vunpack.i.h.bf16 %v11606_v48  ;;  %v11607_v5 = vunpack.i.l.bf16 %v11606_v48  ;;  %v11598_v30 = vunpack.i.h.bf16 %v11596_v12  ;;  %v11597_v6 = vunpack.i.l.bf16 %v11596_v12 }
 0x6ba   :  { %v4593_v10 = vsel %vm518_vm2, %v4561_v27, %v11607_v5  ;;  %v4594_v63 = vsel %vm518_vm2, %v4562_v38, %v11608_v17  ;;  %v4564_v43 = vsel %vm477_vm1, %v4300_v9, %v11598_v30  ;;  %v4563_v45 = vsel %vm477_vm1, %v4299_v62, %v11597_v6 }
 0x6bb   :  { %v11611_v61 = vpop.permute.xlu0 %11610  ;;  %v11601_v31 = vpop.permute.xlu1 %11600  ;;  %v4619_v42 = vpack.c.bf16 %v4594_v63, %v4593_v10 }
 0x6bc   :  { %v11603_v3 = vunpack.i.h.bf16 %v11601_v31  ;;  %v11602_v35 = vunpack.i.l.bf16 %v11601_v31  ;;  %v11613_v50 = vunpack.i.h.bf16 %v11611_v61  ;;  %v11612_v57 = vunpack.i.l.bf16 %v11611_v61 }
 0x6bd   :  { %10784 = vmatprep.mubr.msk.bf16.mxu1 %vm593_vm3, %v4619_v42 }
 0x6be   :  { %v4595_v7 = vsel %vm518_vm2, %v4563_v45, %v11602_v35  ;;  %v4596_v8 = vsel %vm518_vm2, %v4564_v43, %v11603_v3  ;;  %v4566_v9 = vsel %vm477_vm1, %v17064_v36, %v11613_v50  ;;  %v4565_v62 = vsel %vm477_vm1, %v17065_v37, %v11612_v57 }
 0x6bf   :  { %v11626_v24 = vpop.permute.xlu0 %11625  ;;  %v11616_v19 = vpop.permute.xlu1 %11615  ;;  %v4620_v4 = vpack.c.bf16 %v4596_v8, %v4595_v7 }
 0x6c0   :  { %v11628_v13 = vunpack.i.h.bf16 %v11626_v24  ;;  %v11627_v54 = vunpack.i.l.bf16 %v11626_v24  ;;  %v11618_v34 = vunpack.i.h.bf16 %v11616_v19  ;;  %v11617_v15 = vunpack.i.l.bf16 %v11616_v19 }
 0x6c1   :  { %10785 = vmatmul.mubr.msk.bf16.gmra.mrb[136].mxu1 %vm593_vm3, %v4620_v4  ;;  %v17073_v19 = vmax.f32 %v14452_v29, 0.0 }
 0x6c2   :  { %v4597_v47 = vsel %vm518_vm2, %v4565_v62, %v11627_v54  ;;  %v4598_v18 = vsel %vm518_vm2, %v4566_v9, %v11628_v13  ;;  %v4568_v52 = vsel %vm477_vm1, %v17066_v40, %v11618_v34  ;;  %v4567_v44 = vsel %vm477_vm1, %v17067_v16, %v11617_v15 }
 0x6c3   :  { %v11631_v39 = vpop.permute.xlu0 %11630  ;;  %v11621_v23 = vpop.permute.xlu1 %11620  ;;  %v4621_v20 = vpack.c.bf16 %v4598_v18, %v4597_v47 }
 0x6c4   :  { %v11623_v25 = vunpack.i.h.bf16 %v11621_v23  ;;  %v11622_v41 = vunpack.i.l.bf16 %v11621_v23  ;;  %v11633_v11 = vunpack.i.h.bf16 %v11631_v39  ;;  %v11632_v22 = vunpack.i.l.bf16 %v11631_v39 }
 0x6c5   :  { %10788 = vmatprep.mubr.msk.bf16.mxu1 %vm593_vm3, %v4621_v20 }
 0x6c6   :  { %v4599_v14 = vsel %vm518_vm2, %v4567_v44, %v11622_v41  ;;  %v4600_v33 = vsel %vm518_vm2, %v4568_v52, %v11623_v25  ;;  %v4570_v48 = vsel %vm477_vm1, %v17068_v49, %v11633_v11  ;;  %v4569_v12 = vsel %vm477_vm1, %v17069_v0, %v11632_v22 }
 0x6c7   :  { %v11646_v32 = vpop.permute.xlu0 %11645  ;;  %v11636_v53 = vpop.permute.xlu1 %11635  ;;  %v4622_v1 = vpack.c.bf16 %v4600_v33, %v4599_v14 }
 0x6c8   :  { %v11648_v60 = vunpack.i.h.bf16 %v11646_v32  ;;  %v11647_v28 = vunpack.i.l.bf16 %v11646_v32  ;;  %v11638_v17 = vunpack.i.h.bf16 %v11636_v53  ;;  %v11637_v5 = vunpack.i.l.bf16 %v11636_v53 }
 0x6c9   :  { %10789 = vmatmul.mubr.msk.bf16.gmra.mrb[140].mxu1 %vm593_vm3, %v4622_v1 }
 0x6ca   :  { %v4601_v38 = vsel %vm518_vm2, %v4569_v12, %v11647_v28  ;;  %v4602_v27 = vsel %vm518_vm2, %v4570_v48, %v11648_v60  ;;  %v4572_v61 = vsel %vm477_vm1, %v17070_v21, %v11638_v17  ;;  %v4571_v31 = vsel %vm477_vm1, %v17071_v51, %v11637_v5 }
 0x6cb   :  { %v11641_v30 = vpop.permute.xlu1 %11640  ;;  %v4623_v6 = vpack.c.bf16 %v4602_v27, %v4601_v38  ;;  %v11651_v42 = vpop.permute.xlu0 %11650 }
 0x6cc   :  { %v11643_v10 = vunpack.i.h.bf16 %v11641_v30  ;;  %v11642_v63 = vunpack.i.l.bf16 %v11641_v30  ;;  %v11653_v45 = vunpack.i.h.bf16 %v11651_v42  ;;  %v11652_v50 = vunpack.i.l.bf16 %v11651_v42 }
 0x6cd   :  { %10792 = vmatprep.mubr.msk.bf16.mxu1 %vm593_vm3, %v4623_v6 }
 0x6ce   :  { %v4603_v3 = vsel %vm518_vm2, %v4571_v31, %v11642_v63  ;;  %v4604_v35 = vsel %vm518_vm2, %v4572_v61, %v11643_v10  ;;  %v4574_v24 = vsel %vm477_vm1, %v17072_v55, %v11653_v45  ;;  %v4573_v4 = vsel %vm477_vm1, %v17073_v19, %v11652_v50 }
 0x6cf   :  { %v4624_v43 = vpack.c.bf16 %v4604_v35, %v4603_v3 }
 0x6d1   :  { %10793 = vmatmul.mubr.msk.bf16.gmra.mrb[144].mxu1 %vm593_vm3, %v4624_v43 }
 0x6d2   :  { %v11661_v57 = vpop.permute.xlu0 %11660  ;;  %v11656_v59 = vpop.permute.xlu1 %11655 }
 0x6d3   :  { %v11663_v7 = vunpack.i.h.bf16 %v11661_v57  ;;  %v11662_v8 = vunpack.i.l.bf16 %v11661_v57  ;;  %v11658_v13 = vunpack.i.h.bf16 %v11656_v59  ;;  %v11657_v54 = vunpack.i.l.bf16 %v11656_v59 }
 0x6d5   :  { %v4605_v36 = vsel %vm518_vm2, %v4573_v4, %v11662_v8  ;;  %v4606_v9 = vsel %vm518_vm2, %v4574_v24, %v11663_v7  ;;  %v4576_v58 = vsel %vm477_vm1, %v4312_v26, %v11658_v13  ;;  %v4575_v29 = vsel %vm477_vm1, %v4311_v2, %v11657_v54 }
 0x6d6   :  { %v11666_v37 = vpop.permute.xlu1 %11665  ;;  %v4625_v62 = vpack.c.bf16 %v4606_v9, %v4605_v36 }
 0x6d7   :  { %v11668_v34 = vunpack.i.h.bf16 %v11666_v37  ;;  %v11667_v15 = vunpack.i.l.bf16 %v11666_v37 }
 0x6d8   :  { %10796 = vmatprep.mubr.msk.bf16.mxu1 %vm593_vm3, %v4625_v62 }
 0x6d9   :  { %v4607_v47 = vsel %vm518_vm2, %v4575_v29, %v11667_v15  ;;  %v4608_v18 = vsel %vm518_vm2, %v4576_v58, %v11668_v34 }
 0x6da   :  { %v4626_v39 = vpack.c.bf16 %v4608_v18, %v4607_v47 }
 0x6dc   :  { %10797 = vmatmul.mubr.msk.bf16.gmra.mrb[148].mxu1 %vm593_vm3, %v4626_v39 }
 0x748   :  { %v10770_v26 = vpop.f32.mrb[120].mxu1 }
 0x749   :  { %v14653_v56 = vadd.f32 %v10770_v26, %v14650_v46  ;;  %v4724_v2 = vpop.f32.mrb[121].mxu1 }
 0x74a   :  { %v10771_v23 = vpop.f32.mrb[122].mxu1  ;;  %v14661_v41 = vadd.f32 %v14650_v46, %v4724_v2 }
 0x74b   :  { %v14656_v20 = vadd.f32 %v10771_v23, %v14650_v46  ;;  %4887 = vrot.lane.b32.xlu0 %v14653_v56, %s12551_s16  ;;  %v4727_v25 = vpop.f32.mrb[123].mxu1  ;;  %v5013_v32 = vsub.f32 0.0, %v14653_v56 }
 0x74c   :  { %v14666_v40 = vadd.f32 %v14650_v46, %v4727_v25  ;;  %v5011_v28 = vsub.f32 0.0, %v14661_v41 }
 0x74d   :  { %4889 = vrot.lane.b32.xlu1 %v14656_v20, %s12551_s16  ;;  %v5014_v1 = vsub.f32 0.0, %v14656_v20  ;;  %v5047_v60 = vmul.f32 1.442695, %v5013_v32 }
 0x74e   :  { %v5012_v48 = vsub.f32 0.0, %v14666_v40  ;;  %v5043_v0 = vmul.f32 1.442695, %v5011_v28 }
 0x74f   :  { %4883 = vrot.lane.b32.xlu0 %v14661_v41, %s12551_s16  ;;  %v5049_v49 = vmul.f32 1.442695, %v5014_v1  ;;  %12191 = vpow2.f32 %v5047_v60 }
 0x750   :  { %v5045_v5 = vmul.f32 1.442695, %v5012_v48 }
 0x751   :  { %4885 = vrot.lane.b32.xlu1 %v14666_v40, %s12551_s16  ;;  %12193 = vpow2.f32 %v5049_v49 }
 0x752   :  { %12195 = vpow2.f32 %v5043_v0 }
 0x753   :  { %12197 = vpow2.f32 %v5045_v5 }
 0x758   :  { %v10774_v52 = vpop.f32.mrb[124].mxu1 }
 0x759   :  { %v14673_v16 = vadd.f32 %v10774_v52, %v14650_v46  ;;  %v4740_v44 = vpop.f32.mrb[125].mxu1  ;;  %v12192_v43 = vpop.eup %12191 }
 0x75a   :  { %v10775_v11 = vpop.f32.mrb[126].mxu1  ;;  %v14681_v33 = vadd.f32 %v14650_v46, %v4740_v44  ;;  %v5109_v57 = vadd.f32 1.0, %v12192_v43 }
 0x75b   :  { %v14676_v22 = vadd.f32 %v10775_v11, %v14650_v46  ;;  %v4743_v14 = vpop.f32.mrb[127].mxu1  ;;  %4895 = vrot.lane.b32.xlu0 %v14673_v16, %s12551_s16  ;;  %v5017_v12 = vsub.f32 0.0, %v14673_v16  ;;  %v12194_v50 = vpop.eup %12193 }
 0x75c   :  { %v14687_v53 = vadd.f32 %v14650_v46, %v4743_v14  ;;  %v5015_v6 = vsub.f32 0.0, %v14681_v33  ;;  %v12196_v59 = vpop.eup %12195  ;;  %v5110_v7 = vadd.f32 1.0, %v12194_v50 }
 0x75d   :  { %4897 = vrot.lane.b32.xlu1 %v14676_v22, %s12551_s16  ;;  %v5018_v38 = vsub.f32 0.0, %v14676_v22  ;;  %v5055_v63 = vmul.f32 1.442695, %v5017_v12  ;;  %v12198_v8 = vpop.eup %12197  ;;  %v5107_v55 = vadd.f32 1.0, %v12196_v59 }
 0x75e   :  { %v5016_v31 = vsub.f32 0.0, %v14687_v53  ;;  %v5051_v3 = vmul.f32 1.442695, %v5015_v6  ;;  %v5108_v36 = vadd.f32 1.0, %v12198_v8 }
 0x75f   :  { %4891 = vrot.lane.b32.xlu0 %v14681_v33, %s12551_s16  ;;  %v5057_v51 = vmul.f32 1.442695, %v5018_v38  ;;  %12199 = vpow2.f32 %v5055_v63 }
 0x760   :  { %v5053_v45 = vmul.f32 1.442695, %v5016_v31 }
 0x761   :  { %4893 = vrot.lane.b32.xlu1 %v14687_v53, %s12551_s16  ;;  %12201 = vpow2.f32 %v5057_v51 }
 0x762   :  { %12203 = vpow2.f32 %v5051_v3 }
 0x763   :  { %12205 = vpow2.f32 %v5053_v45 }
 0x764   :  { %12207 = vrcp.f32 %v5109_v57 }
 0x765   :  { %12209 = vrcp.f32 %v5110_v7 }
 0x766   :  { %12211 = vrcp.f32 %v5107_v55 }
 0x767   :  { %12213 = vrcp.f32 %v5108_v36 }
 0x768   :  { %v10778_v17 = vpop.f32.mrb[128].mxu1 }
 0x769   :  { %v14699_v27 = vadd.f32 %v10778_v17, %v14650_v46  ;;  %v4756_v30 = vpop.f32.mrb[129].mxu1  ;;  %v12200_v19 = vpop.eup %12199 }
 0x76a   :  { %v10779_v10 = vpop.f32.mrb[130].mxu1  ;;  %v14709_v42 = vadd.f32 %v14650_v46, %v4756_v30  ;;  %v5113_v58 = vadd.f32 1.0, %v12200_v19 }
 0x76b   :  { %v14703_v21 = vadd.f32 %v10779_v10, %v14650_v46  ;;  %v4759_v61 = vpop.f32.mrb[131].mxu1  ;;  %4903 = vrot.lane.b32.xlu0 %v14699_v27, %s12551_s16  ;;  %v5021_v4 = vsub.f32 0.0, %v14699_v27  ;;  %v12202_v37 = vpop.eup %12201 }
 0x76c   :  { %v14714_v35 = vadd.f32 %v14650_v46, %v4759_v61  ;;  %v12204_v15 = vpop.eup %12203  ;;  %v5114_v39 = vadd.f32 1.0, %v12202_v37  ;;  %v5019_v23 = vsub.f32 0.0, %v14709_v42  ;;  %12215 = vrcp.f32 %v5113_v58 }
 0x76d   :  { %4905 = vrot.lane.b32.xlu1 %v14703_v21, %s12551_s16  ;;  %v5022_v29 = vsub.f32 0.0, %v14703_v21  ;;  %v5063_v47 = vmul.f32 1.442695, %v5021_v4  ;;  %v12206_v26 = vpop.eup %12205  ;;  %v5111_v2 = vadd.f32 1.0, %v12204_v15 }
 0x76e   :  { %v5020_v44 = vsub.f32 0.0, %v14714_v35  ;;  %v12208_v11 = vpop.eup %12207  ;;  %v5112_v14 = vadd.f32 1.0, %v12206_v26  ;;  %v5059_v32 = vmul.f32 1.442695, %v5019_v23 }
 0x76f   :  { %4899 = vrot.lane.b32.xlu0 %v14709_v42, %s12551_s16  ;;  %v5065_v52 = vmul.f32 1.442695, %v5022_v29  ;;  %12217 = vpow2.f32 %v5063_v47  ;;  %v12210_v1 = vpop.eup %12209 }
 0x770   :  { %12219 = vrcp.f32 %v5114_v39  ;;  %v5061_v60 = vmul.f32 1.442695, %v5020_v44  ;;  %v12212_v28 = vpop.eup %12211 }
 0x771   :  { %4901 = vrot.lane.b32.xlu1 %v14714_v35, %s12551_s16  ;;  %12221 = vrcp.f32 %v5111_v2  ;;  %v12214_v49 = vpop.eup %12213 }
 0x772   :  { %12223 = vpow2.f32 %v5065_v52 }
 0x773   :  { %12225 = vrcp.f32 %v5112_v14 }
 0x774   :  { %12227 = vpow2.f32 %v5059_v32 }
 0x775   :  { %12229 = vpow2.f32 %v5061_v60 }
 0x776   :  { %v12216_v48 = vpop.eup %12215 }
 0x778   :  { %v10782_v24 = vpop.f32.mrb[132].mxu1 }
 0x779   :  { %v14722_v13 = vadd.f32 %v10782_v24, %v14650_v46  ;;  %v4772_v54 = vpop.f32.mrb[133].mxu1  ;;  %v12218_v0 = vpop.eup %12217 }
 0x77a   :  { %v10783_v9 = vpop.f32.mrb[134].mxu1  ;;  %v14731_v18 = vadd.f32 %v14650_v46, %v4772_v54  ;;  %v12220_v17 = vpop.eup %12219  ;;  %v5117_v6 = vadd.f32 1.0, %v12218_v0 }
 0x77b   :  { %v14725_v62 = vadd.f32 %v10783_v9, %v14650_v46  ;;  %v4775_v34 = vpop.f32.mrb[135].mxu1  ;;  %4911 = vrot.lane.b32.xlu0 %v14722_v13, %s12551_s16  ;;  %v5025_v12 = vsub.f32 0.0, %v14722_v13  ;;  %v12222_v38 = vpop.eup %12221 }
 0x77c   :  { %v14737_v25 = vadd.f32 %v14650_v46, %v4775_v34  ;;  %v12224_v30 = vpop.eup %12223  ;;  %v5023_v10 = vsub.f32 0.0, %v14731_v18  ;;  %12231 = vrcp.f32 %v5117_v6 }
 0x77d   :  { %4913 = vrot.lane.b32.xlu1 %v14725_v62, %s12551_s16  ;;  %v5026_v5 = vsub.f32 0.0, %v14725_v62  ;;  %v5071_v63 = vmul.f32 1.442695, %v5025_v12  ;;  %v12226_v51 = vpop.eup %12225  ;;  %v5118_v43 = vadd.f32 1.0, %v12224_v30 }
 0x77e   :  { %v5024_v61 = vsub.f32 0.0, %v14737_v25  ;;  %v12228_v3 = vpop.eup %12227  ;;  %v5067_v50 = vmul.f32 1.442695, %v5023_v10 }
 0x77f   :  { %4907 = vrot.lane.b32.xlu0 %v14731_v18, %s12551_s16  ;;  %v5073_v31 = vmul.f32 1.442695, %v5026_v5  ;;  %v12230_v45 = vpop.eup %12229  ;;  %12233 = vpow2.f32 %v5071_v63  ;;  %v5115_v59 = vadd.f32 1.0, %v12228_v3 }
 0x780   :  { %v5069_v57 = vmul.f32 1.442695, %v5024_v61  ;;  %v5116_v8 = vadd.f32 1.0, %v12230_v45 }
 0x781   :  { %4909 = vrot.lane.b32.xlu1 %v14737_v25, %s12551_s16  ;;  %12235 = vpow2.f32 %v5073_v31 }
 0x782   :  { %12237 = vrcp.f32 %v5118_v43 }
 0x783   :  { %5239 = vrot.lane.b32.xlu0 %v12208_v11, %s12553_s21  ;;  %12239 = vpow2.f32 %v5067_v50 }
 0x784   :  { %12241 = vpow2.f32 %v5069_v57 }
 0x785   :  { %5241 = vrot.lane.b32.xlu1 %v12210_v1, %s12553_s21  ;;  %12243 = vrcp.f32 %v5115_v59 }
 0x786   :  { %12245 = vrcp.f32 %v5116_v8  ;;  %v12232_v37 = vpop.eup %12231 }
 0x787   :  { %5235 = vrot.lane.b32.xlu0 %v12212_v28, %s12553_s21 }
 0x789   :  { %5237 = vrot.lane.b32.xlu1 %v12214_v49, %s12553_s21  ;;  %v12234_v15 = vpop.eup %12233 }
 0x78a   :  { %v5121_v23 = vadd.f32 1.0, %v12234_v15 }
 0x78b   :  { %5247 = vrot.lane.b32.xlu0 %v12216_v48, %s12553_s21  ;;  %v12236_v29 = vpop.eup %12235 }
 0x78c   :  { %v12238_v39 = vpop.eup %12237  ;;  %v5122_v44 = vadd.f32 1.0, %v12236_v29  ;;  %12247 = vrcp.f32 %v5121_v23 }
 0x78d   :  { %5249 = vrot.lane.b32.xlu1 %v12220_v17, %s12553_s21  ;;  %v12240_v2 = vpop.eup %12239 }
 0x78e   :  { %v12242_v52 = vpop.eup %12241  ;;  %v5119_v1 = vadd.f32 1.0, %v12240_v2  ;;  %12249 = vrcp.f32 %v5122_v44 }
 0x78f   :  { %5243 = vrot.lane.b32.xlu0 %v12222_v38, %s12553_s21  ;;  %v12244_v14 = vpop.eup %12243  ;;  %v5120_v28 = vadd.f32 1.0, %v12242_v52 }
 0x790   :  { %v12246_v32 = vpop.eup %12245  ;;  %12251 = vrcp.f32 %v5119_v1 }
 0x791   :  { %5245 = vrot.lane.b32.xlu1 %v12226_v51, %s12553_s21  ;;  %12253 = vrcp.f32 %v5120_v28 }
 0x794   :  { %v10786_v7 = vpop.f32.mrb[136].mxu1 }
 0x795   :  { %v14757_v55 = vadd.f32 %v10786_v7, %v14650_v46  ;;  %v4788_v24 = vpop.f32.mrb[137].mxu1 }
 0x796   :  { %v14760_v19 = vadd.f32 %v14650_v46, %v4788_v24  ;;  %v10787_v4 = vpop.f32.mrb[138].mxu1  ;;  %v12248_v57 = vpop.eup %12247 }
 0x797   :  { %v4791_v54 = vpop.f32.mrb[139].mxu1  ;;  %4919 = vrot.lane.b32.xlu0 %v14757_v55, %s12551_s16  ;;  %v14770_v9 = vadd.f32 %v10787_v4, %v14650_v46  ;;  %v5029_v11 = vsub.f32 0.0, %v14757_v55 }
 0x798   :  { %v14765_v36 = vadd.f32 %v14650_v46, %v4791_v54  ;;  %4915 = vrot.lane.b32.xlu1 %v14760_v19, %s12551_s16  ;;  %v5027_v49 = vsub.f32 0.0, %v14760_v19  ;;  %v12250_v7 = vpop.eup %12249 }
 0x799   :  { %v5079_v0 = vmul.f32 1.442695, %v5029_v11  ;;  %v5030_v63 = vsub.f32 0.0, %v14770_v9 }
 0x79a   :  { %v5075_v10 = vmul.f32 1.442695, %v5027_v49  ;;  %v12252_v15 = vpop.eup %12251 }
 0x79b   :  { %4917 = vrot.lane.b32.xlu0 %v14765_v36, %s12551_s16  ;;  %12255 = vpow2.f32 %v5079_v0  ;;  %v5081_v43 = vmul.f32 1.442695, %v5030_v63  ;;  %v12254_v29 = vpop.eup %12253 }
 0x79c   :  { %v10790_v34 = vpop.f32.mrb[140].mxu1  ;;  %4921 = vrot.lane.b32.xlu1 %v14770_v9, %s12551_s16  ;;  %12257 = vpow2.f32 %v5075_v10 }
 0x79d   :  { %v4804_v58 = vpop.f32.mrb[141].mxu1  ;;  %v14780_v60 = vadd.f32 %v10790_v34, %v14650_v46 }
 0x79e   :  { %v10791_v47 = vpop.f32.mrb[142].mxu1  ;;  %v14786_v12 = vadd.f32 %v14650_v46, %v4804_v58 }
 0x79f   :  { %v4807_v26 = vpop.f32.mrb[143].mxu1  ;;  %5255 = vrot.lane.b32.xlu0 %v12232_v37, %s12553_s21  ;;  %v14789_v5 = vadd.f32 %v10791_v47, %v14650_v46  ;;  %v5033_v30 = vsub.f32 0.0, %v14780_v60 }
 0x7a0   :  { %5257 = vrot.lane.b32.xlu1 %v12238_v39, %s12553_s21  ;;  %v5031_v61 = vsub.f32 0.0, %v14786_v12  ;;  %v14799_v51 = vadd.f32 %v14650_v46, %v4807_v26 }
 0x7a1   :  { %v5087_v3 = vmul.f32 1.442695, %v5033_v30  ;;  %v5034_v45 = vsub.f32 0.0, %v14789_v5 }
 0x7a2   :  { %v5083_v50 = vmul.f32 1.442695, %v5031_v61  ;;  %v5032_v54 = vsub.f32 0.0, %v14799_v51 }
 0x7a3   :  { %5251 = vrot.lane.b32.xlu0 %v12244_v14, %s12553_s21  ;;  %12259 = vpow2.f32 %v5087_v3  ;;  %v5089_v4 = vmul.f32 1.442695, %v5034_v45 }
 0x7a4   :  { %v10794_v48 = vpop.f32.mrb[144].mxu1  ;;  %5253 = vrot.lane.b32.xlu1 %v12246_v32, %s12553_s21  ;;  %12261 = vpow2.f32 %v5081_v43  ;;  %v5085_v44 = vmul.f32 1.442695, %v5032_v54 }
 0x7a5   :  { %v4820_v17 = vpop.f32.mrb[145].mxu1  ;;  %v14802_v31 = vadd.f32 %v10794_v48, %v14650_v46  ;;  %12263 = vpow2.f32 %v5083_v50  ;;  %v12256_v2 = vpop.eup %12255 }
 0x7a6   :  { %v10795_v38 = vpop.f32.mrb[146].mxu1  ;;  %v14811_v8 = vadd.f32 %v14650_v46, %v4820_v17  ;;  %12265 = vpow2.f32 %v5089_v4  ;;  %v12258_v14 = vpop.eup %12257  ;;  %v5125_v32 = vadd.f32 1.0, %v12256_v2 }
 0x7a7   :  { %v4823_v6 = vpop.f32.mrb[147].mxu1  ;;  %4927 = vrot.lane.b32.xlu0 %v14780_v60, %s12551_s16  ;;  %v5037_v59 = vsub.f32 0.0, %v14802_v31  ;;  %v14816_v37 = vadd.f32 %v10795_v38, %v14650_v46  ;;  %v5123_v30 = vadd.f32 1.0, %v12258_v14 }
 0x7a8   :  { %4929 = vrot.lane.b32.xlu1 %v14789_v5, %s12551_s16  ;;  %v14820_v39 = vadd.f32 %v14650_v46, %v4823_v6  ;;  %v5035_v23 = vsub.f32 0.0, %v14811_v8 }
 0x7a9   :  { %v5095_v47 = vmul.f32 1.442695, %v5037_v59  ;;  %v5038_v11 = vsub.f32 0.0, %v14816_v37 }
 0x7aa   :  { %v5036_v1 = vsub.f32 0.0, %v14820_v39  ;;  %v5091_v28 = vmul.f32 1.442695, %v5035_v23 }
 0x7ab   :  { %4923 = vrot.lane.b32.xlu0 %v14786_v12, %s12551_s16  ;;  %12267 = vpow2.f32 %v5095_v47  ;;  %v5097_v0 = vmul.f32 1.442695, %v5038_v11 }
 0x7ac   :  { %4925 = vrot.lane.b32.xlu1 %v14799_v51, %s12551_s16  ;;  %12269 = vpow2.f32 %v5085_v44  ;;  %v5093_v10 = vmul.f32 1.442695, %v5036_v1 }
 0x7ad   :  { %v12260_v38 = vpop.eup %12259  ;;  %12271 = vrcp.f32 %v5125_v32 }
 0x7ae   :  { %v12262_v6 = vpop.eup %12261  ;;  %12273 = vpow2.f32 %v5091_v28  ;;  %v5129_v43 = vadd.f32 1.0, %v12260_v38 }
 0x7af   :  { %v10798_v24 = vpop.f32.mrb[148].mxu1  ;;  %5263 = vrot.lane.b32.xlu0 %v12248_v57, %s12553_s21  ;;  %v12264_v63 = vpop.eup %12263  ;;  %12275 = vpow2.f32 %v5097_v0  ;;  %v5126_v57 = vadd.f32 1.0, %v12262_v6 }
 0x7b0   :  { %v4836_v34 = vpop.f32.mrb[149].mxu1  ;;  %5265 = vrot.lane.b32.xlu1 %v12250_v7, %s12553_s21  ;;  %v14824_v52 = vadd.f32 %v10798_v24, %v14650_v46  ;;  %12277 = vrcp.f32 %v5123_v30  ;;  %v12266_v59 = vpop.eup %12265  ;;  %v5127_v7 = vadd.f32 1.0, %v12264_v63 }
 0x7b1   :  { %v10799_v58 = vpop.f32.mrb[150].mxu1  ;;  %v14832_v48 = vadd.f32 %v14650_v46, %v4836_v34  ;;  %12279 = vpow2.f32 %v5093_v10 }
 0x7b2   :  { %v4839_v26 = vpop.f32.mrb[151].mxu1  ;;  %v5041_v49 = vsub.f32 0.0, %v14824_v52  ;;  %v14837_v17 = vadd.f32 %v10799_v58, %v14650_v46 }
 0x7b3   :  { %5259 = vrot.lane.b32.xlu0 %v12252_v15, %s12553_s21  ;;  %v5039_v3 = vsub.f32 0.0, %v14832_v48  ;;  %v14846_v50 = vadd.f32 %v14650_v46, %v4839_v26  ;;  %v5130_v46 = vadd.f32 1.0, %v12266_v59 }
 0x7b4   :  { %5261 = vrot.lane.b32.xlu1 %v12254_v29, %s12553_s21  ;;  %v5103_v61 = vmul.f32 1.442695, %v5041_v49  ;;  %v5042_v45 = vsub.f32 0.0, %v14837_v17 }
 0x7b5   :  { %v5099_v24 = vmul.f32 1.442695, %v5039_v3  ;;  %v12268_v4 = vpop.eup %12267  ;;  %v5040_v34 = vsub.f32 0.0, %v14846_v50 }
 0x7b6   :  { %12281 = vpow2.f32 %v5103_v61  ;;  %v5105_v54 = vmul.f32 1.442695, %v5042_v45  ;;  %v12270_v15 = vpop.eup %12269  ;;  %v5133_v58 = vadd.f32 1.0, %v12268_v4 }
 0x7b7   :  { %4935 = vrot.lane.b32.xlu0 %v14802_v31, %s12551_s16  ;;  %12283 = vrcp.f32 %v5129_v43  ;;  %v12272_v29 = vpop.eup %12271  ;;  %v5101_v47 = vmul.f32 1.442695, %v5040_v34  ;;  %v5128_v2 = vadd.f32 1.0, %v12270_v15 }
 0x7b8   :  { %4937 = vrot.lane.b32.xlu1 %v14816_v37, %s12551_s16  ;;  %12285 = vrcp.f32 %v5126_v57  ;;  %v12274_v26 = vpop.eup %12273 }
 0x7b9   :  { %12287 = vrcp.f32 %v5127_v7  ;;  %v12276_v23 = vpop.eup %12275  ;;  %v5131_v14 = vadd.f32 1.0, %v12274_v26 }
 0x7ba   :  { %12289 = vpow2.f32 %v5099_v24  ;;  %v12278_v44 = vpop.eup %12277  ;;  %v5134_v1 = vadd.f32 1.0, %v12276_v23 }
 0x7bb   :  { %4931 = vrot.lane.b32.xlu0 %v14811_v8, %s12551_s16  ;;  %12291 = vpow2.f32 %v5105_v54  ;;  %v12280_v11 = vpop.eup %12279 }
 0x7bc   :  { %4933 = vrot.lane.b32.xlu1 %v14820_v39, %s12551_s16  ;;  %12293 = vrcp.f32 %v5130_v46  ;;  %v5132_v6 = vadd.f32 1.0, %v12280_v11 }
 0x7bd   :  { %12295 = vrcp.f32 %v5133_v58  ;;  %v4888_v61 = vpop.permute.xlu0 %4887 }
 0x7be   :  { %12297 = vpow2.f32 %v5101_v47 }
 0x7bf   :  { %4943 = vrot.lane.b32.xlu0 %v14824_v52, %s12551_s16  ;;  %12299 = vrcp.f32 %v5128_v2  ;;  %v4890_v57 = vpop.permute.xlu1 %4889 }
 0x7c0   :  { %4945 = vrot.lane.b32.xlu1 %v14837_v17, %s12551_s16  ;;  %v12282_v32 = vpop.eup %12281  ;;  %12301 = vrcp.f32 %v5131_v14 }
 0x7c1   :  { %v12284_v28 = vpop.eup %12283  ;;  %v5137_v38 = vadd.f32 1.0, %v12282_v32  ;;  %12303 = vrcp.f32 %v5134_v1  ;;  %v14867_v4 = vpop.permute.xlu0 %4883 }
 0x7c2   :  { %v12286_v49 = vpop.eup %12285 }
 0x7c3   :  { %4939 = vrot.lane.b32.xlu0 %v14832_v48, %s12551_s16  ;;  %v12288_v0 = vpop.eup %12287  ;;  %12305 = vrcp.f32 %v5137_v38  ;;  %v14869_v46 = vpop.permute.xlu1 %4885 }
 0x7c4   :  { %4941 = vrot.lane.b32.xlu1 %v14846_v50, %s12551_s16  ;;  %v12290_v30 = vpop.eup %12289  ;;  %12307 = vrcp.f32 %v5132_v6 }
 0x7c5   :  { %v12292_v10 = vpop.eup %12291  ;;  %v5135_v3 = vadd.f32 1.0, %v12290_v30 }
 0x7c6   :  { %v12294_v63 = vpop.eup %12293  ;;  %v5138_v45 = vadd.f32 1.0, %v12292_v10  ;;  %v4981_v10 = vadd.f32 %v4888_v61, %v14653_v56 }
 0x7c7   :  { %5271 = vrot.lane.b32.xlu0 %v12272_v29, %s12553_s21  ;;  %v12296_v43 = vpop.eup %12295  ;;  %12309 = vrcp.f32 %v5135_v3 }
 0x7c8   :  { %5267 = vrot.lane.b32.xlu1 %v12278_v44, %s12553_s21  ;;  %v12298_v59 = vpop.eup %12297  ;;  %12311 = vrcp.f32 %v5138_v45 }
 0x7c9   :  { %v12300_v7 = vpop.eup %12299  ;;  %v5136_v24 = vadd.f32 1.0, %v12298_v59 }
 0x7ca   :  { %v12302_v54 = vpop.eup %12301 }
 0x7cb   :  { %5279 = vrot.lane.b32.xlu0 %v12284_v28, %s12553_s21  ;;  %v12304_v34 = vpop.eup %12303  ;;  %12313 = vrcp.f32 %v5136_v24 }
 0x7cc   :  { %5273 = vrot.lane.b32.xlu1 %v12286_v49, %s12553_s21 }
 0x7cd   :  { %v4896_v15 = vpop.permute.xlu0 %4895  ;;  %v12306_v58 = vpop.eup %12305 }
 0x7ce   :  { %v12308_v29 = vpop.eup %12307 }
 0x7cf   :  { %5275 = vrot.lane.b32.xlu0 %v12288_v0, %s12553_s21  ;;  %v4898_v47 = vpop.permute.xlu1 %4897 }
 0x7d0   :  { %5281 = vrot.lane.b32.xlu1 %v12294_v63, %s12553_s21  ;;  %v4986_v56 = vadd.f32 %v4898_v47, %v14676_v22 }
 0x7d1   :  { %v12310_v26 = vpop.eup %12309  ;;  %v4892_v23 = vpop.permute.xlu0 %4891 }
 0x7d2   :  { %v12312_v2 = vpop.eup %12311 }
 0x7d3   :  { %5287 = vrot.lane.b32.xlu0 %v12296_v43, %s12553_s21  ;;  %v4894_v44 = vpop.permute.xlu1 %4893 }
 0x7d4   :  { %5277 = vrot.lane.b32.xlu1 %v12300_v7, %s12553_s21 }
 0x7d5   :  { %v12314_v11 = vpop.eup %12313 }
 0x7d7   :  { %5283 = vrot.lane.b32.xlu0 %v12302_v54, %s12553_s21  ;;  %v4983_v54 = vadd.f32 %v4892_v23, %v14681_v33  ;;  %v4984_v33 = vadd.f32 %v4894_v44, %v14687_v53 }
 0x7d8   :  { %5289 = vrot.lane.b32.xlu1 %v12304_v34, %s12553_s21  ;;  %v4982_v34 = vadd.f32 %v4890_v57, %v14656_v20 }
 0x7db   :  { %5295 = vrot.lane.b32.xlu0 %v12306_v58, %s12553_s21 }
 0x7dc   :  { %5285 = vrot.lane.b32.xlu1 %v12308_v29, %s12553_s21 }
 0x7dd   :  { %v4904_v14 = vpop.permute.xlu0 %4903 }
 0x7df   :  { %5291 = vrot.lane.b32.xlu0 %v12310_v26, %s12553_s21  ;;  %v4906_v32 = vpop.permute.xlu1 %4905 }
 0x7e0   :  { %5297 = vrot.lane.b32.xlu1 %v12312_v2, %s12553_s21 }
 0x7e1   :  { %v4900_v1 = vpop.permute.xlu0 %4899 }
 0x7e3   :  { %v4902_v28 = vpop.permute.xlu1 %4901 }
 0x7e4   :  { %5293 = vrot.lane.b32.xlu1 %v12314_v11, %s12553_s21  ;;  %v4985_v11 = vadd.f32 %v4896_v15, %v14673_v16 }
 0x7ed   :  { %v14878_v49 = vpop.permute.xlu0 %4911 }
 0x7ef   :  { %v14880_v0 = vpop.permute.xlu1 %4913 }
 0x7f1   :  { %v14882_v38 = vpop.permute.xlu0 %4907 }
 0x7f3   :  { %v14884_v30 = vpop.permute.xlu1 %4909 }
 0x7f5   :  { %v5240_v6 = vpop.permute.xlu0 %5239 }
 0x7f6   :  { %v14887_v3 = vmul.f32 %v5240_v6, %v4981_v10 }
 0x7f7   :  { %v5242_v63 = vpop.permute.xlu1 %5241 }
 0x7f8   :  { %v5369_v7 = vsel %vm518_vm2, %v14887_v3, 0.0  ;;  %v14900_v29 = vmul.f32 %v5242_v63, %v4982_v34  ;;  %v4989_v63 = vadd.f32 %v4904_v14, %v14699_v27 }
 0x7f9   :  { %v14889_v43 = vpop.permute.xlu0 %5235 }
 0x7fa   :  { %v5372_v20 = vsel %vm518_vm2, %v14900_v29, 0.0 }
 0x7fb   :  { %v14891_v45 = vpop.permute.xlu1 %5237 }
 0x7fd   :  { %v5248_v59 = vpop.permute.xlu0 %5247 }
 0x7fe   :  { %5370 = vadd.xlane.f32.xlu0 %v5369_v7  ;;  %v14908_v23 = vmul.f32 %v5248_v59, %v4985_v11  ;;  %v4990_v59 = vadd.f32 %v4906_v32, %v14703_v21  ;;  %v5028_v21 = vsub.f32 0.0, %v14765_v36 }
 0x7ff   :  { %v5250_v24 = vpop.permute.xlu1 %5249 }
 0x800   :  { %v14902_v26 = vmul.f32 %v5250_v24, %v4986_v56  ;;  %v5381_v16 = vsel %vm518_vm2, %v14908_v23, 0.0 }
 0x801   :  { %v5244_v58 = vpop.permute.xlu0 %5243 }
 0x802   :  { %v14898_v61 = vmul.f32 %v5244_v58, %v4983_v54  ;;  %v5384_v57 = vsel %vm518_vm2, %v14902_v26, 0.0  ;;  %v4987_v58 = vadd.f32 %v4900_v1, %v14709_v42 }
 0x803   :  { %v5246_v6 = vpop.permute.xlu1 %5245 }
 0x804   :  { %v5375_v2 = vsel %vm518_vm2, %v14898_v61, 0.0  ;;  %v14912_v22 = vmul.f32 %v5246_v6, %v4984_v33 }
 0x805   :  { %5376 = vadd.xlane.f32.xlu0 %v5375_v2  ;;  %v4988_v2 = vadd.f32 %v4902_v28, %v14714_v35  ;;  %v5077_v28 = vmul.f32 1.442695, %v5028_v21 }
 0x806   :  { %v5378_v53 = vsel %vm518_vm2, %v14912_v22, 0.0 }
 0x807   :  { %12315 = vpow2.f32 %v5077_v28 }
 0x808   :  { %5373 = vadd.xlane.f32.xlu1 %v5372_v20 }
 0x809   :  { %5385 = vadd.xlane.f32.xlu0 %v5384_v57  ;;  %v14916_v47 = vpop.permute.xlu0 %4919 }
 0x80a   :  { %v14918_v10 = vpop.permute.xlu1 %4915 }
 0x80c   :  { %5382 = vadd.xlane.f32.xlu1 %v5381_v16  ;;  %v4993_v16 = vadd.f32 %v14878_v49, %v14722_v13 }
 0x80d   :  { %5379 = vadd.xlane.f32.xlu0 %v5378_v53  ;;  %v14924_v15 = vpop.permute.xlu0 %4917  ;;  %v4994_v53 = vadd.f32 %v14880_v0, %v14725_v62 }
 0x80e   :  { %v14926_v44 = vpop.permute.xlu1 %4921 }
 0x811   :  { %v5256_v7 = vpop.permute.xlu0 %5255 }
 0x812   :  { %v14930_v24 = vmul.f32 %v5256_v7, %v4989_v63  ;;  %v5258_v54 = vpop.permute.xlu1 %5257 }
 0x813   :  { %v14932_v34 = vmul.f32 %v5258_v54, %v4990_v59 }
 0x814   :  { %v5393_v56 = vsel %vm518_vm2, %v14930_v24, 0.0 }
 0x815   :  { %5394 = vadd.xlane.f32.xlu1 %v5393_v56  ;;  %v5252_v11 = vpop.permute.xlu0 %5251  ;;  %v5396_v27 = vsel %vm518_vm2, %v14932_v34, 0.0 }
 0x816   :  { %v14941_v14 = vmul.f32 %v5252_v11, %v4987_v58  ;;  %v5254_v32 = vpop.permute.xlu1 %5253  ;;  %5397 = vadd.xlane.f32.xlu0 %v5396_v27  ;;  %v4991_v58 = vadd.f32 %v14882_v38, %v14731_v18  ;;  %v12316_v27 = vpop.eup %12315 }
 0x817   :  { %v14943_v6 = vmul.f32 %v5254_v32, %v4988_v2  ;;  %v4992_v2 = vadd.f32 %v14884_v30, %v14737_v25  ;;  %v5124_v21 = vadd.f32 1.0, %v12316_v27 }
 0x818   :  { %v5387_v42 = vsel %vm518_vm2, %v14941_v14, 0.0 }
 0x819   :  { %5388 = vadd.xlane.f32.xlu1 %v5387_v42  ;;  %v14947_v1 = vpop.permute.xlu0 %4927  ;;  %v5390_v35 = vsel %vm518_vm2, %v14943_v6, 0.0  ;;  %12317 = vrcp.f32 %v5124_v21 }
 0x81a   :  { %v4930_v33 = vpop.permute.xlu1 %4929  ;;  %5391 = vadd.xlane.f32.xlu0 %v5390_v35 }
 0x81d   :  { %v4924_v20 = vpop.permute.xlu0 %4923 }
 0x81e   :  { %v4926_v57 = vpop.permute.xlu1 %4925  ;;  %v4999_v27 = vadd.f32 %v4924_v20, %v14786_v12 }
 0x81f   :  { %v5000_v21 = vadd.f32 %v4926_v57, %v14799_v51 }
 0x821   :  { %v5264_v63 = vpop.permute.xlu0 %5263 }
 0x822   :  { %v14955_v59 = vmul.f32 %v5264_v63, %v4993_v16  ;;  %v5266_v7 = vpop.permute.xlu1 %5265  ;;  %v4997_v63 = vadd.f32 %v14916_v47, %v14757_v55 }
 0x823   :  { %v14957_v54 = vmul.f32 %v5266_v7, %v4994_v53  ;;  %v12318_v7 = vpop.eup %12317 }
 0x824   :  { %v5405_v56 = vsel %vm518_vm2, %v14955_v59, 0.0 }
 0x825   :  { %5406 = vadd.xlane.f32.xlu1 %v5405_v56  ;;  %v5260_v13 = vpop.permute.xlu0 %5259  ;;  %v5408_v62 = vsel %vm518_vm2, %v14957_v54, 0.0 }
 0x826   :  { %v14967_v49 = vmul.f32 %v5260_v13, %v4991_v58  ;;  %v5262_v0 = vpop.permute.xlu1 %5261  ;;  %5409 = vadd.xlane.f32.xlu0 %v5408_v62 }
 0x827   :  { %v14969_v11 = vmul.f32 %v5262_v0, %v4992_v2 }
 0x828   :  { %v5399_v18 = vsel %vm518_vm2, %v14967_v49, 0.0 }
 0x829   :  { %5400 = vadd.xlane.f32.xlu1 %v5399_v18  ;;  %v14973_v38 = vpop.permute.xlu0 %4935  ;;  %v5402_v25 = vsel %vm518_vm2, %v14969_v11, 0.0 }
 0x82a   :  { %v4938_v30 = vpop.permute.xlu1 %4937  ;;  %5403 = vadd.xlane.f32.xlu0 %v5402_v25 }
 0x82b   :  { %v5006_v51 = vadd.f32 %v4938_v30, %v14816_v37  ;;  %v4998_v37 = vadd.f32 %v14926_v44, %v14770_v9 }
 0x82d   :  { %v4932_v32 = vpop.permute.xlu0 %4931 }
 0x82e   :  { %v4934_v42 = vpop.permute.xlu1 %4933 }
 0x831   :  { %v14977_v35 = vpop.permute.xlu0 %4943 }
 0x832   :  { %v4946_v28 = vpop.permute.xlu1 %4945 }
 0x833   :  { %v5010_v30 = vadd.f32 %v4946_v28, %v14837_v17 }
 0x835   :  { %v14979_v16 = vpop.permute.xlu0 %4939 }
 0x836   :  { %v4942_v53 = vpop.permute.xlu1 %4941 }
 0x839   :  { %v5272_v58 = vpop.permute.xlu0 %5271 }
 0x83a   :  { %v14983_v56 = vmul.f32 %v5272_v58, %v4997_v63  ;;  %v14985_v2 = vpop.permute.xlu1 %5267  ;;  %5269 = vrot.lane.b32.xlu1 %v12318_v7, %s12553_s21  ;;  %v5002_v7 = vadd.f32 %v4930_v33, %v14789_v5 }
 0x83c   :  { %17074 = vst [vmem:[#allocation22_spill] sm:$0xff] %v14983_v56  ;;  %v5417_v13 = vsel %vm518_vm2, %v14983_v56, 0.0 }
 0x83d   :  { %5418 = vadd.xlane.f32.xlu0 %v5417_v13  ;;  %v5280_v62 = vpop.permute.xlu0 %5279 }
 0x83e   :  { %v5274_v0 = vpop.permute.xlu1 %5273 }
 0x841   :  { %v5276_v18 = vpop.permute.xlu0 %5275 }
 0x842   :  { %v14991_v25 = vmul.f32 %v5276_v18, %v4999_v27  ;;  %v5282_v55 = vpop.permute.xlu1 %5281  ;;  %v5004_v27 = vadd.f32 %v4934_v42, %v14820_v39 }
 0x843   :  { %v14999_v13 = vmul.f32 %v5282_v55, %v5002_v7 }
 0x844   :  { %v5423_v47 = vsel %vm518_vm2, %v14991_v25, 0.0 }
 0x845   :  { %5424 = vadd.xlane.f32.xlu0 %v5423_v47  ;;  %v5432_v18 = vsel %vm518_vm2, %v14999_v13, 0.0  ;;  %v5288_v47 = vpop.permute.xlu0 %5287 }
 0x846   :  { %v5278_v63 = vpop.permute.xlu1 %5277 }
 0x847   :  { %v14997_v58 = vmul.f32 %v5278_v63, %v5000_v21  ;;  %v5008_v21 = vadd.f32 %v4942_v53, %v14846_v50  ;;  %v15021_v63 = vmul.f32 %v5274_v0, %v4998_v37  ;;  %v4980_v53 = vadd.f32 %v14869_v46, %v14666_v40 }
 0x848   :  { %v5003_v0 = vadd.f32 %v4932_v32, %v14811_v8  ;;  %v5007_v32 = vadd.f32 %v14979_v16, %v14832_v48 }
 0x849   :  { %v5426_v12 = vsel %vm518_vm2, %v14997_v58, 0.0  ;;  %v5284_v50 = vpop.permute.xlu0 %5283  ;;  %v15032_v9 = vmul.f32 %v14891_v45, %v4980_v53  ;;  %v5420_v44 = vsel %vm518_vm2, %v15021_v63, 0.0  ;;  %v5005_v45 = vadd.f32 %v14973_v38, %v14802_v31 }
 0x84a   :  { %v5290_v20 = vpop.permute.xlu1 %5289  ;;  %5427 = vadd.xlane.f32.xlu0 %v5426_v12  ;;  %v15041_v40 = vmul.f32 %v5284_v50, %v5003_v0 }
 0x84b   :  { %v15009_v5 = vmul.f32 %v5290_v20, %v5006_v51  ;;  %v5001_v20 = vadd.f32 %v14947_v1, %v14780_v60  ;;  %v5366_v46 = vsel %vm518_vm2, %v15032_v9, 0.0  ;;  %v15049_v1 = vmul.f32 %v5288_v47, %v5005_v45 }
 0x84c   :  { %v4995_v47 = vadd.f32 %v14918_v10, %v14760_v19 }
 0x84d   :  { %v5444_v39 = vsel %vm518_vm2, %v15009_v5, 0.0  ;;  %v15034_v17 = vmul.f32 %v5280_v62, %v5001_v20  ;;  %v5435_v62 = vsel %vm518_vm2, %v15041_v40, 0.0  ;;  %v5441_v51 = vsel %vm518_vm2, %v15049_v1, 0.0 }
 0x84e   :  { %v5286_v56 = vpop.permute.xlu1 %5285  ;;  %5433 = vadd.xlane.f32.xlu0 %v5432_v18 }
 0x84f   :  { %v15007_v57 = vmul.f32 %v5286_v56, %v5004_v27  ;;  %v5296_v27 = vpop.permute.xlu0 %5295  ;;  %v5429_v60 = vsel %vm518_vm2, %v15034_v17, 0.0 }
 0x851   :  { %v5438_v33 = vsel %vm518_vm2, %v15007_v57, 0.0 }
 0x852   :  { %v5298_v55 = vpop.permute.xlu1 %5297  ;;  %5439 = vadd.xlane.f32.xlu0 %v5438_v33  ;;  %v5009_v33 = vadd.f32 %v14977_v35, %v14824_v52  ;;  %v15075_v52 = vmul.f32 %v14985_v2, %v4995_v47 }
 0x853   :  { %v15023_v7 = vmul.f32 %v5298_v55, %v5010_v30  ;;  %v5292_v8 = vpop.permute.xlu0 %5291  ;;  %v4979_v55 = vadd.f32 %v14867_v4, %v14661_v41 }
 0x854   :  { %v15055_v18 = vmul.f32 %v5292_v8, %v5007_v32  ;;  %v15061_v31 = vmul.f32 %v5296_v27, %v5009_v33  ;;  %v5411_v41 = vsel %vm518_vm2, %v15075_v52, 0.0 }
 0x855   :  { %v5456_v28 = vsel %vm518_vm2, %v15023_v7, 0.0  ;;  %v15068_v48 = vmul.f32 %v14889_v43, %v4979_v55 }
 0x856   :  { %v5294_v42 = vpop.permute.xlu1 %5293  ;;  %5445 = vadd.xlane.f32.xlu0 %v5444_v39  ;;  %v5447_v38 = vsel %vm518_vm2, %v15055_v18, 0.0  ;;  %v5453_v16 = vsel %vm518_vm2, %v15061_v31, 0.0 }
 0x857   :  { %v15019_v56 = vmul.f32 %v5294_v42, %v5008_v21  ;;  %v5363_v35 = vsel %vm518_vm2, %v15068_v48, 0.0 }
 0x859   :  { %v5450_v12 = vsel %vm518_vm2, %v15019_v56, 0.0 }
 0x85a   :  { %5451 = vadd.xlane.f32.xlu0 %v5450_v12 }
 0x85e   :  { %5421 = vadd.xlane.f32.xlu1 %v5420_v44  ;;  %5457 = vadd.xlane.f32.xlu0 %v5456_v28 }
 0x862   :  { %5430 = vadd.xlane.f32.xlu1 %v5429_v60  ;;  %5367 = vadd.xlane.f32.xlu0 %v5366_v46 }
 0x866   :  { %5436 = vadd.xlane.f32.xlu1 %v5435_v62 }
 0x86a   :  { %5442 = vadd.xlane.f32.xlu1 %v5441_v51 }
 0x86e   :  { %5448 = vadd.xlane.f32.xlu1 %v5447_v38 }
 0x872   :  { %5454 = vadd.xlane.f32.xlu1 %v5453_v16 }
 0x876   :  { %5364 = vadd.xlane.f32.xlu1 %v5363_v35 }
 0x87a   :  { %5412 = vadd.xlane.f32.xlu1 %v5411_v41 }
 0x88b   :  { %v5371_v4 = vpop.xlane.xlu0 %5370 }
 0x892   :  { %v5377_v43 = vpop.xlane.xlu0 %5376 }
 0x895   :  { %v5374_v21 = vpop.xlane.xlu1 %5373 }
 0x896   :  { %v5466_v39 = vadd.f32 %v5374_v21, %v5371_v4  ;;  %v5386_v42 = vpop.xlane.xlu0 %5385 }
 0x898   :  { %v5467_v37 = vrot.slane %v5466_v39, 4 }
 0x899   :  { %v5383_v30 = vpop.xlane.xlu1 %5382 }
 0x89a   :  { %v5468_v12 = vadd.f32 %v5467_v37, %v5466_v39  ;;  %v5480_v19 = vadd.f32 %v5386_v42, %v5383_v30  ;;  %v5380_v10 = vpop.xlane.xlu0 %5379 }
 0x89b   :  { %v5473_v2 = vadd.f32 %v5380_v10, %v5377_v43 }
 0x89c   :  { %v5469_v50 = vrot.slane %v5468_v12, 2  ;;  %v5481_v53 = vrot.slane %v5480_v19, 4 }
 0x89d   :  { %v5474_v20 = vrot.slane %v5473_v2, 4 }
 0x89e   :  { %v5470_v44 = vadd.f32 %v5469_v50, %v5468_v12  ;;  %v5482_v28 = vadd.f32 %v5481_v53, %v5480_v19 }
 0x89f   :  { %v5475_v0 = vadd.f32 %v5474_v20, %v5473_v2 }
 0x8a0   :  { %v5471_v27 = vrot.slane %v5470_v44, 1  ;;  %v5483_v60 = vrot.slane %v5482_v28, 2 }
 0x8a1   :  { %v5476_v46 = vrot.slane %v5475_v0, 2 }
 0x8a2   :  { %v5472_v45 = vadd.f32 %v5471_v27, %v5470_v44  ;;  %v5484_v62 = vadd.f32 %v5483_v60, %v5482_v28  ;;  %v5395_v8 = vpop.xlane.xlu1 %5394 }
 0x8a3   :  { %v5477_v32 = vadd.f32 %v5476_v46, %v5475_v0  ;;  %v5398_v51 = vpop.xlane.xlu0 %5397 }
 0x8a4   :  { %v5485_v33 = vrot.slane %v5484_v62, 1  ;;  %v5494_v38 = vadd.f32 %v5398_v51, %v5395_v8  ;;  %v5572_v55 = vmul.f32 0.0078125, %v5472_v45 }
 0x8a5   :  { %v5478_v16 = vrot.slane %v5477_v32, 1 }
 0x8a6   :  { %v5486_v47 = vadd.f32 %v5485_v33, %v5484_v62  ;;  %v5495_v35 = vrot.slane %v5494_v38, 4  ;;  %v5389_v41 = vpop.xlane.xlu1 %5388  ;;  %v15082_v4 = vsub.f32 %v14887_v3, %v5572_v55 }
 0x8a7   :  { %v5479_v43 = vadd.f32 %v5478_v16, %v5477_v32  ;;  %v5392_v21 = vpop.xlane.xlu0 %5391 }
 0x8a8   :  { %v5496_v39 = vadd.f32 %v5495_v35, %v5494_v38  ;;  %v5487_v42 = vadd.f32 %v5392_v21, %v5389_v41  ;;  %v5621_v37 = vmul.f32 %v15082_v4, %v15082_v4  ;;  %v5574_v30 = vmul.f32 0.0078125, %v5486_v47 }
 0x8a9   :  { %v5573_v12 = vmul.f32 0.0078125, %v5479_v43 }
 0x8aa   :  { %v5497_v19 = vrot.slane %v5496_v39, 2  ;;  %v5488_v10 = vrot.slane %v5487_v42, 4  ;;  %v5657_v2 = vsel %vm518_vm2, %v5621_v37, 0.0  ;;  %v15091_v3 = vsub.f32 %v14908_v23, %v5574_v30 }
 0x8ab   :  { %5658 = vadd.xlane.f32.xlu1 %v5657_v2  ;;  %v15088_v50 = vsub.f32 %v14898_v61, %v5573_v12 }
 0x8ac   :  { %v5498_v53 = vadd.f32 %v5497_v19, %v5496_v39  ;;  %v5489_v20 = vadd.f32 %v5488_v10, %v5487_v42  ;;  %v5625_v60 = vmul.f32 %v15091_v3, %v15091_v3  ;;  %v4996_v19 = vadd.f32 %v14924_v15, %v14765_v36 }
 0x8ad   :  { %v5623_v44 = vmul.f32 %v15088_v50, %v15088_v50  ;;  %v15123_v15 = vsub.f32 %v14912_v22, %v5573_v12 }
 0x8ae   :  { %v5499_v28 = vrot.slane %v5498_v53, 1  ;;  %v5490_v0 = vrot.slane %v5489_v20, 2  ;;  %v5669_v32 = vsel %vm518_vm2, %v5625_v60, 0.0 }
 0x8af   :  { %v5663_v27 = vsel %vm518_vm2, %v5623_v44, 0.0 }
 0x8b0   :  { %v5500_v46 = vadd.f32 %v5499_v28, %v5498_v53  ;;  %v5491_v45 = vadd.f32 %v5490_v0, %v5489_v20  ;;  %5664 = vadd.xlane.f32.xlu1 %v5663_v27 }
 0x8b2   :  { %v5492_v61 = vrot.slane %v5491_v45, 1  ;;  %v5407_v62 = vpop.xlane.xlu1 %5406  ;;  %v5576_v8 = vmul.f32 0.0078125, %v5500_v46 }
 0x8b3   :  { %v5410_v23 = vpop.xlane.xlu0 %5409 }
 0x8b4   :  { %v5493_v51 = vadd.f32 %v5492_v61, %v5491_v45  ;;  %v5508_v33 = vadd.f32 %v5410_v23, %v5407_v62  ;;  %5670 = vadd.xlane.f32.xlu1 %v5669_v32  ;;  %v15100_v38 = vsub.f32 %v14930_v24, %v5576_v8  ;;  %v15111_v24 = vsub.f32 %v14900_v29, %v5572_v55 }
 0x8b5   :  { %v5624_v61 = vmul.f32 %v15123_v15, %v15123_v15  ;;  %v15129_v62 = vsub.f32 %v14902_v26, %v5574_v30 }
 0x8b6   :  { %v5509_v16 = vrot.slane %v5508_v33, 4  ;;  %v5401_v47 = vpop.xlane.xlu1 %5400  ;;  %v5629_v35 = vmul.f32 %v15100_v38, %v15100_v38  ;;  %v5575_v41 = vmul.f32 0.0078125, %v5493_v51  ;;  %v5622_v29 = vmul.f32 %v15111_v24, %v15111_v24 }
 0x8b7   :  { %v5404_v43 = vpop.xlane.xlu0 %5403  ;;  %v5666_v12 = vsel %vm518_vm2, %v5624_v61, 0.0 }
 0x8b8   :  { %v5510_v21 = vadd.f32 %v5509_v16, %v5508_v33  ;;  %v5501_v39 = vadd.f32 %v5404_v43, %v5401_v47  ;;  %v5681_v42 = vsel %vm518_vm2, %v5629_v35, 0.0  ;;  %v15106_v37 = vsub.f32 %v14941_v14, %v5575_v41 }
 0x8b9   :  { %5682 = vadd.xlane.f32.xlu1 %v5681_v42  ;;  %v5660_v45 = vsel %vm518_vm2, %v5622_v29, 0.0  ;;  %v5626_v33 = vmul.f32 %v15129_v62, %v15129_v62  ;;  %v15138_v16 = vsub.f32 %v14932_v34, %v5576_v8 }
 0x8ba   :  { %v5511_v10 = vrot.slane %v5510_v21, 2  ;;  %v5502_v2 = vrot.slane %v5501_v39, 4  ;;  %v5270_v53 = vpop.permute.xlu1 %5269  ;;  %v5627_v20 = vmul.f32 %v15106_v37, %v15106_v37 }
 0x8bb   :  { %v15115_v44 = vmul.f32 %v5270_v53, %v4996_v19  ;;  %v5630_v43 = vmul.f32 %v15138_v16, %v15138_v16 }
 0x8bc   :  { %v5512_v28 = vadd.f32 %v5511_v10, %v5510_v21  ;;  %v5503_v0 = vadd.f32 %v5502_v2, %v5501_v39  ;;  %v5675_v14 = vsel %vm518_vm2, %v5627_v20, 0.0  ;;  %v15150_v21 = vsub.f32 %v14943_v6, %v5575_v41 }
 0x8bd   :  { %5676 = vadd.xlane.f32.xlu1 %v5675_v14  ;;  %v5414_v36 = vsel %vm518_vm2, %v15115_v44, 0.0  ;;  %v5684_v39 = vsel %vm518_vm2, %v5630_v43, 0.0 }
 0x8be   :  { %v5513_v55 = vrot.slane %v5512_v28, 1  ;;  %v5504_v27 = vrot.slane %v5503_v0, 2  ;;  %5415 = vadd.xlane.f32.xlu0 %v5414_v36 }
 0x8c0   :  { %v5514_v60 = vadd.f32 %v5513_v55, %v5512_v28  ;;  %v5505_v46 = vadd.f32 %v5504_v27, %v5503_v0 }
 0x8c2   :  { %v5506_v23 = vrot.slane %v5505_v46, 1  ;;  %5661 = vadd.xlane.f32.xlu0 %v5660_v45  ;;  %v5578_v32 = vmul.f32 0.0078125, %v5514_v60 }
 0x8c4   :  { %v5507_v51 = vadd.f32 %v5506_v23, %v5505_v46  ;;  %v15132_v22 = vsub.f32 %v14955_v59, %v5578_v32  ;;  %v5672_v59 = vsel %vm518_vm2, %v5626_v33, 0.0  ;;  %v15159_v42 = vsub.f32 %v14957_v54, %v5578_v32 }
 0x8c6   :  { %5667 = vadd.xlane.f32.xlu0 %v5666_v12  ;;  %v5633_v26 = vmul.f32 %v15132_v22, %v15132_v22  ;;  %v5577_v30 = vmul.f32 0.0078125, %v5507_v51  ;;  %v5634_v41 = vmul.f32 %v15159_v42, %v15159_v42 }
 0x8c8   :  { %v5693_v47 = vsel %vm518_vm2, %v5633_v26, 0.0  ;;  %v15144_v35 = vsub.f32 %v14967_v49, %v5577_v30  ;;  %v5628_v49 = vmul.f32 %v15150_v21, %v15150_v21  ;;  %v15165_v10 = vsub.f32 %v14969_v11, %v5577_v30 }
 0x8c9   :  { %5694 = vadd.xlane.f32.xlu1 %v5693_v47  ;;  %v5696_v53 = vsel %vm518_vm2, %v5634_v41, 0.0 }
 0x8ca   :  { %5673 = vadd.xlane.f32.xlu0 %v5672_v59  ;;  %v5631_v34 = vmul.f32 %v15144_v35, %v15144_v35  ;;  %v5419_v19 = vpop.xlane.xlu0 %5418  ;;  %v5678_v6 = vsel %vm518_vm2, %v5628_v49, 0.0  ;;  %v5632_v20 = vmul.f32 %v15165_v10, %v15165_v10 }
 0x8cc   :  { %v5687_v8 = vsel %vm518_vm2, %v5631_v34, 0.0  ;;  %v5690_v28 = vsel %vm518_vm2, %v5632_v20, 0.0 }
 0x8cd   :  { %5688 = vadd.xlane.f32.xlu1 %v5687_v8 }
 0x8ce   :  { %5685 = vadd.xlane.f32.xlu0 %v5684_v39 }
 0x8d2   :  { %5679 = vadd.xlane.f32.xlu0 %v5678_v6  ;;  %v5425_v2 = vpop.xlane.xlu0 %5424 }
 0x8d6   :  { %5697 = vadd.xlane.f32.xlu0 %v5696_v53 }
 0x8d7   :  { %v5428_v54 = vpop.xlane.xlu0 %5427 }
 0x8d8   :  { %v5529_v0 = vadd.f32 %v5428_v54, %v5425_v2 }
 0x8da   :  { %5691 = vadd.xlane.f32.xlu0 %v5690_v28  ;;  %v5530_v14 = vrot.slane %v5529_v0, 4 }
 0x8db   :  { %v5434_v29 = vpop.xlane.xlu0 %5433 }
 0x8dc   :  { %v5531_v36 = vadd.f32 %v5530_v14, %v5529_v0 }
 0x8de   :  { %v5532_v55 = vrot.slane %v5531_v36, 2 }
 0x8df   :  { %v5440_v11 = vpop.xlane.xlu0 %5439 }
 0x8e0   :  { %v5533_v27 = vadd.f32 %v5532_v55, %v5531_v36 }
 0x8e2   :  { %v5534_v61 = vrot.slane %v5533_v27, 1 }
 0x8e3   :  { %v5446_v12 = vpop.xlane.xlu0 %5445 }
 0x8e4   :  { %v5535_v30 = vadd.f32 %v5534_v61, %v5533_v27 }
 0x8e6   :  { %v5581_v2 = vmul.f32 0.0078125, %v5535_v30 }
 0x8e7   :  { %v5452_v6 = vpop.xlane.xlu0 %5451 }
 0x8e8   :  { %v15172_v55 = vsub.f32 %v14997_v58, %v5581_v2  ;;  %v15175_v27 = vsub.f32 %v14991_v25, %v5581_v2 }
 0x8eb   :  { %v5422_v60 = vpop.xlane.xlu1 %5421  ;;  %v5458_v61 = vpop.xlane.xlu0 %5457 }
 0x8ec   :  { %v5522_v46 = vadd.f32 %v5422_v60, %v5419_v19 }
 0x8ee   :  { %v5523_v45 = vrot.slane %v5522_v46, 4 }
 0x8ef   :  { %v5431_v23 = vpop.xlane.xlu1 %5430 }
 0x8f0   :  { %v5524_v32 = vadd.f32 %v5523_v45, %v5522_v46  ;;  %v5536_v51 = vadd.f32 %v5434_v29, %v5431_v23 }
 0x8f2   :  { %v5525_v33 = vrot.slane %v5524_v32, 2  ;;  %v5537_v26 = vrot.slane %v5536_v51, 4 }
 0x8f3   :  { %v5437_v47 = vpop.xlane.xlu1 %5436 }
 0x8f4   :  { %v5526_v59 = vadd.f32 %v5525_v33, %v5524_v32  ;;  %v5538_v43 = vadd.f32 %v5537_v26, %v5536_v51  ;;  %v5543_v34 = vadd.f32 %v5440_v11, %v5437_v47  ;;  %v17075_v32 = vld [vmem:[#allocation22_spill] sm:$0xff] }
 0x8f6   :  { %v5527_v8 = vrot.slane %v5526_v59, 1  ;;  %v5539_v39 = vrot.slane %v5538_v43, 2  ;;  %v5544_v49 = vrot.slane %v5543_v34, 4 }
 0x8f7   :  { %v5443_v41 = vpop.xlane.xlu1 %5442 }
 0x8f8   :  { %v5528_v19 = vadd.f32 %v5527_v8, %v5526_v59  ;;  %v5540_v53 = vadd.f32 %v5539_v39, %v5538_v43  ;;  %v5545_v20 = vadd.f32 %v5544_v49, %v5543_v34  ;;  %v5550_v54 = vadd.f32 %v5446_v12, %v5443_v41 }
 0x8f9   :  { %v5640_v59 = vmul.f32 %v15172_v55, %v15172_v55 }
 0x8fa   :  { %v5541_v28 = vrot.slane %v5540_v53, 1  ;;  %v5546_v0 = vrot.slane %v5545_v20, 2  ;;  %v5551_v14 = vrot.slane %v5550_v54, 4  ;;  %v5580_v36 = vmul.f32 0.0078125, %v5528_v19 }
 0x8fb   :  { %v5449_v29 = vpop.xlane.xlu1 %5448 }
 0x8fc   :  { %v5542_v11 = vadd.f32 %v5541_v28, %v5540_v53  ;;  %v5547_v60 = vadd.f32 %v5546_v0, %v5545_v20  ;;  %v5552_v46 = vadd.f32 %v5551_v14, %v5550_v54  ;;  %v5557_v45 = vadd.f32 %v5452_v6, %v5449_v29  ;;  %v5368_v28 = vpop.xlane.xlu0 %5367 }
 0x8fd   :  { %v15178_v23 = vsub.f32 %v15021_v63, %v5580_v36  ;;  %v15181_v51 = vsub.f32 %v17075_v32, %v5580_v36  ;;  %v5639_v63 = vmul.f32 %v15175_v27, %v15175_v27  ;;  %v5714_v14 = vsel %vm518_vm2, %v5640_v59, 0.0 }
 0x8fe   :  { %v5548_v12 = vrot.slane %v5547_v60, 1  ;;  %v5553_v33 = vrot.slane %v5552_v46, 2  ;;  %v5558_v26 = vrot.slane %v5557_v45, 4  ;;  %v5582_v30 = vmul.f32 0.0078125, %v5542_v11 }
 0x8ff   :  { %v5455_v58 = vpop.xlane.xlu1 %5454  ;;  %v5638_v25 = vmul.f32 %v15178_v23, %v15178_v23  ;;  %v5637_v47 = vmul.f32 %v15181_v51, %v15181_v51 }
 0x900   :  { %v5549_v43 = vadd.f32 %v5548_v12, %v5547_v60  ;;  %v5554_v34 = vadd.f32 %v5553_v33, %v5552_v46  ;;  %v5559_v8 = vadd.f32 %v5558_v26, %v5557_v45  ;;  %v5564_v39 = vadd.f32 %v5458_v61, %v5455_v58 }
 0x901   :  { %v5708_v49 = vsel %vm518_vm2, %v5638_v25, 0.0  ;;  %v5705_v6 = vsel %vm518_vm2, %v5637_v47, 0.0  ;;  %v15194_v41 = vsub.f32 %v14999_v13, %v5582_v30  ;;  %v15197_v2 = vsub.f32 %v15034_v17, %v5582_v30 }
 0x902   :  { %v5555_v19 = vrot.slane %v5554_v34, 1  ;;  %v5560_v53 = vrot.slane %v5559_v8, 2  ;;  %v5565_v20 = vrot.slane %v5564_v39, 4  ;;  %5709 = vadd.xlane.f32.xlu0 %v5708_v49  ;;  %5706 = vadd.xlane.f32.xlu1 %v5705_v6  ;;  %v5583_v54 = vmul.f32 0.0078125, %v5549_v43 }
 0x903   :  { %v5365_v0 = vpop.xlane.xlu1 %5364  ;;  %v5642_v36 = vmul.f32 %v15194_v41, %v15194_v41  ;;  %v5711_v17 = vsel %vm518_vm2, %v5639_v63, 0.0  ;;  %v5641_v46 = vmul.f32 %v15197_v2, %v15197_v2 }
 0x904   :  { %v5556_v29 = vadd.f32 %v5555_v19, %v5554_v34  ;;  %v5561_v11 = vadd.f32 %v5560_v53, %v5559_v8  ;;  %v5566_v13 = vadd.f32 %v5565_v20, %v5564_v39  ;;  %v5459_v60 = vadd.f32 %v5368_v28, %v5365_v0 }
 0x905   :  { %v15206_v45 = vsub.f32 %v15007_v57, %v5583_v54  ;;  %v15209_v61 = vsub.f32 %v15041_v40, %v5583_v54  ;;  %v5720_v30 = vsel %vm518_vm2, %v5642_v36, 0.0  ;;  %v5717_v57 = vsel %vm518_vm2, %v5641_v46, 0.0 }
 0x906   :  { %v5562_v32 = vrot.slane %v5561_v11, 1  ;;  %v5567_v12 = vrot.slane %v5566_v13, 2  ;;  %v5460_v33 = vrot.slane %v5459_v60, 4  ;;  %5715 = vadd.xlane.f32.xlu0 %v5714_v14  ;;  %5712 = vadd.xlane.f32.xlu1 %v5711_v17  ;;  %v5584_v26 = vmul.f32 0.0078125, %v5556_v29 }
 0x907   :  { %v5644_v59 = vmul.f32 %v15206_v45, %v15206_v45  ;;  %v5643_v40 = vmul.f32 %v15209_v61, %v15209_v61 }
 0x908   :  { %v5563_v58 = vadd.f32 %v5562_v32, %v5561_v11  ;;  %v5568_v25 = vadd.f32 %v5567_v12, %v5566_v13  ;;  %v5461_v47 = vadd.f32 %v5460_v33, %v5459_v60  ;;  %v15218_v63 = vsub.f32 %v15009_v5, %v5584_v26 }
 0x909   :  { %v15221_v43 = vsub.f32 %v15049_v1, %v5584_v26  ;;  %v5726_v19 = vsel %vm518_vm2, %v5644_v59, 0.0  ;;  %v5723_v20 = vsel %vm518_vm2, %v5643_v40, 0.0 }
 0x90a   :  { %v5569_v34 = vrot.slane %v5568_v25, 1  ;;  %v5462_v8 = vrot.slane %v5461_v47, 2  ;;  %5721 = vadd.xlane.f32.xlu0 %v5720_v30  ;;  %5718 = vadd.xlane.f32.xlu1 %v5717_v57  ;;  %v5585_v39 = vmul.f32 0.0078125, %v5563_v58  ;;  %v5646_v5 = vmul.f32 %v15218_v63, %v15218_v63 }
 0x90b   :  { %v5645_v1 = vmul.f32 %v15221_v43, %v15221_v43 }
 0x90c   :  { %v5570_v49 = vadd.f32 %v5569_v34, %v5568_v25  ;;  %v5463_v6 = vadd.f32 %v5462_v8, %v5461_v47  ;;  %v15225_v53 = vsub.f32 %v15019_v56, %v5585_v39  ;;  %v15233_v54 = vsub.f32 %v15055_v18, %v5585_v39 }
 0x90d   :  { %v5732_v29 = vsel %vm518_vm2, %v5646_v5, 0.0  ;;  %v5729_v11 = vsel %vm518_vm2, %v5645_v1, 0.0 }
 0x90e   :  { %v5464_v28 = vrot.slane %v5463_v6, 1  ;;  %5727 = vadd.xlane.f32.xlu0 %v5726_v19  ;;  %5724 = vadd.xlane.f32.xlu1 %v5723_v20  ;;  %v5586_v0 = vmul.f32 0.0078125, %v5570_v49  ;;  %v5648_v56 = vmul.f32 %v15225_v53, %v15225_v53  ;;  %v5647_v36 = vmul.f32 %v15233_v54, %v15233_v54 }
 0x910   :  { %v5465_v14 = vadd.f32 %v5464_v28, %v5463_v6  ;;  %v15242_v13 = vsub.f32 %v15023_v7, %v5586_v0  ;;  %v15245_v18 = vsub.f32 %v15061_v31, %v5586_v0  ;;  %v5738_v17 = vsel %vm518_vm2, %v5648_v56, 0.0 }
 0x911   :  { %v5735_v46 = vsel %vm518_vm2, %v5647_v36, 0.0 }
 0x912   :  { %5733 = vadd.xlane.f32.xlu0 %v5732_v29  ;;  %5730 = vadd.xlane.f32.xlu1 %v5729_v11  ;;  %v5571_v60 = vmul.f32 0.0078125, %v5465_v14  ;;  %v5650_v32 = vmul.f32 %v15242_v13, %v15242_v13  ;;  %v5649_v12 = vmul.f32 %v15245_v18, %v15245_v18 }
 0x914   :  { %v15254_v33 = vsub.f32 %v15032_v9, %v5571_v60  ;;  %v15257_v7 = vsub.f32 %v15068_v48, %v5571_v60  ;;  %v5744_v31 = vsel %vm518_vm2, %v5650_v32, 0.0  ;;  %v5741_v26 = vsel %vm518_vm2, %v5649_v12, 0.0  ;;  %v5413_v48 = vpop.xlane.xlu1 %5412 }
 0x916   :  { %5739 = vadd.xlane.f32.xlu0 %v5738_v17  ;;  %5736 = vadd.xlane.f32.xlu1 %v5735_v46  ;;  %v5620_v30 = vmul.f32 %v15254_v33, %v15254_v33  ;;  %v5619_v58 = vmul.f32 %v15257_v7, %v15257_v7 }
 0x918   :  { %v5654_v9 = vsel %vm518_vm2, %v5620_v30, 0.0  ;;  %v5651_v25 = vsel %vm518_vm2, %v5619_v58, 0.0 }
 0x91a   :  { %5745 = vadd.xlane.f32.xlu0 %v5744_v31  ;;  %5742 = vadd.xlane.f32.xlu1 %v5741_v26 }
 0x91e   :  { %5655 = vadd.xlane.f32.xlu0 %v5654_v9  ;;  %5652 = vadd.xlane.f32.xlu1 %v5651_v25 }
 0x938   :  { %v5659_v47 = vpop.xlane.xlu1 %5658 }
 0x93d   :  { %v5665_v59 = vpop.xlane.xlu1 %5664 }
 0x941   :  { %v5671_v6 = vpop.xlane.xlu1 %5670 }
 0x946   :  { %v5683_v29 = vpop.xlane.xlu1 %5682 }
 0x94b   :  { %v5416_v57 = vpop.xlane.xlu0 %5415 }
 0x94c   :  { %v5515_v40 = vadd.f32 %v5416_v57, %v5413_v48  ;;  %v5677_v57 = vpop.xlane.xlu1 %5676 }
 0x94e   :  { %v5516_v34 = vrot.slane %v5515_v40, 4 }
 0x94f   :  { %v5662_v8 = vpop.xlane.xlu0 %5661 }
 0x950   :  { %v5517_v39 = vadd.f32 %v5516_v34, %v5515_v40  ;;  %v5754_v49 = vadd.f32 %v5662_v8, %v5659_v47 }
 0x952   :  { %v5518_v19 = vrot.slane %v5517_v39, 2  ;;  %v5755_v20 = vrot.slane %v5754_v49, 4 }
 0x953   :  { %v5668_v5 = vpop.xlane.xlu0 %5667 }
 0x954   :  { %v5519_v1 = vadd.f32 %v5518_v19, %v5517_v39  ;;  %v5756_v28 = vadd.f32 %v5755_v20, %v5754_v49  ;;  %v5761_v0 = vadd.f32 %v5668_v5, %v5665_v59 }
 0x956   :  { %v5520_v14 = vrot.slane %v5519_v1, 1  ;;  %v5757_v56 = vrot.slane %v5756_v28, 2  ;;  %v5762_v36 = vrot.slane %v5761_v0, 4 }
 0x957   :  { %v5674_v11 = vpop.xlane.xlu0 %5673 }
 0x958   :  { %v5521_v60 = vadd.f32 %v5520_v14, %v5519_v1  ;;  %v5758_v17 = vadd.f32 %v5757_v56, %v5756_v28  ;;  %v5763_v46 = vadd.f32 %v5762_v36, %v5761_v0  ;;  %v5768_v32 = vadd.f32 %v5674_v11, %v5671_v6 }
 0x95a   :  { %v5759_v12 = vrot.slane %v5758_v17, 1  ;;  %v5764_v31 = vrot.slane %v5763_v46, 2  ;;  %v5769_v26 = vrot.slane %v5768_v32, 4  ;;  %v5579_v30 = vmul.f32 0.0078125, %v5521_v60 }
 0x95b   :  { %v5686_v58 = vpop.xlane.xlu0 %5685 }
 0x95c   :  { %v5760_v9 = vadd.f32 %v5759_v12, %v5758_v17  ;;  %v5765_v25 = vadd.f32 %v5764_v31, %v5763_v46  ;;  %v5770_v48 = vadd.f32 %v5769_v26, %v5768_v32  ;;  %v5782_v47 = vadd.f32 %v5686_v58, %v5683_v29 }
 0x95d   :  { %v15268_v59 = vsub.f32 %v15115_v44, %v5579_v30  ;;  %v15271_v40 = vsub.f32 %v15075_v52, %v5579_v30  ;;  %v5695_v44 = vpop.xlane.xlu1 %5694 }
 0x95e   :  { %v5860_v34 = vmul.f32 0.0078125, %v5760_v9  ;;  %v5766_v8 = vrot.slane %v5765_v25, 1  ;;  %v5771_v39 = vrot.slane %v5770_v48, 2  ;;  %v5783_v49 = vrot.slane %v5782_v47, 4 }
 0x95f   :  { %v5680_v6 = vpop.xlane.xlu0 %5679  ;;  %v5636_v19 = vmul.f32 %v15268_v59, %v15268_v59  ;;  %v5635_v20 = vmul.f32 %v15271_v40, %v15271_v40 }
 0x960   :  { %v5876_v5 = vadd.f32 1e-05, %v5860_v34  ;;  %v5767_v1 = vadd.f32 %v5766_v8, %v5765_v25  ;;  %v5772_v28 = vadd.f32 %v5771_v39, %v5770_v48  ;;  %v5784_v0 = vadd.f32 %v5783_v49, %v5782_v47 }
 0x961   :  { %v5775_v14 = vadd.f32 %v5680_v6, %v5677_v57  ;;  %v5702_v52 = vsel %vm518_vm2, %v5636_v19, 0.0  ;;  %v5699_v56 = vsel %vm518_vm2, %v5635_v20, 0.0  ;;  %v5689_v25 = vpop.xlane.xlu1 %5688 }
 0x962   :  { %12319 = vrsqrt.f32 %v5876_v5  ;;  %v5861_v36 = vmul.f32 0.0078125, %v5767_v1  ;;  %v5773_v29 = vrot.slane %v5772_v28, 1  ;;  %v5785_v11 = vrot.slane %v5784_v0, 2  ;;  %5703 = vadd.xlane.f32.xlu0 %v5702_v52  ;;  %5700 = vadd.xlane.f32.xlu1 %v5699_v56  ;;  %v15288_v52 = vld [vmem:[%s9900_s23 + $0x8] sm:$0xff] }
 0x963   :  { %v5776_v60 = vrot.slane %v5775_v14, 4  ;;  %v5698_v17 = vpop.xlane.xlu0 %5697 }
 0x964   :  { %v5877_v46 = vadd.f32 1e-05, %v5861_v36  ;;  %v5774_v32 = vadd.f32 %v5773_v29, %v5772_v28  ;;  %v5786_v12 = vadd.f32 %v5785_v11, %v5784_v0  ;;  %v5796_v31 = vadd.f32 %v5698_v17, %v5695_v44  ;;  %v15292_v17 = vld [vmem:[%s9901_s27] sm:$0xff] }
 0x965   :  { %v5777_v26 = vadd.f32 %v5776_v60, %v5775_v14  ;;  %v15286_v14 = vld [vmem:[%s9900_s23] sm:$0xff]  ;;  %s12569_s23 = smov 25  }
 0x966   :  { %12321 = vrsqrt.f32 %v5877_v46  ;;  %v5862_v30 = vmul.f32 0.0078125, %v5774_v32  ;;  %v5787_v58 = vrot.slane %v5786_v12, 1  ;;  %v5797_v9 = vrot.slane %v5796_v31, 4  ;;  %v15294_v46 = vld [vmem:[%s9901_s27 + $0x8] sm:$0xff]  ;;  %s9909_s26 = sld [smem:[%s16885_s0 + %s12569_s23]]   ;;  %s12570_s27 = smov 26  }
 0x967   :  { %v5778_v48 = vrot.slane %v5777_v26, 2  ;;  %v5692_v47 = vpop.xlane.xlu0 %5691  ;;  %s9910_s30 = sld [smem:[%s16885_s0 + %s12570_s27]]  }
 0x968   :  { %v5878_v57 = vadd.f32 1e-05, %v5862_v30  ;;  %v5788_v34 = vadd.f32 %v5787_v58, %v5786_v12  ;;  %v5798_v8 = vadd.f32 %v5797_v9, %v5796_v31  ;;  %v5789_v39 = vadd.f32 %v5692_v47, %v5689_v25 }
 0x969   :  { %v5779_v49 = vadd.f32 %v5778_v48, %v5777_v26 }
 0x96a   :  { %12323 = vrsqrt.f32 %v5878_v57  ;;  %v5864_v6 = vmul.f32 0.0078125, %v5788_v34  ;;  %v5799_v19 = vrot.slane %v5798_v8, 2  ;;  %v5790_v20 = vrot.slane %v5789_v39, 4 }
 0x96b   :  { %v5780_v5 = vrot.slane %v5779_v49, 1 }
 0x96c   :  { %v12320_v1 = vpop.eup %12319  ;;  %v5880_v28 = vadd.f32 1e-05, %v5864_v6  ;;  %v5800_v0 = vadd.f32 %v5799_v19, %v5798_v8  ;;  %v5791_v44 = vadd.f32 %v5790_v20, %v5789_v39 }
 0x96d   :  { %v5781_v56 = vadd.f32 %v5780_v5, %v5779_v49  ;;  %v5909_v36 = vmul.f32 %v12320_v1, %v15082_v4  ;;  %v5910_v29 = vmul.f32 %v12320_v1, %v15111_v24 }
 0x96e   :  { %12325 = vrsqrt.f32 %v5880_v28  ;;  %v5801_v11 = vrot.slane %v5800_v0, 1  ;;  %v5792_v60 = vrot.slane %v5791_v44, 2 }
 0x96f   :  { %v5863_v32 = vmul.f32 0.0078125, %v5781_v56  ;;  %v5943_v12 = vmul.f32 %v15286_v14, %v5909_v36  ;;  %v5944_v31 = vmul.f32 %v15288_v52, %v5910_v29 }
 0x970   :  { %v12322_v26 = vpop.eup %12321  ;;  %v5802_v30 = vadd.f32 %v5801_v11, %v5800_v0  ;;  %v5793_v58 = vadd.f32 %v5792_v60, %v5791_v44 }
 0x971   :  { %v5879_v9 = vadd.f32 1e-05, %v5863_v32  ;;  %v15299_v4 = vadd.f32 %v15292_v17, %v5943_v12  ;;  %v15302_v24 = vadd.f32 %v15294_v46, %v5944_v31  ;;  %v5911_v25 = vmul.f32 %v12322_v26, %v15088_v50  ;;  %v12023_v32 = vld [vmem:[%s9913_s1] sm:$0xff]  }
 0x972   :  { %v5866_v48 = vmul.f32 0.0078125, %v5802_v30  ;;  %v5794_v47 = vrot.slane %v5793_v58, 1  ;;  %v5912_v57 = vmul.f32 %v12322_v26, %v15123_v15  ;;  %10800 = vmatprep.subr.bf16.mxu1 %v12023_v32  ;;  %v12024_v30 = vld [vmem:[%s9913_s1 + $0x8] ss:$0 sps:$4 sm:$0xff]   ;;  %s12571_s1 = smov 31  }
 0x973   :  { %12327 = vrsqrt.f32 %v5879_v9  ;;  %v11669_v34 = vpack.i.bf16 %v15302_v24, %v15299_v4  ;;  %v5945_v8 = vmul.f32 %v15286_v14, %v5911_v25  ;;  %10801 = vmatpush3.bf16.msra.mxu1 %v12023_v32  ;;  %v6296_v25 = vsel %vm1579_vm4, %v12024_v30, 0  ;;  %s9915_s4 = sld [smem:[%s16885_s0 + %s12571_s1]]  }
 0x974   :  { %v12324_v39 = vpop.eup %12323  ;;  %v5882_v49 = vadd.f32 1e-05, %v5866_v48  ;;  %v5795_v6 = vadd.f32 %v5794_v47, %v5793_v58  ;;  %v5946_v19 = vmul.f32 %v15288_v52, %v5912_v57  ;;  %11066 = vmatprep.subr.msk.bf16.mxu1 %vm1579_vm4, %v12024_v30 }
 0x975   :  { %11670 = vrot.lane.b32.xlu1 %v11669_v34, %s12547_s6  ;;  %v15315_v50 = vadd.f32 %v15292_v17, %v5945_v8  ;;  %v5913_v15 = vmul.f32 %v12324_v39, %v15091_v3  ;;  %v5914_v20 = vmul.f32 %v12324_v39, %v15129_v62 }
 0x976   :  { %v5865_v5 = vmul.f32 0.0078125, %v5795_v6  ;;  %v15320_v1 = vadd.f32 %v15294_v46, %v5946_v19  ;;  %12329 = vrsqrt.f32 %v5882_v49  ;;  %v17076_v6 = vmov 0.0  }
 0x977   :  { %v5947_v28 = vmul.f32 %v15286_v14, %v5913_v15  ;;  %v5948_v0 = vmul.f32 %v15288_v52, %v5914_v20  ;;  %10803 = vmatpush3.bf16.msra.mxu1 %v6296_v25 }
 0x978   :  { %v12326_v44 = vpop.eup %12325  ;;  %v5881_v56 = vadd.f32 1e-05, %v5865_v5  ;;  %v11679_v36 = vpack.i.bf16 %v15320_v1, %v15315_v50  ;;  %10854 = vmatprep.subr.bf16.mxu1 %v17076_v6 }
 0x979   :  { %v15327_v29 = vadd.f32 %v15292_v17, %v5947_v28  ;;  %v15330_v3 = vadd.f32 %v15294_v46, %v5948_v0  ;;  %v5917_v11 = vmul.f32 %v12326_v44, %v15100_v38  ;;  %v5918_v60 = vmul.f32 %v12326_v44, %v15138_v16 }
 0x97a   :  { %12331 = vrsqrt.f32 %v5881_v56  ;;  %11680 = vrot.lane.b32.xlu1 %v11679_v36, %s12562_s19  ;;  %11675 = vrot.lane.b32.xlu0 %v11679_v36, %s12547_s6 }
 0x97b   :  { %v11689_v62 = vpack.i.bf16 %v15330_v3, %v15327_v29  ;;  %v5951_v58 = vmul.f32 %v15286_v14, %v5917_v11  ;;  %v5952_v9 = vmul.f32 %v15288_v52, %v5918_v60 }
 0x97d   :  { %v12328_v12 = vpop.eup %12327  ;;  %v15358_v57 = vadd.f32 %v15294_v46, %v5952_v9 }
 0x97e   :  { %11690 = vrot.lane.b32.xlu0 %v11689_v62, %s12547_s6  ;;  %11685 = vrot.lane.b32.xlu1 %v11689_v62, %s12562_s19  ;;  %v5915_v31 = vmul.f32 %v12328_v12, %v15106_v37  ;;  %v5916_v26 = vmul.f32 %v12328_v12, %v15150_v21  ;;  %v15355_v21 = vadd.f32 %v15292_v17, %v5951_v58 }
 0x980   :  { %v5949_v38 = vmul.f32 %v15286_v14, %v5915_v31  ;;  %v5950_v16 = vmul.f32 %v15288_v52, %v5916_v26  ;;  %v12330_v48 = vpop.eup %12329  ;;  %v11709_v28 = vpack.i.bf16 %v15358_v57, %v15355_v21 }
 0x981   :  { %v5921_v39 = vmul.f32 %v12330_v48, %v15132_v22  ;;  %v5922_v49 = vmul.f32 %v12330_v48, %v15159_v42 }
 0x982   :  { %v15349_v47 = vadd.f32 %v15292_v17, %v5949_v38  ;;  %v15352_v37 = vadd.f32 %v15294_v46, %v5950_v16 }
 0x983   :  { %v5955_v22 = vmul.f32 %v15286_v14, %v5921_v39  ;;  %v5956_v42 = vmul.f32 %v15288_v52, %v5922_v49 }
 0x984   :  { %v12332_v34 = vpop.eup %12331  ;;  %v11704_v8 = vpack.i.bf16 %v15352_v37, %v15349_v47 }
 0x985   :  { %v5919_v19 = vmul.f32 %v12332_v34, %v15144_v35  ;;  %v5920_v15 = vmul.f32 %v12332_v34, %v15165_v10  ;;  %v5989_v44 = vadd.f32 %v15292_v17, %v5955_v22  ;;  %v5990_v56 = vadd.f32 %v15294_v46, %v5956_v42 }
 0x986   :  { %11705 = vrot.lane.b32.xlu0 %v11704_v8, %s12562_s19  ;;  %11695 = vrot.lane.b32.xlu1 %v11704_v8, %s12547_s6 }
 0x987   :  { %v5953_v20 = vmul.f32 %v15286_v14, %v5919_v19  ;;  %v5954_v5 = vmul.f32 %v15288_v52, %v5920_v15  ;;  %v11719_v60 = vpack.i.bf16 %v5990_v56, %v5989_v44 }
 0x989   :  { %v5987_v0 = vadd.f32 %v15292_v17, %v5953_v20  ;;  %v5988_v35 = vadd.f32 %v15294_v46, %v5954_v5 }
 0x98a   :  { %11710 = vrot.lane.b32.xlu0 %v11709_v28, %s12547_s6  ;;  %11700 = vrot.lane.b32.xlu1 %v11709_v28, %s12562_s19 }
 0x98b   :  { %v11724_v10 = vpack.i.bf16 %v5988_v35, %v5987_v0 }
 0x98e   :  { %11725 = vrot.lane.b32.xlu0 %v11724_v10, %s12562_s19  ;;  %11715 = vrot.lane.b32.xlu1 %v11724_v10, %s12547_s6 }
 0x98f   :  { %v5707_v36 = vpop.xlane.xlu1 %5706  ;;  %v5710_v62 = vpop.xlane.xlu0 %5709 }
 0x990   :  { %v5810_v11 = vadd.f32 %v5710_v62, %v5707_v36 }
 0x992   :  { %v5811_v32 = vrot.slane %v5810_v11, 4  ;;  %11720 = vrot.lane.b32.xlu1 %v11719_v60, %s12562_s19 }
 0x993   :  { %v5713_v12 = vpop.xlane.xlu1 %5712  ;;  %v5716_v31 = vpop.xlane.xlu0 %5715 }
 0x994   :  { %v5812_v26 = vadd.f32 %v5811_v32, %v5810_v11  ;;  %v5817_v30 = vadd.f32 %v5716_v31, %v5713_v12 }
 0x996   :  { %v5813_v58 = vrot.slane %v5812_v26, 2  ;;  %v5818_v9 = vrot.slane %v5817_v30, 4 }
 0x997   :  { %v5719_v38 = vpop.xlane.xlu1 %5718  ;;  %v5722_v16 = vpop.xlane.xlu0 %5721 }
 0x998   :  { %v5814_v25 = vadd.f32 %v5813_v58, %v5812_v26  ;;  %v5819_v48 = vadd.f32 %v5818_v9, %v5817_v30  ;;  %v5824_v34 = vadd.f32 %v5722_v16, %v5719_v38 }
 0x99a   :  { %v5815_v8 = vrot.slane %v5814_v25, 1  ;;  %v5820_v39 = vrot.slane %v5819_v48, 2  ;;  %v5825_v49 = vrot.slane %v5824_v34, 4 }
 0x99b   :  { %v5725_v19 = vpop.xlane.xlu1 %5724  ;;  %v5728_v15 = vpop.xlane.xlu0 %5727 }
 0x99c   :  { %v5816_v20 = vadd.f32 %v5815_v8, %v5814_v25  ;;  %v5821_v5 = vadd.f32 %v5820_v39, %v5819_v48  ;;  %v5826_v28 = vadd.f32 %v5825_v49, %v5824_v34  ;;  %v5831_v22 = vadd.f32 %v5728_v15, %v5725_v19 }
 0x99e   :  { %v5868_v42 = vmul.f32 0.0078125, %v5816_v20  ;;  %v5822_v0 = vrot.slane %v5821_v5, 1  ;;  %v5827_v35 = vrot.slane %v5826_v28, 2  ;;  %v5832_v10 = vrot.slane %v5831_v22, 4 }
 0x99f   :  { %v5731_v44 = vpop.xlane.xlu1 %5730  ;;  %v5734_v56 = vpop.xlane.xlu0 %5733 }
 0x9a0   :  { %v5884_v36 = vadd.f32 1e-05, %v5868_v42  ;;  %v5823_v62 = vadd.f32 %v5822_v0, %v5821_v5  ;;  %v5828_v11 = vadd.f32 %v5827_v35, %v5826_v28  ;;  %v5833_v60 = vadd.f32 %v5832_v10, %v5831_v22 }
 0x9a1   :  { %v5838_v32 = vadd.f32 %v5734_v56, %v5731_v44 }
 0x9a2   :  { %12333 = vrsqrt.f32 %v5884_v36  ;;  %v5869_v12 = vmul.f32 0.0078125, %v5823_v62  ;;  %v5829_v31 = vrot.slane %v5828_v11, 1  ;;  %v5834_v26 = vrot.slane %v5833_v60, 2 }
 0x9a3   :  { %v5839_v30 = vrot.slane %v5838_v32, 4  ;;  %v5737_v58 = vpop.xlane.xlu1 %5736  ;;  %v5740_v9 = vpop.xlane.xlu0 %5739 }
 0x9a4   :  { %v5885_v38 = vadd.f32 1e-05, %v5869_v12  ;;  %v5830_v16 = vadd.f32 %v5829_v31, %v5828_v11  ;;  %v5835_v25 = vadd.f32 %v5834_v26, %v5833_v60  ;;  %v5845_v48 = vadd.f32 %v5740_v9, %v5737_v58 }
 0x9a5   :  { %v5840_v34 = vadd.f32 %v5839_v30, %v5838_v32 }
 0x9a6   :  { %12335 = vrsqrt.f32 %v5885_v38  ;;  %v5870_v8 = vmul.f32 0.0078125, %v5830_v16  ;;  %v5836_v39 = vrot.slane %v5835_v25, 1  ;;  %v5846_v49 = vrot.slane %v5845_v48, 4 }
 0x9a7   :  { %v5841_v19 = vrot.slane %v5840_v34, 2  ;;  %v5743_v15 = vpop.xlane.xlu1 %5742  ;;  %v5746_v20 = vpop.xlane.xlu0 %5745 }
 0x9a8   :  { %v5886_v5 = vadd.f32 1e-05, %v5870_v8  ;;  %v5837_v28 = vadd.f32 %v5836_v39, %v5835_v25  ;;  %v5847_v22 = vadd.f32 %v5846_v49, %v5845_v48  ;;  %v5852_v42 = vadd.f32 %v5746_v20, %v5743_v15 }
 0x9a9   :  { %v5842_v0 = vadd.f32 %v5841_v19, %v5840_v34 }
 0x9aa   :  { %12337 = vrsqrt.f32 %v5886_v5  ;;  %v5871_v35 = vmul.f32 0.0078125, %v5837_v28  ;;  %v5848_v10 = vrot.slane %v5847_v22, 2  ;;  %v5853_v44 = vrot.slane %v5852_v42, 4 }
 0x9ab   :  { %v5843_v56 = vrot.slane %v5842_v0, 1 }
 0x9ac   :  { %v12334_v36 = vpop.eup %12333  ;;  %v5887_v62 = vadd.f32 1e-05, %v5871_v35  ;;  %v5849_v11 = vadd.f32 %v5848_v10, %v5847_v22  ;;  %v5854_v60 = vadd.f32 %v5853_v44, %v5852_v42 }
 0x9ad   :  { %v5844_v32 = vadd.f32 %v5843_v56, %v5842_v0  ;;  %v5925_v12 = vmul.f32 %v12334_v36, %v15181_v51  ;;  %v5926_v31 = vmul.f32 %v12334_v36, %v15178_v23 }
 0x9ae   :  { %12339 = vrsqrt.f32 %v5887_v62  ;;  %v5850_v26 = vrot.slane %v5849_v11, 1  ;;  %v5855_v30 = vrot.slane %v5854_v60, 2 }
 0x9af   :  { %v5872_v58 = vmul.f32 0.0078125, %v5844_v32  ;;  %v5959_v9 = vmul.f32 %v15286_v14, %v5925_v12  ;;  %v5960_v38 = vmul.f32 %v15288_v52, %v5926_v31  ;;  %v5653_v12 = vpop.xlane.xlu1 %5652  ;;  %v5656_v31 = vpop.xlane.xlu0 %5655 }
 0x9b0   :  { %v12336_v16 = vpop.eup %12335  ;;  %v5851_v25 = vadd.f32 %v5850_v26, %v5849_v11  ;;  %v5856_v48 = vadd.f32 %v5855_v30, %v5854_v60 }
 0x9b1   :  { %v5888_v34 = vadd.f32 1e-05, %v5872_v58  ;;  %v15389_v8 = vadd.f32 %v15292_v17, %v5959_v9  ;;  %v15392_v39 = vadd.f32 %v15294_v46, %v5960_v38  ;;  %v5927_v23 = vmul.f32 %v12336_v16, %v15175_v27 }
 0x9b2   :  { %v5873_v51 = vmul.f32 0.0078125, %v5851_v25  ;;  %v5857_v49 = vrot.slane %v5856_v48, 1  ;;  %v5928_v19 = vmul.f32 %v12336_v16, %v15172_v55 }
 0x9b3   :  { %12341 = vrsqrt.f32 %v5888_v34  ;;  %v11729_v15 = vpack.i.bf16 %v15392_v39, %v15389_v8  ;;  %v5961_v20 = vmul.f32 %v15286_v14, %v5927_v23 }
 0x9b4   :  { %v12338_v5 = vpop.eup %12337  ;;  %v5889_v28 = vadd.f32 1e-05, %v5873_v51  ;;  %v5858_v22 = vadd.f32 %v5857_v49, %v5856_v48  ;;  %v5962_v42 = vmul.f32 %v15288_v52, %v5928_v19 }
 0x9b5   :  { %11730 = vrot.lane.b32.xlu0 %v11729_v15, %s12547_s6  ;;  %v15402_v0 = vadd.f32 %v15292_v17, %v5961_v20  ;;  %v5929_v27 = vmul.f32 %v12338_v5, %v15197_v2  ;;  %v5930_v55 = vmul.f32 %v12338_v5, %v15194_v41 }
 0x9b6   :  { %12343 = vrsqrt.f32 %v5889_v28  ;;  %v5874_v35 = vmul.f32 0.0078125, %v5858_v22  ;;  %v15407_v10 = vadd.f32 %v15294_v46, %v5962_v42 }
 0x9b7   :  { %v5963_v44 = vmul.f32 %v15286_v14, %v5929_v27  ;;  %v5964_v56 = vmul.f32 %v15288_v52, %v5930_v55 }
 0x9b8   :  { %v12340_v36 = vpop.eup %12339  ;;  %v5890_v62 = vadd.f32 1e-05, %v5874_v35  ;;  %v11744_v11 = vpack.i.bf16 %v15407_v10, %v15402_v0 }
 0x9b9   :  { %v15414_v60 = vadd.f32 %v15292_v17, %v5963_v44  ;;  %v15417_v2 = vadd.f32 %v15294_v46, %v5964_v56  ;;  %v5931_v41 = vmul.f32 %v12340_v36, %v15209_v61  ;;  %v5932_v32 = vmul.f32 %v12340_v36, %v15206_v45 }
 0x9ba   :  { %12345 = vrsqrt.f32 %v5890_v62  ;;  %11745 = vrot.lane.b32.xlu0 %v11744_v11, %s12562_s19  ;;  %11735 = vrot.lane.b32.xlu1 %v11744_v11, %s12547_s6  ;;  %v5747_v61 = vadd.f32 %v5656_v31, %v5653_v12 }
 0x9bb   :  { %v11749_v26 = vpack.i.bf16 %v15417_v2, %v15414_v60  ;;  %v5965_v30 = vmul.f32 %v15286_v14, %v5931_v41  ;;  %v5966_v58 = vmul.f32 %v15288_v52, %v5932_v32 }
 0x9bc   :  { %v5748_v15 = vrot.slane %v5747_v61, 4 }
 0x9bd   :  { %v12342_v9 = vpop.eup %12341  ;;  %v15428_v38 = vadd.f32 %v15292_v17, %v5965_v30  ;;  %v15431_v45 = vadd.f32 %v15294_v46, %v5966_v58 }
 0x9be   :  { %11750 = vrot.lane.b32.xlu0 %v11749_v26, %s12547_s6  ;;  %11740 = vrot.lane.b32.xlu1 %v11749_v26, %s12562_s19  ;;  %v5933_v16 = vmul.f32 %v12342_v9, %v15221_v43  ;;  %v5934_v25 = vmul.f32 %v12342_v9, %v15218_v63  ;;  %v5749_v55 = vadd.f32 %v5748_v15, %v5747_v61 }
 0x9bf   :  { %v11764_v48 = vpack.i.bf16 %v15431_v45, %v15428_v38 }
 0x9c0   :  { %v12344_v34 = vpop.eup %12343  ;;  %v5967_v23 = vmul.f32 %v15286_v14, %v5933_v16  ;;  %v5968_v51 = vmul.f32 %v15288_v52, %v5934_v25  ;;  %v5750_v11 = vrot.slane %v5749_v55, 2 }
 0x9c1   :  { %v5935_v49 = vmul.f32 %v12344_v34, %v15233_v54  ;;  %v5936_v19 = vmul.f32 %v12344_v34, %v15225_v53 }
 0x9c2   :  { %11765 = vrot.lane.b32.xlu0 %v11764_v48, %s12562_s19  ;;  %11755 = vrot.lane.b32.xlu1 %v11764_v48, %s12547_s6  ;;  %v15446_v43 = vadd.f32 %v15292_v17, %v5967_v23  ;;  %v15449_v63 = vadd.f32 %v15294_v46, %v5968_v51 }
 0x9c3   :  { %v5969_v20 = vmul.f32 %v15286_v14, %v5935_v49  ;;  %v5970_v5 = vmul.f32 %v15288_v52, %v5936_v19 }
 0x9c4   :  { %v12346_v28 = vpop.eup %12345  ;;  %v11769_v54 = vpack.i.bf16 %v15449_v63, %v15446_v43 }
 0x9c5   :  { %v6003_v53 = vadd.f32 %v15292_v17, %v5969_v20  ;;  %v6004_v22 = vadd.f32 %v15294_v46, %v5970_v5  ;;  %v5937_v42 = vmul.f32 %v12346_v28, %v15245_v18  ;;  %v5938_v27 = vmul.f32 %v12346_v28, %v15242_v13 }
 0x9c6   :  { %11770 = vrot.lane.b32.xlu0 %v11769_v54, %s12547_s6  ;;  %11760 = vrot.lane.b32.xlu1 %v11769_v54, %s12562_s19  ;;  %v5751_v18 = vadd.f32 %v5750_v11, %v5749_v55 }
 0x9c7   :  { %v11779_v35 = vpack.i.bf16 %v6004_v22, %v6003_v53  ;;  %v5971_v44 = vmul.f32 %v15286_v14, %v5937_v42  ;;  %v5972_v56 = vmul.f32 %v15288_v52, %v5938_v27 }
 0x9c8   :  { %v5752_v41 = vrot.slane %v5751_v18, 1 }
 0x9c9   :  { %v6005_v36 = vadd.f32 %v15292_v17, %v5971_v44  ;;  %v6006_v62 = vadd.f32 %v15294_v46, %v5972_v56 }
 0x9ca   :  { %11780 = vrot.lane.b32.xlu0 %v11779_v35, %s12562_s19  ;;  %11775 = vrot.lane.b32.xlu1 %v11779_v35, %s12547_s6  ;;  %v5753_v32 = vadd.f32 %v5752_v41, %v5751_v18 }
 0x9cb   :  { %v11784_v13 = vpack.i.bf16 %v6006_v62, %v6005_v36 }
 0x9cc   :  { %v5859_v12 = vmul.f32 0.0078125, %v5753_v32 }
 0x9ce   :  { %11785 = vrot.lane.b32.xlu1 %v11784_v13, %s12562_s19  ;;  %v5875_v31 = vadd.f32 1e-05, %v5859_v12 }
 0x9d0   :  { %12347 = vrsqrt.f32 %v5875_v31 }
 0x9da   :  { %v12348_v26 = vpop.eup %12347 }
 0x9db   :  { %v5907_v9 = vmul.f32 %v12348_v26, %v15257_v7  ;;  %v5908_v61 = vmul.f32 %v12348_v26, %v15254_v33 }
 0x9dd   :  { %v5941_v48 = vmul.f32 %v15286_v14, %v5907_v9  ;;  %v5942_v34 = vmul.f32 %v15288_v52, %v5908_v61 }
 0x9df   :  { %v5975_v15 = vadd.f32 %v15292_v17, %v5941_v48  ;;  %v5976_v20 = vadd.f32 %v15294_v46, %v5942_v34 }
 0x9ef   :  { %v5701_v30 = vpop.xlane.xlu1 %5700  ;;  %v5704_v58 = vpop.xlane.xlu0 %5703 }
 0x9f0   :  { %v5803_v16 = vadd.f32 %v5704_v58, %v5701_v30 }
 0x9f2   :  { %v5804_v19 = vrot.slane %v5803_v16, 4 }
 0x9f3   :  { %v11671_v25 = vpop.permute.xlu1 %11670  ;;  %v11676_v23 = vpop.permute.xlu0 %11675 }
 0x9f4   :  { %v11673_v51 = vunpack.i.h.bf16 %v11671_v25  ;;  %v11672_v49 = vunpack.i.l.bf16 %v11671_v25  ;;  %v11678_v54 = vunpack.i.h.bf16 %v11676_v23  ;;  %v11677_v42 = vunpack.i.l.bf16 %v11676_v23 }
 0x9f5   :  { %v5805_v56 = vadd.f32 %v5804_v19, %v5803_v16 }
 0x9f6   :  { %v6179_v33 = vsel %vm518_vm2, %v5975_v15, %v11672_v49  ;;  %v6180_v22 = vsel %vm518_vm2, %v5976_v20, %v11673_v51  ;;  %v6182_v32 = vsel %vm518_vm2, %v15302_v24, %v11678_v54  ;;  %v6181_v12 = vsel %vm518_vm2, %v15299_v4, %v11677_v42 }
 0x9f7   :  { %v11681_v5 = vpop.permute.xlu1 %11680  ;;  %v11691_v28 = vpop.permute.xlu0 %11690  ;;  %v5806_v16 = vrot.slane %v5805_v56, 2 }
 0x9f8   :  { %v11683_v7 = vunpack.i.h.bf16 %v11681_v5  ;;  %v11682_v53 = vunpack.i.l.bf16 %v11681_v5  ;;  %v11693_v27 = vunpack.i.h.bf16 %v11691_v28  ;;  %v11692_v44 = vunpack.i.l.bf16 %v11691_v28 }
 0x9fa   :  { %v6203_v55 = vsel %vm1803_vm6, %v6179_v33, %v11682_v53  ;;  %v6204_v35 = vsel %vm1803_vm6, %v6180_v22, %v11683_v7  ;;  %v6184_v31 = vsel %vm518_vm2, %v15320_v1, %v11693_v27  ;;  %v6183_v30 = vsel %vm518_vm2, %v15315_v50, %v11692_v44 }
 0x9fb   :  { %v11686_v36 = vpop.permute.xlu1 %11685  ;;  %v11706_v62 = vpop.permute.xlu0 %11705  ;;  %v6230_v11 = vpack.c.bf16 %v6204_v35, %v6203_v55  ;;  %v5807_v50 = vadd.f32 %v5806_v16, %v5805_v56 }
 0x9fc   :  { %v11688_v13 = vunpack.i.h.bf16 %v11686_v36  ;;  %v11687_v18 = vunpack.i.l.bf16 %v11686_v36  ;;  %v11708_v41 = vunpack.i.h.bf16 %v11706_v62  ;;  %v11707_v26 = vunpack.i.l.bf16 %v11706_v62 }
 0x9fd   :  { %10804 = vmatprep.mubr.msk.bf16.mxu1 %vm6258_vm7, %v6230_v11  ;;  %v5808_v44 = vrot.slane %v5807_v50, 1 }
 0x9fe   :  { %v6205_v58 = vsel %vm1803_vm6, %v6181_v12, %v11687_v18  ;;  %v6206_v9 = vsel %vm1803_vm6, %v6182_v32, %v11688_v13  ;;  %v6208_v61 = vsel %vm1803_vm6, %v6184_v31, %v11708_v41  ;;  %v6207_v25 = vsel %vm1803_vm6, %v6183_v30, %v11707_v26 }
 0x9ff   :  { %v6231_v24 = vpack.c.bf16 %v6206_v9, %v6205_v58  ;;  %v11696_v4 = vpop.permute.xlu1 %11695  ;;  %v11711_v48 = vpop.permute.xlu0 %11710  ;;  %v6232_v49 = vpack.c.bf16 %v6208_v61, %v6207_v25 }
 0xa00   :  { %v11698_v34 = vunpack.i.h.bf16 %v11696_v4  ;;  %v11697_v1 = vunpack.i.l.bf16 %v11696_v4  ;;  %v11713_v23 = vunpack.i.h.bf16 %v11711_v48  ;;  %v11712_v51 = vunpack.i.l.bf16 %v11711_v48 }
 0xa01   :  { %10805 = vmatmul.mubr.msk.bf16.vlgmr.msra.gmra.mrb[152].mxu1 %vm6258_vm7, %v6231_v24 }
 0xa02   :  { %10808 = vmatprep.mubr.msk.bf16.mxu1 %vm6258_vm7, %v6232_v49  ;;  %v6186_v7 = vsel %vm518_vm2, %v15330_v3, %v11698_v34  ;;  %v6185_v53 = vsel %vm518_vm2, %v15327_v29, %v11697_v1  ;;  %v6188_v33 = vsel %vm518_vm2, %v15352_v37, %v11713_v23  ;;  %v6187_v22 = vsel %vm518_vm2, %v15349_v47, %v11712_v51 }
 0xa03   :  { %v11701_v19 = vpop.permute.xlu1 %11700  ;;  %v11726_v15 = vpop.permute.xlu0 %11725  ;;  %v5809_v37 = vadd.f32 %v5808_v44, %v5807_v50 }
 0xa04   :  { %v11703_v20 = vunpack.i.h.bf16 %v11701_v19  ;;  %v11702_v5 = vunpack.i.l.bf16 %v11701_v19  ;;  %v11728_v28 = vunpack.i.h.bf16 %v11726_v15  ;;  %v11727_v54 = vunpack.i.l.bf16 %v11726_v15 }
 0xa05   :  { %v5867_v31 = vmul.f32 0.0078125, %v5809_v37 }
 0xa06   :  { %v6209_v42 = vsel %vm1803_vm6, %v6185_v53, %v11702_v5  ;;  %v6210_v27 = vsel %vm1803_vm6, %v6186_v7, %v11703_v20  ;;  %v6211_v55 = vsel %vm1803_vm6, %v6187_v22, %v11727_v54  ;;  %v6212_v35 = vsel %vm1803_vm6, %v6188_v33, %v11728_v28 }
 0xa07   :  { %v11716_v56 = vpop.permute.xlu1 %11715  ;;  %v6233_v3 = vpack.c.bf16 %v6210_v27, %v6209_v42  ;;  %v6234_v36 = vpack.c.bf16 %v6212_v35, %v6211_v55  ;;  %v5883_v30 = vadd.f32 1e-05, %v5867_v31 }
 0xa08   :  { %v11718_v62 = vunpack.i.h.bf16 %v11716_v56  ;;  %v11717_v29 = vunpack.i.l.bf16 %v11716_v56 }
 0xa09   :  { %10809 = vmatmul.mubr.msk.bf16.gmra.mrb[156].mxu1 %vm6258_vm7, %v6233_v3  ;;  %12349 = vrsqrt.f32 %v5883_v30 }
 0xa0a   :  { %10812 = vmatprep.mubr.msk.bf16.mxu1 %vm6258_vm7, %v6234_v36  ;;  %v6190_v18 = vsel %vm518_vm2, %v15358_v57, %v11718_v62  ;;  %v6189_v41 = vsel %vm518_vm2, %v15355_v21, %v11717_v29 }
 0xa0b   :  { %v11721_v47 = vpop.permute.xlu1 %11720 }
 0xa0c   :  { %v11723_v11 = vunpack.i.h.bf16 %v11721_v47  ;;  %v11722_v13 = vunpack.i.l.bf16 %v11721_v47 }
 0xa0e   :  { %v6213_v32 = vsel %vm1803_vm6, %v6189_v41, %v11722_v13  ;;  %v6214_v12 = vsel %vm1803_vm6, %v6190_v18, %v11723_v11 }
 0xa0f   :  { %v6235_v26 = vpack.c.bf16 %v6214_v12, %v6213_v32 }
 0xa11   :  { %10813 = vmatmul.mubr.msk.bf16.gmra.mrb[160].mxu1 %vm6258_vm7, %v6235_v26 }
 0xa13   :  { %v12350_v58 = vpop.eup %12349 }
 0xa14   :  { %v5923_v9 = vmul.f32 %v12350_v58, %v15271_v40  ;;  %v5924_v61 = vmul.f32 %v12350_v58, %v15268_v59 }
 0xa16   :  { %v5957_v57 = vmul.f32 %v15286_v14, %v5923_v9  ;;  %v5958_v21 = vmul.f32 %v15288_v52, %v5924_v61 }
 0xa18   :  { %v5991_v4 = vadd.f32 %v15292_v17, %v5957_v57  ;;  %v5992_v48 = vadd.f32 %v15294_v46, %v5958_v21 }
 0xa27   :  { %v11731_v16 = vpop.permute.xlu0 %11730 }
 0xa28   :  { %v11733_v24 = vunpack.i.h.bf16 %v11731_v16  ;;  %v11732_v25 = vunpack.i.l.bf16 %v11731_v16 }
 0xa2a   :  { %v6192_v49 = vsel %vm518_vm2, %v5992_v48, %v11733_v24  ;;  %v6191_v40 = vsel %vm518_vm2, %v5991_v4, %v11732_v25 }
 0xa2c   :  { %v11736_v34 = vpop.permute.xlu1 %11735  ;;  %v11746_v1 = vpop.permute.xlu0 %11745 }
 0xa2d   :  { %v11748_v23 = vunpack.i.h.bf16 %v11746_v1  ;;  %v11747_v51 = vunpack.i.l.bf16 %v11746_v1  ;;  %v11738_v59 = vunpack.i.h.bf16 %v11736_v34  ;;  %v11737_v50 = vunpack.i.l.bf16 %v11736_v34 }
 0xa2f   :  { %v6215_v14 = vsel %vm1803_vm6, %v6191_v40, %v11747_v51  ;;  %v6216_v52 = vsel %vm1803_vm6, %v6192_v49, %v11748_v23  ;;  %v6194_v46 = vsel %vm518_vm2, %v15392_v39, %v11738_v59  ;;  %v6193_v28 = vsel %vm518_vm2, %v15389_v8, %v11737_v50 }
 0xa30   :  { %v11741_v19 = vpop.permute.xlu1 %11740  ;;  %v11751_v15 = vpop.permute.xlu0 %11750  ;;  %v6236_v20 = vpack.c.bf16 %v6216_v52, %v6215_v14 }
 0xa31   :  { %v11743_v17 = vunpack.i.h.bf16 %v11741_v19  ;;  %v11742_v5 = vunpack.i.l.bf16 %v11741_v19  ;;  %v11753_v54 = vunpack.i.h.bf16 %v11751_v15  ;;  %v11752_v7 = vunpack.i.l.bf16 %v11751_v15 }
 0xa32   :  { %10816 = vmatprep.mubr.msk.bf16.mxu1 %vm6258_vm7, %v6236_v20 }
 0xa33   :  { %v6218_v53 = vsel %vm1803_vm6, %v6194_v46, %v11743_v17  ;;  %v6217_v33 = vsel %vm1803_vm6, %v6193_v28, %v11742_v5  ;;  %v6196_v44 = vsel %vm518_vm2, %v15407_v10, %v11753_v54  ;;  %v6195_v39 = vsel %vm518_vm2, %v15402_v0, %v11752_v7 }
 0xa34   :  { %v11756_v22 = vpop.permute.xlu1 %11755  ;;  %v11766_v42 = vpop.permute.xlu0 %11765  ;;  %v6237_v27 = vpack.c.bf16 %v6218_v53, %v6217_v33 }
 0xa35   :  { %v11768_v55 = vunpack.i.h.bf16 %v11766_v42  ;;  %v11767_v35 = vunpack.i.l.bf16 %v11766_v42  ;;  %v11758_v8 = vunpack.i.h.bf16 %v11756_v22  ;;  %v11757_v56 = vunpack.i.l.bf16 %v11756_v22 }
 0xa36   :  { %10817 = vmatmul.mubr.msk.bf16.gmra.mrb[164].mxu1 %vm6258_vm7, %v6237_v27 }
 0xa37   :  { %v6219_v3 = vsel %vm1803_vm6, %v6195_v39, %v11767_v35  ;;  %v6220_v36 = vsel %vm1803_vm6, %v6196_v44, %v11768_v55  ;;  %v6198_v13 = vsel %vm518_vm2, %v15417_v2, %v11758_v8  ;;  %v6197_v10 = vsel %vm518_vm2, %v15414_v60, %v11757_v56 }
 0xa38   :  { %v11761_v62 = vpop.permute.xlu1 %11760  ;;  %v11771_v29 = vpop.permute.xlu0 %11770  ;;  %v6238_v37 = vpack.c.bf16 %v6220_v36, %v6219_v3 }
 0xa39   :  { %v11763_v47 = vunpack.i.h.bf16 %v11761_v62  ;;  %v11762_v11 = vunpack.i.l.bf16 %v11761_v62  ;;  %v11773_v0 = vunpack.i.h.bf16 %v11771_v29  ;;  %v11772_v18 = vunpack.i.l.bf16 %v11771_v29 }
 0xa3a   :  { %10820 = vmatprep.mubr.msk.bf16.mxu1 %vm6258_vm7, %v6238_v37 }
 0xa3b   :  { %v6222_v41 = vsel %vm1803_vm6, %v6198_v13, %v11763_v47  ;;  %v6221_v32 = vsel %vm1803_vm6, %v6197_v10, %v11762_v11  ;;  %v6200_v9 = vsel %vm518_vm2, %v15431_v45, %v11773_v0  ;;  %v6199_v2 = vsel %vm518_vm2, %v15428_v38, %v11772_v18 }
 0xa3c   :  { %v11776_v12 = vpop.permute.xlu1 %11775  ;;  %v11781_v31 = vpop.permute.xlu0 %11780  ;;  %v6239_v26 = vpack.c.bf16 %v6222_v41, %v6221_v32 }
 0xa3d   :  { %v11783_v30 = vunpack.i.h.bf16 %v11781_v31  ;;  %v11782_v58 = vunpack.i.l.bf16 %v11781_v31  ;;  %v11778_v60 = vunpack.i.h.bf16 %v11776_v12  ;;  %v11777_v61 = vunpack.i.l.bf16 %v11776_v12  ;;  %v6811_v12 = vld [vmem:[%s9906_s11] sm:$0xf] }
 0xa3e   :  { %10821 = vmatmul.mubr.msk.bf16.gmra.mrb[168].mxu1 %vm6258_vm7, %v6239_v26  ;;  %11067 = vmatprep.subr.msk.bf16.mxu0 %vm1579_vm4, %v6811_v12 }
 0xa3f   :  { %v6223_v16 = vsel %vm1803_vm6, %v6199_v2, %v11782_v58  ;;  %v6224_v57 = vsel %vm1803_vm6, %v6200_v9, %v11783_v30  ;;  %v6202_v48 = vsel %vm518_vm2, %v15449_v63, %v11778_v60  ;;  %v6201_v45 = vsel %vm518_vm2, %v15446_v43, %v11777_v61  ;;  %v15565_v63 = vld [vmem:[%s9914_s5] ss:$0 sm:$0xff]  ;;  %s12572_s5 = smov 32  }
 0xa40   :  { %v11786_v21 = vpop.permute.xlu1 %11785  ;;  %v6240_v24 = vpack.c.bf16 %v6224_v57, %v6223_v16  ;;  %v6868_v2 = vsel %vm1579_vm4, %v6811_v12, 0  ;;  %s9916_s10 = sld [smem:[%s16885_s0 + %s12572_s5]]  }
 0xa41   :  { %v11788_v25 = vunpack.i.h.bf16 %v11786_v21  ;;  %v11787_v4 = vunpack.i.l.bf16 %v11786_v21  ;;  %10829 = vmatpush3.bf16.msra.mxu0 %v6868_v2  ;;  %s9891_s5 = sld [smem:[%s16885_s0 + %s12579_s2]]  }
 0xa42   :  { %10824 = vmatprep.mubr.msk.bf16.mxu1 %vm6258_vm7, %v6240_v24  ;;  %10866 = vmatprep.subr.bf16.mxu0 %v17076_v6 }
 0xa43   :  { %v6226_v38 = vsel %vm1803_vm6, %v6202_v48, %v11788_v25  ;;  %v6225_v34 = vsel %vm1803_vm6, %v6201_v45, %v11787_v4 }
 0xa44   :  { %v6241_v1 = vpack.c.bf16 %v6226_v38, %v6225_v34 }
 0xa46   :  { %10825 = vmatmul.mubr.msk.bf16.gmra.mrb[172].mxu1 %vm6258_vm7, %v6241_v1 }
 0xa47   :  { %10856 = vmatprep.mubr.msk.bf16.mxu1 %vm12556_vm5, %v17076_v6 }
 0xad4   :  { %v10806_v43 = vpop.f32.mrb[152].mxu1 }
 0xad5   :  { %v15568_v23 = vadd.f32 %v10806_v43, %v15565_v63  ;;  %v6332_v51 = vpop.f32.mrb[153].mxu1 }
 0xad6   :  { %v15571_v49 = vadd.f32 %v15565_v63, %v6332_v51  ;;  %v10807_v40 = vpop.f32.mrb[154].mxu1 }
 0xad7   :  { %v6549_v59 = vsub.f32 0.0, %v15568_v23  ;;  %v15575_v50 = vadd.f32 %v10807_v40, %v15565_v63  ;;  %6455 = vrot.lane.b32.xlu0 %v15568_v23, %s12551_s16  ;;  %v6335_v14 = vpop.f32.mrb[155].mxu1 }
 0xad8   :  { %v6547_v52 = vsub.f32 0.0, %v15571_v49  ;;  %v15581_v19 = vadd.f32 %v15565_v63, %v6335_v14 }
 0xad9   :  { %v6575_v15 = vmul.f32 1.442695, %v6549_v59  ;;  %v6550_v20 = vsub.f32 0.0, %v15575_v50  ;;  %6457 = vrot.lane.b32.xlu1 %v15575_v50, %s12551_s16 }
 0xada   :  { %v6571_v17 = vmul.f32 1.442695, %v6547_v52  ;;  %v6548_v5 = vsub.f32 0.0, %v15581_v19 }
 0xadb   :  { %12351 = vpow2.f32 %v6575_v15  ;;  %v6577_v46 = vmul.f32 1.442695, %v6550_v20  ;;  %6451 = vrot.lane.b32.xlu0 %v15571_v49, %s12551_s16 }
 0xadc   :  { %12353 = vpow2.f32 %v6571_v17  ;;  %v6573_v28 = vmul.f32 1.442695, %v6548_v5  ;;  %v10810_v54 = vpop.f32.mrb[156].mxu1 }
 0xadd   :  { %12355 = vpow2.f32 %v6577_v46  ;;  %v15590_v7 = vadd.f32 %v10810_v54, %v15565_v63  ;;  %v6348_v53 = vpop.f32.mrb[157].mxu1  ;;  %6453 = vrot.lane.b32.xlu1 %v15581_v19, %s12551_s16 }
 0xade   :  { %12357 = vpow2.f32 %v6573_v28  ;;  %v15595_v33 = vadd.f32 %v15565_v63, %v6348_v53  ;;  %v10811_v22 = vpop.f32.mrb[158].mxu1 }
 0xadf   :  { %v6553_v42 = vsub.f32 0.0, %v15590_v7  ;;  %v15599_v27 = vadd.f32 %v10811_v22, %v15565_v63  ;;  %v6351_v55 = vpop.f32.mrb[159].mxu1  ;;  %6463 = vrot.lane.b32.xlu0 %v15590_v7, %s12551_s16 }
 0xae0   :  { %v6551_v35 = vsub.f32 0.0, %v15595_v33  ;;  %v15605_v44 = vadd.f32 %v15565_v63, %v6351_v55 }
 0xae1   :  { %v6583_v39 = vmul.f32 1.442695, %v6553_v42  ;;  %v6554_v8 = vsub.f32 0.0, %v15599_v27  ;;  %6465 = vrot.lane.b32.xlu1 %v15599_v27, %s12551_s16 }
 0xae2   :  { %v6579_v56 = vmul.f32 1.442695, %v6551_v35  ;;  %v6552_v3 = vsub.f32 0.0, %v15605_v44 }
 0xae3   :  { %12359 = vpow2.f32 %v6583_v39  ;;  %v6585_v36 = vmul.f32 1.442695, %v6554_v8  ;;  %6459 = vrot.lane.b32.xlu0 %v15595_v33, %s12551_s16 }
 0xae4   :  { %12361 = vpow2.f32 %v6579_v56  ;;  %v6581_v62 = vmul.f32 1.442695, %v6552_v3  ;;  %v10814_v29 = vpop.f32.mrb[160].mxu1 }
 0xae5   :  { %v12352_v37 = vpop.eup %12351  ;;  %12363 = vpow2.f32 %v6585_v36  ;;  %v15617_v47 = vadd.f32 %v10814_v29, %v15565_v63  ;;  %v6364_v11 = vpop.f32.mrb[161].mxu1  ;;  %6461 = vrot.lane.b32.xlu1 %v15605_v44, %s12551_s16 }
 0xae6   :  { %v12354_v13 = vpop.eup %12353  ;;  %v6621_v10 = vadd.f32 1.0, %v12352_v37  ;;  %12365 = vpow2.f32 %v6581_v62  ;;  %v10815_v0 = vpop.f32.mrb[162].mxu1  ;;  %v15628_v58 = vadd.f32 %v15565_v63, %v6364_v11 }
 0xae7   :  { %v12356_v18 = vpop.eup %12355  ;;  %v15622_v41 = vadd.f32 %v10815_v0, %v15565_v63  ;;  %v6367_v32 = vpop.f32.mrb[163].mxu1  ;;  %6471 = vrot.lane.b32.xlu0 %v15617_v47, %s12551_s16  ;;  %v6619_v26 = vadd.f32 1.0, %v12354_v13  ;;  %v6557_v48 = vsub.f32 0.0, %v15617_v47 }
 0xae8   :  { %v12358_v31 = vpop.eup %12357  ;;  %12367 = vrcp.f32 %v6621_v10  ;;  %v6622_v30 = vadd.f32 1.0, %v12356_v18  ;;  %v15634_v60 = vadd.f32 %v15565_v63, %v6367_v32  ;;  %v6555_v51 = vsub.f32 0.0, %v15628_v58 }
 0xae9   :  { %6473 = vrot.lane.b32.xlu1 %v15622_v41, %s12551_s16  ;;  %v6620_v9 = vadd.f32 1.0, %v12358_v31  ;;  %v6558_v34 = vsub.f32 0.0, %v15622_v41  ;;  %v6591_v43 = vmul.f32 1.442695, %v6557_v48 }
 0xaea   :  { %12369 = vrcp.f32 %v6622_v30  ;;  %v6556_v14 = vsub.f32 0.0, %v15634_v60  ;;  %v6587_v15 = vmul.f32 1.442695, %v6555_v51 }
 0xaeb   :  { %6467 = vrot.lane.b32.xlu0 %v15628_v58, %s12551_s16  ;;  %12371 = vrcp.f32 %v6619_v26  ;;  %v6593_v59 = vmul.f32 1.442695, %v6558_v34 }
 0xaec   :  { %12373 = vrcp.f32 %v6620_v9  ;;  %v6589_v17 = vmul.f32 1.442695, %v6556_v14 }
 0xaed   :  { %v12360_v61 = vpop.eup %12359  ;;  %6469 = vrot.lane.b32.xlu1 %v15634_v60, %s12551_s16 }
 0xaee   :  { %v12362_v16 = vpop.eup %12361  ;;  %v6625_v57 = vadd.f32 1.0, %v12360_v61 }
 0xaef   :  { %v12364_v21 = vpop.eup %12363  ;;  %v6623_v25 = vadd.f32 1.0, %v12362_v16 }
 0xaf0   :  { %v12366_v24 = vpop.eup %12365  ;;  %12375 = vrcp.f32 %v6625_v57  ;;  %v6626_v4 = vadd.f32 1.0, %v12364_v21 }
 0xaf1   :  { %v6624_v38 = vadd.f32 1.0, %v12366_v24 }
 0xaf2   :  { %v12368_v45 = vpop.eup %12367  ;;  %12377 = vrcp.f32 %v6626_v4 }
 0xaf3   :  { %6719 = vrot.lane.b32.xlu0 %v12368_v45, %s12553_s21  ;;  %12379 = vrcp.f32 %v6623_v25 }
 0xaf4   :  { %v12370_v1 = vpop.eup %12369  ;;  %12381 = vrcp.f32 %v6624_v38 }
 0xaf5   :  { %6721 = vrot.lane.b32.xlu1 %v12370_v1, %s12553_s21  ;;  %v12372_v40 = vpop.eup %12371  ;;  %12383 = vpow2.f32 %v6591_v43 }
 0xaf6   :  { %v12374_v52 = vpop.eup %12373  ;;  %12385 = vpow2.f32 %v6593_v59 }
 0xaf7   :  { %6715 = vrot.lane.b32.xlu0 %v12372_v40, %s12553_s21  ;;  %12387 = vpow2.f32 %v6587_v15 }
 0xaf8   :  { %12389 = vpow2.f32 %v6589_v17 }
 0xaf9   :  { %6717 = vrot.lane.b32.xlu1 %v12374_v52, %s12553_s21 }
 0xafa   :  { %v12376_v20 = vpop.eup %12375 }
 0xafb   :  { %6727 = vrot.lane.b32.xlu0 %v12376_v20, %s12553_s21 }
 0xafc   :  { %v12378_v5 = vpop.eup %12377 }
 0xafd   :  { %6729 = vrot.lane.b32.xlu1 %v12378_v5, %s12553_s21  ;;  %v12380_v46 = vpop.eup %12379 }
 0xafe   :  { %v12382_v28 = vpop.eup %12381 }
 0xaff   :  { %6723 = vrot.lane.b32.xlu0 %v12380_v46, %s12553_s21  ;;  %v12384_v54 = vpop.eup %12383 }
 0xb00   :  { %v12386_v53 = vpop.eup %12385  ;;  %v6629_v22 = vadd.f32 1.0, %v12384_v54 }
 0xb01   :  { %6725 = vrot.lane.b32.xlu1 %v12382_v28, %s12553_s21  ;;  %v12388_v42 = vpop.eup %12387  ;;  %v6630_v55 = vadd.f32 1.0, %v12386_v53 }
 0xb02   :  { %v12390_v35 = vpop.eup %12389  ;;  %12391 = vrcp.f32 %v6629_v22  ;;  %v6627_v39 = vadd.f32 1.0, %v12388_v42 }
 0xb03   :  { %12393 = vrcp.f32 %v6630_v55  ;;  %v6628_v36 = vadd.f32 1.0, %v12390_v35 }
 0xb04   :  { %12395 = vrcp.f32 %v6627_v39 }
 0xb05   :  { %12397 = vrcp.f32 %v6628_v36 }
 0xb09   :  { %v10818_v8 = vpop.f32.mrb[164].mxu1 }
 0xb0a   :  { %v15654_v56 = vadd.f32 %v10818_v8, %v15565_v63  ;;  %v6380_v3 = vpop.f32.mrb[165].mxu1 }
 0xb0b   :  { %v15657_v62 = vadd.f32 %v15565_v63, %v6380_v3  ;;  %v10819_v29 = vpop.f32.mrb[166].mxu1 }
 0xb0c   :  { %v6561_v37 = vsub.f32 0.0, %v15654_v56  ;;  %v15661_v11 = vadd.f32 %v10819_v29, %v15565_v63  ;;  %v6383_v13 = vpop.f32.mrb[167].mxu1  ;;  %6479 = vrot.lane.b32.xlu0 %v15654_v56, %s12551_s16  ;;  %v12392_v16 = vpop.eup %12391 }
 0xb0d   :  { %v6559_v10 = vsub.f32 0.0, %v15657_v62  ;;  %v15667_v0 = vadd.f32 %v15565_v63, %v6383_v13  ;;  %v12394_v48 = vpop.eup %12393 }
 0xb0e   :  { %v6599_v18 = vmul.f32 1.442695, %v6561_v37  ;;  %v6562_v32 = vsub.f32 0.0, %v15661_v11  ;;  %6481 = vrot.lane.b32.xlu1 %v15661_v11, %s12551_s16  ;;  %v12396_v43 = vpop.eup %12395 }
 0xb0f   :  { %v6595_v12 = vmul.f32 1.442695, %v6559_v10  ;;  %v6560_v31 = vsub.f32 0.0, %v15667_v0  ;;  %v12398_v14 = vpop.eup %12397 }
 0xb10   :  { %12399 = vpow2.f32 %v6599_v18  ;;  %v6601_v26 = vmul.f32 1.442695, %v6562_v32  ;;  %6475 = vrot.lane.b32.xlu0 %v15657_v62, %s12551_s16 }
 0xb11   :  { %12401 = vpow2.f32 %v6595_v12  ;;  %v6597_v30 = vmul.f32 1.442695, %v6560_v31  ;;  %v10822_v9 = vpop.f32.mrb[168].mxu1 }
 0xb12   :  { %12403 = vpow2.f32 %v6601_v26  ;;  %v15676_v2 = vadd.f32 %v10822_v9, %v15565_v63  ;;  %v6396_v61 = vpop.f32.mrb[169].mxu1  ;;  %6477 = vrot.lane.b32.xlu1 %v15667_v0, %s12551_s16 }
 0xb13   :  { %12405 = vpow2.f32 %v6597_v30  ;;  %v15681_v57 = vadd.f32 %v15565_v63, %v6396_v61  ;;  %v10823_v21 = vpop.f32.mrb[170].mxu1 }
 0xb14   :  { %v6565_v24 = vsub.f32 0.0, %v15676_v2  ;;  %v15685_v25 = vadd.f32 %v10823_v21, %v15565_v63  ;;  %v6399_v4 = vpop.f32.mrb[171].mxu1  ;;  %6735 = vrot.lane.b32.xlu0 %v12392_v16, %s12553_s21 }
 0xb15   :  { %v6563_v45 = vsub.f32 0.0, %v15681_v57  ;;  %v15690_v38 = vadd.f32 %v15565_v63, %v6399_v4 }
 0xb16   :  { %v6607_v34 = vmul.f32 1.442695, %v6565_v24  ;;  %v6566_v1 = vsub.f32 0.0, %v15685_v25  ;;  %6737 = vrot.lane.b32.xlu1 %v12394_v48, %s12553_s21 }
 0xb17   :  { %v6603_v51 = vmul.f32 1.442695, %v6563_v45  ;;  %v6564_v40 = vsub.f32 0.0, %v15690_v38 }
 0xb18   :  { %12407 = vpow2.f32 %v6607_v34  ;;  %v6609_v59 = vmul.f32 1.442695, %v6566_v1  ;;  %6731 = vrot.lane.b32.xlu0 %v12396_v43, %s12553_s21 }
 0xb19   :  { %12409 = vpow2.f32 %v6603_v51  ;;  %v6605_v52 = vmul.f32 1.442695, %v6564_v40  ;;  %v10826_v15 = vpop.f32.mrb[172].mxu1 }
 0xb1a   :  { %v12400_v20 = vpop.eup %12399  ;;  %12411 = vpow2.f32 %v6609_v59  ;;  %v15697_v17 = vadd.f32 %v10826_v15, %v15565_v63  ;;  %v6412_v5 = vpop.f32.mrb[173].mxu1  ;;  %6733 = vrot.lane.b32.xlu1 %v12398_v14, %s12553_s21 }
 0xb1b   :  { %v12402_v46 = vpop.eup %12401  ;;  %v6633_v28 = vadd.f32 1.0, %v12400_v20  ;;  %12413 = vpow2.f32 %v6605_v52  ;;  %v15701_v54 = vadd.f32 %v15565_v63, %v6412_v5  ;;  %v10827_v53 = vpop.f32.mrb[174].mxu1 }
 0xb1c   :  { %v12404_v22 = vpop.eup %12403  ;;  %v6631_v42 = vadd.f32 1.0, %v12402_v46  ;;  %v6569_v55 = vsub.f32 0.0, %v15697_v17  ;;  %v15705_v35 = vadd.f32 %v10827_v53, %v15565_v63  ;;  %v6415_v39 = vpop.f32.mrb[175].mxu1  ;;  %6487 = vrot.lane.b32.xlu0 %v15676_v2, %s12551_s16 }
 0xb1d   :  { %v12406_v8 = vpop.eup %12405  ;;  %12415 = vrcp.f32 %v6633_v28  ;;  %v6634_v3 = vadd.f32 1.0, %v12404_v22  ;;  %v6567_v36 = vsub.f32 0.0, %v15701_v54  ;;  %v15711_v29 = vadd.f32 %v15565_v63, %v6415_v39 }
 0xb1e   :  { %v6632_v37 = vadd.f32 1.0, %v12406_v8  ;;  %v6570_v13 = vsub.f32 0.0, %v15705_v35  ;;  %6489 = vrot.lane.b32.xlu1 %v15685_v25, %s12551_s16  ;;  %v6615_v10 = vmul.f32 1.442695, %v6569_v55 }
 0xb1f   :  { %12417 = vrcp.f32 %v6634_v3  ;;  %v6611_v18 = vmul.f32 1.442695, %v6567_v36  ;;  %v6568_v32 = vsub.f32 0.0, %v15711_v29 }
 0xb20   :  { %12419 = vrcp.f32 %v6631_v42  ;;  %6483 = vrot.lane.b32.xlu0 %v15681_v57, %s12551_s16  ;;  %v6617_v63 = vmul.f32 1.442695, %v6570_v13 }
 0xb21   :  { %12421 = vrcp.f32 %v6632_v37  ;;  %v6613_v12 = vmul.f32 1.442695, %v6568_v32 }
 0xb22   :  { %v12408_v31 = vpop.eup %12407  ;;  %12423 = vpow2.f32 %v6611_v18  ;;  %6485 = vrot.lane.b32.xlu1 %v15690_v38, %s12551_s16 }
 0xb23   :  { %v12410_v26 = vpop.eup %12409  ;;  %v6637_v30 = vadd.f32 1.0, %v12408_v31  ;;  %12425 = vpow2.f32 %v6615_v10 }
 0xb24   :  { %v12412_v9 = vpop.eup %12411  ;;  %12427 = vpow2.f32 %v6613_v12  ;;  %6491 = vrot.lane.b32.xlu0 %v15701_v54, %s12551_s16  ;;  %v6635_v16 = vadd.f32 1.0, %v12410_v26 }
 0xb25   :  { %v12414_v61 = vpop.eup %12413  ;;  %12429 = vrcp.f32 %v6637_v30  ;;  %v6638_v21 = vadd.f32 1.0, %v12412_v9 }
 0xb26   :  { %12431 = vpow2.f32 %v6617_v63  ;;  %6493 = vrot.lane.b32.xlu1 %v15711_v29, %s12551_s16  ;;  %v6636_v4 = vadd.f32 1.0, %v12414_v61 }
 0xb27   :  { %v12416_v24 = vpop.eup %12415  ;;  %12433 = vrcp.f32 %v6638_v21 }
 0xb28   :  { %6743 = vrot.lane.b32.xlu0 %v12416_v24, %s12553_s21  ;;  %12435 = vrcp.f32 %v6635_v16 }
 0xb29   :  { %v12418_v48 = vpop.eup %12417  ;;  %12437 = vrcp.f32 %v6636_v4 }
 0xb2a   :  { %v12420_v45 = vpop.eup %12419  ;;  %6745 = vrot.lane.b32.xlu1 %v12418_v48, %s12553_s21 }
 0xb2b   :  { %v12422_v34 = vpop.eup %12421 }
 0xb2c   :  { %v12424_v1 = vpop.eup %12423  ;;  %6739 = vrot.lane.b32.xlu0 %v12420_v45, %s12553_s21 }
 0xb2d   :  { %v12426_v43 = vpop.eup %12425  ;;  %v6639_v51 = vadd.f32 1.0, %v12424_v1 }
 0xb2e   :  { %v12428_v40 = vpop.eup %12427  ;;  %6741 = vrot.lane.b32.xlu1 %v12422_v34, %s12553_s21  ;;  %v6641_v20 = vadd.f32 1.0, %v12426_v43 }
 0xb2f   :  { %v12430_v59 = vpop.eup %12429  ;;  %v6640_v14 = vadd.f32 1.0, %v12428_v40  ;;  %12439 = vrcp.f32 %v6639_v51 }
 0xb30   :  { %v12432_v52 = vpop.eup %12431  ;;  %6751 = vrot.lane.b32.xlu0 %v12430_v59, %s12553_s21 }
 0xb31   :  { %v12434_v15 = vpop.eup %12433  ;;  %v6642_v46 = vadd.f32 1.0, %v12432_v52  ;;  %12441 = vrcp.f32 %v6640_v14 }
 0xb32   :  { %6753 = vrot.lane.b32.xlu1 %v12434_v15, %s12553_s21  ;;  %v12436_v5 = vpop.eup %12435  ;;  %12443 = vrcp.f32 %v6641_v20 }
 0xb33   :  { %v12438_v28 = vpop.eup %12437  ;;  %12445 = vrcp.f32 %v6642_v46 }
 0xb34   :  { %6747 = vrot.lane.b32.xlu0 %v12436_v5, %s12553_s21 }
 0xb36   :  { %6749 = vrot.lane.b32.xlu1 %v12438_v28, %s12553_s21 }
 0xb38   :  { %6495 = vrot.lane.b32.xlu0 %v15697_v17, %s12551_s16 }
 0xb39   :  { %v12440_v53 = vpop.eup %12439 }
 0xb3a   :  { %6497 = vrot.lane.b32.xlu1 %v15705_v35, %s12551_s16 }
 0xb3b   :  { %v12442_v22 = vpop.eup %12441 }
 0xb3c   :  { %6755 = vrot.lane.b32.xlu0 %v12440_v53, %s12553_s21  ;;  %v12444_v42 = vpop.eup %12443 }
 0xb3d   :  { %v12446_v55 = vpop.eup %12445 }
 0xb3e   :  { %6757 = vrot.lane.b32.xlu1 %v12442_v22, %s12553_s21 }
 0xb40   :  { %6759 = vrot.lane.b32.xlu0 %v12444_v42, %s12553_s21 }
 0xb42   :  { %6761 = vrot.lane.b32.xlu1 %v12446_v55, %s12553_s21 }
 0xb49   :  { %v6456_v39 = vpop.permute.xlu0 %6455 }
 0xb4a   :  { %v6525_v24 = vadd.f32 %v6456_v39, %v15568_v23 }
 0xb4b   :  { %v6458_v8 = vpop.permute.xlu1 %6457 }
 0xb4c   :  { %v6526_v9 = vadd.f32 %v6458_v8, %v15575_v50 }
 0xb4d   :  { %v6452_v3 = vpop.permute.xlu0 %6451 }
 0xb4e   :  { %v6523_v16 = vadd.f32 %v6452_v3, %v15571_v49 }
 0xb4f   :  { %v6454_v36 = vpop.permute.xlu1 %6453 }
 0xb50   :  { %v6524_v21 = vadd.f32 %v6454_v36, %v15581_v19 }
 0xb51   :  { %v6464_v37 = vpop.permute.xlu0 %6463 }
 0xb52   :  { %v6529_v14 = vadd.f32 %v6464_v37, %v15590_v7 }
 0xb53   :  { %v6466_v13 = vpop.permute.xlu1 %6465 }
 0xb54   :  { %v6530_v50 = vadd.f32 %v6466_v13, %v15599_v27 }
 0xb55   :  { %v6460_v10 = vpop.permute.xlu0 %6459 }
 0xb56   :  { %v6527_v19 = vadd.f32 %v6460_v10, %v15595_v33 }
 0xb57   :  { %v6462_v18 = vpop.permute.xlu1 %6461 }
 0xb58   :  { %v6528_v23 = vadd.f32 %v6462_v18, %v15605_v44 }
 0xb59   :  { %v6472_v32 = vpop.permute.xlu0 %6471 }
 0xb5a   :  { %v6533_v36 = vadd.f32 %v6472_v32, %v15617_v47 }
 0xb5b   :  { %v6474_v12 = vpop.permute.xlu1 %6473 }
 0xb5c   :  { %v6534_v44 = vadd.f32 %v6474_v12, %v15622_v41 }
 0xb5d   :  { %v6468_v31 = vpop.permute.xlu0 %6467 }
 0xb5e   :  { %v6531_v8 = vadd.f32 %v6468_v31, %v15628_v58 }
 0xb5f   :  { %v6470_v63 = vpop.permute.xlu1 %6469 }
 0xb60   :  { %v6532_v3 = vadd.f32 %v6470_v63, %v15634_v60 }
 0xb65   :  { %v6720_v26 = vpop.permute.xlu0 %6719 }
 0xb66   :  { %v6789_v1 = vmul.f32 %v6720_v26, %v6525_v24 }
 0xb67   :  { %v6722_v30 = vpop.permute.xlu1 %6721 }
 0xb68   :  { %v6790_v4 = vmul.f32 %v6722_v30, %v6526_v9 }
 0xb69   :  { %v6716_v61 = vpop.permute.xlu0 %6715 }
 0xb6a   :  { %v6787_v45 = vmul.f32 %v6716_v61, %v6523_v16  ;;  %v6813_v40 = vpack.c.bf16 %v6790_v4, %v6789_v1 }
 0xb6b   :  { %v6718_v48 = vpop.permute.xlu1 %6717 }
 0xb6c   :  { %v6788_v34 = vmul.f32 %v6718_v48, %v6524_v21 }
 0xb6d   :  { %v6728_v43 = vpop.permute.xlu0 %6727 }
 0xb6e   :  { %v6812_v51 = vpack.c.bf16 %v6788_v34, %v6787_v45  ;;  %v6793_v46 = vmul.f32 %v6728_v43, %v6529_v14 }
 0xb6f   :  { %v6730_v59 = vpop.permute.xlu1 %6729 }
 0xb70   :  { %10830 = vmatprep.mubr.msk.bf16.mxu0 %vm518_vm2, %v6812_v51  ;;  %v6794_v52 = vmul.f32 %v6730_v59, %v6530_v50 }
 0xb71   :  { %10831 = vmatmul.mubr.msk.bf16.vlgmr.msra.gmra.mrb[160].mxu0 %vm518_vm2, %v6813_v40  ;;  %v6724_v49 = vpop.permute.xlu0 %6723 }
 0xb72   :  { %v6791_v20 = vmul.f32 %v6724_v49, %v6527_v19  ;;  %v6815_v53 = vpack.c.bf16 %v6794_v52, %v6793_v46 }
 0xb73   :  { %v6726_v15 = vpop.permute.xlu1 %6725 }
 0xb74   :  { %v6792_v5 = vmul.f32 %v6726_v15, %v6528_v23 }
 0xb76   :  { %v6814_v28 = vpack.c.bf16 %v6792_v5, %v6791_v20 }
 0xb78   :  { %10834 = vmatprep.mubr.msk.bf16.mxu0 %vm518_vm2, %v6814_v28 }
 0xb79   :  { %10835 = vmatmul.mubr.msk.bf16.gmra.mrb[164].mxu0 %vm518_vm2, %v6815_v53 }
 0xb7e   :  { %v6480_v27 = vpop.permute.xlu0 %6479 }
 0xb7f   :  { %v6537_v4 = vadd.f32 %v6480_v27, %v15654_v56 }
 0xb80   :  { %v6482_v22 = vpop.permute.xlu1 %6481 }
 0xb81   :  { %v6538_v47 = vadd.f32 %v6482_v22, %v15661_v11 }
 0xb82   :  { %v6476_v42 = vpop.permute.xlu0 %6475 }
 0xb83   :  { %v6535_v21 = vadd.f32 %v6476_v42, %v15657_v62 }
 0xb84   :  { %v6478_v55 = vpop.permute.xlu1 %6477 }
 0xb85   :  { %v6536_v24 = vadd.f32 %v6478_v55, %v15667_v0 }
 0xb86   :  { %v6736_v33 = vpop.permute.xlu0 %6735 }
 0xb87   :  { %v6797_v26 = vmul.f32 %v6736_v33, %v6533_v36 }
 0xb88   :  { %v6738_v39 = vpop.permute.xlu1 %6737 }
 0xb89   :  { %v6798_v37 = vmul.f32 %v6738_v39, %v6534_v44 }
 0xb8a   :  { %v6732_v7 = vpop.permute.xlu0 %6731 }
 0xb8b   :  { %v6795_v10 = vmul.f32 %v6732_v7, %v6531_v8  ;;  %v6817_v61 = vpack.c.bf16 %v6798_v37, %v6797_v26 }
 0xb8c   :  { %v6734_v13 = vpop.permute.xlu1 %6733 }
 0xb8d   :  { %v6796_v18 = vmul.f32 %v6734_v13, %v6532_v3 }
 0xb8e   :  { %v6488_v30 = vpop.permute.xlu0 %6487 }
 0xb8f   :  { %v6816_v9 = vpack.c.bf16 %v6796_v18, %v6795_v10  ;;  %v6541_v49 = vadd.f32 %v6488_v30, %v15676_v2  ;;  %v15799_v18 = vld [vmem:[%s9908_s15] sm:$0xff]   ;;  %s12574_s15 = smov 28  }
 0xb90   :  { %v6490_v16 = vpop.permute.xlu1 %6489  ;;  %s9912_s20 = sld [smem:[%s16885_s0 + %s12574_s15]]  }
 0xb91   :  { %10838 = vmatprep.mubr.msk.bf16.mxu0 %vm518_vm2, %v6816_v9  ;;  %v6542_v11 = vadd.f32 %v6490_v16, %v15685_v25 }
 0xb92   :  { %10839 = vmatmul.mubr.msk.bf16.gmra.mrb[168].mxu0 %vm518_vm2, %v6817_v61  ;;  %v6484_v41 = vpop.permute.xlu0 %6483 }
 0xb93   :  { %v6539_v0 = vadd.f32 %v6484_v41, %v15681_v57 }
 0xb94   :  { %v6486_v12 = vpop.permute.xlu1 %6485 }
 0xb95   :  { %v6540_v56 = vadd.f32 %v6486_v12, %v15690_v38 }
 0xb96   :  { %v6492_v58 = vpop.permute.xlu0 %6491 }
 0xb97   :  { %v6543_v57 = vadd.f32 %v6492_v58, %v15701_v54  ;;  %v15786_v54 = vld [vmem:[%s9907_s22] ss:$0 sm:$0xff]  ;;  %s12575_s22 = smov 9  }
 0xb98   :  { %v6494_v31 = vpop.permute.xlu1 %6493  ;;  %s9893_s25 = sld [smem:[%s16885_s0 + %s12575_s22]]  }
 0xb99   :  { %v6544_v38 = vadd.f32 %v6494_v31, %v15711_v29 }
 0xb9a   :  { %v6744_v60 = vpop.permute.xlu0 %6743 }
 0xb9b   :  { %v6801_v43 = vmul.f32 %v6744_v60, %v6537_v4 }
 0xb9c   :  { %v6746_v63 = vpop.permute.xlu1 %6745 }
 0xb9d   :  { %v6802_v48 = vmul.f32 %v6746_v63, %v6538_v47 }
 0xb9e   :  { %v6740_v32 = vpop.permute.xlu0 %6739 }
 0xb9f   :  { %v6799_v34 = vmul.f32 %v6740_v32, %v6535_v21  ;;  %v6819_v59 = vpack.c.bf16 %v6802_v48, %v6801_v43 }
 0xba0   :  { %v6742_v45 = vpop.permute.xlu1 %6741 }
 0xba1   :  { %v6800_v1 = vmul.f32 %v6742_v45, %v6536_v24 }
 0xba2   :  { %v6752_v51 = vpop.permute.xlu0 %6751 }
 0xba3   :  { %v6818_v40 = vpack.c.bf16 %v6800_v1, %v6799_v34  ;;  %v6805_v15 = vmul.f32 %v6752_v51, %v6541_v49 }
 0xba4   :  { %v6754_v50 = vpop.permute.xlu1 %6753 }
 0xba5   :  { %10842 = vmatprep.mubr.msk.bf16.mxu0 %vm518_vm2, %v6818_v40  ;;  %v6806_v19 = vmul.f32 %v6754_v50, %v6542_v11 }
 0xba6   :  { %10843 = vmatmul.mubr.msk.bf16.gmra.mrb[172].mxu0 %vm518_vm2, %v6819_v59  ;;  %v6748_v62 = vpop.permute.xlu0 %6747 }
 0xba7   :  { %v6803_v14 = vmul.f32 %v6748_v62, %v6539_v0  ;;  %v6821_v46 = vpack.c.bf16 %v6806_v19, %v6805_v15 }
 0xba8   :  { %v6750_v23 = vpop.permute.xlu1 %6749 }
 0xba9   :  { %v6804_v52 = vmul.f32 %v6750_v23, %v6540_v56 }
 0xbaa   :  { %v6496_v20 = vpop.permute.xlu0 %6495 }
 0xbab   :  { %v6820_v5 = vpack.c.bf16 %v6804_v52, %v6803_v14  ;;  %v6545_v42 = vadd.f32 %v6496_v20, %v15697_v17 }
 0xbac   :  { %v6498_v28 = vpop.permute.xlu1 %6497 }
 0xbad   :  { %10846 = vmatprep.mubr.msk.bf16.mxu0 %vm518_vm2, %v6820_v5  ;;  %v6546_v55 = vadd.f32 %v6498_v28, %v15705_v35 }
 0xbae   :  { %10847 = vmatmul.mubr.msk.bf16.gmra.mrb[176].mxu0 %vm518_vm2, %v6821_v46  ;;  %v6756_v25 = vpop.permute.xlu0 %6755 }
 0xbaf   :  { %v6807_v2 = vmul.f32 %v6756_v25, %v6543_v57 }
 0xbb0   :  { %v6758_v53 = vpop.permute.xlu1 %6757 }
 0xbb1   :  { %v6808_v27 = vmul.f32 %v6758_v53, %v6544_v38 }
 0xbb2   :  { %v6760_v22 = vpop.permute.xlu0 %6759 }
 0xbb3   :  { %v6822_v33 = vpack.c.bf16 %v6808_v27, %v6807_v2  ;;  %v6809_v44 = vmul.f32 %v6760_v22, %v6545_v42 }
 0xbb4   :  { %v6762_v39 = vpop.permute.xlu1 %6761 }
 0xbb5   :  { %v6810_v7 = vmul.f32 %v6762_v39, %v6546_v55  ;;  %10850 = vmatprep.mubr.msk.bf16.mxu0 %vm518_vm2, %v6822_v33 }
 0xbb7   :  { %v6823_v8 = vpack.c.bf16 %v6810_v7, %v6809_v44 }
 0xbb9   :  { %10851 = vmatmul.mubr.msk.bf16.gmra.mrb[180].mxu0 %vm518_vm2, %v6823_v8 }
 0xbba   :  { %10868 = vmatprep.mubr.msk.bf16.mxu0 %vm12556_vm5, %v17076_v6 }
 0xc44   :  { %v10832_v17 = vpop.f32.mrb[160].mxu0 }
 0xc45   :  { %v6904_v35 = vpop.f32.mrb[161].mxu0  ;;  %v15802_v26 = vadd.f32 %v10832_v17, %v15786_v54 }
 0xc46   :  { %v10833_v29 = vpop.f32.mrb[162].mxu0  ;;  %v15789_v36 = vadd.f32 %v15786_v54, %v6904_v35 }
 0xc47   :  { %v6907_v3 = vpop.f32.mrb[163].mxu0  ;;  %v15795_v13 = vadd.f32 %v10833_v29, %v15786_v54 }
 0xc48   :  { %v15792_v37 = vadd.f32 %v15786_v54, %v6907_v3 }
 0xc49   :  { %v7002_v16 = vpack.c.bf16 %v15795_v13, %v15802_v26 }
 0xc4a   :  { %v7001_v10 = vpack.c.bf16 %v15792_v37, %v15789_v36 }
 0xc4c   :  { %v10836_v30 = vpop.f32.mrb[164].mxu0  ;;  %10855 = vmatpush3.bf16.msra.mxu1 %v7001_v10 }
 0xc4d   :  { %v6920_v9 = vpop.f32.mrb[165].mxu0  ;;  %10860 = vmatprep.subr.bf16.mxu1 %v17076_v6  ;;  %v15824_v63 = vadd.f32 %v10836_v30, %v15786_v54 }
 0xc4e   :  { %v10837_v61 = vpop.f32.mrb[166].mxu0  ;;  %v15810_v12 = vadd.f32 %v15786_v54, %v6920_v9 }
 0xc4f   :  { %v6923_v41 = vpop.f32.mrb[167].mxu0  ;;  %10857 = vmatmul.mubr.msk.bf16.vlgmr.msra.gmra.mrb[176].mxu1 %vm1803_vm6, %v15799_v18  ;;  %v15819_v31 = vadd.f32 %v10837_v61, %v15786_v54 }
 0xc50   :  { %v15813_v58 = vadd.f32 %v15786_v54, %v6923_v41  ;;  %10861 = vmatpush3.bf16.msra.mxu1 %v7002_v16  ;;  %10862 = vmatprep.mubr.msk.bf16.mxu1 %vm12556_vm5, %v17076_v6 }
 0xc51   :  { %10872 = vmatprep.subr.bf16.mxu1 %v17076_v6  ;;  %v7004_v47 = vpack.c.bf16 %v15819_v31, %v15824_v63 }
 0xc52   :  { %v7003_v60 = vpack.c.bf16 %v15813_v58, %v15810_v12 }
 0xc54   :  { %10867 = vmatpush3.bf16.msra.mxu0 %v7003_v60 }
 0xc55   :  { %10878 = vmatprep.subr.bf16.mxu0 %v17076_v6 }
 0xc57   :  { %10863 = vmatmul.mubr.msk.bf16.vlgmr.msra.gmra.mrb[180].mxu1 %vm1803_vm6, %v15799_v18  ;;  %10869 = vmatmul.mubr.msk.bf16.vlgmr.msra.gmra.mrb[184].mxu0 %vm1803_vm6, %v15799_v18 }
 0xc58   :  { %10873 = vmatpush3.bf16.msra.mxu1 %v7004_v47  ;;  %10874 = vmatprep.mubr.msk.bf16.mxu1 %vm12556_vm5, %v17076_v6 }
 0xc59   :  { %10884 = vmatprep.subr.bf16.mxu1 %v17076_v6  ;;  %10880 = vmatprep.mubr.msk.bf16.mxu0 %vm12556_vm5, %v17076_v6 }
 0xc5f   :  { %10875 = vmatmul.mubr.msk.bf16.vlgmr.msra.gmra.mrb[184].mxu1 %vm1803_vm6, %v15799_v18 }
 0xc60   :  { %10886 = vmatprep.mubr.msk.bf16.mxu1 %vm12556_vm5, %v17076_v6 }
 0xc65   :  { %v10840_v32 = vpop.f32.mrb[168].mxu0 }
 0xc66   :  { %v6936_v21 = vpop.f32.mrb[169].mxu0  ;;  %v15843_v4 = vadd.f32 %v10840_v32, %v15786_v54 }
 0xc67   :  { %v10841_v24 = vpop.f32.mrb[170].mxu0  ;;  %v15849_v34 = vadd.f32 %v15786_v54, %v6936_v21 }
 0xc68   :  { %v15846_v48 = vadd.f32 %v10841_v24, %v15786_v54  ;;  %v6939_v45 = vpop.f32.mrb[171].mxu0 }
 0xc69   :  { %v15852_v1 = vadd.f32 %v15786_v54, %v6939_v45 }
 0xc6a   :  { %v7006_v43 = vpack.c.bf16 %v15846_v48, %v15843_v4 }
 0xc6b   :  { %v7005_v51 = vpack.c.bf16 %v15852_v1, %v15849_v34 }
 0xc6c   :  { %10885 = vmatpush3.bf16.msra.mxu1 %v7006_v43 }
 0xc6d   :  { %10879 = vmatpush3.bf16.msra.mxu0 %v7005_v51  ;;  %10896 = vmatprep.subr.bf16.mxu1 %v17076_v6 }
 0xc6e   :  { %10890 = vmatprep.subr.bf16.mxu0 %v17076_v6 }
 0xc6f   :  { %10887 = vmatmul.mubr.msk.bf16.vlgmr.msra.gmra.mrb[188].mxu1 %vm1803_vm6, %v15799_v18 }
 0xc70   :  { %10881 = vmatmul.mubr.msk.bf16.vlgmr.msra.gmra.mrb[188].mxu0 %vm1803_vm6, %v15799_v18  ;;  %10898 = vmatprep.mubr.msk.bf16.mxu1 %vm12556_vm5, %v17076_v6 }
 0xc71   :  { %10892 = vmatprep.mubr.msk.bf16.mxu0 %vm12556_vm5, %v17076_v6 }
 0xc79   :  { %v10844_v40 = vpop.f32.mrb[172].mxu0 }
 0xc7a   :  { %v6952_v59 = vpop.f32.mrb[173].mxu0  ;;  %v15869_v11 = vadd.f32 %v10844_v40, %v15786_v54 }
 0xc7b   :  { %v10845_v50 = vpop.f32.mrb[174].mxu0  ;;  %v15875_v56 = vadd.f32 %v15786_v54, %v6952_v59 }
 0xc7c   :  { %v15872_v62 = vadd.f32 %v10845_v50, %v15786_v54  ;;  %v6955_v0 = vpop.f32.mrb[175].mxu0 }
 0xc7d   :  { %v15878_v49 = vadd.f32 %v15786_v54, %v6955_v0 }
 0xc7e   :  { %v7008_v19 = vpack.c.bf16 %v15872_v62, %v15869_v11 }
 0xc7f   :  { %v7007_v23 = vpack.c.bf16 %v15878_v49, %v15875_v56 }
 0xc80   :  { %10897 = vmatpush3.bf16.msra.mxu1 %v7008_v19 }
 0xc81   :  { %v10848_v14 = vpop.f32.mrb[176].mxu0  ;;  %10891 = vmatpush3.bf16.msra.mxu0 %v7007_v23  ;;  %10908 = vmatprep.subr.bf16.mxu1 %v17076_v6 }
 0xc82   :  { %v6968_v52 = vpop.f32.mrb[177].mxu0  ;;  %10902 = vmatprep.subr.bf16.mxu0 %v17076_v6  ;;  %v15889_v20 = vadd.f32 %v10848_v14, %v15786_v54 }
 0xc83   :  { %v10849_v15 = vpop.f32.mrb[178].mxu0  ;;  %10899 = vmatmul.mubr.msk.bf16.vlgmr.msra.gmra.mrb[192].mxu1 %vm1803_vm6, %v15799_v18  ;;  %v15899_v28 = vadd.f32 %v15786_v54, %v6968_v52 }
 0xc84   :  { %v15892_v5 = vadd.f32 %v10849_v15, %v15786_v54  ;;  %v6971_v46 = vpop.f32.mrb[179].mxu0  ;;  %10893 = vmatmul.mubr.msk.bf16.vlgmr.msra.gmra.mrb[192].mxu0 %vm1803_vm6, %v15799_v18  ;;  %10910 = vmatprep.mubr.msk.bf16.mxu1 %vm12556_vm5, %v17076_v6 }
 0xc85   :  { %v15902_v25 = vadd.f32 %v15786_v54, %v6971_v46  ;;  %10904 = vmatprep.mubr.msk.bf16.mxu0 %vm12556_vm5, %v17076_v6 }
 0xc86   :  { %v7010_v57 = vpack.c.bf16 %v15892_v5, %v15889_v20 }
 0xc87   :  { %v7009_v38 = vpack.c.bf16 %v15902_v25, %v15899_v28 }
 0xc88   :  { %10909 = vmatpush3.bf16.msra.mxu1 %v7010_v57 }
 0xc89   :  { %10903 = vmatpush3.bf16.msra.mxu0 %v7009_v38  ;;  %10920 = vmatprep.subr.bf16.mxu1 %v17076_v6 }
 0xc8a   :  { %10914 = vmatprep.subr.bf16.mxu0 %v17076_v6 }
 0xc8b   :  { %10911 = vmatmul.mubr.msk.bf16.vlgmr.msra.gmra.mrb[196].mxu1 %vm1803_vm6, %v15799_v18 }
 0xc8c   :  { %v10852_v53 = vpop.f32.mrb[180].mxu0  ;;  %10905 = vmatmul.mubr.msk.bf16.vlgmr.msra.gmra.mrb[196].mxu0 %vm1803_vm6, %v15799_v18  ;;  %10922 = vmatprep.mubr.msk.bf16.mxu1 %vm12556_vm5, %v17076_v6 }
 0xc8d   :  { %v6984_v2 = vpop.f32.mrb[181].mxu0  ;;  %10916 = vmatprep.mubr.msk.bf16.mxu0 %vm12556_vm5, %v17076_v6  ;;  %v15921_v22 = vadd.f32 %v10852_v53, %v15786_v54 }
 0xc8e   :  { %v10853_v27 = vpop.f32.mrb[182].mxu0  ;;  %v15927_v33 = vadd.f32 %v15786_v54, %v6984_v2 }
 0xc8f   :  { %v15924_v42 = vadd.f32 %v10853_v27, %v15786_v54  ;;  %v6987_v55 = vpop.f32.mrb[183].mxu0 }
 0xc90   :  { %v15930_v39 = vadd.f32 %v15786_v54, %v6987_v55 }
 0xc91   :  { %v7012_v44 = vpack.c.bf16 %v15924_v42, %v15921_v22 }
 0xc92   :  { %v7011_v7 = vpack.c.bf16 %v15930_v39, %v15927_v33 }
 0xc93   :  { %10921 = vmatpush3.bf16.msra.mxu1 %v7012_v44 }
 0xc94   :  { %10915 = vmatpush3.bf16.msra.mxu0 %v7011_v7  ;;  %10932 = vmatprep.subr.bf16.mxu1 %v17076_v6 }
 0xc95   :  { %10926 = vmatprep.subr.bf16.mxu0 %v17076_v6 }
 0xc96   :  { %10923 = vmatmul.mubr.msk.bf16.vlgmr.msra.gmra.mrb[200].mxu1 %vm1803_vm6, %v15799_v18 }
 0xc97   :  { %10917 = vmatmul.mubr.msk.bf16.vlgmr.msra.gmra.mrb[200].mxu0 %vm1803_vm6, %v15799_v18  ;;  %10934 = vmatprep.mubr.msk.bf16.mxu1 %vm12556_vm5, %v17076_v6 }
 0xc98   :  { %10928 = vmatprep.mubr.msk.bf16.mxu0 %vm12556_vm5, %v17076_v6 }
 0xd22   :  { %v7055_v8 = vpop.f32.mrb[176].mxu1 }
 0xd23   :  { %v10858_v17 = vpop.f32.mrb[177].mxu1 }
 0xd24   :  { %v7058_v54 = vpop.f32.mrb[178].mxu1 }
 0xd25   :  { %v11789_v35 = vpack.i.bf16 %v7058_v54, %v7055_v8  ;;  %v7513_v29 = vpack.c.bf16 %v7058_v54, %v7055_v8  ;;  %v10859_v3 = vpop.f32.mrb[179].mxu1 }
 0xd27   :  { %11790 = vrot.lane.b32.xlu0 %v11789_v35, %s12548_s7  ;;  %10927 = vmatpush3.bf16.msra.mxu0 %v7513_v29 }
 0xd28   :  { %10938 = vmatprep.subr.bf16.mxu0 %v17076_v6 }
 0xd2a   :  { %v7096_v10 = vpop.f32.mrb[180].mxu1  ;;  %v15948_v30 = vpop.f32.mrb[184].mxu0  ;;  %10929 = vmatmul.mubr.msk.bf16.vlgmr.msra.gmra.mrb[204].mxu0 %vm1803_vm6, %v15799_v18 }
 0xd2b   :  { %v10864_v9 = vpop.f32.mrb[181].mxu1  ;;  %v10870_v61 = vpop.f32.mrb[185].mxu0  ;;  %10940 = vmatprep.mubr.msk.bf16.mxu0 %vm12556_vm5, %v17076_v6 }
 0xd2c   :  { %v7099_v16 = vpop.f32.mrb[182].mxu1  ;;  %v15954_v41 = vpop.f32.mrb[186].mxu0 }
 0xd2d   :  { %v11794_v60 = vpack.i.bf16 %v7099_v16, %v7096_v10  ;;  %v7514_v47 = vpack.c.bf16 %v7099_v16, %v7096_v10  ;;  %v11804_v32 = vpack.i.bf16 %v15954_v41, %v15948_v30  ;;  %v7515_v21 = vpack.c.bf16 %v15954_v41, %v15948_v30  ;;  %v10865_v24 = vpop.f32.mrb[183].mxu1  ;;  %v10871_v45 = vpop.f32.mrb[187].mxu0 }
 0xd2f   :  { %11795 = vrot.lane.b32.xlu1 %v11794_v60, %s12548_s7  ;;  %10933 = vmatpush3.bf16.msra.mxu1 %v7514_v47 }
 0xd30   :  { %10939 = vmatpush3.bf16.msra.mxu0 %v7515_v21  ;;  %10944 = vmatprep.subr.bf16.mxu1 %v17076_v6 }
 0xd31   :  { %10950 = vmatprep.subr.bf16.mxu0 %v17076_v6 }
 0xd32   :  { %v15963_v43 = vpop.f32.mrb[184].mxu1  ;;  %10935 = vmatmul.mubr.msk.bf16.vlgmr.msra.gmra.mrb[204].mxu1 %vm1803_vm6, %v15799_v18 }
 0xd33   :  { %10941 = vmatmul.mubr.msk.bf16.vlgmr.msra.gmra.mrb[208].mxu0 %vm1803_vm6, %v15799_v18  ;;  %v10876_v51 = vpop.f32.mrb[185].mxu1  ;;  %10946 = vmatprep.mubr.msk.bf16.mxu1 %vm12556_vm5, %v17076_v6 }
 0xd34   :  { %v15971_v40 = vpop.f32.mrb[186].mxu1  ;;  %10952 = vmatprep.mubr.msk.bf16.mxu0 %vm12556_vm5, %v17076_v6 }
 0xd35   :  { %v11814_v59 = vpack.i.bf16 %v15971_v40, %v15963_v43  ;;  %v7516_v50 = vpack.c.bf16 %v15971_v40, %v15963_v43  ;;  %v10877_v0 = vpop.f32.mrb[187].mxu1 }
 0xd37   :  { %10945 = vmatpush3.bf16.msra.mxu1 %v7516_v50 }
 0xd38   :  { %10956 = vmatprep.subr.bf16.mxu1 %v17076_v6 }
 0xd3a   :  { %10947 = vmatmul.mubr.msk.bf16.vlgmr.msra.gmra.mrb[208].mxu1 %vm1803_vm6, %v15799_v18 }
 0xd3b   :  { %10958 = vmatprep.mubr.msk.bf16.mxu1 %vm12556_vm5, %v17076_v6 }
 0xd42   :  { %v15984_v19 = vpop.f32.mrb[188].mxu1 }
 0xd43   :  { %v15986_v23 = vpop.f32.mrb[188].mxu0  ;;  %v10888_v14 = vpop.f32.mrb[189].mxu1 }
 0xd44   :  { %v10882_v52 = vpop.f32.mrb[189].mxu0  ;;  %v15988_v15 = vpop.f32.mrb[190].mxu1 }
 0xd45   :  { %v7518_v57 = vpack.c.bf16 %v15988_v15, %v15984_v19  ;;  %v15994_v38 = vpop.f32.mrb[190].mxu0  ;;  %v10889_v53 = vpop.f32.mrb[191].mxu1 }
 0xd46   :  { %v11824_v2 = vpack.i.bf16 %v15994_v38, %v15986_v23  ;;  %v7517_v27 = vpack.c.bf16 %v15994_v38, %v15986_v23  ;;  %v10883_v55 = vpop.f32.mrb[191].mxu0 }
 0xd47   :  { %10957 = vmatpush3.bf16.msra.mxu1 %v7518_v57 }
 0xd48   :  { %10951 = vmatpush3.bf16.msra.mxu0 %v7517_v27  ;;  %10968 = vmatprep.subr.bf16.mxu1 %v17076_v6 }
 0xd49   :  { %10962 = vmatprep.subr.bf16.mxu0 %v17076_v6 }
 0xd4a   :  { %10959 = vmatmul.mubr.msk.bf16.vlgmr.msra.gmra.mrb[212].mxu1 %vm1803_vm6, %v15799_v18 }
 0xd4b   :  { %10953 = vmatmul.mubr.msk.bf16.vlgmr.msra.gmra.mrb[212].mxu0 %vm1803_vm6, %v15799_v18  ;;  %10970 = vmatprep.mubr.msk.bf16.mxu1 %vm12556_vm5, %v17076_v6 }
 0xd4c   :  { %10964 = vmatprep.mubr.msk.bf16.mxu0 %vm12556_vm5, %v17076_v6 }
 0xd56   :  { %v16010_v44 = vpop.f32.mrb[192].mxu1 }
 0xd57   :  { %v16012_v7 = vpop.f32.mrb[192].mxu0  ;;  %v10900_v8 = vpop.f32.mrb[193].mxu1 }
 0xd58   :  { %v10894_v17 = vpop.f32.mrb[193].mxu0  ;;  %v16014_v54 = vpop.f32.mrb[194].mxu1 }
 0xd59   :  { %v7520_v29 = vpack.c.bf16 %v16014_v54, %v16010_v44  ;;  %v16020_v3 = vpop.f32.mrb[194].mxu0  ;;  %v10901_v10 = vpop.f32.mrb[195].mxu1 }
 0xd5a   :  { %v7519_v61 = vpack.c.bf16 %v16020_v3, %v16012_v7  ;;  %v10895_v16 = vpop.f32.mrb[195].mxu0 }
 0xd5b   :  { %10969 = vmatpush3.bf16.msra.mxu1 %v7520_v29 }
 0xd5c   :  { %10963 = vmatpush3.bf16.msra.mxu0 %v7519_v61  ;;  %10980 = vmatprep.subr.bf16.mxu1 %v17076_v6 }
 0xd5d   :  { %10974 = vmatprep.subr.bf16.mxu0 %v17076_v6 }
 0xd5e   :  { %v16028_v60 = vpop.f32.mrb[196].mxu1  ;;  %10971 = vmatmul.mubr.msk.bf16.vlgmr.msra.gmra.mrb[216].mxu1 %vm1803_vm6, %v15799_v18 }
 0xd5f   :  { %v16032_v47 = vpop.f32.mrb[196].mxu0  ;;  %v10912_v21 = vpop.f32.mrb[197].mxu1  ;;  %10965 = vmatmul.mubr.msk.bf16.vlgmr.msra.gmra.mrb[216].mxu0 %vm1803_vm6, %v15799_v18  ;;  %10982 = vmatprep.mubr.msk.bf16.mxu1 %vm12556_vm5, %v17076_v6 }
 0xd60   :  { %v10906_v24 = vpop.f32.mrb[197].mxu0  ;;  %v16038_v45 = vpop.f32.mrb[198].mxu1  ;;  %10976 = vmatprep.mubr.msk.bf16.mxu0 %vm12556_vm5, %v17076_v6 }
 0xd61   :  { %v7522_v50 = vpack.c.bf16 %v16038_v45, %v16028_v60  ;;  %v16046_v0 = vpop.f32.mrb[198].mxu0  ;;  %v10913_v14 = vpop.f32.mrb[199].mxu1 }
 0xd62   :  { %v7521_v57 = vpack.c.bf16 %v16046_v0, %v16032_v47  ;;  %v10907_v53 = vpop.f32.mrb[199].mxu0 }
 0xd63   :  { %10981 = vmatpush3.bf16.msra.mxu1 %v7522_v50 }
 0xd64   :  { %10975 = vmatpush3.bf16.msra.mxu0 %v7521_v57  ;;  %10992 = vmatprep.subr.bf16.mxu1 %v17076_v6 }
 0xd65   :  { %10986 = vmatprep.subr.bf16.mxu0 %v17076_v6 }
 0xd66   :  { %10983 = vmatmul.mubr.msk.bf16.vlgmr.msra.gmra.mrb[220].mxu1 %vm1803_vm6, %v15799_v18 }
 0xd67   :  { %10977 = vmatmul.mubr.msk.bf16.vlgmr.msra.gmra.mrb[220].mxu0 %vm1803_vm6, %v15799_v18  ;;  %10994 = vmatprep.mubr.msk.bf16.mxu1 %vm12556_vm5, %v17076_v6 }
 0xd68   :  { %10988 = vmatprep.mubr.msk.bf16.mxu0 %vm12556_vm5, %v17076_v6 }
 0xd69   :  { %v16062_v27 = vpop.f32.mrb[200].mxu1 }
 0xd6a   :  { %v16064_v55 = vpop.f32.mrb[200].mxu0  ;;  %v10924_v8 = vpop.f32.mrb[201].mxu1 }
 0xd6b   :  { %v10918_v17 = vpop.f32.mrb[201].mxu0  ;;  %v16066_v29 = vpop.f32.mrb[202].mxu1 }
 0xd6c   :  { %v7524_v61 = vpack.c.bf16 %v16066_v29, %v16062_v27  ;;  %v16072_v16 = vpop.f32.mrb[202].mxu0  ;;  %v10925_v21 = vpop.f32.mrb[203].mxu1 }
 0xd6d   :  { %v7523_v24 = vpack.c.bf16 %v16072_v16, %v16064_v55  ;;  %v10919_v50 = vpop.f32.mrb[203].mxu0 }
 0xd6e   :  { %10993 = vmatpush3.bf16.msra.mxu1 %v7524_v61  ;;  %v12026_v50 = vld [vmem:[%s9909_s26] sm:$0x3f]  }
 0xd6f   :  { %10987 = vmatpush3.bf16.msra.mxu0 %v7523_v24 }
 0xd70   :  { %11068 = vmatprep.subr.msk.bf16.mxu0 %vm654_vm0, %v12026_v50 }
 0xd71   :  { %10995 = vmatmul.mubr.msk.bf16.vlgmr.msra.gmra.mrb[224].mxu1 %vm1803_vm6, %v15799_v18 }
 0xd72   :  { %10989 = vmatmul.mubr.msk.bf16.vlgmr.msra.gmra.mrb[224].mxu0 %vm1803_vm6, %v15799_v18  ;;  %v8368_v18 = vsel %vm654_vm0, %v12026_v50, 0 }
 0xd73   :  { %10999 = vmatpush3.bf16.msra.mxu0 %v8368_v18 }
 0xdfd   :  { %v7559_v14 = vpop.f32.mrb[204].mxu0 }
 0xdfe   :  { %v8017_v57 = vmul.f32 2.0, %v7559_v14  ;;  %v10930_v53 = vpop.f32.mrb[205].mxu0 }
 0xdff   :  { %v7562_v8 = vpop.f32.mrb[206].mxu0 }
 0xe00   :  { %v8018_v17 = vmul.f32 2.0, %v7562_v8  ;;  %v10931_v21 = vpop.f32.mrb[207].mxu0  ;;  %v8041_v61 = vsub.f32 %v8017_v57, %v15789_v36 }
 0xe02   :  { %v8042_v24 = vsub.f32 %v8018_v17, %v15792_v37 }
 0xe04   :  { %v11799_v6 = vpack.i.bf16 %v8042_v24, %v8041_v61 }
 0xe05   :  { %v7600_v10 = vpop.f32.mrb[204].mxu1 }
 0xe06   :  { %v8019_v52 = vmul.f32 2.0, %v7600_v10  ;;  %v7641_v51 = vpop.f32.mrb[208].mxu0  ;;  %v10936_v9 = vpop.f32.mrb[205].mxu1  ;;  %11800 = vrot.lane.b32.xlu0 %v11799_v6, %s12547_s6 }
 0xe07   :  { %v8021_v14 = vmul.f32 2.0, %v7641_v51  ;;  %v10942_v53 = vpop.f32.mrb[209].mxu0  ;;  %v7603_v8 = vpop.f32.mrb[206].mxu1 }
 0xe08   :  { %v8020_v21 = vmul.f32 2.0, %v7603_v8  ;;  %v7644_v57 = vpop.f32.mrb[210].mxu0  ;;  %v10937_v35 = vpop.f32.mrb[207].mxu1  ;;  %v8043_v61 = vsub.f32 %v8019_v52, %v15802_v26 }
 0xe09   :  { %v8022_v17 = vmul.f32 2.0, %v7644_v57  ;;  %v10943_v46 = vpop.f32.mrb[211].mxu0  ;;  %v8045_v9 = vsub.f32 %v8021_v14, %v15810_v12 }
 0xe0a   :  { %v8044_v24 = vsub.f32 %v8020_v21, %v15795_v13  ;;  %11805 = vrot.lane.b32.xlu0 %v11804_v32, %s12548_s7  ;;  %v17077_v32 = vpack.i.bf16 %v15988_v15, %v15984_v19 }
 0xe0b   :  { %v8046_v51 = vsub.f32 %v8022_v17, %v15813_v58 }
 0xe0c   :  { %v11809_v10 = vpack.i.bf16 %v8044_v24, %v8043_v61 }
 0xe0d   :  { %v11819_v6 = vpack.i.bf16 %v8046_v51, %v8045_v9  ;;  %v7682_v50 = vpop.f32.mrb[208].mxu1 }
 0xe0e   :  { %v8023_v18 = vmul.f32 2.0, %v7682_v50  ;;  %11810 = vrot.lane.b32.xlu1 %v11809_v10, %s12547_s6  ;;  %v10948_v46 = vpop.f32.mrb[209].mxu1  ;;  %v17078_v50 = vpack.i.bf16 %v16014_v54, %v16010_v44 }
 0xe0f   :  { %11820 = vrot.lane.b32.xlu0 %v11819_v6, %s12547_s6  ;;  %v7685_v35 = vpop.f32.mrb[210].mxu1 }
 0xe10   :  { %v8024_v52 = vmul.f32 2.0, %v7685_v35  ;;  %v10949_v53 = vpop.f32.mrb[211].mxu1  ;;  %v8047_v8 = vsub.f32 %v8023_v18, %v15824_v63  ;;  %v17079_v18 = vpack.i.bf16 %v16020_v3, %v16012_v7 }
 0xe12   :  { %v8048_v30 = vsub.f32 %v8024_v52, %v15819_v31  ;;  %11815 = vrot.lane.b32.xlu1 %v11814_v59, %s12548_s7 }
 0xe13   :  { %11825 = vrot.lane.b32.xlu0 %v11824_v2, %s12548_s7 }
 0xe14   :  { %v11829_v41 = vpack.i.bf16 %v8048_v30, %v8047_v8 }
 0xe16   :  { %11830 = vrot.lane.b32.xlu1 %v11829_v41, %s12547_s6 }
 0xe1a   :  { %11835 = vrot.lane.b32.xlu1 %v17077_v32, %s12548_s7 }
 0xe1d   :  { %v7764_v14 = vpop.f32.mrb[212].mxu1 }
 0xe1e   :  { %v8027_v21 = vmul.f32 2.0, %v7764_v14  ;;  %v7723_v57 = vpop.f32.mrb[212].mxu0  ;;  %v10960_v17 = vpop.f32.mrb[213].mxu1 }
 0xe1f   :  { %v8025_v61 = vmul.f32 2.0, %v7723_v57  ;;  %v10954_v43 = vpop.f32.mrb[213].mxu0  ;;  %v7767_v40 = vpop.f32.mrb[214].mxu1 }
 0xe20   :  { %v8028_v59 = vmul.f32 2.0, %v7767_v40  ;;  %v7726_v24 = vpop.f32.mrb[214].mxu0  ;;  %v10961_v9 = vpop.f32.mrb[215].mxu1  ;;  %v8051_v2 = vsub.f32 %v8027_v21, %v15843_v4 }
 0xe21   :  { %v8026_v23 = vmul.f32 2.0, %v7726_v24  ;;  %v10955_v38 = vpop.f32.mrb[215].mxu0  ;;  %v8049_v10 = vsub.f32 %v8025_v61, %v15849_v34 }
 0xe22   :  { %v8052_v51 = vsub.f32 %v8028_v59, %v15846_v48 }
 0xe23   :  { %v8050_v19 = vsub.f32 %v8026_v23, %v15852_v1 }
 0xe24   :  { %v11849_v15 = vpack.i.bf16 %v8052_v51, %v8051_v2 }
 0xe25   :  { %v11839_v6 = vpack.i.bf16 %v8050_v19, %v8049_v10 }
 0xe26   :  { %11850 = vrot.lane.b32.xlu1 %v11849_v15, %s12547_s6 }
 0xe27   :  { %11840 = vrot.lane.b32.xlu0 %v11839_v6, %s12547_s6 }
 0xe2a   :  { %11855 = vrot.lane.b32.xlu1 %v17078_v50, %s12548_s7 }
 0xe2b   :  { %11845 = vrot.lane.b32.xlu0 %v17079_v18, %s12548_s7 }
 0xe31   :  { %v7846_v46 = vpop.f32.mrb[216].mxu1 }
 0xe32   :  { %v8031_v35 = vmul.f32 2.0, %v7846_v46  ;;  %v7805_v52 = vpop.f32.mrb[216].mxu0  ;;  %v10972_v53 = vpop.f32.mrb[217].mxu1  ;;  %v17080_v46 = vpack.i.bf16 %v16038_v45, %v16028_v60 }
 0xe33   :  { %v8029_v8 = vmul.f32 2.0, %v7805_v52  ;;  %v10966_v30 = vpop.f32.mrb[217].mxu0  ;;  %v7849_v41 = vpop.f32.mrb[218].mxu1  ;;  %v17081_v53 = vpack.i.bf16 %v16046_v0, %v16032_v47  ;;  %v17083_v0 = vpack.i.bf16 %v16072_v16, %v16064_v55 }
 0xe34   :  { %v8032_v32 = vmul.f32 2.0, %v7849_v41  ;;  %v7808_v14 = vpop.f32.mrb[218].mxu0  ;;  %v10973_v21 = vpop.f32.mrb[219].mxu1  ;;  %v8055_v44 = vsub.f32 %v8031_v35, %v15869_v11 }
 0xe35   :  { %v8030_v57 = vmul.f32 2.0, %v7808_v14  ;;  %v10967_v17 = vpop.f32.mrb[219].mxu0  ;;  %v8053_v61 = vsub.f32 %v8029_v8, %v15875_v56  ;;  %v17082_v21 = vpack.i.bf16 %v16066_v29, %v16062_v27  ;;  %v11791_v55 = vpop.permute.xlu0 %11790 }
 0xe36   :  { %v8056_v54 = vsub.f32 %v8032_v32, %v15872_v62  ;;  %v11793_v16 = vunpack.i.h.bf16 %v11791_v55 }
 0xe37   :  { %v8054_v7 = vsub.f32 %v8030_v57, %v15878_v49 }
 0xe38   :  { %v11859_v3 = vpack.i.bf16 %v8056_v54, %v8055_v44 }
 0xe39   :  { %v11864_v43 = vpack.i.bf16 %v8054_v7, %v8053_v61  ;;  %v7928_v40 = vpop.f32.mrb[220].mxu1 }
 0xe3a   :  { %v8035_v59 = vmul.f32 2.0, %v7928_v40  ;;  %11860 = vrot.lane.b32.xlu1 %v11859_v3, %s12547_s6  ;;  %v7887_v24 = vpop.f32.mrb[220].mxu0  ;;  %v10984_v9 = vpop.f32.mrb[221].mxu1 }
 0xe3b   :  { %v8033_v23 = vmul.f32 2.0, %v7887_v24  ;;  %v7931_v38 = vpop.f32.mrb[222].mxu1  ;;  %11865 = vrot.lane.b32.xlu0 %v11864_v43, %s12547_s6  ;;  %v10978_v2 = vpop.f32.mrb[221].mxu0  ;;  %v11792_v24 = vunpack.i.l.bf16 %v11791_v55 }
 0xe3c   :  { %v8036_v51 = vmul.f32 2.0, %v7931_v38  ;;  %v7890_v10 = vpop.f32.mrb[222].mxu0  ;;  %v10985_v19 = vpop.f32.mrb[223].mxu1  ;;  %v8059_v50 = vsub.f32 %v8035_v59, %v15889_v20  ;;  %v8258_v2 = vsel %vm477_vm1, %v15792_v37, %v11793_v16 }
 0xe3d   :  { %v8034_v15 = vmul.f32 2.0, %v7890_v10  ;;  %v10979_v6 = vpop.f32.mrb[223].mxu0  ;;  %v8057_v35 = vsub.f32 %v8033_v23, %v15899_v28  ;;  %v11796_v10 = vpop.permute.xlu1 %11795 }
 0xe3e   :  { %v8060_v18 = vsub.f32 %v8036_v51, %v15892_v5  ;;  %11875 = vrot.lane.b32.xlu1 %v17080_v46, %s12548_s7  ;;  %v8257_v51 = vsel %vm477_vm1, %v15789_v36, %v11792_v24  ;;  %v11797_v46 = vunpack.i.l.bf16 %v11796_v10 }
 0xe3f   :  { %v8058_v52 = vsub.f32 %v8034_v15, %v15902_v25  ;;  %11870 = vrot.lane.b32.xlu0 %v17081_v53, %s12548_s7 }
 0xe40   :  { %v11879_v8 = vpack.i.bf16 %v8060_v18, %v8059_v50  ;;  %v11798_v18 = vunpack.i.h.bf16 %v11796_v10 }
 0xe41   :  { %v11884_v30 = vpack.i.bf16 %v8058_v52, %v8057_v35 }
 0xe42   :  { %11880 = vrot.lane.b32.xlu1 %v11879_v8, %s12547_s6 }
 0xe43   :  { %11885 = vrot.lane.b32.xlu0 %v11884_v30, %s12547_s6 }
 0xe44   :  { %v8010_v41 = vpop.f32.mrb[224].mxu1 }
 0xe45   :  { %v8039_v32 = vmul.f32 2.0, %v8010_v41  ;;  %v7969_v14 = vpop.f32.mrb[224].mxu0  ;;  %v10996_v60 = vpop.f32.mrb[225].mxu1 }
 0xe46   :  { %v8037_v45 = vmul.f32 2.0, %v7969_v14  ;;  %11895 = vrot.lane.b32.xlu1 %v17082_v21, %s12548_s7  ;;  %v10990_v57 = vpop.f32.mrb[225].mxu0  ;;  %v8013_v17 = vpop.f32.mrb[226].mxu1  ;;  %v8259_v14 = vsel %vm477_vm1, %v15802_v26, %v11797_v46 }
 0xe47   :  { %v8040_v47 = vmul.f32 2.0, %v8013_v17  ;;  %11890 = vrot.lane.b32.xlu0 %v17083_v0, %s12548_s7  ;;  %v7972_v44 = vpop.f32.mrb[226].mxu0  ;;  %v10997_v54 = vpop.f32.mrb[227].mxu1  ;;  %v8063_v3 = vsub.f32 %v8039_v32, %v15921_v22  ;;  %v8260_v32 = vsel %vm477_vm1, %v15795_v13, %v11798_v18 }
 0xe48   :  { %v8038_v61 = vmul.f32 2.0, %v7972_v44  ;;  %v10991_v7 = vpop.f32.mrb[227].mxu0  ;;  %v8061_v40 = vsub.f32 %v8037_v45, %v15927_v33 }
 0xe49   :  { %v8064_v43 = vsub.f32 %v8040_v47, %v15924_v42 }
 0xe4a   :  { %v8062_v27 = vsub.f32 %v8038_v61, %v15930_v39 }
 0xe4b   :  { %v11904_v29 = vpack.i.bf16 %v8064_v43, %v8063_v3 }
 0xe4c   :  { %v11899_v59 = vpack.i.bf16 %v8062_v27, %v8061_v40 }
 0xe4d   :  { %11905 = vrot.lane.b32.xlu1 %v11904_v29, %s12547_s6 }
 0xe4e   :  { %11900 = vrot.lane.b32.xlu0 %v11899_v59, %s12547_s6 }
 0xe78   :  { %v11801_v9 = vpop.permute.xlu0 %11800 }
 0xe79   :  { %v11803_v23 = vunpack.i.h.bf16 %v11801_v9  ;;  %v11802_v38 = vunpack.i.l.bf16 %v11801_v9 }
 0xe7b   :  { %v8281_v19 = vsel %vm518_vm2, %v8257_v51, %v11802_v38  ;;  %v8282_v15 = vsel %vm518_vm2, %v8258_v2, %v11803_v23 }
 0xe7c   :  { %v11806_v6 = vpop.permute.xlu0 %11805  ;;  %v8307_v50 = vpack.c.bf16 %v8282_v15, %v8281_v19 }
 0xe7d   :  { %v11808_v35 = vunpack.i.h.bf16 %v11806_v6  ;;  %v11807_v52 = vunpack.i.l.bf16 %v11806_v6 }
 0xe7e   :  { %11000 = vmatprep.mubr.msk.bf16.mxu0 %vm593_vm3, %v8307_v50 }
 0xe7f   :  { %v8262_v21 = vsel %vm477_vm1, %v15813_v58, %v11808_v35  ;;  %v8261_v57 = vsel %vm477_vm1, %v15810_v12, %v11807_v52 }
 0xe80   :  { %v11811_v53 = vpop.permute.xlu1 %11810 }
 0xe81   :  { %v11813_v8 = vunpack.i.h.bf16 %v11811_v53  ;;  %v11812_v30 = vunpack.i.l.bf16 %v11811_v53  ;;  %v11821_v41 = vpop.permute.xlu0 %11820 }
 0xe82   :  { %v11823_v60 = vunpack.i.h.bf16 %v11821_v41  ;;  %v11822_v45 = vunpack.i.l.bf16 %v11821_v41 }
 0xe83   :  { %v8284_v17 = vsel %vm518_vm2, %v8260_v32, %v11813_v8  ;;  %v8283_v47 = vsel %vm518_vm2, %v8259_v14, %v11812_v30 }
 0xe84   :  { %v8308_v0 = vpack.c.bf16 %v8284_v17, %v8283_v47  ;;  %v8285_v44 = vsel %vm518_vm2, %v8261_v57, %v11822_v45  ;;  %v8286_v54 = vsel %vm518_vm2, %v8262_v21, %v11823_v60  ;;  %v11816_v61 = vpop.permute.xlu1 %11815 }
 0xe85   :  { %v8309_v7 = vpack.c.bf16 %v8286_v54, %v8285_v44  ;;  %v11818_v3 = vunpack.i.h.bf16 %v11816_v61  ;;  %v11817_v43 = vunpack.i.l.bf16 %v11816_v61  ;;  %v11826_v38 = vpop.permute.xlu0 %11825 }
 0xe86   :  { %11001 = vmatmul.mubr.msk.bf16.vlgmr.msra.gmra.mrb[228].mxu0 %vm593_vm3, %v8308_v0  ;;  %v11828_v10 = vunpack.i.h.bf16 %v11826_v38  ;;  %v11827_v19 = vunpack.i.l.bf16 %v11826_v38 }
 0xe87   :  { %11004 = vmatprep.mubr.msk.bf16.mxu0 %vm593_vm3, %v8309_v7  ;;  %v8264_v59 = vsel %vm477_vm1, %v15819_v31, %v11818_v3  ;;  %v8263_v55 = vsel %vm477_vm1, %v15824_v63, %v11817_v43 }
 0xe88   :  { %v11831_v40 = vpop.permute.xlu1 %11830  ;;  %v8266_v8 = vsel %vm477_vm1, %v15852_v1, %v11828_v10  ;;  %v8265_v30 = vsel %vm477_vm1, %v15849_v34, %v11827_v19 }
 0xe89   :  { %v11833_v27 = vunpack.i.h.bf16 %v11831_v40  ;;  %v11832_v29 = vunpack.i.l.bf16 %v11831_v40 }
 0xe8b   :  { %v8288_v16 = vsel %vm518_vm2, %v8264_v59, %v11833_v27  ;;  %v8287_v24 = vsel %vm518_vm2, %v8263_v55, %v11832_v29 }
 0xe8c   :  { %v8310_v9 = vpack.c.bf16 %v8288_v16, %v8287_v24  ;;  %v11836_v23 = vpop.permute.xlu1 %11835 }
 0xe8d   :  { %v11838_v2 = vunpack.i.h.bf16 %v11836_v23  ;;  %v11837_v51 = vunpack.i.l.bf16 %v11836_v23 }
 0xe8e   :  { %11005 = vmatmul.mubr.msk.bf16.gmra.mrb[232].mxu0 %vm593_vm3, %v8310_v9 }
 0xe8f   :  { %v8268_v46 = vsel %vm477_vm1, %v15846_v48, %v11838_v2  ;;  %v8267_v35 = vsel %vm477_vm1, %v15843_v4, %v11837_v51 }
 0xe98   :  { %v11851_v15 = vpop.permute.xlu1 %11850 }
 0xe99   :  { %v11853_v6 = vunpack.i.h.bf16 %v11851_v15  ;;  %v11852_v50 = vunpack.i.l.bf16 %v11851_v15  ;;  %v11841_v18 = vpop.permute.xlu0 %11840 }
 0xe9a   :  { %v11843_v52 = vunpack.i.h.bf16 %v11841_v18  ;;  %v11842_v53 = vunpack.i.l.bf16 %v11841_v18 }
 0xe9b   :  { %v8292_v41 = vsel %vm518_vm2, %v8268_v46, %v11853_v6  ;;  %v8291_v32 = vsel %vm518_vm2, %v8267_v35, %v11852_v50 }
 0xe9c   :  { %v8289_v14 = vsel %vm518_vm2, %v8265_v30, %v11842_v53  ;;  %v8290_v60 = vsel %vm518_vm2, %v8266_v8, %v11843_v52  ;;  %v8312_v21 = vpack.c.bf16 %v8292_v41, %v8291_v32  ;;  %v11856_v57 = vpop.permute.xlu1 %11855 }
 0xe9d   :  { %v8311_v45 = vpack.c.bf16 %v8290_v60, %v8289_v14  ;;  %v11846_v17 = vpop.permute.xlu0 %11845  ;;  %v11858_v47 = vunpack.i.h.bf16 %v11856_v57  ;;  %v11857_v0 = vunpack.i.l.bf16 %v11856_v57 }
 0xe9e   :  { %v11848_v44 = vunpack.i.h.bf16 %v11846_v17  ;;  %v11847_v54 = vunpack.i.l.bf16 %v11846_v17 }
 0xe9f   :  { %11008 = vmatprep.mubr.msk.bf16.mxu0 %vm593_vm3, %v8311_v45  ;;  %v8272_v40 = vsel %vm477_vm1, %v15872_v62, %v11858_v47  ;;  %v8271_v27 = vsel %vm477_vm1, %v15869_v11, %v11857_v0 }
 0xea0   :  { %11009 = vmatmul.mubr.msk.bf16.gmra.mrb[236].mxu0 %vm593_vm3, %v8312_v21  ;;  %v8270_v55 = vsel %vm477_vm1, %v15878_v49, %v11848_v44  ;;  %v8269_v16 = vsel %vm477_vm1, %v15875_v56, %v11847_v54 }
 0xeac   :  { %v11861_v61 = vpop.permute.xlu1 %11860 }
 0xead   :  { %v11863_v7 = vunpack.i.h.bf16 %v11861_v61  ;;  %v11862_v3 = vunpack.i.l.bf16 %v11861_v61  ;;  %v11866_v43 = vpop.permute.xlu0 %11865 }
 0xeae   :  { %v11868_v29 = vunpack.i.h.bf16 %v11866_v43  ;;  %v11867_v59 = vunpack.i.l.bf16 %v11866_v43 }
 0xeaf   :  { %v8296_v24 = vsel %vm518_vm2, %v8272_v40, %v11863_v7  ;;  %v8295_v9 = vsel %vm518_vm2, %v8271_v27, %v11862_v3 }
 0xeb0   :  { %v8293_v23 = vsel %vm518_vm2, %v8269_v16, %v11867_v59  ;;  %v8294_v38 = vsel %vm518_vm2, %v8270_v55, %v11868_v29  ;;  %v11876_v2 = vpop.permute.xlu1 %11875  ;;  %v8314_v6 = vpack.c.bf16 %v8296_v24, %v8295_v9 }
 0xeb1   :  { %v11871_v51 = vpop.permute.xlu0 %11870  ;;  %v8313_v10 = vpack.c.bf16 %v8294_v38, %v8293_v23  ;;  %v11878_v19 = vunpack.i.h.bf16 %v11876_v2  ;;  %v11877_v15 = vunpack.i.l.bf16 %v11876_v2 }
 0xeb2   :  { %v11873_v50 = vunpack.i.h.bf16 %v11871_v51  ;;  %v11872_v18 = vunpack.i.l.bf16 %v11871_v51 }
 0xeb3   :  { %11012 = vmatprep.mubr.msk.bf16.mxu0 %vm593_vm3, %v8313_v10  ;;  %v8276_v8 = vsel %vm477_vm1, %v15892_v5, %v11878_v19  ;;  %v8275_v30 = vsel %vm477_vm1, %v15889_v20, %v11877_v15 }
 0xeb4   :  { %v11881_v46 = vpop.permute.xlu1 %11880  ;;  %11013 = vmatmul.mubr.msk.bf16.gmra.mrb[240].mxu0 %vm593_vm3, %v8314_v6  ;;  %v8274_v14 = vsel %vm477_vm1, %v15902_v25, %v11873_v50  ;;  %v8273_v60 = vsel %vm477_vm1, %v15899_v28, %v11872_v18  ;;  %v16250_v50 = vld [vmem:[%s9910_s30] ss:$0 sm:$0xff] }
 0xeb5   :  { %v11883_v35 = vunpack.i.h.bf16 %v11881_v46  ;;  %v11882_v52 = vunpack.i.l.bf16 %v11881_v46  ;;  %v11886_v53 = vpop.permute.xlu0 %11885 }
 0xeb6   :  { %v11888_v41 = vunpack.i.h.bf16 %v11886_v53  ;;  %v11887_v32 = vunpack.i.l.bf16 %v11886_v53 }
 0xeb7   :  { %v8300_v45 = vsel %vm518_vm2, %v8276_v8, %v11883_v35  ;;  %v8299_v21 = vsel %vm518_vm2, %v8275_v30, %v11882_v52 }
 0xeb8   :  { %v8297_v57 = vsel %vm518_vm2, %v8273_v60, %v11887_v32  ;;  %v8298_v17 = vsel %vm518_vm2, %v8274_v14, %v11888_v41  ;;  %v11896_v0 = vpop.permute.xlu1 %11895  ;;  %v8316_v44 = vpack.c.bf16 %v8300_v45, %v8299_v21 }
 0xeb9   :  { %v8315_v47 = vpack.c.bf16 %v8298_v17, %v8297_v57  ;;  %v11891_v54 = vpop.permute.xlu0 %11890  ;;  %v11898_v61 = vunpack.i.h.bf16 %v11896_v0  ;;  %v11897_v7 = vunpack.i.l.bf16 %v11896_v0 }
 0xeba   :  { %v11893_v3 = vunpack.i.h.bf16 %v11891_v54  ;;  %v11892_v43 = vunpack.i.l.bf16 %v11891_v54 }
 0xebb   :  { %11016 = vmatprep.mubr.msk.bf16.mxu0 %vm593_vm3, %v8315_v47  ;;  %v8280_v55 = vsel %vm477_vm1, %v15924_v42, %v11898_v61  ;;  %v8279_v16 = vsel %vm477_vm1, %v15921_v22, %v11897_v7  ;;  %v12027_v7 = vld [vmem:[%s9915_s4] sm:$0x3f]  }
 0xebc   :  { %11017 = vmatmul.mubr.msk.bf16.gmra.mrb[244].mxu0 %vm593_vm3, %v8316_v44  ;;  %v8278_v23 = vsel %vm477_vm1, %v15930_v39, %v11893_v3  ;;  %v8277_v38 = vsel %vm477_vm1, %v15927_v33, %v11892_v43  ;;  %11069 = vmatprep.subr.msk.bf16.mxu1 %vm654_vm0, %v12027_v7 }
 0xebf   :  { %v11906_v40 = vpop.permute.xlu1 %11905 }
 0xec0   :  { %v11908_v27 = vunpack.i.h.bf16 %v11906_v40  ;;  %v11907_v29 = vunpack.i.l.bf16 %v11906_v40  ;;  %v11901_v59 = vpop.permute.xlu0 %11900 }
 0xec1   :  { %v11903_v24 = vunpack.i.h.bf16 %v11901_v59  ;;  %v11902_v9 = vunpack.i.l.bf16 %v11901_v59 }
 0xec2   :  { %v8304_v2 = vsel %vm518_vm2, %v8280_v55, %v11908_v27  ;;  %v8303_v51 = vsel %vm518_vm2, %v8279_v16, %v11907_v29 }
 0xec3   :  { %v8301_v10 = vsel %vm518_vm2, %v8277_v38, %v11902_v9  ;;  %v8302_v19 = vsel %vm518_vm2, %v8278_v23, %v11903_v24  ;;  %v8318_v6 = vpack.c.bf16 %v8304_v2, %v8303_v51 }
 0xec4   :  { %v8317_v15 = vpack.c.bf16 %v8302_v19, %v8301_v10 }
 0xec6   :  { %11020 = vmatprep.mubr.msk.bf16.mxu0 %vm593_vm3, %v8317_v15 }
 0xec7   :  { %11021 = vmatmul.mubr.msk.bf16.gmra.mrb[248].mxu0 %vm593_vm3, %v8318_v6 }
 0xf59   :  { %v11002_v18 = vpop.f32.mrb[228].mxu0 }
 0xf5a   :  { %v8413_v46 = vadd.f32 %v11002_v18, %v16250_v50  ;;  %v16253_v35 = vpop.f32.mrb[229].mxu0 }
 0xf5b   :  { %v11003_v52 = vpop.f32.mrb[230].mxu0 }
 0xf5c   :  { %v16256_v53 = vadd.f32 %v8413_v46, %v15802_v26  ;;  %v8416_v8 = vadd.f32 %v11003_v52, %v16250_v50  ;;  %v16259_v30 = vpop.f32.mrb[231].mxu0 }
 0xf5e   :  { %v16262_v41 = vadd.f32 %v8416_v8, %v15795_v13  ;;  %v8525_v32 = vmax.f32 %v16256_v53, 0.0 }
 0xf60   :  { %v8526_v14 = vmax.f32 %v16262_v41, 0.0 }
 0xf61   :  { %v11006_v60 = vpop.f32.mrb[232].mxu0 }
 0xf62   :  { %v11909_v26 = vpack.i.bf16 %v8526_v14, %v8525_v32  ;;  %v8420_v45 = vpop.f32.mrb[233].mxu0  ;;  %v8429_v47 = vadd.f32 %v11006_v60, %v16250_v50 }
 0xf63   :  { %v8421_v21 = vadd.f32 %v16250_v50, %v8420_v45  ;;  %v11007_v13 = vpop.f32.mrb[234].mxu0 }
 0xf64   :  { %v8432_v57 = vadd.f32 %v11007_v13, %v16250_v50  ;;  %11910 = vrot.lane.b32.xlu0 %v11909_v26, %s12548_s7  ;;  %v8423_v17 = vpop.f32.mrb[235].mxu0  ;;  %v16288_v3 = vadd.f32 %v8429_v47, %v15824_v63 }
 0xf65   :  { %v16278_v0 = vadd.f32 %v8421_v21, %v15810_v12  ;;  %v8424_v44 = vadd.f32 %v16250_v50, %v8423_v17  ;;  %v8742_v12 = vsel %vm654_vm0, %v12027_v7, 0 }
 0xf66   :  { %v16282_v54 = vadd.f32 %v8432_v57, %v15819_v31  ;;  %11025 = vmatpush3.bf16.msra.mxu1 %v8742_v12  ;;  %v8529_v31 = vmax.f32 %v16288_v3, 0.0 }
 0xf67   :  { %v16285_v61 = vadd.f32 %v8424_v44, %v15813_v58  ;;  %v8527_v43 = vmax.f32 %v16278_v0, 0.0 }
 0xf68   :  { %v8530_v27 = vmax.f32 %v16282_v54, 0.0 }
 0xf69   :  { %v8528_v40 = vmax.f32 %v16285_v61, 0.0 }
 0xf6a   :  { %v11929_v63 = vpack.i.bf16 %v8530_v27, %v8529_v31 }
 0xf6b   :  { %v11924_v58 = vpack.i.bf16 %v8528_v40, %v8527_v43 }
 0xf6d   :  { %11925 = vrot.lane.b32.xlu0 %v11924_v58, %s12547_s6  ;;  %11915 = vrot.lane.b32.xlu1 %v11924_v58, %s12548_s7 }
 0xf71   :  { %11930 = vrot.lane.b32.xlu0 %v11929_v63, %s12548_s7  ;;  %11920 = vrot.lane.b32.xlu1 %v11929_v63, %s12547_s6 }
 0xf73   :  { %v11010_v29 = vpop.f32.mrb[236].mxu0 }
 0xf74   :  { %v8445_v59 = vadd.f32 %v11010_v29, %v16250_v50  ;;  %v8436_v55 = vpop.f32.mrb[237].mxu0 }
 0xf75   :  { %v8437_v16 = vadd.f32 %v16250_v50, %v8436_v55  ;;  %v11011_v24 = vpop.f32.mrb[238].mxu0 }
 0xf76   :  { %v8509_v9 = vadd.f32 %v8445_v59, %v15843_v4  ;;  %v8448_v23 = vadd.f32 %v11011_v24, %v16250_v50  ;;  %v8439_v38 = vpop.f32.mrb[239].mxu0 }
 0xf77   :  { %v8507_v2 = vadd.f32 %v8437_v16, %v15849_v34  ;;  %v8440_v51 = vadd.f32 %v16250_v50, %v8439_v38 }
 0xf78   :  { %v8510_v10 = vadd.f32 %v8448_v23, %v15846_v48  ;;  %v8533_v15 = vmax.f32 %v8509_v9, 0.0 }
 0xf79   :  { %v8508_v19 = vadd.f32 %v8440_v51, %v15852_v1  ;;  %v8531_v18 = vmax.f32 %v8507_v2, 0.0 }
 0xf7a   :  { %v8534_v6 = vmax.f32 %v8510_v10, 0.0 }
 0xf7b   :  { %v8532_v46 = vmax.f32 %v8508_v19, 0.0 }
 0xf7c   :  { %v11939_v52 = vpack.i.bf16 %v8534_v6, %v8533_v15 }
 0xf7d   :  { %v11944_v8 = vpack.i.bf16 %v8532_v46, %v8531_v18 }
 0xf7f   :  { %11945 = vrot.lane.b32.xlu0 %v11944_v8, %s12547_s6  ;;  %11935 = vrot.lane.b32.xlu1 %v11944_v8, %s12548_s7 }
 0xf83   :  { %11940 = vrot.lane.b32.xlu1 %v11939_v52, %s12547_s6 }
 0xf87   :  { %v11014_v4 = vpop.f32.mrb[240].mxu0 }
 0xf88   :  { %v8461_v34 = vadd.f32 %v11014_v4, %v16250_v50  ;;  %v16320_v60 = vpop.f32.mrb[241].mxu0 }
 0xf89   :  { %v11015_v48 = vpop.f32.mrb[242].mxu0 }
 0xf8a   :  { %v16323_v1 = vadd.f32 %v8461_v34, %v15869_v11  ;;  %v8464_v26 = vadd.f32 %v11015_v48, %v16250_v50  ;;  %v16326_v45 = vpop.f32.mrb[243].mxu0 }
 0xf8b   :  { %v8456_v54 = vadd.f32 %v16250_v50, %v16326_v45 }
 0xf8c   :  { %v16329_v21 = vadd.f32 %v8464_v26, %v15872_v62  ;;  %v8537_v13 = vmax.f32 %v16323_v1, 0.0 }
 0xf8e   :  { %v8538_v57 = vmax.f32 %v16329_v21, 0.0 }
 0xf8f   :  { %v11018_v17 = vpop.f32.mrb[244].mxu0 }
 0xf90   :  { %v11949_v47 = vpack.i.bf16 %v8538_v57, %v8537_v13  ;;  %v8468_v44 = vpop.f32.mrb[245].mxu0  ;;  %v8477_v62 = vadd.f32 %v11018_v17, %v16250_v50 }
 0xf91   :  { %v8469_v11 = vadd.f32 %v16250_v50, %v8468_v44  ;;  %v11019_v7 = vpop.f32.mrb[246].mxu0 }
 0xf92   :  { %v8480_v12 = vadd.f32 %v11019_v7, %v16250_v50  ;;  %v8471_v58 = vpop.f32.mrb[247].mxu0  ;;  %11950 = vrot.lane.b32.xlu0 %v11949_v47, %s12548_s7  ;;  %v16352_v16 = vadd.f32 %v8477_v62, %v15889_v20 }
 0xf93   :  { %v16342_v63 = vadd.f32 %v8469_v11, %v15899_v28  ;;  %v8472_v29 = vadd.f32 %v16250_v50, %v8471_v58 }
 0xf94   :  { %v16346_v59 = vadd.f32 %v8480_v12, %v15892_v5  ;;  %v8541_v5 = vmax.f32 %v16352_v16, 0.0 }
 0xf95   :  { %v16349_v55 = vadd.f32 %v8472_v29, %v15902_v25  ;;  %v8539_v24 = vmax.f32 %v16342_v63, 0.0 }
 0xf96   :  { %v8542_v23 = vmax.f32 %v16346_v59, 0.0  ;;  %v16460_v59 = vld [vmem:[%s9916_s10] ss:$0 sm:$0xff]  ;;  %s9892_s10 = sld [smem:[%s16885_s0 + %s12547_s6]]  }
 0xf97   :  { %v8540_v9 = vmax.f32 %v16349_v55, 0.0 }
 0xf98   :  { %v11969_v6 = vpack.i.bf16 %v8542_v23, %v8541_v5 }
 0xf99   :  { %v11964_v28 = vpack.i.bf16 %v8540_v9, %v8539_v24 }
 0xf9a   :  { %v11022_v38 = vpop.f32.mrb[248].mxu0 }
 0xf9b   :  { %v8493_v25 = vadd.f32 %v11022_v38, %v16250_v50  ;;  %v8484_v2 = vpop.f32.mrb[249].mxu0  ;;  %11965 = vrot.lane.b32.xlu0 %v11964_v28, %s12547_s6  ;;  %11955 = vrot.lane.b32.xlu1 %v11964_v28, %s12548_s7 }
 0xf9c   :  { %v8485_v20 = vadd.f32 %v16250_v50, %v8484_v2  ;;  %v11023_v51 = vpop.f32.mrb[250].mxu0 }
 0xf9d   :  { %v8521_v10 = vadd.f32 %v8493_v25, %v15921_v22  ;;  %v8496_v19 = vadd.f32 %v11023_v51, %v16250_v50  ;;  %v8487_v15 = vpop.f32.mrb[251].mxu0 }
 0xf9e   :  { %v8519_v18 = vadd.f32 %v8485_v20, %v15927_v33  ;;  %v8488_v46 = vadd.f32 %v16250_v50, %v8487_v15  ;;  %v8408_v33 = vadd.f32 %v16250_v50, %v16259_v30 }
 0xf9f   :  { %v8522_v52 = vadd.f32 %v8496_v19, %v15924_v42  ;;  %11970 = vrot.lane.b32.xlu0 %v11969_v6, %s12548_s7  ;;  %11960 = vrot.lane.b32.xlu1 %v11969_v6, %s12547_s6  ;;  %v8545_v8 = vmax.f32 %v8521_v10, 0.0  ;;  %v8405_v42 = vadd.f32 %v16250_v50, %v16253_v35 }
 0xfa0   :  { %v8520_v22 = vadd.f32 %v8488_v46, %v15930_v39  ;;  %v8543_v34 = vmax.f32 %v8519_v18, 0.0  ;;  %v8500_v44 = vadd.f32 %v8408_v33, %v15792_v37 }
 0xfa1   :  { %v8546_v4 = vmax.f32 %v8522_v52, 0.0  ;;  %v8499_v39 = vadd.f32 %v8405_v42, %v15789_v36 }
 0xfa2   :  { %v8544_v48 = vmax.f32 %v8520_v22, 0.0  ;;  %v8524_v58 = vmax.f32 %v8500_v44, 0.0 }
 0xfa3   :  { %v11984_v26 = vpack.i.bf16 %v8546_v4, %v8545_v8  ;;  %v8523_v12 = vmax.f32 %v8499_v39, 0.0 }
 0xfa4   :  { %v11979_v17 = vpack.i.bf16 %v8544_v48, %v8543_v34 }
 0xfa6   :  { %11980 = vrot.lane.b32.xlu0 %v11979_v17, %s12547_s6  ;;  %11975 = vrot.lane.b32.xlu1 %v11979_v17, %s12548_s7 }
 0xfaa   :  { %11985 = vrot.lane.b32.xlu1 %v11984_v26, %s12547_s6 }
 0xfd6   :  { %v11911_v47 = vpop.permute.xlu0 %11910 }
 0xfd7   :  { %v11913_v11 = vunpack.i.h.bf16 %v11911_v47  ;;  %v11912_v7 = vunpack.i.l.bf16 %v11911_v47 }
 0xfd9   :  { %v8663_v25 = vsel %vm477_vm1, %v8523_v12, %v11912_v7  ;;  %v8664_v35 = vsel %vm477_vm1, %v8524_v58, %v11913_v11  ;;  %v8453_v12 = vadd.f32 %v16250_v50, %v16320_v60 }
 0xfdb   :  { %v8511_v3 = vadd.f32 %v8453_v12, %v15875_v56 }
 0xfdf   :  { %v11926_v62 = vpop.permute.xlu0 %11925  ;;  %v11916_v29 = vpop.permute.xlu1 %11915 }
 0xfe0   :  { %v11928_v28 = vunpack.i.h.bf16 %v11926_v62  ;;  %v11927_v38 = vunpack.i.l.bf16 %v11926_v62  ;;  %v11918_v2 = vunpack.i.h.bf16 %v11916_v29  ;;  %v11917_v20 = vunpack.i.l.bf16 %v11916_v29 }
 0xfe1   :  { %v8535_v29 = vmax.f32 %v8511_v3, 0.0 }
 0xfe2   :  { %v8679_v30 = vsel %vm518_vm2, %v8663_v25, %v11927_v38  ;;  %v8680_v36 = vsel %vm518_vm2, %v8664_v35, %v11928_v28  ;;  %v8666_v15 = vsel %vm477_vm1, %v8526_v14, %v11918_v2  ;;  %v8665_v6 = vsel %vm477_vm1, %v8525_v32, %v11917_v20 }
 0xfe3   :  { %v11921_v51 = vpop.permute.xlu1 %11920  ;;  %v8697_v37 = vpack.c.bf16 %v8680_v36, %v8679_v30  ;;  %v11931_v22 = vpop.permute.xlu0 %11930 }
 0xfe4   :  { %v11923_v10 = vunpack.i.h.bf16 %v11921_v51  ;;  %v11922_v19 = vunpack.i.l.bf16 %v11921_v51  ;;  %v11933_v8 = vunpack.i.h.bf16 %v11931_v22  ;;  %v11932_v4 = vunpack.i.l.bf16 %v11931_v22 }
 0xfe5   :  { %11026 = vmatprep.mubr.msk.bf16.mxu1 %vm593_vm3, %v8697_v37 }
 0xfe6   :  { %v8681_v18 = vsel %vm518_vm2, %v8665_v6, %v11922_v19  ;;  %v8682_v46 = vsel %vm518_vm2, %v8666_v15, %v11923_v10  ;;  %v8668_v53 = vsel %vm477_vm1, %v8528_v40, %v11933_v8  ;;  %v8667_v32 = vsel %vm477_vm1, %v8527_v43, %v11932_v4 }
 0xfe7   :  { %v8698_v52 = vpack.c.bf16 %v8682_v46, %v8681_v18 }
 0xfe9   :  { %11027 = vmatmul.mubr.msk.bf16.vlgmr.msra.gmra.mrb[228].mxu1 %vm593_vm3, %v8698_v52 }
 0xff1   :  { %v11946_v34 = vpop.permute.xlu0 %11945  ;;  %v11936_v41 = vpop.permute.xlu1 %11935 }
 0xff2   :  { %v11948_v48 = vunpack.i.h.bf16 %v11946_v34  ;;  %v11947_v14 = vunpack.i.l.bf16 %v11946_v34  ;;  %v11938_v26 = vunpack.i.h.bf16 %v11936_v41  ;;  %v11937_v17 = vunpack.i.l.bf16 %v11936_v41 }
 0xff4   :  { %v8683_v42 = vsel %vm518_vm2, %v8667_v32, %v11947_v14  ;;  %v8684_v33 = vsel %vm518_vm2, %v8668_v53, %v11948_v48  ;;  %v8670_v61 = vsel %vm477_vm1, %v8530_v27, %v11938_v26  ;;  %v8669_v0 = vsel %vm477_vm1, %v8529_v31, %v11937_v17 }
 0xff5   :  { %v8699_v47 = vpack.c.bf16 %v8684_v33, %v8683_v42  ;;  %v11941_v39 = vpop.permute.xlu1 %11940  ;;  %v8512_v31 = vadd.f32 %v8456_v54, %v15878_v49 }
 0xff6   :  { %v11943_v44 = vunpack.i.h.bf16 %v11941_v39  ;;  %v11942_v11 = vunpack.i.l.bf16 %v11941_v39 }
 0xff7   :  { %11030 = vmatprep.mubr.msk.bf16.mxu1 %vm593_vm3, %v8699_v47  ;;  %v8536_v28 = vmax.f32 %v8512_v31, 0.0 }
 0xff8   :  { %v8685_v43 = vsel %vm518_vm2, %v8669_v0, %v11942_v11  ;;  %v8686_v40 = vsel %vm518_vm2, %v8670_v61, %v11943_v44 }
 0xff9   :  { %v8700_v7 = vpack.c.bf16 %v8686_v40, %v8685_v43 }
 0xffb   :  { %11031 = vmatmul.mubr.msk.bf16.gmra.mrb[232].mxu1 %vm593_vm3, %v8700_v7 }
0x1004   :  { %v11951_v27 = vpop.permute.xlu0 %11950 }
0x1005   :  { %v11953_v58 = vunpack.i.h.bf16 %v11951_v27  ;;  %v11952_v62 = vunpack.i.l.bf16 %v11951_v27 }
0x1007   :  { %v8672_v20 = vsel %vm477_vm1, %v8536_v28, %v11953_v58  ;;  %v8671_v60 = vsel %vm477_vm1, %v8535_v29, %v11952_v62 }
0x100d   :  { %v11966_v38 = vpop.permute.xlu0 %11965  ;;  %v11956_v25 = vpop.permute.xlu1 %11955 }
0x100e   :  { %v11968_v35 = vunpack.i.h.bf16 %v11966_v38  ;;  %v11967_v2 = vunpack.i.l.bf16 %v11966_v38  ;;  %v11958_v30 = vunpack.i.h.bf16 %v11956_v25  ;;  %v11957_v36 = vunpack.i.l.bf16 %v11956_v25 }
0x1010   :  { %v8687_v50 = vsel %vm518_vm2, %v8671_v60, %v11967_v2  ;;  %v8688_v56 = vsel %vm518_vm2, %v8672_v20, %v11968_v35  ;;  %v8674_v10 = vsel %vm477_vm1, %v8538_v57, %v11958_v30  ;;  %v8673_v19 = vsel %vm477_vm1, %v8537_v13, %v11957_v36 }
0x1011   :  { %v8701_v45 = vpack.c.bf16 %v8688_v56, %v8687_v50  ;;  %v11961_v49 = vpop.permute.xlu1 %11960  ;;  %v11971_v15 = vpop.permute.xlu0 %11970 }
0x1012   :  { %v11963_v51 = vunpack.i.h.bf16 %v11961_v49  ;;  %v11962_v37 = vunpack.i.l.bf16 %v11961_v49  ;;  %v11973_v52 = vunpack.i.h.bf16 %v11971_v15  ;;  %v11972_v22 = vunpack.i.l.bf16 %v11971_v15 }
0x1013   :  { %11034 = vmatprep.mubr.msk.bf16.mxu1 %vm593_vm3, %v8701_v45 }
0x1014   :  { %v8689_v6 = vsel %vm518_vm2, %v8673_v19, %v11962_v37  ;;  %v8690_v18 = vsel %vm518_vm2, %v8674_v10, %v11963_v51  ;;  %v8676_v1 = vsel %vm477_vm1, %v8540_v9, %v11973_v52  ;;  %v8675_v13 = vsel %vm477_vm1, %v8539_v24, %v11972_v22 }
0x1015   :  { %v8702_v46 = vpack.c.bf16 %v8690_v18, %v8689_v6 }
0x1017   :  { %11035 = vmatmul.mubr.msk.bf16.gmra.mrb[236].mxu1 %vm593_vm3, %v8702_v46 }
0x1018   :  { %v11981_v8 = vpop.permute.xlu0 %11980  ;;  %v11976_v21 = vpop.permute.xlu1 %11975 }
0x1019   :  { %v11983_v4 = vunpack.i.h.bf16 %v11981_v8  ;;  %v11982_v57 = vunpack.i.l.bf16 %v11981_v8  ;;  %v11978_v34 = vunpack.i.h.bf16 %v11976_v21  ;;  %v11977_v41 = vunpack.i.l.bf16 %v11976_v21 }
0x101b   :  { %v8691_v48 = vsel %vm518_vm2, %v8675_v13, %v11982_v57  ;;  %v8692_v14 = vsel %vm518_vm2, %v8676_v1, %v11983_v4  ;;  %v8678_v55 = vsel %vm477_vm1, %v8542_v23, %v11978_v34  ;;  %v8677_v63 = vsel %vm477_vm1, %v8541_v5, %v11977_v41 }
0x101c   :  { %v8703_v53 = vpack.c.bf16 %v8692_v14, %v8691_v48  ;;  %v11986_v32 = vpop.permute.xlu1 %11985 }
0x101d   :  { %v11988_v26 = vunpack.i.h.bf16 %v11986_v32  ;;  %v11987_v17 = vunpack.i.l.bf16 %v11986_v32 }
0x101e   :  { %11038 = vmatprep.mubr.msk.bf16.mxu1 %vm593_vm3, %v8703_v53 }
0x101f   :  { %v8693_v24 = vsel %vm518_vm2, %v8677_v63, %v11987_v17  ;;  %v8694_v9 = vsel %vm518_vm2, %v8678_v55, %v11988_v26 }
0x1020   :  { %v8704_v42 = vpack.c.bf16 %v8694_v9, %v8693_v24 }
0x1022   :  { %11039 = vmatmul.mubr.msk.bf16.gmra.mrb[240].mxu1 %vm593_vm3, %v8704_v42 }
0x10bc   :  { %v11028_v23 = vpop.f32.mrb[228].mxu1 }
0x10bd   :  { %v16463_v16 = vadd.f32 %v11028_v23, %v16460_v59  ;;  %v8778_v5 = vpop.f32.mrb[229].mxu1 }
0x10be   :  { %v16466_v33 = vadd.f32 %v16460_v59, %v8778_v5  ;;  %v11029_v47 = vpop.f32.mrb[230].mxu1 }
0x10bf   :  { %v8923_v39 = vsub.f32 0.0, %v16463_v16  ;;  %v16470_v44 = vadd.f32 %v11029_v47, %v16460_v59  ;;  %8861 = vrot.lane.b32.xlu0 %v16463_v16, %s12551_s16  ;;  %v8781_v11 = vpop.f32.mrb[231].mxu1 }
0x10c0   :  { %v16475_v61 = vadd.f32 %v16460_v59, %v8781_v11 }
0x10c1   :  { %v8941_v0 = vmul.f32 1.442695, %v8923_v39  ;;  %v8924_v43 = vsub.f32 0.0, %v16470_v44  ;;  %8863 = vrot.lane.b32.xlu1 %v16470_v44, %s12551_s16 }
0x10c3   :  { %12447 = vpow2.f32 %v8941_v0  ;;  %v8943_v40 = vmul.f32 1.442695, %v8924_v43 }
0x10c5   :  { %12449 = vpow2.f32 %v8943_v40 }
0x10cd   :  { %v12448_v7 = vpop.eup %12447 }
0x10ce   :  { %v8971_v12 = vadd.f32 1.0, %v12448_v7  ;;  %v11032_v54 = vpop.f32.mrb[232].mxu1 }
0x10cf   :  { %v12450_v27 = vpop.eup %12449  ;;  %v16481_v3 = vadd.f32 %v11032_v54, %v16460_v59  ;;  %v8794_v31 = vpop.f32.mrb[233].mxu1 }
0x10d0   :  { %12451 = vrcp.f32 %v8971_v12  ;;  %v8972_v58 = vadd.f32 1.0, %v12450_v27  ;;  %v16484_v62 = vadd.f32 %v16460_v59, %v8794_v31  ;;  %v11033_v29 = vpop.f32.mrb[234].mxu1 }
0x10d1   :  { %v8927_v28 = vsub.f32 0.0, %v16481_v3  ;;  %v16488_v38 = vadd.f32 %v11033_v29, %v16460_v59  ;;  %8869 = vrot.lane.b32.xlu0 %v16481_v3, %s12551_s16  ;;  %v8797_v25 = vpop.f32.mrb[235].mxu1  ;;  %v8921_v29 = vsub.f32 0.0, %v16466_v33 }
0x10d2   :  { %12453 = vrcp.f32 %v8972_v58  ;;  %v8925_v35 = vsub.f32 0.0, %v16484_v62  ;;  %v16494_v2 = vadd.f32 %v16460_v59, %v8797_v25 }
0x10d3   :  { %v8949_v20 = vmul.f32 1.442695, %v8927_v28  ;;  %v8928_v60 = vsub.f32 0.0, %v16488_v38  ;;  %8871 = vrot.lane.b32.xlu1 %v16488_v38, %s12551_s16  ;;  %v8937_v28 = vmul.f32 1.442695, %v8921_v29 }
0x10d4   :  { %v8926_v30 = vsub.f32 0.0, %v16494_v2  ;;  %v8945_v36 = vmul.f32 1.442695, %v8925_v35 }
0x10d5   :  { %12455 = vpow2.f32 %v8949_v20  ;;  %v8951_v50 = vmul.f32 1.442695, %v8928_v60  ;;  %8865 = vrot.lane.b32.xlu0 %v16484_v62, %s12551_s16  ;;  %v8922_v60 = vsub.f32 0.0, %v16475_v61 }
0x10d6   :  { %v8947_v56 = vmul.f32 1.442695, %v8926_v30 }
0x10d7   :  { %12457 = vpow2.f32 %v8951_v50  ;;  %8867 = vrot.lane.b32.xlu1 %v16494_v2, %s12551_s16 }
0x10d8   :  { %12459 = vpow2.f32 %v8945_v36 }
0x10d9   :  { %12461 = vpow2.f32 %v8947_v56 }
0x10da   :  { %v12452_v45 = vpop.eup %12451 }
0x10db   :  { %9037 = vrot.lane.b32.xlu0 %v12452_v45, %s12553_s21 }
0x10dc   :  { %v12454_v49 = vpop.eup %12453 }
0x10dd   :  { %9039 = vrot.lane.b32.xlu1 %v12454_v49, %s12553_s21  ;;  %v8939_v49 = vmul.f32 1.442695, %v8922_v60 }
0x10df   :  { %v12456_v51 = vpop.eup %12455 }
0x10e0   :  { %v8975_v10 = vadd.f32 1.0, %v12456_v51 }
0x10e1   :  { %v12458_v37 = vpop.eup %12457 }
0x10e2   :  { %v12460_v19 = vpop.eup %12459  ;;  %v8976_v15 = vadd.f32 1.0, %v12458_v37  ;;  %12463 = vrcp.f32 %v8975_v10 }
0x10e3   :  { %v12462_v6 = vpop.eup %12461  ;;  %v8973_v18 = vadd.f32 1.0, %v12460_v19 }
0x10e4   :  { %12465 = vrcp.f32 %v8976_v15  ;;  %v8974_v46 = vadd.f32 1.0, %v12462_v6 }
0x10e5   :  { %12467 = vrcp.f32 %v8973_v18 }
0x10e6   :  { %12469 = vrcp.f32 %v8974_v46 }
0x10ea   :  { %v11036_v52 = vpop.f32.mrb[236].mxu1 }
0x10eb   :  { %v16507_v22 = vadd.f32 %v11036_v52, %v16460_v59  ;;  %v8810_v8 = vpop.f32.mrb[237].mxu1 }
0x10ec   :  { %v16510_v21 = vadd.f32 %v16460_v59, %v8810_v8  ;;  %v11037_v4 = vpop.f32.mrb[238].mxu1  ;;  %v12464_v14 = vpop.eup %12463 }
0x10ed   :  { %v8931_v57 = vsub.f32 0.0, %v16507_v22  ;;  %v16514_v1 = vadd.f32 %v11037_v4, %v16460_v59  ;;  %v8813_v13 = vpop.f32.mrb[239].mxu1  ;;  %8877 = vrot.lane.b32.xlu0 %v16507_v22, %s12551_s16 }
0x10ee   :  { %v16519_v34 = vadd.f32 %v16460_v59, %v8813_v13  ;;  %v12466_v32 = vpop.eup %12465  ;;  %v8929_v25 = vsub.f32 0.0, %v16510_v21 }
0x10ef   :  { %v8957_v41 = vmul.f32 1.442695, %v8931_v57  ;;  %v8932_v48 = vsub.f32 0.0, %v16514_v1  ;;  %8879 = vrot.lane.b32.xlu1 %v16514_v1, %s12551_s16  ;;  %v12468_v26 = vpop.eup %12467 }
0x10f0   :  { %v12470_v55 = vpop.eup %12469  ;;  %v8953_v50 = vmul.f32 1.442695, %v8929_v25  ;;  %v8930_v51 = vsub.f32 0.0, %v16519_v34 }
0x10f1   :  { %12471 = vpow2.f32 %v8957_v41  ;;  %v8959_v53 = vmul.f32 1.442695, %v8932_v48  ;;  %9045 = vrot.lane.b32.xlu0 %v12464_v14, %s12553_s21 }
0x10f2   :  { %v8955_v15 = vmul.f32 1.442695, %v8930_v51 }
0x10f3   :  { %12473 = vpow2.f32 %v8959_v53  ;;  %9047 = vrot.lane.b32.xlu1 %v12466_v32, %s12553_s21 }
0x10f5   :  { %v11040_v17 = vpop.f32.mrb[240].mxu1  ;;  %9041 = vrot.lane.b32.xlu0 %v12468_v26, %s12553_s21 }
0x10f6   :  { %v16528_v63 = vadd.f32 %v11040_v17, %v16460_v59  ;;  %v8826_v24 = vpop.f32.mrb[241].mxu1 }
0x10f7   :  { %v16531_v9 = vadd.f32 %v16460_v59, %v8826_v24  ;;  %v11041_v42 = vpop.f32.mrb[242].mxu1  ;;  %9043 = vrot.lane.b32.xlu1 %v12470_v55, %s12553_s21 }
0x10f8   :  { %v8935_v23 = vsub.f32 0.0, %v16528_v63  ;;  %v16536_v5 = vadd.f32 %v11041_v42, %v16460_v59  ;;  %v8829_v47 = vpop.f32.mrb[243].mxu1 }
0x10f9   :  { %v8933_v39 = vsub.f32 0.0, %v16531_v9  ;;  %v16540_v11 = vadd.f32 %v16460_v59, %v8829_v47  ;;  %8885 = vrot.lane.b32.xlu0 %v16528_v63, %s12551_s16 }
0x10fa   :  { %v8965_v0 = vmul.f32 1.442695, %v8935_v23  ;;  %v8936_v43 = vsub.f32 0.0, %v16536_v5 }
0x10fb   :  { %v12472_v40 = vpop.eup %12471  ;;  %v8961_v7 = vmul.f32 1.442695, %v8933_v39  ;;  %v8934_v12 = vsub.f32 0.0, %v16540_v11  ;;  %8887 = vrot.lane.b32.xlu1 %v16536_v5, %s12551_s16 }
0x10fc   :  { %v8979_v54 = vadd.f32 1.0, %v12472_v40  ;;  %12475 = vpow2.f32 %v8965_v0  ;;  %v8967_v31 = vmul.f32 1.442695, %v8936_v43 }
0x10fd   :  { %v12474_v27 = vpop.eup %12473  ;;  %12477 = vpow2.f32 %v8961_v7  ;;  %8881 = vrot.lane.b32.xlu0 %v16531_v9, %s12551_s16  ;;  %v8963_v58 = vmul.f32 1.442695, %v8934_v12 }
0x10fe   :  { %12479 = vrcp.f32 %v8979_v54  ;;  %v8980_v59 = vadd.f32 1.0, %v12474_v27 }
0x10ff   :  { %8883 = vrot.lane.b32.xlu1 %v16540_v11, %s12551_s16 }
0x1100   :  { %12481 = vrcp.f32 %v8980_v59 }
0x1101   :  { %12483 = vpow2.f32 %v8967_v31 }
0x1102   :  { %12485 = vpow2.f32 %v8963_v58 }
0x1103   :  { %12487 = vpow2.f32 %v8937_v28 }
0x1106   :  { %v12476_v35 = vpop.eup %12475 }
0x1107   :  { %v12478_v20 = vpop.eup %12477  ;;  %v8983_v30 = vadd.f32 1.0, %v12476_v35 }
0x1108   :  { %v12480_v36 = vpop.eup %12479  ;;  %v8981_v56 = vadd.f32 1.0, %v12478_v20 }
0x1109   :  { %12489 = vrcp.f32 %v8983_v30  ;;  %9053 = vrot.lane.b32.xlu0 %v12480_v36, %s12553_s21 }
0x110a   :  { %v12482_v45 = vpop.eup %12481  ;;  %12491 = vpow2.f32 %v8953_v50 }
0x110b   :  { %9055 = vrot.lane.b32.xlu1 %v12482_v45, %s12553_s21  ;;  %v12484_v37 = vpop.eup %12483  ;;  %12493 = vrcp.f32 %v8981_v56 }
0x110c   :  { %v12486_v10 = vpop.eup %12485  ;;  %12495 = vpow2.f32 %v8939_v49  ;;  %v8984_v6 = vadd.f32 1.0, %v12484_v37 }
0x110d   :  { %v8982_v19 = vadd.f32 1.0, %v12486_v10  ;;  %v12488_v18 = vpop.eup %12487 }
0x110e   :  { %v8969_v52 = vadd.f32 1.0, %v12488_v18 }
0x110f   :  { %12497 = vrcp.f32 %v8982_v19 }
0x1110   :  { %12499 = vpow2.f32 %v8955_v15 }
0x1111   :  { %12501 = vrcp.f32 %v8984_v6 }
0x1112   :  { %12503 = vrcp.f32 %v8969_v52 }
0x1113   :  { %v12490_v46 = vpop.eup %12489 }
0x1114   :  { %9061 = vrot.lane.b32.xlu0 %v12490_v46, %s12553_s21  ;;  %v12492_v8 = vpop.eup %12491 }
0x1115   :  { %v12494_v4 = vpop.eup %12493  ;;  %v8977_v13 = vadd.f32 1.0, %v12492_v8 }
0x1116   :  { %v12496_v57 = vpop.eup %12495 }
0x1117   :  { %v8970_v48 = vadd.f32 1.0, %v12496_v57  ;;  %12505 = vrcp.f32 %v8977_v13 }
0x1118   :  { %9057 = vrot.lane.b32.xlu0 %v12494_v4, %s12553_s21 }
0x1119   :  { %v12498_v41 = vpop.eup %12497  ;;  %12507 = vrcp.f32 %v8970_v48 }
0x111a   :  { %9059 = vrot.lane.b32.xlu1 %v12498_v41, %s12553_s21  ;;  %v12500_v14 = vpop.eup %12499 }
0x111b   :  { %v12502_v53 = vpop.eup %12501  ;;  %v8978_v32 = vadd.f32 1.0, %v12500_v14 }
0x111c   :  { %8857 = vrot.lane.b32.xlu0 %v16466_v33, %s12551_s16  ;;  %v12504_v26 = vpop.eup %12503 }
0x111d   :  { %12509 = vrcp.f32 %v8978_v32 }
0x111e   :  { %9063 = vrot.lane.b32.xlu1 %v12502_v53, %s12553_s21 }
0x1120   :  { %8873 = vrot.lane.b32.xlu0 %v16510_v21, %s12551_s16 }
0x1121   :  { %v12506_v17 = vpop.eup %12505 }
0x1122   :  { %8859 = vrot.lane.b32.xlu1 %v16475_v61, %s12551_s16 }
0x1123   :  { %v12508_v55 = vpop.eup %12507 }
0x1124   :  { %9033 = vrot.lane.b32.xlu0 %v12504_v26, %s12553_s21 }
0x1126   :  { %8875 = vrot.lane.b32.xlu1 %v16519_v34, %s12551_s16 }
0x1127   :  { %v12510_v24 = vpop.eup %12509 }
0x1128   :  { %9049 = vrot.lane.b32.xlu0 %v12506_v17, %s12553_s21 }
0x112a   :  { %9035 = vrot.lane.b32.xlu1 %v12508_v55, %s12553_s21 }
0x112e   :  { %9051 = vrot.lane.b32.xlu1 %v12510_v24, %s12553_s21  ;;  %s12573_s21 = smov 27  }
0x112f   :  { %s9911_s14 = sld [smem:[%s16885_s0 + %s12573_s21]]  }
0x1131   :  { %v8862_v42 = vpop.permute.xlu0 %8861 }
0x1132   :  { %v8907_v40 = vadd.f32 %v8862_v42, %v16463_v16 }
0x1133   :  { %v8864_v23 = vpop.permute.xlu1 %8863 }
0x1134   :  { %v8908_v12 = vadd.f32 %v8864_v23, %v16470_v44 }
0x1143   :  { %v8870_v47 = vpop.permute.xlu0 %8869 }
0x1144   :  { %v8911_v16 = vadd.f32 %v8870_v47, %v16481_v3 }
0x1145   :  { %v8872_v39 = vpop.permute.xlu1 %8871 }
0x1146   :  { %v8912_v36 = vadd.f32 %v8872_v39, %v16488_v38 }
0x1147   :  { %v8866_v0 = vpop.permute.xlu0 %8865 }
0x1148   :  { %v8909_v20 = vadd.f32 %v8866_v0, %v16484_v62 }
0x1149   :  { %v8868_v43 = vpop.permute.xlu1 %8867 }
0x114a   :  { %v8910_v49 = vadd.f32 %v8868_v43, %v16494_v2 }
0x114d   :  { %v9038_v7 = vpop.permute.xlu0 %9037 }
0x114e   :  { %v16576_v54 = vmul.f32 %v9038_v7, %v8907_v40 }
0x114f   :  { %v9040_v27 = vpop.permute.xlu1 %9039 }
0x1150   :  { %v16578_v59 = vmul.f32 %v9040_v27, %v8908_v12  ;;  %v9103_v31 = vsel %vm518_vm2, %v16576_v54, 0.0 }
0x1151   :  { %9104 = vadd.xlane.f32.xlu0 %v9103_v31 }
0x1152   :  { %v9106_v58 = vsel %vm518_vm2, %v16578_v59, 0.0 }
0x1153   :  { %9107 = vadd.xlane.f32.xlu1 %v9106_v58 }
0x115f   :  { %v8878_v29 = vpop.permute.xlu0 %8877 }
0x1160   :  { %v8915_v6 = vadd.f32 %v8878_v29, %v16507_v22 }
0x1161   :  { %v8880_v28 = vpop.permute.xlu1 %8879 }
0x1162   :  { %v8916_v46 = vadd.f32 %v8880_v28, %v16514_v1 }
0x1163   :  { %v9046_v25 = vpop.permute.xlu0 %9045 }
0x1164   :  { %v16585_v35 = vmul.f32 %v9046_v25, %v8911_v16 }
0x1165   :  { %v9048_v44 = vpop.permute.xlu1 %9047 }
0x1166   :  { %v9115_v60 = vsel %vm518_vm2, %v16585_v35, 0.0  ;;  %v16593_v56 = vmul.f32 %v9048_v44, %v8912_v36 }
0x1167   :  { %v9042_v30 = vpop.permute.xlu0 %9041  ;;  %9116 = vadd.xlane.f32.xlu1 %v9115_v60 }
0x1168   :  { %v16591_v50 = vmul.f32 %v9042_v30, %v8909_v20  ;;  %v9118_v62 = vsel %vm518_vm2, %v16593_v56, 0.0 }
0x1169   :  { %v9044_v45 = vpop.permute.xlu1 %9043 }
0x116a   :  { %v9109_v3 = vsel %vm518_vm2, %v16591_v50, 0.0  ;;  %v16598_v51 = vmul.f32 %v9044_v45, %v8910_v49 }
0x116b   :  { %9110 = vadd.xlane.f32.xlu0 %v9109_v3  ;;  %v8886_v37 = vpop.permute.xlu0 %8885 }
0x116c   :  { %v9112_v38 = vsel %vm518_vm2, %v16598_v51, 0.0  ;;  %v8919_v48 = vadd.f32 %v8886_v37, %v16528_v63 }
0x116d   :  { %v8888_v10 = vpop.permute.xlu1 %8887 }
0x116e   :  { %v8920_v24 = vadd.f32 %v8888_v10, %v16536_v5 }
0x116f   :  { %9119 = vadd.xlane.f32.xlu0 %v9118_v62  ;;  %v8882_v19 = vpop.permute.xlu0 %8881 }
0x1170   :  { %v8917_v41 = vadd.f32 %v8882_v19, %v16531_v9 }
0x1171   :  { %v8884_v15 = vpop.permute.xlu1 %8883 }
0x1172   :  { %v8918_v14 = vadd.f32 %v8884_v15, %v16540_v11 }
0x1173   :  { %9113 = vadd.xlane.f32.xlu0 %v9112_v38 }
0x117b   :  { %v9054_v18 = vpop.permute.xlu0 %9053 }
0x117c   :  { %v16606_v2 = vmul.f32 %v9054_v18, %v8915_v6 }
0x117d   :  { %v9056_v52 = vpop.permute.xlu1 %9055 }
0x117e   :  { %v16608_v8 = vmul.f32 %v9056_v52, %v8916_v46  ;;  %v9127_v4 = vsel %vm518_vm2, %v16606_v2, 0.0 }
0x117f   :  { %9128 = vadd.xlane.f32.xlu1 %v9127_v4 }
0x1180   :  { %v9130_v57 = vsel %vm518_vm2, %v16608_v8, 0.0 }
0x1181   :  { %9131 = vadd.xlane.f32.xlu0 %v9130_v57 }
0x1186   :  { %v9062_v13 = vpop.permute.xlu0 %9061 }
0x1187   :  { %v16619_v53 = vmul.f32 %v9062_v13, %v8919_v48 }
0x1189   :  { %v9139_v11 = vsel %vm518_vm2, %v16619_v53, 0.0 }
0x118a   :  { %v9058_v22 = vpop.permute.xlu0 %9057 }
0x118b   :  { %v16616_v1 = vmul.f32 %v9058_v22, %v8917_v41 }
0x118c   :  { %v9060_v32 = vpop.permute.xlu1 %9059 }
0x118d   :  { %v9133_v26 = vsel %vm518_vm2, %v16616_v1, 0.0  ;;  %v16623_v17 = vmul.f32 %v9060_v32, %v8918_v14 }
0x118e   :  { %9134 = vadd.xlane.f32.xlu1 %v9133_v26  ;;  %v8858_v55 = vpop.permute.xlu0 %8857 }
0x118f   :  { %v9136_v9 = vsel %vm518_vm2, %v16623_v17, 0.0  ;;  %v8905_v39 = vadd.f32 %v8858_v55, %v16466_v33 }
0x1190   :  { %v9064_v63 = vpop.permute.xlu1 %9063  ;;  %9137 = vadd.xlane.f32.xlu0 %v9136_v9 }
0x1191   :  { %v16630_v42 = vmul.f32 %v9064_v63, %v8920_v24 }
0x1192   :  { %9140 = vadd.xlane.f32.xlu1 %v9139_v11  ;;  %v8874_v23 = vpop.permute.xlu0 %8873 }
0x1193   :  { %v9142_v47 = vsel %vm518_vm2, %v16630_v42, 0.0  ;;  %v8913_v40 = vadd.f32 %v8874_v23, %v16510_v21 }
0x1194   :  { %v8860_v0 = vpop.permute.xlu1 %8859  ;;  %9143 = vadd.xlane.f32.xlu0 %v9142_v47 }
0x1195   :  { %v8906_v58 = vadd.f32 %v8860_v0, %v16475_v61 }
0x1196   :  { %v9034_v5 = vpop.permute.xlu0 %9033 }
0x1197   :  { %v16635_v43 = vmul.f32 %v9034_v5, %v8905_v39 }
0x1198   :  { %v8876_v7 = vpop.permute.xlu1 %8875 }
0x1199   :  { %v9097_v12 = vsel %vm518_vm2, %v16635_v43, 0.0  ;;  %v8914_v16 = vadd.f32 %v8876_v7, %v16519_v34 }
0x119a   :  { %9098 = vadd.xlane.f32.xlu1 %v9097_v12  ;;  %v9050_v27 = vpop.permute.xlu0 %9049 }
0x119b   :  { %v16640_v31 = vmul.f32 %v9050_v27, %v8913_v40 }
0x119c   :  { %v9036_v29 = vpop.permute.xlu1 %9035 }
0x119d   :  { %v9121_v33 = vsel %vm518_vm2, %v16640_v31, 0.0  ;;  %v16645_v28 = vmul.f32 %v9036_v29, %v8906_v58 }
0x119e   :  { %9122 = vadd.xlane.f32.xlu1 %v9121_v33 }
0x119f   :  { %v9100_v21 = vsel %vm518_vm2, %v16645_v28, 0.0 }
0x11a0   :  { %v9052_v25 = vpop.permute.xlu1 %9051  ;;  %9101 = vadd.xlane.f32.xlu0 %v9100_v21 }
0x11a1   :  { %v16650_v44 = vmul.f32 %v9052_v25, %v8914_v16 }
0x11a3   :  { %v9124_v20 = vsel %vm518_vm2, %v16650_v44, 0.0 }
0x11a4   :  { %9125 = vadd.xlane.f32.xlu0 %v9124_v20 }
0x11de   :  { %v9105_v61 = vpop.xlane.xlu0 %9104 }
0x11e0   :  { %v9108_v60 = vpop.xlane.xlu1 %9107 }
0x11e1   :  { %v9152_v30 = vadd.f32 %v9108_v60, %v9105_v61 }
0x11e3   :  { %v9153_v36 = vrot.slane %v9152_v30, 4 }
0x11e5   :  { %v9154_v3 = vadd.f32 %v9153_v36, %v9152_v30 }
0x11e7   :  { %v9155_v45 = vrot.slane %v9154_v3, 2 }
0x11e9   :  { %v9156_v49 = vadd.f32 %v9155_v45, %v9154_v3 }
0x11eb   :  { %v9157_v62 = vrot.slane %v9156_v49, 1 }
0x11ed   :  { %v9158_v34 = vadd.f32 %v9157_v62, %v9156_v49 }
0x11ef   :  { %v9202_v37 = vmul.f32 0.0078125, %v9158_v34 }
0x11f1   :  { %v16655_v38 = vsub.f32 %v16578_v59, %v9202_v37  ;;  %v16658_v10 = vsub.f32 %v16576_v54, %v9202_v37 }
0x11f3   :  { %v9228_v19 = vmul.f32 %v16655_v38, %v16655_v38  ;;  %v9227_v15 = vmul.f32 %v16658_v10, %v16658_v10 }
0x11f4   :  { %v9117_v52 = vpop.xlane.xlu1 %9116 }
0x11f5   :  { %v9250_v6 = vsel %vm518_vm2, %v9228_v19, 0.0  ;;  %v9247_v18 = vsel %vm518_vm2, %v9227_v15, 0.0 }
0x11f6   :  { %9251 = vadd.xlane.f32.xlu0 %v9250_v6  ;;  %9248 = vadd.xlane.f32.xlu1 %v9247_v18 }
0x11f8   :  { %v9111_v46 = vpop.xlane.xlu0 %9110 }
0x11fc   :  { %v9120_v4 = vpop.xlane.xlu0 %9119 }
0x11fd   :  { %v9166_v59 = vadd.f32 %v9120_v4, %v9117_v52 }
0x11ff   :  { %v9167_v57 = vrot.slane %v9166_v59, 4 }
0x1200   :  { %v9114_v13 = vpop.xlane.xlu0 %9113 }
0x1201   :  { %v9168_v54 = vadd.f32 %v9167_v57, %v9166_v59  ;;  %v9159_v41 = vadd.f32 %v9114_v13, %v9111_v46 }
0x1203   :  { %v9169_v22 = vrot.slane %v9168_v54, 2  ;;  %v9160_v48 = vrot.slane %v9159_v41, 4 }
0x1205   :  { %v9170_v14 = vadd.f32 %v9169_v22, %v9168_v54  ;;  %v9161_v32 = vadd.f32 %v9160_v48, %v9159_v41 }
0x1207   :  { %v9171_v26 = vrot.slane %v9170_v14, 1  ;;  %v9162_v55 = vrot.slane %v9161_v32, 2 }
0x1209   :  { %v9172_v24 = vadd.f32 %v9171_v26, %v9170_v14  ;;  %v9163_v9 = vadd.f32 %v9162_v55, %v9161_v32 }
0x120b   :  { %v9204_v63 = vmul.f32 0.0078125, %v9172_v24  ;;  %v9164_v11 = vrot.slane %v9163_v9, 1 }
0x120c   :  { %v9129_v0 = vpop.xlane.xlu1 %9128 }
0x120d   :  { %v9165_v23 = vadd.f32 %v9164_v11, %v9163_v9  ;;  %v16667_v47 = vsub.f32 %v16593_v56, %v9204_v63  ;;  %v16670_v39 = vsub.f32 %v16585_v35, %v9204_v63 }
0x120e   :  { %v9132_v5 = vpop.xlane.xlu0 %9131 }
0x120f   :  { %v9203_v40 = vmul.f32 0.0078125, %v9165_v23  ;;  %v9180_v7 = vadd.f32 %v9132_v5, %v9129_v0  ;;  %v9232_v12 = vmul.f32 %v16667_v47, %v16667_v47  ;;  %v9231_v27 = vmul.f32 %v16670_v39, %v16670_v39 }
0x1211   :  { %v9181_v58 = vrot.slane %v9180_v7, 4  ;;  %v9262_v29 = vsel %vm518_vm2, %v9232_v12, 0.0  ;;  %v9259_v33 = vsel %vm518_vm2, %v9231_v27, 0.0  ;;  %v16679_v56 = vsub.f32 %v16598_v51, %v9203_v40 }
0x1212   :  { %9263 = vadd.xlane.f32.xlu0 %v9262_v29  ;;  %9260 = vadd.xlane.f32.xlu1 %v9259_v33  ;;  %v16682_v35 = vsub.f32 %v16591_v50, %v9203_v40 }
0x1213   :  { %v9182_v16 = vadd.f32 %v9181_v58, %v9180_v7  ;;  %v9230_v21 = vmul.f32 %v16679_v56, %v16679_v56 }
0x1214   :  { %v9229_v25 = vmul.f32 %v16682_v35, %v16682_v35 }
0x1215   :  { %v9183_v20 = vrot.slane %v9182_v16, 2  ;;  %v9256_v61 = vsel %vm518_vm2, %v9230_v21, 0.0 }
0x1216   :  { %9257 = vadd.xlane.f32.xlu0 %v9256_v61  ;;  %v9253_v60 = vsel %vm518_vm2, %v9229_v25, 0.0 }
0x1217   :  { %v9184_v51 = vadd.f32 %v9183_v20, %v9182_v16  ;;  %9254 = vadd.xlane.f32.xlu1 %v9253_v60 }
0x1219   :  { %v9185_v30 = vrot.slane %v9184_v51, 1 }
0x121b   :  { %v9186_v36 = vadd.f32 %v9185_v30, %v9184_v51  ;;  %v9135_v3 = vpop.xlane.xlu1 %9134 }
0x121d   :  { %v9206_v50 = vmul.f32 0.0078125, %v9186_v36  ;;  %v9138_v45 = vpop.xlane.xlu0 %9137 }
0x121e   :  { %v9187_v49 = vadd.f32 %v9138_v45, %v9135_v3 }
0x121f   :  { %v16691_v62 = vsub.f32 %v16608_v8, %v9206_v50  ;;  %v16694_v34 = vsub.f32 %v16606_v2, %v9206_v50  ;;  %v9141_v37 = vpop.xlane.xlu1 %9140 }
0x1220   :  { %v9188_v19 = vrot.slane %v9187_v49, 4 }
0x1221   :  { %v9236_v15 = vmul.f32 %v16691_v62, %v16691_v62  ;;  %v9235_v6 = vmul.f32 %v16694_v34, %v16694_v34  ;;  %v9144_v18 = vpop.xlane.xlu0 %9143 }
0x1222   :  { %v9189_v46 = vadd.f32 %v9188_v19, %v9187_v49  ;;  %v9194_v52 = vadd.f32 %v9144_v18, %v9141_v37 }
0x1223   :  { %v9274_v4 = vsel %vm518_vm2, %v9236_v15, 0.0  ;;  %v9271_v59 = vsel %vm518_vm2, %v9235_v6, 0.0 }
0x1224   :  { %9275 = vadd.xlane.f32.xlu0 %v9274_v4  ;;  %9272 = vadd.xlane.f32.xlu1 %v9271_v59  ;;  %v9190_v8 = vrot.slane %v9189_v46, 2  ;;  %v9195_v2 = vrot.slane %v9194_v52, 4 }
0x1226   :  { %v9191_v57 = vadd.f32 %v9190_v8, %v9189_v46  ;;  %v9196_v13 = vadd.f32 %v9195_v2, %v9194_v52 }
0x1227   :  { %v9099_v14 = vpop.xlane.xlu1 %9098 }
0x1228   :  { %v9192_v54 = vrot.slane %v9191_v57, 1  ;;  %v9197_v41 = vrot.slane %v9196_v13, 2 }
0x122a   :  { %v9193_v22 = vadd.f32 %v9192_v54, %v9191_v57  ;;  %v9198_v48 = vadd.f32 %v9197_v41, %v9196_v13 }
0x122b   :  { %v9123_v7 = vpop.xlane.xlu1 %9122 }
0x122c   :  { %v9207_v32 = vmul.f32 0.0078125, %v9193_v22  ;;  %v9199_v26 = vrot.slane %v9198_v48, 1 }
0x122d   :  { %v9102_v55 = vpop.xlane.xlu0 %9101 }
0x122e   :  { %v9200_v24 = vadd.f32 %v9199_v26, %v9198_v48  ;;  %v9145_v9 = vadd.f32 %v9102_v55, %v9099_v14  ;;  %v16703_v63 = vsub.f32 %v16623_v17, %v9207_v32  ;;  %v16706_v11 = vsub.f32 %v16616_v1, %v9207_v32 }
0x1230   :  { %v9208_v23 = vmul.f32 0.0078125, %v9200_v24  ;;  %v9146_v0 = vrot.slane %v9145_v9, 4  ;;  %v9238_v5 = vmul.f32 %v16703_v63, %v16703_v63  ;;  %v9237_v40 = vmul.f32 %v16706_v11, %v16706_v11 }
0x1231   :  { %v9126_v12 = vpop.xlane.xlu0 %9125 }
0x1232   :  { %v9147_v27 = vadd.f32 %v9146_v0, %v9145_v9  ;;  %v9173_v58 = vadd.f32 %v9126_v12, %v9123_v7  ;;  %v9280_v29 = vsel %vm518_vm2, %v9238_v5, 0.0  ;;  %v9277_v17 = vsel %vm518_vm2, %v9237_v40, 0.0  ;;  %v16756_v0 = vld [vmem:[%s9911_s14] sm:$0xff]  ;;  %v16758_v5 = vld [vmem:[%s9911_s14 + $0x8] sm:$0xff]  ;;  %s12581_s14 = smov 1  }
0x1233   :  { %9281 = vadd.xlane.f32.xlu0 %v9280_v29  ;;  %9278 = vadd.xlane.f32.xlu1 %v9277_v17  ;;  %v16715_v1 = vsub.f32 %v16630_v42, %v9208_v23  ;;  %v16718_v33 = vsub.f32 %v16619_v53, %v9208_v23  ;;  %s9885_s18 = sld [smem:[%s16885_s0 + %s12581_s14]]  }
0x1234   :  { %v9148_v16 = vrot.slane %v9147_v27, 2  ;;  %v9174_v21 = vrot.slane %v9173_v58, 4 }
0x1235   :  { %v9240_v25 = vmul.f32 %v16715_v1, %v16715_v1  ;;  %v9239_v20 = vmul.f32 %v16718_v33, %v16718_v33 }
0x1236   :  { %v9149_v61 = vadd.f32 %v9148_v16, %v9147_v27  ;;  %v9175_v60 = vadd.f32 %v9174_v21, %v9173_v58  ;;  %v16762_v27 = vld [vmem:[%s9912_s20] sm:$0xff]  ;;  %v16764_v58 = vld [vmem:[%s9912_s20 + $0x8] sm:$0xff]  ;;  %s12582_s20 = smov 2  }
0x1237   :  { %v9286_v51 = vsel %vm518_vm2, %v9240_v25, 0.0  ;;  %v9283_v30 = vsel %vm518_vm2, %v9239_v20, 0.0  ;;  %s9886_s24 = sld [smem:[%s16885_s0 + %s12582_s20]]  }
0x1238   :  { %v9150_v36 = vrot.slane %v9149_v61, 1  ;;  %v9176_v42 = vrot.slane %v9175_v60, 2  ;;  %9287 = vadd.xlane.f32.xlu0 %v9286_v51  ;;  %9284 = vadd.xlane.f32.xlu1 %v9283_v30 }
0x123a   :  { %v9151_v53 = vadd.f32 %v9150_v36, %v9149_v61  ;;  %v9177_v3 = vadd.f32 %v9176_v42, %v9175_v60 }
0x123c   :  { %v9201_v50 = vmul.f32 0.0078125, %v9151_v53  ;;  %v9178_v45 = vrot.slane %v9177_v3, 1 }
0x123e   :  { %v9179_v49 = vadd.f32 %v9178_v45, %v9177_v3  ;;  %v16727_v37 = vsub.f32 %v16645_v28, %v9201_v50  ;;  %v16730_v19 = vsub.f32 %v16635_v43, %v9201_v50 }
0x1240   :  { %v9205_v15 = vmul.f32 0.0078125, %v9179_v49  ;;  %v9226_v6 = vmul.f32 %v16727_v37, %v16727_v37  ;;  %v9225_v18 = vmul.f32 %v16730_v19, %v16730_v19 }
0x1242   :  { %v9244_v46 = vsel %vm518_vm2, %v9226_v6, 0.0  ;;  %v9241_v52 = vsel %vm518_vm2, %v9225_v18, 0.0  ;;  %v16739_v4 = vsub.f32 %v16650_v44, %v9205_v15  ;;  %v16742_v28 = vsub.f32 %v16640_v31, %v9205_v15 }
0x1243   :  { %9245 = vadd.xlane.f32.xlu0 %v9244_v46  ;;  %9242 = vadd.xlane.f32.xlu1 %v9241_v52 }
0x1244   :  { %v9234_v43 = vmul.f32 %v16739_v4, %v16739_v4  ;;  %v9233_v59 = vmul.f32 %v16742_v28, %v16742_v28 }
0x1246   :  { %v9268_v8 = vsel %vm518_vm2, %v9234_v43, 0.0  ;;  %v9265_v2 = vsel %vm518_vm2, %v9233_v59, 0.0 }
0x1247   :  { %9269 = vadd.xlane.f32.xlu0 %v9268_v8  ;;  %9266 = vadd.xlane.f32.xlu1 %v9265_v2 }
0x1283   :  { %v9249_v57 = vpop.xlane.xlu1 %9248  ;;  %v9252_v44 = vpop.xlane.xlu0 %9251 }
0x1284   :  { %v9296_v13 = vadd.f32 %v9252_v44, %v9249_v57 }
0x1286   :  { %v9297_v54 = vrot.slane %v9296_v13, 4 }
0x1288   :  { %v9298_v31 = vadd.f32 %v9297_v54, %v9296_v13 }
0x128a   :  { %v9299_v41 = vrot.slane %v9298_v31, 2 }
0x128c   :  { %v9300_v22 = vadd.f32 %v9299_v41, %v9298_v31 }
0x128e   :  { %v9301_v48 = vrot.slane %v9300_v22, 1 }
0x1290   :  { %v9302_v14 = vadd.f32 %v9301_v48, %v9300_v22 }
0x1292   :  { %v9346_v32 = vmul.f32 0.0078125, %v9302_v14 }
0x1294   :  { %v9354_v26 = vadd.f32 1e-05, %v9346_v32 }
0x1296   :  { %12511 = vrsqrt.f32 %v9354_v26 }
0x129f   :  { %v9261_v55 = vpop.xlane.xlu1 %9260  ;;  %v9264_v24 = vpop.xlane.xlu0 %9263 }
0x12a0   :  { %v12512_v9 = vpop.eup %12511  ;;  %v9310_v23 = vadd.f32 %v9264_v24, %v9261_v55 }
0x12a1   :  { %v9371_v40 = vmul.f32 %v12512_v9, %v16658_v10  ;;  %v9372_v7 = vmul.f32 %v12512_v9, %v16655_v38 }
0x12a2   :  { %v9311_v12 = vrot.slane %v9310_v23, 4 }
0x12a3   :  { %v9258_v29 = vpop.xlane.xlu0 %9257  ;;  %v9389_v17 = vmul.f32 %v16756_v0, %v9371_v40  ;;  %v9390_v16 = vmul.f32 %v16758_v5, %v9372_v7 }
0x12a4   :  { %v9312_v21 = vadd.f32 %v9311_v12, %v9310_v23  ;;  %v9255_v25 = vpop.xlane.xlu1 %9254 }
0x12a5   :  { %v9303_v20 = vadd.f32 %v9258_v29, %v9255_v25  ;;  %v9407_v61 = vadd.f32 %v16762_v27, %v9389_v17  ;;  %v9408_v60 = vadd.f32 %v16764_v58, %v9390_v16 }
0x12a6   :  { %v9313_v10 = vrot.slane %v9312_v21, 2 }
0x12a7   :  { %v9304_v51 = vrot.slane %v9303_v20, 4  ;;  %v11989_v38 = vpack.i.bf16 %v9408_v60, %v9407_v61 }
0x12a8   :  { %v9314_v36 = vadd.f32 %v9313_v10, %v9312_v21 }
0x12a9   :  { %v9305_v30 = vadd.f32 %v9304_v51, %v9303_v20  ;;  %11990 = vrot.lane.b32.xlu1 %v11989_v38, %s12547_s6 }
0x12aa   :  { %v9315_v3 = vrot.slane %v9314_v36, 1 }
0x12ab   :  { %v9306_v42 = vrot.slane %v9305_v30, 2 }
0x12ac   :  { %v9316_v18 = vadd.f32 %v9315_v3, %v9314_v36 }
0x12ad   :  { %v9307_v53 = vadd.f32 %v9306_v42, %v9305_v30 }
0x12ae   :  { %v9348_v8 = vmul.f32 0.0078125, %v9316_v18 }
0x12af   :  { %v9308_v50 = vrot.slane %v9307_v53, 1 }
0x12b0   :  { %v9356_v44 = vadd.f32 1e-05, %v9348_v8 }
0x12b1   :  { %v9309_v45 = vadd.f32 %v9308_v50, %v9307_v53  ;;  %v9273_v49 = vpop.xlane.xlu1 %9272  ;;  %v9276_v15 = vpop.xlane.xlu0 %9275 }
0x12b2   :  { %v9324_v6 = vadd.f32 %v9276_v15, %v9273_v49 }
0x12b3   :  { %v9347_v46 = vmul.f32 0.0078125, %v9309_v45 }
0x12b4   :  { %v9325_v52 = vrot.slane %v9324_v6, 4 }
0x12b5   :  { %v9355_v43 = vadd.f32 1e-05, %v9347_v46 }
0x12b6   :  { %v9326_v59 = vadd.f32 %v9325_v52, %v9324_v6 }
0x12b7   :  { %12513 = vrsqrt.f32 %v9355_v43 }
0x12b8   :  { %v9327_v2 = vrot.slane %v9326_v59, 2  ;;  %12515 = vrsqrt.f32 %v9356_v44 }
0x12ba   :  { %v9328_v57 = vadd.f32 %v9327_v2, %v9326_v59 }
0x12bc   :  { %v9329_v13 = vrot.slane %v9328_v57, 1 }
0x12be   :  { %v9330_v54 = vadd.f32 %v9329_v13, %v9328_v57  ;;  %v12028_v57 = vld [vmem:[%s9893_s25] sm:$0xff]   ;;  %v12029_v13 = vld [vmem:[%s9893_s25 + $0x8] sm:$0xff]   ;;  %s12583_s25 = smov 6  }
0x12bf   :  { %11042 = vmatprep.subr.bf16.mxu1 %v12028_v57  ;;  %s9890_s26 = sld [smem:[%s16885_s0 + %s12583_s25]]  }
0x12c0   :  { %v9350_v31 = vmul.f32 0.0078125, %v9330_v54  ;;  %v9279_v22 = vpop.xlane.xlu1 %9278  ;;  %v9282_v48 = vpop.xlane.xlu0 %9281  ;;  %11043 = vmatpush3.bf16.msra.mxu1 %v12028_v57 }
0x12c1   :  { %v12514_v41 = vpop.eup %12513  ;;  %v9331_v32 = vadd.f32 %v9282_v48, %v9279_v22  ;;  %11044 = vmatprep.subr.bf16.mxu1 %v12029_v13 }
0x12c2   :  { %v9358_v14 = vadd.f32 1e-05, %v9350_v31  ;;  %v9373_v26 = vmul.f32 %v12514_v41, %v16682_v35  ;;  %v9374_v55 = vmul.f32 %v12514_v41, %v16679_v56  ;;  %v12516_v20 = vpop.eup %12515 }
0x12c3   :  { %v9332_v24 = vrot.slane %v9331_v32, 4  ;;  %v9375_v10 = vmul.f32 %v12516_v20, %v16670_v39  ;;  %v9376_v38 = vmul.f32 %v12516_v20, %v16667_v47 }
0x12c4   :  { %12517 = vrsqrt.f32 %v9358_v14  ;;  %v9391_v9 = vmul.f32 %v16756_v0, %v9373_v26  ;;  %v9392_v23 = vmul.f32 %v16758_v5, %v9374_v55  ;;  %11045 = vmatpush3.bf16.msra.mxu1 %v12029_v13 }
0x12c5   :  { %v9333_v40 = vadd.f32 %v9332_v24, %v9331_v32  ;;  %v9285_v7 = vpop.xlane.xlu1 %9284  ;;  %v9288_v12 = vpop.xlane.xlu0 %9287  ;;  %v9393_v45 = vmul.f32 %v16756_v0, %v9375_v10  ;;  %v9394_v39 = vmul.f32 %v16758_v5, %v9376_v38 }
0x12c6   :  { %v9409_v29 = vadd.f32 %v16762_v27, %v9391_v9  ;;  %v9410_v17 = vadd.f32 %v16764_v58, %v9392_v23  ;;  %v9338_v16 = vadd.f32 %v9288_v12, %v9285_v7 }
0x12c7   :  { %v9334_v21 = vrot.slane %v9333_v40, 2  ;;  %v9411_v43 = vadd.f32 %v16762_v27, %v9393_v45  ;;  %v9412_v59 = vadd.f32 %v16764_v58, %v9394_v39 }
0x12c8   :  { %v11994_v25 = vpack.i.bf16 %v9410_v17, %v9409_v29  ;;  %v9339_v35 = vrot.slane %v9338_v16, 4 }
0x12c9   :  { %v9335_v61 = vadd.f32 %v9334_v21, %v9333_v40  ;;  %v12004_v2 = vpack.i.bf16 %v9412_v59, %v9411_v43 }
0x12ca   :  { %11995 = vrot.lane.b32.xlu1 %v11994_v25, %s12562_s19  ;;  %v9340_v56 = vadd.f32 %v9339_v35, %v9338_v16 }
0x12cb   :  { %v9336_v60 = vrot.slane %v9335_v61, 1 }
0x12cc   :  { %v9341_v51 = vrot.slane %v9340_v56, 2 }
0x12cd   :  { %v9337_v36 = vadd.f32 %v9336_v60, %v9335_v61 }
0x12ce   :  { %v12518_v30 = vpop.eup %12517  ;;  %v9342_v42 = vadd.f32 %v9341_v51, %v9340_v56 }
0x12cf   :  { %v9379_v53 = vmul.f32 %v12518_v30, %v16694_v34  ;;  %v9380_v3 = vmul.f32 %v12518_v30, %v16691_v62  ;;  %v9351_v50 = vmul.f32 0.0078125, %v9337_v36 }
0x12d0   :  { %v9343_v49 = vrot.slane %v9342_v42, 1  ;;  %v9243_v7 = vpop.xlane.xlu1 %9242  ;;  %v9246_v12 = vpop.xlane.xlu0 %9245 }
0x12d1   :  { %v9397_v15 = vmul.f32 %v16756_v0, %v9379_v53  ;;  %v9398_v6 = vmul.f32 %v16758_v5, %v9380_v3  ;;  %v9359_v18 = vadd.f32 1e-05, %v9351_v50  ;;  %v9289_v29 = vadd.f32 %v9246_v12, %v9243_v7 }
0x12d2   :  { %v9344_v46 = vadd.f32 %v9343_v49, %v9342_v42 }
0x12d3   :  { %v9415_v47 = vadd.f32 %v16762_v27, %v9397_v15  ;;  %v9416_v52 = vadd.f32 %v16764_v58, %v9398_v6  ;;  %12519 = vrsqrt.f32 %v9359_v18 }
0x12d4   :  { %v9352_v62 = vmul.f32 0.0078125, %v9344_v46  ;;  %v9267_v16 = vpop.xlane.xlu1 %9266  ;;  %v9270_v21 = vpop.xlane.xlu0 %9269 }
0x12d5   :  { %v11999_v34 = vpack.i.bf16 %v9416_v52, %v9415_v47  ;;  %v9317_v20 = vadd.f32 %v9270_v21, %v9267_v16 }
0x12d6   :  { %v9360_v8 = vadd.f32 1e-05, %v9352_v62 }
0x12d7   :  { %12000 = vrot.lane.b32.xlu0 %v11999_v34, %s12547_s6  ;;  %v9318_v61 = vrot.slane %v9317_v20, 4  ;;  %s12580_s6 = smov 5  }
0x12d8   :  { %12521 = vrsqrt.f32 %v9360_v8  ;;  %s9889_s13 = sld [smem:[%s16885_s0 + %s12580_s6]]  }
0x12d9   :  { %v9319_v60 = vadd.f32 %v9318_v61, %v9317_v20 }
0x12db   :  { %12005 = vrot.lane.b32.xlu0 %v12004_v2, %s12567_s12  ;;  %v9320_v51 = vrot.slane %v9319_v60, 2 }
0x12dd   :  { %v12520_v44 = vpop.eup %12519  ;;  %v9321_v30 = vadd.f32 %v9320_v51, %v9319_v60 }
0x12de   :  { %v9381_v54 = vmul.f32 %v12520_v44, %v16706_v11  ;;  %v9382_v31 = vmul.f32 %v12520_v44, %v16703_v63 }
0x12df   :  { %v9322_v36 = vrot.slane %v9321_v30, 1 }
0x12e0   :  { %v9399_v41 = vmul.f32 %v16756_v0, %v9381_v54  ;;  %v9400_v22 = vmul.f32 %v16758_v5, %v9382_v31 }
0x12e1   :  { %v9323_v42 = vadd.f32 %v9322_v36, %v9321_v30 }
0x12e2   :  { %v12522_v48 = vpop.eup %12521  ;;  %v9417_v14 = vadd.f32 %v16762_v27, %v9399_v41  ;;  %v9418_v32 = vadd.f32 %v16764_v58, %v9400_v22 }
0x12e3   :  { %v9383_v26 = vmul.f32 %v12522_v48, %v16718_v33  ;;  %v9384_v55 = vmul.f32 %v12522_v48, %v16715_v1  ;;  %v9290_v33 = vrot.slane %v9289_v29, 4  ;;  %v9349_v53 = vmul.f32 0.0078125, %v9323_v42 }
0x12e4   :  { %v12009_v24 = vpack.i.bf16 %v9418_v32, %v9417_v14 }
0x12e5   :  { %v9401_v11 = vmul.f32 %v16756_v0, %v9383_v26  ;;  %v9402_v63 = vmul.f32 %v16758_v5, %v9384_v55  ;;  %v9291_v17 = vadd.f32 %v9290_v33, %v9289_v29  ;;  %v9357_v50 = vadd.f32 1e-05, %v9349_v53 }
0x12e6   :  { %12010 = vrot.lane.b32.xlu1 %v12009_v24, %s12562_s19  ;;  %s12576_s19 = smov 10  }
0x12e7   :  { %v9419_v9 = vadd.f32 %v16762_v27, %v9401_v11  ;;  %v9420_v23 = vadd.f32 %v16764_v58, %v9402_v63  ;;  %v9292_v1 = vrot.slane %v9291_v17, 2  ;;  %s9894_s27 = sld [smem:[%s16885_s0 + %s12576_s19]]  }
0x12e9   :  { %v12014_v40 = vpack.i.bf16 %v9420_v23, %v9419_v9  ;;  %v9293_v25 = vadd.f32 %v9292_v1, %v9291_v17 }
0x12eb   :  { %12015 = vrot.lane.b32.xlu1 %v12014_v40, %s12567_s12  ;;  %v9294_v35 = vrot.slane %v9293_v25, 1 }
0x12ed   :  { %v9295_v56 = vadd.f32 %v9294_v35, %v9293_v25 }
0x12ef   :  { %v9345_v10 = vmul.f32 0.0078125, %v9295_v56 }
0x12f1   :  { %v9353_v38 = vadd.f32 1e-05, %v9345_v10 }
0x12f3   :  { %12523 = vrsqrt.f32 %v9353_v38 }
0x12f4   :  { %12525 = vrsqrt.f32 %v9357_v50 }
0x12fd   :  { %v12524_v3 = vpop.eup %12523 }
0x12fe   :  { %v9369_v49 = vmul.f32 %v12524_v3, %v16730_v19  ;;  %v9370_v15 = vmul.f32 %v12524_v3, %v16727_v37  ;;  %v12526_v22 = vpop.eup %12525 }
0x12ff   :  { %v9377_v48 = vmul.f32 %v12526_v22, %v16742_v28  ;;  %v9378_v14 = vmul.f32 %v12526_v22, %v16739_v4 }
0x1300   :  { %v9387_v6 = vmul.f32 %v16756_v0, %v9369_v49  ;;  %v9388_v39 = vmul.f32 %v16758_v5, %v9370_v15 }
0x1301   :  { %v9395_v32 = vmul.f32 %v16756_v0, %v9377_v48  ;;  %v9396_v26 = vmul.f32 %v16758_v5, %v9378_v14 }
0x1302   :  { %v9405_v43 = vadd.f32 %v16762_v27, %v9387_v6  ;;  %v9406_v59 = vadd.f32 %v16764_v58, %v9388_v39 }
0x1303   :  { %v9413_v23 = vadd.f32 %v16762_v27, %v9395_v32  ;;  %v9414_v40 = vadd.f32 %v16764_v58, %v9396_v26  ;;  %v10119_v27 = vld [vmem:[%s9894_s27] ss:$0 sm:$0xff] }
0x131b   :  { %v11991_v45 = vpop.permute.xlu1 %11990 }
0x131c   :  { %v11993_v47 = vunpack.i.h.bf16 %v11991_v45  ;;  %v11992_v52 = vunpack.i.l.bf16 %v11991_v45 }
0x131e   :  { %v9469_v19 = vsel %vm518_vm2, %v9405_v43, %v11992_v52  ;;  %v9470_v37 = vsel %vm518_vm2, %v9406_v59, %v11993_v47 }
0x133c   :  { %v11996_v18 = vpop.permute.xlu1 %11995 }
0x133d   :  { %v11998_v62 = vunpack.i.h.bf16 %v11996_v18  ;;  %v11997_v34 = vunpack.i.l.bf16 %v11996_v18 }
0x133f   :  { %v9473_v44 = vsel %vm1803_vm6, %v9469_v19, %v11997_v34  ;;  %v9474_v13 = vsel %vm1803_vm6, %v9470_v37, %v11998_v62 }
0x1349   :  { %v12001_v46 = vpop.permute.xlu0 %12000 }
0x134a   :  { %v12003_v24 = vunpack.i.h.bf16 %v12001_v46  ;;  %v12002_v11 = vunpack.i.l.bf16 %v12001_v46 }
0x134c   :  { %v9472_v12 = vsel %vm518_vm2, %v9414_v40, %v12003_v24  ;;  %v9471_v28 = vsel %vm518_vm2, %v9413_v23, %v12002_v11 }
0x134d   :  { %v12006_v8 = vpop.permute.xlu0 %12005 }
0x134e   :  { %v12008_v2 = vunpack.i.h.bf16 %v12006_v8  ;;  %v12007_v57 = vunpack.i.l.bf16 %v12006_v8 }
0x1350   :  { %v9478_v54 = vsel %vm6258_vm7, %v9474_v13, %v12008_v2  ;;  %v9477_v31 = vsel %vm6258_vm7, %v9473_v44, %v12007_v57 }
0x1351   :  { %v9485_v41 = vpack.c.bf16 %v9478_v54, %v9477_v31 }
0x1353   :  { %11046 = vmatprep.mubr.msk.bf16.mxu1 %vm9506_vm8, %v9485_v41 }
0x1358   :  { %v12011_v55 = vpop.permute.xlu1 %12010 }
0x1359   :  { %v12013_v63 = vunpack.i.h.bf16 %v12011_v55  ;;  %v12012_v9 = vunpack.i.l.bf16 %v12011_v55 }
0x135b   :  { %v9475_v0 = vsel %vm1803_vm6, %v9471_v28, %v12012_v9  ;;  %v9476_v5 = vsel %vm1803_vm6, %v9472_v12, %v12013_v63 }
0x135d   :  { %v12016_v7 = vpop.permute.xlu1 %12015 }
0x135e   :  { %v12018_v29 = vunpack.i.h.bf16 %v12016_v7  ;;  %v12017_v4 = vunpack.i.l.bf16 %v12016_v7 }
0x1360   :  { %v9479_v33 = vsel %vm6258_vm7, %v9475_v0, %v12017_v4  ;;  %v9480_v17 = vsel %vm6258_vm7, %v9476_v5, %v12018_v29 }
0x1361   :  { %v9486_v1 = vpack.c.bf16 %v9480_v17, %v9479_v33 }
0x1363   :  { %11047 = vmatmul.mubr.msk.bf16.vlgmr.msra.gmra.mrb[244].mxu1 %vm9506_vm8, %v9486_v1 }
0x1436   :  { %v11048_v58 = vpop.f32.mrb[244].mxu1 }
0x1437   :  { %v9556_v16 = vadd.f32 %v11048_v58, %v10119_v27  ;;  %v9547_v21 = vpop.f32.mrb[245].mxu1 }
0x1438   :  { %v9548_v25 = vadd.f32 %v10119_v27, %v9547_v21  ;;  %v11049_v20 = vpop.f32.mrb[246].mxu1 }
0x1439   :  { %v9584_v35 = vsub.f32 0.0, %v9556_v16  ;;  %v9559_v61 = vadd.f32 %v11049_v20, %v10119_v27  ;;  %9570 = vrot.lane.b32.xlu0 %v9556_v16, %s12577_s28  ;;  %v9550_v56 = vpop.f32.mrb[247].mxu1 }
0x143a   :  { %v9582_v60 = vsub.f32 0.0, %v9548_v25  ;;  %v9551_v10 = vadd.f32 %v10119_v27, %v9550_v56 }
0x143b   :  { %v9590_v51 = vmul.f32 1.442695, %v9584_v35  ;;  %v9585_v38 = vsub.f32 0.0, %v9559_v61  ;;  %9572 = vrot.lane.b32.xlu1 %v9559_v61, %s12577_s28 }
0x143c   :  { %v9586_v30 = vmul.f32 1.442695, %v9582_v60  ;;  %v9583_v36 = vsub.f32 0.0, %v9551_v10 }
0x143d   :  { %12527 = vpow2.f32 %v9590_v51  ;;  %v9592_v42 = vmul.f32 1.442695, %v9585_v38  ;;  %9566 = vrot.lane.b32.xlu0 %v9548_v25, %s12577_s28 }
0x143e   :  { %12529 = vpow2.f32 %v9586_v30  ;;  %v9588_v53 = vmul.f32 1.442695, %v9583_v36 }
0x143f   :  { %12531 = vpow2.f32 %v9592_v42  ;;  %9568 = vrot.lane.b32.xlu1 %v9551_v10, %s12577_s28 }
0x1440   :  { %12533 = vpow2.f32 %v9588_v53 }
0x1447   :  { %v12528_v3 = vpop.eup %12527 }
0x1448   :  { %v12530_v50 = vpop.eup %12529  ;;  %v9596_v6 = vadd.f32 1.0, %v12528_v3 }
0x1449   :  { %v12532_v45 = vpop.eup %12531  ;;  %v9594_v49 = vadd.f32 1.0, %v12530_v50 }
0x144a   :  { %v12534_v15 = vpop.eup %12533  ;;  %v9597_v18 = vadd.f32 1.0, %v12532_v45 }
0x144b   :  { %12535 = vrcp.f32 %v9594_v49  ;;  %v9595_v39 = vadd.f32 1.0, %v12534_v15 }
0x144d   :  { %12537 = vrcp.f32 %v9595_v39 }
0x144e   :  { %12539 = vrcp.f32 %v9596_v6 }
0x144f   :  { %12541 = vrcp.f32 %v9597_v18 }
0x1455   :  { %v12536_v46 = vpop.eup %12535 }
0x1456   :  { %9610 = vrot.lane.b32.xlu0 %v12536_v46, %s12551_s16 }
0x1457   :  { %v12538_v47 = vpop.eup %12537 }
0x1458   :  { %9612 = vrot.lane.b32.xlu1 %v12538_v47, %s12551_s16  ;;  %v12540_v52 = vpop.eup %12539 }
0x1459   :  { %v12542_v62 = vpop.eup %12541 }
0x145a   :  { %9614 = vrot.lane.b32.xlu0 %v12540_v52, %s12551_s16 }
0x145c   :  { %9616 = vrot.lane.b32.xlu1 %v12542_v62, %s12551_s16  ;;  %s12578_s16 = smov 3  }
0x145d   :  { %s9887_s1 = sld [smem:[%s16885_s0 + %s12578_s16]]  }
0x145e   :  { %s9888_s16 = sld [smem:[%s16885_s0 + %s12548_s7]]   ;;  %s12584_s7 = smov 33  }
0x1463   :  { %v12030_v3 = vld [vmem:[%s9887_s1] sm:$0xff]   ;;  %s9917_s1 = sld [smem:[%s16885_s0 + %s12584_s7]]  }
0x1464   :  { %11050 = vmatprep.subr.bf16.mxu1 %v12030_v3 }
0x1465   :  { %11051 = vmatpush3.bf16.msra.mxu1 %v12030_v3 }
0x14ab   :  { %v9571_v34 = vpop.permute.xlu0 %9570 }
0x14ac   :  { %v9580_v13 = vadd.f32 %v9571_v34, %v9556_v16 }
0x14ad   :  { %v9573_v43 = vpop.permute.xlu1 %9572 }
0x14ae   :  { %v9581_v22 = vadd.f32 %v9573_v43, %v9559_v61 }
0x14af   :  { %v9567_v59 = vpop.permute.xlu0 %9566 }
0x14b0   :  { %v9578_v19 = vadd.f32 %v9567_v59, %v9548_v25 }
0x14b1   :  { %v9569_v8 = vpop.permute.xlu1 %9568 }
0x14b2   :  { %v9579_v2 = vadd.f32 %v9569_v8, %v9551_v10 }
0x14c8   :  { %v9611_v37 = vpop.permute.xlu0 %9610 }
0x14c9   :  { %v9622_v57 = vmul.f32 %v9611_v37, %v9578_v19 }
0x14ca   :  { %v9613_v44 = vpop.permute.xlu1 %9612 }
0x14cb   :  { %v9623_v54 = vmul.f32 %v9613_v44, %v9579_v2  ;;  %v9626_v31 = vsel %vm1803_vm6, %v9622_v57, 0.0 }
0x14cc   :  { %9627 = vadd.xlane.f32.xlu0 %v9626_v31  ;;  %v9615_v41 = vpop.permute.xlu0 %9614 }
0x14cd   :  { %v9624_v48 = vmul.f32 %v9615_v41, %v9580_v13  ;;  %v9629_v14 = vsel %vm1803_vm6, %v9623_v54, 0.0  ;;  %v9698_v41 = vld [vmem:[%s9891_s5] sm:$0xff] }
0x14ce   :  { %9630 = vadd.xlane.f32.xlu1 %v9629_v14  ;;  %v9617_v32 = vpop.permute.xlu1 %9616 }
0x14cf   :  { %v9625_v26 = vmul.f32 %v9617_v32, %v9581_v22  ;;  %v9632_v55 = vsel %vm1803_vm6, %v9624_v48, 0.0  ;;  %v9699_v22 = vld [vmem:[%s9891_s5 + $0x8] sm:$0xff]  ;;  %v9704_v32 = vld [vmem:[%s9892_s10] sm:$0xff] }
0x14d0   :  { %9633 = vadd.xlane.f32.xlu0 %v9632_v55 }
0x14d1   :  { %v9635_v24 = vsel %vm1803_vm6, %v9625_v26, 0.0 }
0x14d4   :  { %9636 = vadd.xlane.f32.xlu0 %v9635_v24 }
0x1559   :  { %v9628_v11 = vpop.xlane.xlu0 %9627 }
0x155b   :  { %v9631_v63 = vpop.xlane.xlu1 %9630 }
0x155c   :  { %v9638_v9 = vadd.f32 %v9631_v63, %v9628_v11 }
0x155d   :  { %v9634_v23 = vpop.xlane.xlu0 %9633 }
0x155e   :  { %v9639_v40 = vrot.slane %v9638_v9, 4 }
0x1560   :  { %v9640_v7 = vadd.f32 %v9639_v40, %v9638_v9 }
0x1561   :  { %v9637_v12 = vpop.xlane.xlu0 %9636 }
0x1562   :  { %v9641_v28 = vrot.slane %v9640_v7, 2  ;;  %v9645_v29 = vadd.f32 %v9637_v12, %v9634_v23 }
0x1564   :  { %v9642_v4 = vadd.f32 %v9641_v28, %v9640_v7  ;;  %v9646_v0 = vrot.slane %v9645_v29, 4 }
0x1566   :  { %v9643_v5 = vrot.slane %v9642_v4, 1  ;;  %v9647_v33 = vadd.f32 %v9646_v0, %v9645_v29 }
0x1568   :  { %v9644_v17 = vadd.f32 %v9643_v5, %v9642_v4  ;;  %v9648_v1 = vrot.slane %v9647_v33, 2  ;;  %v9786_v5 = vld [vmem:[%s9889_s13] sm:$0xf] }
0x1569   :  { %11070 = vmatprep.subr.msk.bf16.mxu0 %vm1579_vm4, %v9786_v5 }
0x156a   :  { %v9652_v27 = vmul.f32 0.00390625, %v9644_v17  ;;  %v9649_v58 = vadd.f32 %v9648_v1, %v9647_v33  ;;  %v9803_v33 = vsel %vm1579_vm4, %v9786_v5, 0  ;;  %v72_v17 = vstv %s9885_s18 }
0x156b   :  { %11057 = vmatpush3.bf16.msra.mxu0 %v9803_v33  ;;  %v74_v1 = vstv %s9886_s24  ;;  %73 = vst [vmem:[#allocation2] sm:$0x1] %v72_v17 }
0x156c   :  { %v9650_v16 = vrot.slane %v9649_v58, 1  ;;  %v9655_v21 = vsub.f32 %v9623_v54, %v9652_v27  ;;  %v9654_v25 = vsub.f32 %v9622_v57, %v9652_v27  ;;  %75 = vst [vmem:[#allocation3] sm:$0x1] %v74_v1  ;;  %v76_v27 = vstv %s9890_s26 }
0x156d   :  { %77 = vst [vmem:[#allocation4] sm:$0x1] %v76_v27 }
0x156e   :  { %v9651_v20 = vadd.f32 %v9650_v16, %v9649_v58  ;;  %v9659_v35 = vmul.f32 %v9655_v21, %v9655_v21  ;;  %v9658_v61 = vmul.f32 %v9654_v25, %v9654_v25  ;;  %v10124_v58 = vld [vmem:[%s9888_s16] ss:$0 sm:$0xff] }
0x1570   :  { %v9653_v56 = vmul.f32 0.00390625, %v9651_v20  ;;  %v9665_v60 = vsel %vm1803_vm6, %v9659_v35, 0.0  ;;  %v9662_v10 = vsel %vm1803_vm6, %v9658_v61, 0.0 }
0x1571   :  { %9666 = vadd.xlane.f32.xlu0 %v9665_v60  ;;  %9663 = vadd.xlane.f32.xlu1 %v9662_v10 }
0x1572   :  { %v9657_v51 = vsub.f32 %v9625_v26, %v9653_v56  ;;  %v9656_v38 = vsub.f32 %v9624_v48, %v9653_v56  ;;  %v9705_v26 = vld [vmem:[%s9892_s10 + $0x8] sm:$0xff] }
0x1574   :  { %v9661_v30 = vmul.f32 %v9657_v51, %v9657_v51  ;;  %v9660_v36 = vmul.f32 %v9656_v38, %v9656_v38 }
0x1576   :  { %v9671_v42 = vsel %vm1803_vm6, %v9661_v30, 0.0  ;;  %v9668_v53 = vsel %vm1803_vm6, %v9660_v36, 0.0 }
0x1577   :  { %9672 = vadd.xlane.f32.xlu0 %v9671_v42  ;;  %9669 = vadd.xlane.f32.xlu1 %v9668_v53  ;;  %v10128_v53 = vld [vmem:[#allocation4] ss:$0 sm:$0xff] }
0x15fe   :  { %v9664_v50 = vpop.xlane.xlu1 %9663  ;;  %v9667_v45 = vpop.xlane.xlu0 %9666 }
0x15ff   :  { %v9674_v49 = vadd.f32 %v9667_v45, %v9664_v50  ;;  %v10131_v50 = vld [vmem:[#allocation2] ss:$0 sm:$0xff] }
0x1601   :  { %v9675_v15 = vrot.slane %v9674_v49, 4 }
0x1603   :  { %v9676_v6 = vadd.f32 %v9675_v15, %v9674_v49  ;;  %v10132_v15 = vld [vmem:[#allocation3] ss:$0 sm:$0xff] }
0x1604   :  { %v9670_v39 = vpop.xlane.xlu1 %9669  ;;  %v9673_v18 = vpop.xlane.xlu0 %9672 }
0x1605   :  { %v9677_v46 = vrot.slane %v9676_v6, 2  ;;  %v9681_v47 = vadd.f32 %v9673_v18, %v9670_v39 }
0x1607   :  { %v9678_v52 = vadd.f32 %v9677_v46, %v9676_v6  ;;  %v9682_v62 = vrot.slane %v9681_v47, 4 }
0x1609   :  { %v9679_v34 = vrot.slane %v9678_v52, 1  ;;  %v9683_v43 = vadd.f32 %v9682_v62, %v9681_v47 }
0x160b   :  { %v9680_v59 = vadd.f32 %v9679_v34, %v9678_v52  ;;  %v9684_v8 = vrot.slane %v9683_v43, 2 }
0x160d   :  { %v9688_v19 = vmul.f32 0.00390625, %v9680_v59  ;;  %v9685_v37 = vadd.f32 %v9684_v8, %v9683_v43 }
0x160f   :  { %v9690_v2 = vadd.f32 1e-05, %v9688_v19  ;;  %v9686_v57 = vrot.slane %v9685_v37, 1 }
0x1611   :  { %12543 = vrsqrt.f32 %v9690_v2  ;;  %v9687_v44 = vadd.f32 %v9686_v57, %v9685_v37 }
0x1613   :  { %v9689_v13 = vmul.f32 0.00390625, %v9687_v44 }
0x1615   :  { %v9691_v54 = vadd.f32 1e-05, %v9689_v13 }
0x1617   :  { %12545 = vrsqrt.f32 %v9691_v54 }
0x161b   :  { %v12544_v31 = vpop.eup %12543 }
0x161c   :  { %v9694_v48 = vmul.f32 %v12544_v31, %v9654_v25  ;;  %v9695_v14 = vmul.f32 %v12544_v31, %v9655_v21 }
0x161e   :  { %v9700_v55 = vmul.f32 %v9698_v41, %v9694_v48  ;;  %v9701_v24 = vmul.f32 %v9699_v22, %v9695_v14 }
0x1620   :  { %v9706_v11 = vadd.f32 %v9704_v32, %v9700_v55  ;;  %v9707_v63 = vadd.f32 %v9705_v26, %v9701_v24 }
0x1621   :  { %v12546_v9 = vpop.eup %12545 }
0x1622   :  { %v9696_v23 = vmul.f32 %v12546_v9, %v9656_v38  ;;  %v9697_v40 = vmul.f32 %v12546_v9, %v9657_v51  ;;  %v9712_v7 = vpack.c.bf16 %v9707_v63, %v9706_v11 }
0x1624   :  { %v9702_v12 = vmul.f32 %v9698_v41, %v9696_v23  ;;  %v9703_v28 = vmul.f32 %v9699_v22, %v9697_v40  ;;  %11052 = vmatprep.mubr.msk.bf16.mxu1 %vm1803_vm6, %v9712_v7 }
0x1626   :  { %v9708_v29 = vadd.f32 %v9704_v32, %v9702_v12  ;;  %v9709_v4 = vadd.f32 %v9705_v26, %v9703_v28 }
0x1628   :  { %v9713_v0 = vpack.c.bf16 %v9709_v4, %v9708_v29 }
0x162a   :  { %11053 = vmatmul.mubr.msk.bf16.vlgmr.msra.gmra.mrb[248].mxu1 %vm1803_vm6, %v9713_v0 }
0x16fd   :  { %v11054_v16 = vpop.f32.mrb[248].mxu1 }
0x16fe   :  { %v9776_v21 = vadd.f32 %v11054_v16, %v10124_v58  ;;  %v9767_v25 = vpop.f32.mrb[249].mxu1 }
0x16ff   :  { %v9768_v20 = vadd.f32 %v10124_v58, %v9767_v25  ;;  %v11055_v35 = vpop.f32.mrb[250].mxu1 }
0x1700   :  { %v9779_v61 = vadd.f32 %v11055_v35, %v10124_v58  ;;  %v9770_v56 = vpop.f32.mrb[251].mxu1  ;;  %v9784_v10 = vmax.f32 %v9776_v21, 0.0 }
0x1701   :  { %v9771_v60 = vadd.f32 %v10124_v58, %v9770_v56  ;;  %v9782_v38 = vmax.f32 %v9768_v20, 0.0 }
0x1702   :  { %v9785_v51 = vmax.f32 %v9779_v61, 0.0 }
0x1703   :  { %v9783_v30 = vmax.f32 %v9771_v60, 0.0 }
0x1704   :  { %v9788_v36 = vpack.c.bf16 %v9785_v51, %v9784_v10 }
0x1705   :  { %v9787_v42 = vpack.c.bf16 %v9783_v30, %v9782_v38 }
0x1707   :  { %11058 = vmatprep.mubr.msk.bf16.mxu0 %vm518_vm2, %v9787_v42 }
0x1708   :  { %11059 = vmatmul.mubr.msk.bf16.vlgmr.msra.gmra.mrb[252].mxu0 %vm518_vm2, %v9788_v36 }
0x17db   :  { %v11060_v3 = vpop.f32.mrb[252].mxu0 }
0x17dc   :  { %v9848_v45 = vadd.f32 %v11060_v3, %v10128_v53  ;;  %v9839_v49 = vpop.f32.mrb[253].mxu0 }
0x17dd   :  { %v9840_v6 = vadd.f32 %v10128_v53, %v9839_v49  ;;  %v11061_v39 = vpop.f32.mrb[254].mxu0 }
0x17de   :  { %v9863_v18 = vmul.f32 %v10131_v50, %v9848_v45  ;;  %v9851_v46 = vadd.f32 %v11061_v39, %v10128_v53  ;;  %v9842_v47 = vpop.f32.mrb[255].mxu0 }
0x17df   :  { %v9861_v52 = vmul.f32 %v10131_v50, %v9840_v6  ;;  %v9843_v62 = vadd.f32 %v10128_v53, %v9842_v47 }
0x17e0   :  { %v9874_v34 = vadd.f32 %v10132_v15, %v9863_v18  ;;  %v9864_v43 = vmul.f32 %v10131_v50, %v9851_v46 }
0x17e1   :  { %v9872_v59 = vadd.f32 %v10132_v15, %v9861_v52  ;;  %v9862_v8 = vmul.f32 %v10131_v50, %v9843_v62 }
0x17e2   :  { %9879 = vst.msk [vmem:[%s9917_s1 + $0x10] sm:$0xff] %vm9876_vm9, %v9874_v34  ;;  %v9875_v19 = vadd.f32 %v10132_v15, %v9864_v43 }
0x17e3   :  { %9877 = vst.msk [vmem:[%s9917_s1] sm:$0xff] %vm9876_vm9, %v9872_v59  ;;  %v9873_v37 = vadd.f32 %v10132_v15, %v9862_v8 }
0x17e4   :  { %9880 = vst.msk [vmem:[%s9917_s1 + $0x18] sm:$0xff] %vm9876_vm9, %v9875_v19 }
0x17e5   :  { %9878 = vst.msk [vmem:[%s9917_s1 + $0x8] sm:$0xff] %vm9876_vm9, %v9873_v37 }

</bundles_post_ra>
